<compile_context>
chip_gen: v7x
topology: tpu7x:2x2x1
jax: 0.10.0
libtpu: 0.0.40
codegen_flags: <defaults>
</compile_context>

<pallas_src>
import functools

import numpy as np

import jax
import jax.numpy as jnp
from jax.experimental import pallas as pl
from jax.experimental.pallas import tpu as pltpu


# ----------------------------------------------------------------------------
# Static geometry.  Input spatial size 100x100 is what Linear(1600) implies
# (100 -> 24 -> 11 -> 5 spatial, 64 * 5 * 5 = 1600).
# ----------------------------------------------------------------------------
_IN_H = _IN_W = 100
_CELL = 8                          # conv1 s2d cell = stride1 * stride2
_GRID = 13                         # ceil(104 / 8) cells per side
_CS1 = _CELL * _CELL * 4           # 256 slab channels per cell
_R_IN = 184                        # slab rows (169 real cells + zero pad, 8-aligned)
_M1 = 168                          # conv1 output rows (needs >= 155)
_M2 = 152                          # conv2 output rows (needs >= 141)
_M3 = 120                          # dense-conv3 rows  (needs >= 113)
_TAPS2 = (0, 1, _GRID, _GRID + 1)                                    # 2x2 cell taps
_TAPS3 = tuple(a * _GRID + b for a in range(3) for b in range(3))    # 3x3 cell taps
_NSEL = 32                         # selected conv3 rows (25 real, padded)
_KFC1 = _NSEL * 64                 # 2048 = lane-padded fc1 contraction dim
_NOUT = 128                        # lane-padded fc3 output width


# ----------------------------------------------------------------------------
# The fused kernel: whole forward pass for one sample per grid step.
# ----------------------------------------------------------------------------
def _dqn_kernel(x_ref, w1_ref, b1_ref, w2_ref, b2_ref, w3_ref, b3_ref,
                sel_ref, fw1_ref, fb1_ref, fw2_ref, fb2_ref, fw3_ref, fb3_ref,
                o_ref):
    def conv_gemm(src, shifts, m_out, w_ref, b_ref):
        # K-concatenated GEMM: one MXU matmul per conv layer.  Halo taps are
        # realized by shifting the *bf16 LHS* with static row windows and
        # concatenating along lanes (MXU-native K), then fused bias + ReLU.
        lhs = jnp.concatenate([src[d:d + m_out, :] for d in shifts], axis=1)
        acc = jnp.dot(lhs, w_ref[...], preferred_element_type=jnp.float32)
        return jnp.maximum(acc + b_ref[...], 0.0).astype(jnp.bfloat16)

    x = x_ref[...]                                        # (184, 256) bf16 slab
    # conv1: rows = 13x13 cell grid, lanes = 2x2 output pixels x 32 channels.
    y1 = conv_gemm(x, _TAPS2, _M1, w1_ref, b1_ref)        # (168, 128)
    # conv2: consumes y1 rows directly (they ARE its s2d slab); lanes = 64 ch.
    y2 = conv_gemm(y1, _TAPS2, _M2, w2_ref, b2_ref)       # (152, 64)
    # conv3 evaluated densely (stride 1) on the conv2 grid.
    d3 = conv_gemm(y2, _TAPS3, _M3, w3_ref, b3_ref)       # (120, 64)

    # Pick the 25 true stride-2 conv3 positions with a 0/1 selection matmul.
    z3 = jnp.dot(sel_ref[...], d3, preferred_element_type=jnp.float32)  # (32, 64)
    z3 = z3.astype(jnp.bfloat16)

    # Flatten (32, 64) -> (1, 2048) without an unsupported reshape:
    # lane-tile 32x, mask with iota, reduce over sublanes.  fc1 rows are
    # pre-permuted (and zero-padded) to exactly this lane order.
    t = jnp.concatenate([z3] * _NSEL, axis=1).astype(jnp.float32)       # (32, 2048)
    rows = jax.lax.broadcasted_iota(jnp.int32, (_NSEL, _KFC1), 0)
    lanes = jax.lax.broadcasted_iota(jnp.int32, (_NSEL, _KFC1), 1)
    mask = jnp.logical_and(lanes >= rows * 64, lanes < rows * 64 + 64)
    xf = jnp.sum(jnp.where(mask, t, 0.0), axis=0, keepdims=True)        # (1, 2048)
    xf = xf.astype(jnp.bfloat16)

    # Fused fc1 -> fc2 -> fc3, all weights resident in VMEM.
    h = jnp.dot(xf, fw1_ref[...], preferred_element_type=jnp.float32) + fb1_ref[...]
    h = jnp.maximum(h, 0.0).astype(jnp.bfloat16)
    # TODO(synk): nn.Dropout(0.2) is identity here (eval-mode semantics).
    h = jnp.dot(h, fw2_ref[...], preferred_element_type=jnp.float32) + fb2_ref[...]
    h = jnp.maximum(h, 0.0).astype(jnp.bfloat16)
    out = jnp.dot(h, fw3_ref[...], preferred_element_type=jnp.float32) + fb3_ref[...]
    o_ref[...] = out                                      # (1, 128) lane-dense f32


def _const_spec(shape):
    return pl.BlockSpec(shape, lambda b: (0,) * len(shape))


def _make_slab(x_nchw):
    """NCHW f32 input -> (B, 184, 256) bf16 space-to-depth slab (8x8 cells).

    Pure byte relayout (same bytes as the input) done once in XLA.
    """
    B = x_nchw.shape[0]
    x = jnp.transpose(x_nchw, (0, 2, 3, 1)).astype(jnp.bfloat16)        # NHWC
    x = jnp.pad(x, ((0, 0), (0, _GRID * _CELL - _IN_H),
                    (0, _GRID * _CELL - _IN_W), (0, 0)))                # 104x104
    x = x.reshape(B, _GRID, _CELL, _GRID, _CELL, 4)
    x = jnp.transpose(x, (0, 1, 3, 2, 4, 5)).reshape(B, _GRID * _GRID, _CS1)
    return jnp.pad(x, ((0, 0), (0, _R_IN - _GRID * _GRID), (0, 0)))


@functools.partial(jax.jit, static_argnames=("action_dim",))
def dqn_forward(kp, x_nchw, *, action_dim):
    xs = _make_slab(x_nchw)
    B = xs.shape[0]
    out = pl.pallas_call(
        _dqn_kernel,
        out_shape=jax.ShapeDtypeStruct((B, 1, _NOUT), jnp.float32),
        grid=(B,),
        in_specs=[
            pl.BlockSpec((None, _R_IN, _CS1), lambda b: (b, 0, 0)),
            _const_spec(kp["w1"].shape), _const_spec(kp["b1"].shape),
            _const_spec(kp["w2"].shape), _const_spec(kp["b2"].shape),
            _const_spec(kp["w3"].shape), _const_spec(kp["b3"].shape),
            _const_spec(kp["sel"].shape),
            _const_spec(kp["fw1"].shape), _const_spec(kp["fb1"].shape),
            _const_spec(kp["fw2"].shape), _const_spec(kp["fb2"].shape),
            _const_spec(kp["fw3"].shape), _const_spec(kp["fb3"].shape),
        ],
        out_specs=pl.BlockSpec((None, 1, _NOUT), lambda b: (b, 0, 0)),
        compiler_params=pltpu.CompilerParams(
            dimension_semantics=("parallel",),
            vmem_limit_bytes=32 * 1024 * 1024,
        ),
    )(xs, kp["w1"], kp["b1"], kp["w2"], kp["b2"], kp["w3"], kp["b3"],
      kp["sel"], kp["fw1"], kp["fb1"], kp["fw2"], kp["fb2"],
      kp["fw3"], kp["fb3"])
    return out.reshape(B, _NOUT)[:, :action_dim]


# ----------------------------------------------------------------------------
# Parameters (PyTorch layout) + conversion into the kernel's layouts.
# ----------------------------------------------------------------------------
def init_params(key, action_dim):
    ks = jax.random.split(key, 12)

    def w(k, shape, fan_in):
        return jax.random.normal(k, shape, jnp.float32) * (1.0 / jnp.sqrt(fan_in))

    return {
        "conv1_w": w(ks[0], (32, 4, 8, 8), 4 * 8 * 8),
        "conv1_b": w(ks[1], (32,), 4 * 8 * 8),
        "conv2_w": w(ks[2], (64, 32, 4, 4), 32 * 4 * 4),
        "conv2_b": w(ks[3], (64,), 32 * 4 * 4),
        "conv3_w": w(ks[4], (64, 64, 3, 3), 64 * 3 * 3),
        "conv3_b": w(ks[5], (64,), 64 * 3 * 3),
        "fc1_w": w(ks[6], (1600, 512), 1600),
        "fc1_b": w(ks[7], (512,), 1600),
        "fc2_w": w(ks[8], (512, 512), 512),
        "fc2_b": w(ks[9], (512,), 512),
        "fc3_w": w(ks[10], (512, action_dim), 512),
        "fc3_b": w(ks[11], (action_dim,), 512),
    }


def prepare_params(params, action_dim):
    assert action_dim <= _NOUT
    k1 = np.asarray(params["conv1_w"], np.float32)      # (32, 4, 8, 8)
    k2 = np.asarray(params["conv2_w"], np.float32)      # (64, 32, 4, 4)
    k3 = np.asarray(params["conv3_w"], np.float32)      # (64, 64, 3, 3)

    # conv1: 8x8 input cell -> 2x2 output pixels per row; taps = 4 cell shifts.
    # W1cat[(a*2+b)*256 + (u*8+v)*4 + ci, (p*2+q)*32 + o1] = K1[o1, ci, u', v']
    # with (a,u) = divmod(4p + u', 8), (b,v) = divmod(4q + v', 8).
    w1 = np.zeros((4, _CS1, 128), np.float32)
    for p in range(2):
        for q in range(2):
            for uk in range(8):
                for vk in range(8):
                    a, u = divmod(4 * p + uk, 8)
                    b, v = divmod(4 * q + vk, 8)
                    w1[a * 2 + b,
                       (u * 8 + v) * 4:(u * 8 + v) * 4 + 4,
                       (p * 2 + q) * 32:(p * 2 + q) * 32 + 32] = k1[:, :, uk, vk].T
    w1cat = w1.reshape(4 * _CS1, 128)
    b1 = np.tile(np.asarray(params["conv1_b"], np.float32), 4).reshape(1, 128)

    # conv2 consumes conv1's (2x2 pixel, 32 ch) rows; taps = 4 cell shifts.
    w2 = np.zeros((4, 128, 64), np.float32)
    for a in range(2):
        for b in range(2):
            for p in range(2):
                for q in range(2):
                    w2[a * 2 + b, (p * 2 + q) * 32:(p * 2 + q) * 32 + 32, :] = \
                        k2[:, :, 2 * a + p, 2 * b + q].T
    w2cat = w2.reshape(4 * 128, 64)
    b2 = np.asarray(params["conv2_b"], np.float32).reshape(1, 64)

    # conv3 evaluated densely (stride 1) on the conv2 grid; 9 taps.
    w3 = np.zeros((9, 64, 64), np.float32)
    for a in range(3):
        for b in range(3):
            w3[a * 3 + b] = k3[:, :, a, b].T
    w3cat = w3.reshape(9 * 64, 64)
    b3 = np.asarray(params["conv3_b"], np.float32).reshape(1, 64)

    # Selection: true conv3 outputs sit at dense-grid rows 26*y3 + 2*x3.
    sel = np.zeros((_NSEL, _M3), np.float32)
    for r in range(25):
        y3, x3 = divmod(r, 5)
        sel[r, 2 * _GRID * y3 + 2 * x3] = 1.0

    # fc1 rows: permute torch NCHW-flatten order (o3*25 + y3*5 + x3) to the
    # kernel's lane order (r*64 + o3), zero-padded to K = 2048.
    fc1 = np.asarray(params["fc1_w"], np.float32)        # (1600, 512)
    src = (np.arange(1600) % 64) * 25 + (np.arange(1600) // 64)
    fw1 = np.zeros((_KFC1, 512), np.float32)
    fw1[:1600] = fc1[src]
    fb1 = np.asarray(params["fc1_b"], np.float32).reshape(1, 512)

    fw2 = np.asarray(params["fc2_w"], np.float32)
    fb2 = np.asarray(params["fc2_b"], np.float32).reshape(1, 512)

    fw3 = np.zeros((512, _NOUT), np.float32)
    fw3[:, :action_dim] = np.asarray(params["fc3_w"], np.float32)
    fb3 = np.zeros((1, _NOUT), np.float32)
    fb3[0, :action_dim] = np.asarray(params["fc3_b"], np.float32)

    bf = lambda a: jnp.asarray(a, jnp.bfloat16)
    f32 = lambda a: jnp.asarray(a, jnp.float32)
    return {
        "w1": bf(w1cat), "b1": f32(b1),
        "w2": bf(w2cat), "b2": f32(b2),
        "w3": bf(w3cat), "b3": f32(b3),
        "sel": bf(sel),
        "fw1": bf(fw1), "fb1": f32(fb1),
        "fw2": bf(fw2), "fb2": f32(fb2),
        "fw3": bf(fw3), "fb3": f32(fb3),
    }


# ----------------------------------------------------------------------------
# Plain-JAX f32 reference (PyTorch semantics) used for validation only.
# ----------------------------------------------------------------------------
def dqn_reference(params, x_nchw):
    dn = ("NCHW", "OIHW", "NCHW")
    x = x_nchw
    for i, s in ((1, 4), (2, 2), (3, 2)):
        x = jax.lax.conv_general_dilated(x, params[f"conv{i}_w"], (s, s), "VALID",
                                         dimension_numbers=dn)
        x = jax.nn.relu(x + params[f"conv{i}_b"][None, :, None, None])
    x = x.reshape(x.shape[0], -1)
    x = jax.nn.relu(x @ params["fc1_w"] + params["fc1_b"])
    x = jax.nn.relu(x @ params["fc2_w"] + params["fc2_b"])
    return x @ params["fc3_w"] + params["fc3_b"]


if __name__ == "__main__":
    action_dim = 6
    batch = 2

    key = jax.random.PRNGKey(0)
    k_params, k_x = jax.random.split(key)

    params = init_params(k_params, action_dim)
    kparams = prepare_params(params, action_dim)

    x = jax.random.normal(k_x, (batch, 4, _IN_H, _IN_W), jnp.float32)

    out = jax.block_until_ready(dqn_forward(kparams, x, action_dim=action_dim))
    assert out.shape == (batch, action_dim), out.shape
    assert out.dtype == jnp.float32, out.dtype

    # Validate the bf16 Pallas path against the f32 reference (bf16 tolerance).
    ref = jax.block_until_ready(dqn_reference(params, x))
    np.testing.assert_allclose(np.asarray(out), np.asarray(ref), atol=0.2, rtol=0.1)

    print("KERNEL_OK")
</pallas_src>

<mosaic_0001>
module attributes {stable_mosaic.version = 11 : i64} {
  func.func @_dqn_kernel(%arg0: i32, %arg1: memref<1x184x256xbf16, #tpu.memory_space<vmem>>, %arg2: memref<1024x128xbf16, #tpu.memory_space<vmem>>, %arg3: memref<1x128xf32, #tpu.memory_space<vmem>>, %arg4: memref<512x64xbf16, #tpu.memory_space<vmem>>, %arg5: memref<1x64xf32, #tpu.memory_space<vmem>>, %arg6: memref<576x64xbf16, #tpu.memory_space<vmem>>, %arg7: memref<1x64xf32, #tpu.memory_space<vmem>>, %arg8: memref<32x120xbf16, #tpu.memory_space<vmem>>, %arg9: memref<2048x512xbf16, #tpu.memory_space<vmem>>, %arg10: memref<1x512xf32, #tpu.memory_space<vmem>>, %arg11: memref<512x512xbf16, #tpu.memory_space<vmem>>, %arg12: memref<1x512xf32, #tpu.memory_space<vmem>>, %arg13: memref<512x128xbf16, #tpu.memory_space<vmem>>, %arg14: memref<1x128xf32, #tpu.memory_space<vmem>>, %arg15: memref<1x1x128xf32, #tpu.memory_space<vmem>>) attributes {dimension_semantics = [#tpu.dimension_semantics<parallel>], iteration_bounds = array<i64: 2>, scalar_prefetch = 0 : i64, scratch_operands = 0 : i64, tpu.core_type = #tpu.core_type<tc>, window_params = [{transform_indices = @transform_0, window_bounds = array<i64: 1, 184, 256>}, {pipeline_mode = #tpu.pipeline_mode<synchronous>, transform_indices = @transform_1, window_bounds = array<i64: 1024, 128>}, {pipeline_mode = #tpu.pipeline_mode<synchronous>, transform_indices = @transform_2, window_bounds = array<i64: 1, 128>}, {pipeline_mode = #tpu.pipeline_mode<synchronous>, transform_indices = @transform_3, window_bounds = array<i64: 512, 64>}, {pipeline_mode = #tpu.pipeline_mode<synchronous>, transform_indices = @transform_4, window_bounds = array<i64: 1, 64>}, {pipeline_mode = #tpu.pipeline_mode<synchronous>, transform_indices = @transform_5, window_bounds = array<i64: 576, 64>}, {pipeline_mode = #tpu.pipeline_mode<synchronous>, transform_indices = @transform_6, window_bounds = array<i64: 1, 64>}, {pipeline_mode = #tpu.pipeline_mode<synchronous>, transform_indices = @transform_7, window_bounds = array<i64: 32, 120>}, {pipeline_mode = #tpu.pipeline_mode<synchronous>, transform_indices = @transform_8, window_bounds = array<i64: 2048, 512>}, {pipeline_mode = #tpu.pipeline_mode<synchronous>, transform_indices = @transform_9, window_bounds = array<i64: 1, 512>}, {pipeline_mode = #tpu.pipeline_mode<synchronous>, transform_indices = @transform_10, window_bounds = array<i64: 512, 512>}, {pipeline_mode = #tpu.pipeline_mode<synchronous>, transform_indices = @transform_11, window_bounds = array<i64: 1, 512>}, {pipeline_mode = #tpu.pipeline_mode<synchronous>, transform_indices = @transform_12, window_bounds = array<i64: 512, 128>}, {pipeline_mode = #tpu.pipeline_mode<synchronous>, transform_indices = @transform_13, window_bounds = array<i64: 1, 128>}, {transform_indices = @transform_14, window_bounds = array<i64: 1, 1, 128>}]} {
    %c0 = arith.constant 0 : index
    %c0_0 = arith.constant 0 : index
    %c0_1 = arith.constant 0 : index
    %0 = vector.load %arg1[%c0, %c0_0, %c0_1] : memref<1x184x256xbf16, #tpu.memory_space<vmem>>, vector<1x184x256xbf16>
    %1 = vector.shape_cast %0 : vector<1x184x256xbf16> to vector<184x256xbf16>
    %2 = vector.extract_strided_slice %1 {offsets = [0, 0], sizes = [168, 256], strides = [1, 1]} : vector<184x256xbf16> to vector<168x256xbf16>
    %3 = vector.extract_strided_slice %1 {offsets = [1, 0], sizes = [168, 256], strides = [1, 1]} : vector<184x256xbf16> to vector<168x256xbf16>
    %4 = vector.extract_strided_slice %1 {offsets = [13, 0], sizes = [168, 256], strides = [1, 1]} : vector<184x256xbf16> to vector<168x256xbf16>
    %5 = vector.extract_strided_slice %1 {offsets = [14, 0], sizes = [168, 256], strides = [1, 1]} : vector<184x256xbf16> to vector<168x256xbf16>
    %6 = tpu.concatenate %2, %3, %4, %5 in 1 : vector<168x256xbf16>, vector<168x256xbf16>, vector<168x256xbf16>, vector<168x256xbf16> -> vector<168x1024xbf16>
    %c0_2 = arith.constant 0 : index
    %c0_3 = arith.constant 0 : index
    %7 = vector.load %arg2[%c0_2, %c0_3] : memref<1024x128xbf16, #tpu.memory_space<vmem>>, vector<1024x128xbf16>
    %cst = arith.constant dense<0.000000e+00> : vector<168x128xf32>
    %8 = tpu.matmul %6, %7, %cst {dimension_numbers = #tpu.dot_dimension_numbers<[1], [0], [0], [1], [0, 0, 1, 1], [], []>} : vector<168x1024xbf16>, vector<1024x128xbf16>, vector<168x128xf32> -> vector<168x128xf32>
    %c0_4 = arith.constant 0 : index
    %c0_5 = arith.constant 0 : index
    %9 = vector.load %arg3[%c0_4, %c0_5] : memref<1x128xf32, #tpu.memory_space<vmem>>, vector<1x128xf32>
    %10 = vector.broadcast %9 : vector<1x128xf32> to vector<168x128xf32>
    %11 = arith.addf %8, %10 : vector<168x128xf32>
    %cst_6 = arith.constant 0.000000e+00 : f32
    %12 = vector.broadcast %cst_6 : f32 to vector<168x128xf32>
    %13 = arith.maximumf %11, %12 : vector<168x128xf32>
    %14 = arith.truncf %13 : vector<168x128xf32> to vector<168x128xbf16>
    %15 = vector.extract_strided_slice %14 {offsets = [0, 0], sizes = [152, 128], strides = [1, 1]} : vector<168x128xbf16> to vector<152x128xbf16>
    %16 = vector.extract_strided_slice %14 {offsets = [1, 0], sizes = [152, 128], strides = [1, 1]} : vector<168x128xbf16> to vector<152x128xbf16>
    %17 = vector.extract_strided_slice %14 {offsets = [13, 0], sizes = [152, 128], strides = [1, 1]} : vector<168x128xbf16> to vector<152x128xbf16>
    %18 = vector.extract_strided_slice %14 {offsets = [14, 0], sizes = [152, 128], strides = [1, 1]} : vector<168x128xbf16> to vector<152x128xbf16>
    %19 = tpu.concatenate %15, %16, %17, %18 in 1 : vector<152x128xbf16>, vector<152x128xbf16>, vector<152x128xbf16>, vector<152x128xbf16> -> vector<152x512xbf16>
    %c0_7 = arith.constant 0 : index
    %c0_8 = arith.constant 0 : index
    %20 = vector.load %arg4[%c0_7, %c0_8] : memref<512x64xbf16, #tpu.memory_space<vmem>>, vector<512x64xbf16>
    %cst_9 = arith.constant dense<0.000000e+00> : vector<152x64xf32>
    %21 = tpu.matmul %19, %20, %cst_9 {dimension_numbers = #tpu.dot_dimension_numbers<[1], [0], [0], [1], [0, 0, 1, 1], [], []>} : vector<152x512xbf16>, vector<512x64xbf16>, vector<152x64xf32> -> vector<152x64xf32>
    %c0_10 = arith.constant 0 : index
    %c0_11 = arith.constant 0 : index
    %22 = vector.load %arg5[%c0_10, %c0_11] : memref<1x64xf32, #tpu.memory_space<vmem>>, vector<1x64xf32>
    %23 = vector.broadcast %22 : vector<1x64xf32> to vector<152x64xf32>
    %24 = arith.addf %21, %23 : vector<152x64xf32>
    %cst_12 = arith.constant 0.000000e+00 : f32
    %25 = vector.broadcast %cst_12 : f32 to vector<152x64xf32>
    %26 = arith.maximumf %24, %25 : vector<152x64xf32>
    %27 = arith.truncf %26 : vector<152x64xf32> to vector<152x64xbf16>
    %28 = vector.extract_strided_slice %27 {offsets = [0, 0], sizes = [120, 64], strides = [1, 1]} : vector<152x64xbf16> to vector<120x64xbf16>
    %29 = vector.extract_strided_slice %27 {offsets = [1, 0], sizes = [120, 64], strides = [1, 1]} : vector<152x64xbf16> to vector<120x64xbf16>
    %30 = vector.extract_strided_slice %27 {offsets = [2, 0], sizes = [120, 64], strides = [1, 1]} : vector<152x64xbf16> to vector<120x64xbf16>
    %31 = vector.extract_strided_slice %27 {offsets = [13, 0], sizes = [120, 64], strides = [1, 1]} : vector<152x64xbf16> to vector<120x64xbf16>
    %32 = vector.extract_strided_slice %27 {offsets = [14, 0], sizes = [120, 64], strides = [1, 1]} : vector<152x64xbf16> to vector<120x64xbf16>
    %33 = vector.extract_strided_slice %27 {offsets = [15, 0], sizes = [120, 64], strides = [1, 1]} : vector<152x64xbf16> to vector<120x64xbf16>
    %34 = vector.extract_strided_slice %27 {offsets = [26, 0], sizes = [120, 64], strides = [1, 1]} : vector<152x64xbf16> to vector<120x64xbf16>
    %35 = vector.extract_strided_slice %27 {offsets = [27, 0], sizes = [120, 64], strides = [1, 1]} : vector<152x64xbf16> to vector<120x64xbf16>
    %36 = vector.extract_strided_slice %27 {offsets = [28, 0], sizes = [120, 64], strides = [1, 1]} : vector<152x64xbf16> to vector<120x64xbf16>
    %37 = tpu.concatenate %28, %29, %30, %31, %32, %33, %34, %35, %36 in 1 : vector<120x64xbf16>, vector<120x64xbf16>, vector<120x64xbf16>, vector<120x64xbf16>, vector<120x64xbf16>, vector<120x64xbf16>, vector<120x64xbf16>, vector<120x64xbf16>, vector<120x64xbf16> -> vector<120x576xbf16>
    %c0_13 = arith.constant 0 : index
    %c0_14 = arith.constant 0 : index
    %38 = vector.load %arg6[%c0_13, %c0_14] : memref<576x64xbf16, #tpu.memory_space<vmem>>, vector<576x64xbf16>
    %cst_15 = arith.constant dense<0.000000e+00> : vector<120x64xf32>
    %39 = tpu.matmul %37, %38, %cst_15 {dimension_numbers = #tpu.dot_dimension_numbers<[1], [0], [0], [1], [0, 0, 1, 1], [], []>} : vector<120x576xbf16>, vector<576x64xbf16>, vector<120x64xf32> -> vector<120x64xf32>
    %c0_16 = arith.constant 0 : index
    %c0_17 = arith.constant 0 : index
    %40 = vector.load %arg7[%c0_16, %c0_17] : memref<1x64xf32, #tpu.memory_space<vmem>>, vector<1x64xf32>
    %41 = vector.broadcast %40 : vector<1x64xf32> to vector<120x64xf32>
    %42 = arith.addf %39, %41 : vector<120x64xf32>
    %cst_18 = arith.constant 0.000000e+00 : f32
    %43 = vector.broadcast %cst_18 : f32 to vector<120x64xf32>
    %44 = arith.maximumf %42, %43 : vector<120x64xf32>
    %45 = arith.truncf %44 : vector<120x64xf32> to vector<120x64xbf16>
    %c0_19 = arith.constant 0 : index
    %c0_20 = arith.constant 0 : index
    %46 = vector.load %arg8[%c0_19, %c0_20] : memref<32x120xbf16, #tpu.memory_space<vmem>>, vector<32x120xbf16>
    %cst_21 = arith.constant dense<0.000000e+00> : vector<32x64xf32>
    %47 = tpu.matmul %46, %45, %cst_21 {dimension_numbers = #tpu.dot_dimension_numbers<[1], [0], [0], [1], [0, 0, 1, 1], [], []>} : vector<32x120xbf16>, vector<120x64xbf16>, vector<32x64xf32> -> vector<32x64xf32>
    %48 = arith.truncf %47 : vector<32x64xf32> to vector<32x64xbf16>
    %49 = tpu.concatenate %48, %48, %48, %48, %48, %48, %48, %48, %48, %48, %48, %48, %48, %48, %48, %48 in 1 : vector<32x64xbf16>, vector<32x64xbf16>, vector<32x64xbf16>, vector<32x64xbf16>, vector<32x64xbf16>, vector<32x64xbf16>, vector<32x64xbf16>, vector<32x64xbf16>, vector<32x64xbf16>, vector<32x64xbf16>, vector<32x64xbf16>, vector<32x64xbf16>, vector<32x64xbf16>, vector<32x64xbf16>, vector<32x64xbf16>, vector<32x64xbf16> -> vector<32x1024xbf16>
    %50 = tpu.concatenate %48, %48, %48, %48, %48, %48, %48, %48, %48, %48, %48, %48, %48, %48, %48, %48 in 1 : vector<32x64xbf16>, vector<32x64xbf16>, vector<32x64xbf16>, vector<32x64xbf16>, vector<32x64xbf16>, vector<32x64xbf16>, vector<32x64xbf16>, vector<32x64xbf16>, vector<32x64xbf16>, vector<32x64xbf16>, vector<32x64xbf16>, vector<32x64xbf16>, vector<32x64xbf16>, vector<32x64xbf16>, vector<32x64xbf16>, vector<32x64xbf16> -> vector<32x1024xbf16>
    %51 = tpu.concatenate %49, %50 in 1 : vector<32x1024xbf16>, vector<32x1024xbf16> -> vector<32x2048xbf16>
    %52 = arith.extf %51 : vector<32x2048xbf16> to vector<32x2048xf32>
    %53 = tpu.iota {dimensions = array<i32: 0>} : vector<32x2048xi32>
    %54 = tpu.iota {dimensions = array<i32: 1>} : vector<32x2048xi32>
    %c64_i32 = arith.constant 64 : i32
    %55 = vector.broadcast %c64_i32 : i32 to vector<32x2048xi32>
    %56 = arith.muli %53, %55 : vector<32x2048xi32>
    %57 = arith.cmpi sge, %54, %56 : vector<32x2048xi32>
    %c64_i32_22 = arith.constant 64 : i32
    %58 = vector.broadcast %c64_i32_22 : i32 to vector<32x2048xi32>
    %59 = arith.muli %53, %58 : vector<32x2048xi32>
    %c64_i32_23 = arith.constant 64 : i32
    %60 = vector.broadcast %c64_i32_23 : i32 to vector<32x2048xi32>
    %61 = arith.addi %59, %60 : vector<32x2048xi32>
    %62 = arith.cmpi slt, %54, %61 : vector<32x2048xi32>
    %63 = arith.andi %57, %62 : vector<32x2048xi1>
    %cst_24 = arith.constant 0.000000e+00 : f32
    %64 = vector.broadcast %cst_24 : f32 to vector<32x2048xf32>
    %65 = arith.select %63, %52, %64 : vector<32x2048xi1>, vector<32x2048xf32>
    %cst_25 = arith.constant dense<0.000000e+00> : vector<2048xf32>
    %66 = vector.multi_reduction <add>, %65, %cst_25 [0] : vector<32x2048xf32> to vector<2048xf32>
    %67 = vector.shape_cast %66 : vector<2048xf32> to vector<1x2048xf32>
    %68 = arith.truncf %67 : vector<1x2048xf32> to vector<1x2048xbf16>
    %c0_26 = arith.constant 0 : index
    %c0_27 = arith.constant 0 : index
    %69 = vector.load %arg9[%c0_26, %c0_27] : memref<2048x512xbf16, #tpu.memory_space<vmem>>, vector<2048x512xbf16>
    %cst_28 = arith.constant dense<0.000000e+00> : vector<1x512xf32>
    %70 = tpu.matmul %68, %69, %cst_28 {dimension_numbers = #tpu.dot_dimension_numbers<[1], [0], [0], [1], [0, 0, 1, 1], [], []>} : vector<1x2048xbf16>, vector<2048x512xbf16>, vector<1x512xf32> -> vector<1x512xf32>
    %c0_29 = arith.constant 0 : index
    %c0_30 = arith.constant 0 : index
    %71 = vector.load %arg10[%c0_29, %c0_30] : memref<1x512xf32, #tpu.memory_space<vmem>>, vector<1x512xf32>
    %72 = arith.addf %70, %71 : vector<1x512xf32>
    %cst_31 = arith.constant 0.000000e+00 : f32
    %73 = vector.broadcast %cst_31 : f32 to vector<1x512xf32>
    %74 = arith.maximumf %72, %73 : vector<1x512xf32>
    %75 = arith.truncf %74 : vector<1x512xf32> to vector<1x512xbf16>
    %c0_32 = arith.constant 0 : index
    %c0_33 = arith.constant 0 : index
    %76 = vector.load %arg11[%c0_32, %c0_33] : memref<512x512xbf16, #tpu.memory_space<vmem>>, vector<512x512xbf16>
    %cst_34 = arith.constant dense<0.000000e+00> : vector<1x512xf32>
    %77 = tpu.matmul %75, %76, %cst_34 {dimension_numbers = #tpu.dot_dimension_numbers<[1], [0], [0], [1], [0, 0, 1, 1], [], []>} : vector<1x512xbf16>, vector<512x512xbf16>, vector<1x512xf32> -> vector<1x512xf32>
    %c0_35 = arith.constant 0 : index
    %c0_36 = arith.constant 0 : index
    %78 = vector.load %arg12[%c0_35, %c0_36] : memref<1x512xf32, #tpu.memory_space<vmem>>, vector<1x512xf32>
    %79 = arith.addf %77, %78 : vector<1x512xf32>
    %cst_37 = arith.constant 0.000000e+00 : f32
    %80 = vector.broadcast %cst_37 : f32 to vector<1x512xf32>
    %81 = arith.maximumf %79, %80 : vector<1x512xf32>
    %82 = arith.truncf %81 : vector<1x512xf32> to vector<1x512xbf16>
    %c0_38 = arith.constant 0 : index
    %c0_39 = arith.constant 0 : index
    %83 = vector.load %arg13[%c0_38, %c0_39] : memref<512x128xbf16, #tpu.memory_space<vmem>>, vector<512x128xbf16>
    %cst_40 = arith.constant dense<0.000000e+00> : vector<1x128xf32>
    %84 = tpu.matmul %82, %83, %cst_40 {dimension_numbers = #tpu.dot_dimension_numbers<[1], [0], [0], [1], [0, 0, 1, 1], [], []>} : vector<1x512xbf16>, vector<512x128xbf16>, vector<1x128xf32> -> vector<1x128xf32>
    %c0_41 = arith.constant 0 : index
    %c0_42 = arith.constant 0 : index
    %85 = vector.load %arg14[%c0_41, %c0_42] : memref<1x128xf32, #tpu.memory_space<vmem>>, vector<1x128xf32>
    %86 = arith.addf %84, %85 : vector<1x128xf32>
    %c0_43 = arith.constant 0 : index
    %c0_44 = arith.constant 0 : index
    %c0_45 = arith.constant 0 : index
    %87 = vector.load %arg15[%c0_43, %c0_44, %c0_45] : memref<1x1x128xf32, #tpu.memory_space<vmem>>, vector<1x1x128xf32>
    %88 = vector.shape_cast %87 : vector<1x1x128xf32> to vector<1x128xf32>
    %89 = vector.shape_cast %86 : vector<1x128xf32> to vector<1x1x128xf32>
    tpu.vector_store %arg15[%c0_43, %c0_44, %c0_45], %89 {strides = array<i32>} : memref<1x1x128xf32, #tpu.memory_space<vmem>>, vector<1x1x128xf32>,
    return
  }
  func.func @transform_0(%arg0: i32) -> (i32, i32, i32) {
    %c0_i32 = arith.constant 0 : i32
    %c0_i32_0 = arith.constant 0 : i32
    %c0_i32_1 = arith.constant 0 : i32
    return %arg0, %c0_i32, %c0_i32_0 : i32, i32, i32
  }
  func.func @transform_1(%arg0: i32) -> (i32, i32) {
    %c0_i32 = arith.constant 0 : i32
    %c0_i32_0 = arith.constant 0 : i32
    %c0_i32_1 = arith.constant 0 : i32
    return %c0_i32, %c0_i32_0 : i32, i32
  }
  func.func @transform_2(%arg0: i32) -> (i32, i32) {
    %c0_i32 = arith.constant 0 : i32
    %c0_i32_0 = arith.constant 0 : i32
    %c0_i32_1 = arith.constant 0 : i32
    return %c0_i32, %c0_i32_0 : i32, i32
  }
  func.func @transform_3(%arg0: i32) -> (i32, i32) {
    %c0_i32 = arith.constant 0 : i32
    %c0_i32_0 = arith.constant 0 : i32
    %c0_i32_1 = arith.constant 0 : i32
    return %c0_i32, %c0_i32_0 : i32, i32
  }
  func.func @transform_4(%arg0: i32) -> (i32, i32) {
    %c0_i32 = arith.constant 0 : i32
    %c0_i32_0 = arith.constant 0 : i32
    %c0_i32_1 = arith.constant 0 : i32
    return %c0_i32, %c0_i32_0 : i32, i32
  }
  func.func @transform_5(%arg0: i32) -> (i32, i32) {
    %c0_i32 = arith.constant 0 : i32
    %c0_i32_0 = arith.constant 0 : i32
    %c0_i32_1 = arith.constant 0 : i32
    return %c0_i32, %c0_i32_0 : i32, i32
  }
  func.func @transform_6(%arg0: i32) -> (i32, i32) {
    %c0_i32 = arith.constant 0 : i32
    %c0_i32_0 = arith.constant 0 : i32
    %c0_i32_1 = arith.constant 0 : i32
    return %c0_i32, %c0_i32_0 : i32, i32
  }
  func.func @transform_7(%arg0: i32) -> (i32, i32) {
    %c0_i32 = arith.constant 0 : i32
    %c0_i32_0 = arith.constant 0 : i32
    %c0_i32_1 = arith.constant 0 : i32
    return %c0_i32, %c0_i32_0 : i32, i32
  }
  func.func @transform_8(%arg0: i32) -> (i32, i32) {
    %c0_i32 = arith.constant 0 : i32
    %c0_i32_0 = arith.constant 0 : i32
    %c0_i32_1 = arith.constant 0 : i32
    return %c0_i32, %c0_i32_0 : i32, i32
  }
  func.func @transform_9(%arg0: i32) -> (i32, i32) {
    %c0_i32 = arith.constant 0 : i32
    %c0_i32_0 = arith.constant 0 : i32
    %c0_i32_1 = arith.constant 0 : i32
    return %c0_i32, %c0_i32_0 : i32, i32
  }
  func.func @transform_10(%arg0: i32) -> (i32, i32) {
    %c0_i32 = arith.constant 0 : i32
    %c0_i32_0 = arith.constant 0 : i32
    %c0_i32_1 = arith.constant 0 : i32
    return %c0_i32, %c0_i32_0 : i32, i32
  }
  func.func @transform_11(%arg0: i32) -> (i32, i32) {
    %c0_i32 = arith.constant 0 : i32
    %c0_i32_0 = arith.constant 0 : i32
    %c0_i32_1 = arith.constant 0 : i32
    return %c0_i32, %c0_i32_0 : i32, i32
  }
  func.func @transform_12(%arg0: i32) -> (i32, i32) {
    %c0_i32 = arith.constant 0 : i32
    %c0_i32_0 = arith.constant 0 : i32
    %c0_i32_1 = arith.constant 0 : i32
    return %c0_i32, %c0_i32_0 : i32, i32
  }
  func.func @transform_13(%arg0: i32) -> (i32, i32) {
    %c0_i32 = arith.constant 0 : i32
    %c0_i32_0 = arith.constant 0 : i32
    %c0_i32_1 = arith.constant 0 : i32
    return %c0_i32, %c0_i32_0 : i32, i32
  }
  func.func @transform_14(%arg0: i32) -> (i32, i32, i32) {
    %c0_i32 = arith.constant 0 : i32
    %c0_i32_0 = arith.constant 0 : i32
    %c0_i32_1 = arith.constant 0 : i32
    return %arg0, %c0_i32, %c0_i32_0 : i32, i32, i32
  }
}

</mosaic_0001>

<bundles_post_ra>
// kernel: dqn_forward.1
= control target key start
LH: loop header
LB: loop body
LE: loop exit
PB: predicated region body
PF: predicated region fallthrough
CT: control target
= control target key end

     0   :  { %s17376_s0 = inlined_call_operand.vmem [shape: bf16[2,184,256], index: 0, kind: input, shape index: {}]   ;;  %s17377_s1 = inlined_call_operand.vmem [shape: bf16[1024,128], index: 1, kind: input, shape index: {}]   ;;  %s17378_s2 = inlined_call_operand.vmem [shape: f32[1,128], index: 2, kind: input, shape index: {}]   ;;  %s17379_s3 = inlined_call_operand.vmem [shape: bf16[512,64], index: 3, kind: input, shape index: {}]   ;;  %s17380_s4 = inlined_call_operand.vmem [shape: f32[1,64], index: 4, kind: input, shape index: {}]   ;;  %s17381_s5 = inlined_call_operand.vmem [shape: bf16[576,64], index: 5, kind: input, shape index: {}]   ;;  %s17382_s6 = inlined_call_operand.vmem [shape: f32[1,64], index: 6, kind: input, shape index: {}]   ;;  %s17383_s7 = inlined_call_operand.vmem [shape: bf16[32,120], index: 7, kind: input, shape index: {}]   ;;  %s17384_s8 = inlined_call_operand.vmem [shape: bf16[2048,512], index: 8, kind: input, shape index: {}]   ;;  %s17385_s9 = inlined_call_operand.vmem [shape: f32[1,512], index: 9, kind: input, shape index: {}]   ;;  %s17386_s10 = inlined_call_operand.vmem [shape: bf16[512,512], index: 10, kind: input, shape index: {}]   ;;  %s17387_s11 = inlined_call_operand.vmem [shape: f32[1,512], index: 11, kind: input, shape index: {}]   ;;  %s17388_s12 = inlined_call_operand.vmem [shape: bf16[512,128], index: 12, kind: input, shape index: {}]   ;;  %s17389_s13 = inlined_call_operand.vmem [shape: f32[1,128], index: 13, kind: input, shape index: {}]   ;;  %s17390_s14 = inlined_call_operand.hbm [shape: f32[2,1,128], index: 14, kind: output, shape index: {}]  }
   0x1   :  { %17411 = sst [smem:[#allocation21_spill]] %s17376_s0 }
   0x2   :  { %19 = vsyncpa [#allocation3], 0 }
   0x3   :  { %21 = vsyncpa [#allocation3 + $0x1], 0  ;;  %s12593_s29 = smov 0   ;;  %s12595_s30 = smov 0  }
   0x4   :  { %s12597_s15 = smov 0   ;;  %s12599_s16 = smov 0  }
   0x5 LB: > { %17412 = sst [smem:[#allocation5_spill]] %s12510_s15  ;;  %s12614_s17 = sadd.s32 4294967295, %s12514_s16   ;;  %s12514_s16 = sphi %s12599_s16, %s17725_s16   ;;  %s12510_s15 = sphi %s12597_s15, %s17727_s15   ;;  %s12506_s30 = sphi %s12595_s30, %s17729_s30   ;;  %s12502_s29 = sphi %s12593_s29, %s17728_s29  }
   0x6   : > { %s9575_s18 = sadd.s32 4294967294, %s12514_s16   ;;  %s12618_s19 = sadd.s32 1, %s12514_s16  }
   0x7   : > { %17413 = sst [smem:[#allocation6_spill]] %s12618_s19  ;;  %s333_s20 = sadd.s32 1, %s12510_s15 }
   0x8   : > { %s330_s21 = ssub.s32 %s12514_s16, %s12618_s19  ;;  %p343_p0 = scmp.ne.s32.totalorder %s12510_s15, %s12506_s30 }
   0x9   : > { %p331_p1 = scmp.eq.s32.totalorder %s330_s21, 0  ;;  %p344_p2 = scmp.eq.s32.totalorder %s12614_s17, 1 }
   0xa   : > { %p349_p3 = scmp.ne.s32.totalorder %s12506_s30, %s12502_s29  ;;  %p350_p4 = scmp.eq.s32.totalorder %s9575_s18, 1 }
   0xb   : > { %s12629_s22 = scalar_select %p331_p1, %s12510_s15, %s333_s20  }
   0xc   : > { %p12631_p5 = por %p344_p2, %p343_p0  ;;  %p12635_p6 = por %p350_p4, %p349_p3 }
   0xd   : > { %17414 = sst [smem:[#allocation7_spill]] %s12629_s22  ;;  %p9578_p7 = scmp.ge.s32.totalorder %s12514_s16, 1 }
   0xe   : > { %s17416_s24 = scalar_select %p12635_p6, 1, 0 }
   0xf   : > { %p415_p8 = scmp.lt.s32.totalorder %s12514_s16, 3 }
  0x10   : > { %17417 = sst [smem:[#allocation8_spill]] %s17416_s24 }
  0x11   : > { %p416_p9 = pnand %p9578_p7, %p415_p8 }
  0x13   : > { %419 = sbr.rel (%p416_p9) target bundleno = 2609 (0xa31), region = 76 }
  0x1a   : > { %v11280_v0 = vld [vmem:[%s17377_s1 + $0x40] sm:$0xff]   ;;  %v11284_v4 = vld [vmem:[%s17377_s1 + $0x48] sm:$0xff]   ;;  %v11288_v8 = vld [vmem:[%s17377_s1 + $0x50] sm:$0xff]   ;;  %p460_p10 = scmp.lt.s32.totalorder %s12614_s17, 1  ;;  %s17418_s0 = sld [smem:[#allocation21_spill]]  ;;  %vm1042_vm1 = vcmask 1044480  }
  0x1b   : > { %v11281_v1 = vld [vmem:[%s17377_s1 + $0xc0] sm:$0xff]   ;;  %10448 = vmatprep.subr.bf16.mxu0 %v11280_v0  ;;  %v11285_v5 = vld [vmem:[%s17377_s1 + $0xc8] sm:$0xff]   ;;  %v11289_v9 = vld [vmem:[%s17377_s1 + $0xd0] sm:$0xff]   ;;  %vm601_vm0 = vsmask.f32 7424  ;;  %vm2297_vm3 = vcmask 1040384  }
  0x1c   : > { %v11282_v2 = vld [vmem:[%s17377_s1] sm:$0xff]   ;;  %10530 = vmatprep.subr.bf16.mxu1 %v11281_v1  ;;  %v11286_v6 = vld [vmem:[%s17377_s1 + $0x8] sm:$0xff]   ;;  %v11290_v10 = vld [vmem:[%s17377_s1 + $0x10] sm:$0xff]   ;;  %s461_s18 = scalar_select %p460_p10, %s12614_s17, 1  ;;  %vm823_vm2 = vsmask.f32 5376 }
  0x1d   : > { %v11283_v3 = vld [vmem:[%s17377_s1 + $0x80] sm:$0xff]   ;;  %10449 = vmatpush3.bf16.msra.mxu0 %v11282_v2  ;;  %v11287_v7 = vld [vmem:[%s17377_s1 + $0x88] sm:$0xff]   ;;  %v11291_v11 = vld [vmem:[%s17377_s1 + $0x90] sm:$0xff]   ;;  %vm2227_vm4 = vsmask.f32 1280  ;;  %s17395_s27 = smov 64  }
  0x1e   : > { %10531 = vmatpush3.bf16.msra.mxu1 %v11283_v3  ;;  %10450 = vmatprep.subr.bf16.mxu0 %v11284_v4  ;;  %v11292_v12 = vld [vmem:[%s17377_s1 + $0x58] sm:$0xff]   ;;  %v11296_v16 = vld [vmem:[%s17377_s1 + $0x60] sm:$0xff]   ;;  %v11300_v20 = vld [vmem:[%s17377_s1 + $0x68] sm:$0xff]   ;;  %s11239_s28 = smul.u32 184, %s461_s18  ;;  %vm3022_vm5 = vsmask.f32 256 }
  0x1f   : > { %10532 = vmatprep.subr.bf16.mxu1 %v11285_v5  ;;  %v11293_v13 = vld [vmem:[%s17377_s1 + $0xd8] sm:$0xff]   ;;  %v11297_v17 = vld [vmem:[%s17377_s1 + $0xe0] sm:$0xff]   ;;  %v11301_v21 = vld [vmem:[%s17377_s1 + $0xe8] sm:$0xff]   ;;  %vm3083_vm6 = vsmask.f32 2304  ;;  %vm3065_vm7 = vcmask 1042432  }
  0x20   : > { %v11294_v14 = vld [vmem:[%s17377_s1 + $0x18] sm:$0xff]   ;;  %v11298_v18 = vld [vmem:[%s17377_s1 + $0x20] sm:$0xff]   ;;  %v11302_v22 = vld [vmem:[%s17377_s1 + $0x28] sm:$0xff]   ;;  %s12736_s24 = scalar_lea.vmem %s17418_s0, %s11239_s28  ;;  %vm3140_vm8 = vcmask 1041408   ;;  %vm2932_vm9 = vcmask 1046528   ;;  %vm17397_vm10 = vcmask 523264  }
  0x21   : > { %10451 = vmatpush3.bf16.msra.mxu0 %v11286_v6  ;;  %v11295_v15 = vld [vmem:[%s17377_s1 + $0x98] sm:$0xff]   ;;  %v11299_v19 = vld [vmem:[%s17377_s1 + $0xa0] sm:$0xff]   ;;  %v11303_v23 = vld [vmem:[%s17377_s1 + $0xa8] sm:$0xff]   ;;  %vm3923_vm11 = vcmask 982016   ;;  %vm3930_vm12 = vcmask 1043456   ;;  %s17423_s21 = smov 64  }
  0x22   : > { %10533 = vmatpush3.bf16.msra.mxu1 %v11287_v7  ;;  %10452 = vmatprep.subr.bf16.mxu0 %v11288_v8  ;;  %v11304_v24 = vld [vmem:[%s17377_s1 + $0x70] sm:$0xff]   ;;  %v11308_v28 = vld [vmem:[%s17377_s1 + $0x78] sm:$0xff]   ;;  %v466_v32 = vld [vmem:[%s12736_s24] sm:$0xff]  ;;  %s458_s0 = sand.u32 1, %s12506_s30  }
  0x23   : > { %10534 = vmatprep.subr.bf16.mxu1 %v11289_v9  ;;  %v11305_v25 = vld [vmem:[%s17377_s1 + $0xf0] sm:$0xff]   ;;  %v11309_v29 = vld [vmem:[%s17377_s1 + $0xf8] sm:$0xff]   ;;  %v467_v33 = vld [vmem:[%s12736_s24 + $0x8] sm:$0xff]  ;;  %s9508_s26 = scalar_lea.sflag [#allocation3], %s458_s0 }
  0x24   : > { %v11306_v26 = vld [vmem:[%s17377_s1 + $0x30] sm:$0xff]   ;;  %v11310_v30 = vld [vmem:[%s17377_s1 + $0x38] sm:$0xff]   ;;  %v9581_v35 = vcombine.high %v466_v32, %v467_v33  ;;  %v9580_v39 = vcombine.low %v466_v32, %v467_v33  ;;  %v12755_v40 = vld [vmem:[%s12736_s24 + $0x20] sm:$0xff] }
  0x25   : > { %10453 = vmatpush3.bf16.msra.mxu0 %v11290_v10  ;;  %v11307_v27 = vld [vmem:[%s17377_s1 + $0xb0] sm:$0xff]   ;;  %v11311_v31 = vld [vmem:[%s17377_s1 + $0xb8] sm:$0xff]   ;;  %v12758_v41 = vld [vmem:[%s12736_s24 + $0x28] sm:$0xff] }
  0x26   : > { %10535 = vmatpush3.bf16.msra.mxu1 %v11291_v11  ;;  %10454 = vmatprep.subr.bf16.mxu0 %v11292_v12  ;;  %v468_v34 = vld [vmem:[%s12736_s24 + $0x10] sm:$0xff]  ;;  %v12752_v38 = vld [vmem:[%s12736_s24 + $0x18] sm:$0xff]  ;;  %v9585_v44 = vcombine.high %v12755_v40, %v12758_v41  ;;  %v12766_v45 = vcombine.low %v12755_v40, %v12758_v41  ;;  %v615_v46 = vshrl.u32 %v9581_v35, 16  ;;  %v617_v47 = vshll.u32 %v9581_v35, 16  ;;  %v11326_v56 = vld [vmem:[%s17377_s1 + $0x140] sm:$0xff]  }
  0x27   : > { %10536 = vmatprep.subr.bf16.mxu1 %v11293_v13  ;;  %v12747_v36 = vcombine.low %v467_v33, %v468_v34  ;;  %v12749_v37 = vcombine.high %v467_v33, %v468_v34  ;;  %v9583_v42 = vcombine.high %v468_v34, %v12752_v38  ;;  %v9582_v43 = vcombine.low %v468_v34, %v12752_v38  ;;  %v12769_v50 = vld [vmem:[%s12736_s24 + $0x30] sm:$0xff]  ;;  %v12772_v51 = vld [vmem:[%s12736_s24 + $0x38] sm:$0xff]  ;;  %v12782_v63 = vld [vmem:[%s12736_s24 + $0x40] sm:$0xff] }
  0x28   : > { %1658 = vmatprep.mubr.bf16.mxu0 %v9581_v35  ;;  %v605_v48 = vshll.u32 %v9580_v39, 16  ;;  %v603_v49 = vshrl.u32 %v9580_v39, 16  ;;  %v638_v55 = vshll.u32 %v9585_v44, 16  ;;  %v619_v57 = vrot.slane %v617_v47, 1  ;;  %v12785_v0 = vld [vmem:[%s12736_s24 + $0x48] sm:$0xff]  ;;  %v11327_v1 = vld [vmem:[%s17377_s1 + $0x100] sm:$0xff]  }
  0x29   : > { %10455 = vmatpush3.bf16.msra.mxu0 %v11294_v14  ;;  %v622_v52 = vshll.u32 %v9583_v42, 16  ;;  %v610_v53 = vshll.u32 %v9582_v43, 16  ;;  %v634_v54 = vshrl.u32 %v9583_v42, 16  ;;  %v12779_v62 = vcombine.high %v12769_v50, %v12772_v51  ;;  %v12792_v6 = vld [vmem:[%s12736_s24 + $0x50] sm:$0xff]  ;;  %v12795_v7 = vld [vmem:[%s12736_s24 + $0x58] sm:$0xff]  ;;  %v11328_v11 = vld [vmem:[%s17377_s1 + $0x1c0] sm:$0xff]  }
  0x2a   : > { %10537 = vmatpush3.bf16.msra.mxu1 %v11295_v15  ;;  %10456 = vmatprep.subr.bf16.mxu0 %v11296_v16  ;;  %v607_v58 = vrot.slane %v605_v48, 1  ;;  %v640_v61 = vrot.slane %v638_v55, 1  ;;  %v620_v2 = vor.u32 %v619_v57, %v615_v46  ;;  %v626_v4 = vshrl.u32 %v9582_v43, 16  ;;  %v11329_v15 = vld [vmem:[%s17377_s1 + $0x180] sm:$0xff]   ;;  %v11335_v33 = vld [vmem:[%s17377_s1 + $0x188] sm:$0xff]   ;;  %v12858_v47 = vld [vmem:[%s12736_s24 + $0x70] sm:$0xff] }
  0x2b   : > { %10538 = vmatprep.subr.bf16.mxu1 %v11297_v17  ;;  %v624_v59 = vrot.slane %v622_v52, 1  ;;  %v612_v60 = vrot.slane %v610_v53, 1  ;;  %v630_v5 = vshll.u32 %v12766_v45, 16  ;;  %v650_v9 = vshrl.u32 %v9585_v44, 16  ;;  %v12812_v17 = vld [vmem:[%s12736_s24 + $0x60] sm:$0xff]  ;;  %v11338_v55 = vld [vmem:[%s17377_s1 + $0x150] sm:$0xff]  }
  0x2c   : > { %v608_v3 = vor.u32 %v607_v58, %v603_v49  ;;  %v12799_v10 = vcombine.low %v12769_v50, %v12772_v51  ;;  %v654_v14 = vshll.u32 %v12779_v62, 16  ;;  %v666_v34 = vshrl.u32 %v12779_v62, 16 }
  0x2d   : > { %10457 = vmatpush3.bf16.msra.mxu0 %v11298_v18  ;;  %v636_v8 = vor.u32 %v634_v54, %v624_v59  ;;  %v625_v12 = vsel %vm601_vm0, %v620_v2, %v624_v59  ;;  %v12815_v18 = vld [vmem:[%s12736_s24 + $0x68] sm:$0xff]  ;;  %v12867_v54 = vld [vmem:[%s12736_s24 + $0x78] sm:$0xff] }
  0x2e   : > { %10539 = vmatpush3.bf16.msra.mxu1 %v11299_v19  ;;  %10458 = vmatprep.subr.bf16.mxu0 %v11300_v20  ;;  %v613_v13 = vsel %vm601_vm0, %v608_v3, %v612_v60  ;;  %v646_v19 = vshll.u32 %v12799_v10, 16  ;;  %v12820_v20 = vcombine.high %v12782_v63, %v12785_v0  ;;  %v12855_v46 = vcombine.high %v12812_v17, %v12815_v18  ;;  %v12882_v2 = vld [vmem:[%s12736_s24 + $0x88] sm:$0xff]  ;;  %v11340_v3 = vld [vmem:[%s17377_s1 + $0x110] sm:$0xff]  }
  0x2f   : > { %10540 = vmatprep.subr.bf16.mxu1 %v11301_v21  ;;  %1778 = vmatprep.mubr.bf16.mxu1 %v625_v12  ;;  %v641_v16 = vsel %vm601_vm0, %v636_v8, %v640_v61  ;;  %v12824_v21 = vcombine.low %v12782_v63, %v12785_v0  ;;  %v12864_v53 = vcombine.low %v12812_v17, %v12815_v18 }
  0x31   : > { %10459 = vmatpush3.bf16.msra.mxu0 %v11302_v22  ;;  %v11332_v22 = vld [vmem:[%s17377_s1 + $0x148] sm:$0xff]   ;;  %v662_v32 = vshll.u32 %v12824_v21, 16  ;;  %v674_v59 = vshrl.u32 %v12824_v21, 16  ;;  %v694_v8 = vshll.u32 %v12864_v53, 16 }
  0x32   : > { %10541 = vmatpush3.bf16.msra.mxu1 %v11303_v23  ;;  %10460 = vmatprep.subr.bf16.mxu0 %v11304_v24  ;;  %v628_v23 = vor.u32 %v626_v4, %v612_v60  ;;  %v632_v24 = vrot.slane %v630_v5, 1  ;;  %v12877_v60 = vld [vmem:[%s12736_s24 + $0x80] sm:$0xff] }
  0x33   : > { %10542 = vmatprep.subr.bf16.mxu1 %v11305_v25  ;;  %v642_v25 = vshrl.u32 %v12766_v45, 16  ;;  %v664_v57 = vrot.slane %v662_v32, 1  ;;  %v11347_v32 = vld [vmem:[%s17377_s1 + $0x118] sm:$0xff]  }
  0x34   : > { %v633_v48 = vsel %vm601_vm0, %v628_v23, %v632_v24  ;;  %v12913_v23 = vrot.slane %v694_v8, 1  ;;  %v11348_v8 = vld [vmem:[%s17377_s1 + $0x1d8] sm:$0xff]  }
  0x35   : > { %10461 = vmatpush3.bf16.msra.mxu0 %v11306_v26  ;;  %v12832_v26 = vcombine.high %v12792_v6, %v12795_v7  ;;  %v644_v4 = vor.u32 %v642_v25, %v632_v24  ;;  %v12920_v25 = vld [vmem:[%s12736_s24 + $0x98] sm:$0xff] }
  0x36   : > { %10543 = vmatpush3.bf16.msra.mxu1 %v11307_v27  ;;  %10462 = vmatprep.subr.bf16.mxu0 %v11308_v28  ;;  %v11333_v27 = vld [vmem:[%s17377_s1 + $0x108] sm:$0xff]  }
  0x37   : > { %10544 = vmatprep.subr.bf16.mxu1 %v11309_v29  ;;  %v11334_v28 = vld [vmem:[%s17377_s1 + $0x1c8] sm:$0xff]   ;;  %v652_v29 = vor.u32 %v650_v9, %v640_v61  ;;  %v686_v35 = vshll.u32 %v12832_v26, 16  ;;  %v698_v61 = vshrl.u32 %v12832_v26, 16  ;;  %v12892_v9 = vcombine.high %v12858_v47, %v12867_v54 }
  0x39   : > { %10463 = vmatpush3.bf16.msra.mxu0 %v11310_v30  ;;  %v656_v30 = vrot.slane %v654_v14, 1  ;;  %v12873_v58 = vrot.slane %v686_v35, 1  ;;  %v11342_v14 = vld [vmem:[%s17377_s1 + $0x1d0] sm:$0xff]   ;;  %v12936_v35 = vcombine.low %v12877_v60, %v12882_v2 }
  0x3a   : > { %10545 = vmatpush3.bf16.msra.mxu1 %v11311_v31  ;;  %10612 = vmatprep.subr.bf16.mxu0 %v11326_v56  ;;  %v670_v31 = vshll.u32 %v12820_v20, 16 }
  0x3b   : > { %10694 = vmatprep.subr.bf16.mxu1 %v11328_v11  ;;  %v657_v56 = vsel %vm601_vm0, %v652_v29, %v656_v30  ;;  %v668_v11 = vor.u32 %v666_v34, %v656_v30  ;;  %v706_v29 = vshrl.u32 %v12864_v53, 16  ;;  %v13043_v34 = vcombine.low %v12758_v41, %v12769_v50 }
  0x3c   : > { %1659 = vmatmul.mubr.bf16.vlgmr.msra.gmra.mrb[0].mxu0 %v9580_v39  ;;  %v12849_v39 = vcombine.low %v12792_v6, %v12795_v7  ;;  %v672_v49 = vrot.slane %v670_v31, 1  ;;  %v11346_v31 = vld [vmem:[%s17377_s1 + $0x158] sm:$0xff]  }
  0x3d   : > { %1666 = vmatprep.mubr.bf16.mxu0 %v9583_v42  ;;  %10613 = vmatpush3.bf16.msra.mxu0 %v11327_v1  ;;  %v648_v42 = vrot.slane %v646_v19, 1  ;;  %v702_v1 = vshll.u32 %v12855_v46, 16  ;;  %v718_v19 = vshll.u32 %v12892_v9, 16 }
  0x3e   : > { %1779 = vmatmul.mubr.bf16.vlgmr.msra.gmra.mrb[0].mxu1 %v613_v13  ;;  %10614 = vmatprep.subr.bf16.mxu0 %v11332_v22  ;;  %v678_v52 = vshll.u32 %v12849_v39, 16  ;;  %v690_v12 = vshrl.u32 %v12849_v39, 16  ;;  %v12898_v13 = vcombine.low %v12858_v47, %v12867_v54  ;;  %v11343_v22 = vld [vmem:[%s17377_s1 + $0x190] sm:$0xff]  }
  0x3f   : > { %1786 = vmatprep.mubr.bf16.mxu1 %v641_v16  ;;  %10695 = vmatpush3.bf16.msra.mxu1 %v11329_v15  ;;  %v704_v15 = vrot.slane %v702_v1, 1  ;;  %v714_v16 = vshrl.u32 %v12855_v46, 16  ;;  %v700_v1 = vor.u32 %v698_v61, %v12873_v58 }
  0x40   : > { %10696 = vmatprep.subr.bf16.mxu1 %v11334_v28  ;;  %v12887_v5 = vrot.slane %v678_v52, 1  ;;  %v710_v24 = vshll.u32 %v12898_v13, 16 }
  0x41   : > { %10615 = vmatpush3.bf16.msra.mxu0 %v11333_v27  ;;  %v649_v27 = vsel %vm601_vm0, %v644_v4, %v648_v42 }
  0x42   : > { %10616 = vmatprep.subr.bf16.mxu0 %v11338_v55  ;;  %v12943_v52 = vrot.slane %v710_v24, 1  ;;  %v722_v55 = vshrl.u32 %v12898_v13, 16 }
  0x43   : > { %10697 = vmatpush3.bf16.msra.mxu1 %v11335_v33  ;;  %v12931_v33 = vrot.slane %v718_v19, 1  ;;  %v12967_v19 = vld [vmem:[%s12736_s24 + $0xa8] sm:$0xff] }
  0x44   : > { %1667 = vmatmul.mubr.bf16.gmra.mrb[4].mxu0 %v9582_v43  ;;  %v658_v43 = vshrl.u32 %v12799_v10, 16  ;;  %10698 = vmatprep.subr.bf16.mxu1 %v11342_v14  ;;  %v12964_v14 = vld [vmem:[%s12736_s24 + $0xa0] sm:$0xff] }
  0x45   : > { %1674 = vmatprep.mubr.bf16.mxu0 %v9585_v44  ;;  %v682_v44 = vshrl.u32 %v12820_v20, 16  ;;  %10617 = vmatpush3.bf16.msra.mxu0 %v11340_v3  ;;  %v726_v3 = vshll.u32 %v12936_v35, 16 }
  0x46   : > { %1787 = vmatmul.mubr.bf16.gmra.mrb[4].mxu1 %v633_v48  ;;  %v660_v28 = vor.u32 %v658_v43, %v648_v42  ;;  %v673_v43 = vsel %vm601_vm0, %v668_v11, %v672_v49  ;;  %10618 = vmatprep.subr.bf16.mxu0 %v11346_v31 }
  0x47   : > { %1794 = vmatprep.mubr.bf16.mxu1 %v657_v56  ;;  %10699 = vmatpush3.bf16.msra.mxu1 %v11343_v22  ;;  %v684_v48 = vor.u32 %v682_v44, %v672_v49  ;;  %v676_v56 = vor.u32 %v674_v59, %v664_v57  ;;  %v11349_v44 = vld [vmem:[%s17377_s1 + $0x198] sm:$0xff]   ;;  %v12970_v22 = vrot.slane %v726_v3, 1 }
  0x48   : > { %v665_v49 = vsel %vm601_vm0, %v660_v28, %v664_v57  ;;  %v738_v57 = vshrl.u32 %v12936_v35, 16  ;;  %v11352_v28 = vld [vmem:[%s17377_s1 + $0x160] sm:$0xff]   ;;  %10700 = vmatprep.subr.bf16.mxu1 %v11348_v8  ;;  %v13003_v8 = vor.u32 %v714_v16, %v704_v15  ;;  %v13022_v16 = vcombine.low %v12752_v38, %v12755_v40 }
  0x49   : > { %10619 = vmatpush3.bf16.msra.mxu0 %v11347_v32  ;;  %v12988_v32 = vcombine.low %v12964_v14, %v12967_v19  ;;  %v12994_v3 = vsel %vm601_vm0, %v676_v56, %v12887_v5  ;;  %v11355_v56 = vld [vmem:[%s17377_s1 + $0x1a0] sm:$0xff]  }
  0x4a   : > { %10620 = vmatprep.subr.bf16.mxu0 %v11352_v28 }
  0x4b   : > { %10701 = vmatpush3.bf16.msra.mxu1 %v11349_v44  ;;  %v13026_v44 = vcombine.high %v12758_v41, %v12769_v50  ;;  %v11357_v41 = vld [vmem:[%s17377_s1 + $0x1e8] sm:$0xff]   ;;  %v842_v50 = vshrl.u32 %v12749_v37, 16 }
  0x4c   : > { %1675 = vmatmul.mubr.bf16.gmra.mrb[8].mxu0 %v12766_v45  ;;  %v12908_v45 = vcombine.high %v12877_v60, %v12882_v2 }
  0x4d   : > { %1682 = vmatprep.mubr.bf16.mxu0 %v12779_v62  ;;  %v12917_v62 = vld [vmem:[%s12736_s24 + $0x90] sm:$0xff] }
  0x4e   : > { %v734_v30 = vshll.u32 %v12908_v45, 16  ;;  %v12940_v42 = vcombine.high %v12917_v62, %v12920_v25  ;;  %1795 = vmatmul.mubr.bf16.gmra.mrb[8].mxu1 %v649_v27  ;;  %v746_v59 = vshrl.u32 %v12908_v45, 16  ;;  %v12961_v61 = vcombine.low %v12917_v62, %v12920_v25 }
  0x4f   : > { %1802 = vmatprep.mubr.bf16.mxu1 %v673_v43  ;;  %v12977_v27 = vcombine.high %v12964_v14, %v12967_v19  ;;  %v689_v43 = vsel %vm601_vm0, %v684_v48, %v12873_v58  ;;  %v758_v48 = vshll.u32 %v12988_v32, 16 }
  0x50   : > { %v750_v4 = vshll.u32 %v12940_v42, 16  ;;  %v12956_v11 = vrot.slane %v734_v30, 1  ;;  %v692_v30 = vor.u32 %v690_v12, %v12887_v5  ;;  %v754_v12 = vshrl.u32 %v12961_v61, 16  ;;  %v11354_v5 = vld [vmem:[%s17377_s1 + $0x120] sm:$0xff]  }
  0x51   : > { %v766_v58 = vshll.u32 %v12977_v27, 16  ;;  %10621 = vmatpush3.bf16.msra.mxu0 %v11354_v5 }
  0x52   : > { %v12972_v24 = vrot.slane %v750_v4, 1  ;;  %v11353_v4 = vld [vmem:[%s17377_s1 + $0x1e0] sm:$0xff]   ;;  %v13030_v28 = vsel %vm601_vm0, %v692_v30, %v12913_v23  ;;  %v13047_v30 = vcombine.high %v12772_v51, %v12782_v63  ;;  %v748_v5 = vor.u32 %v746_v59, %v12956_v11 }
  0x53   : > { %10702 = vmatprep.subr.bf16.mxu1 %v11353_v4  ;;  %v13033_v4 = vrot.slane %v766_v58, 1  ;;  %v13074_v59 = vcombine.low %v12785_v0, %v12792_v6 }
  0x54   : > { %1683 = vmatmul.mubr.bf16.gmra.mrb[12].mxu0 %v12799_v10  ;;  %v742_v10 = vshll.u32 %v12961_v61, 16  ;;  %10703 = vmatpush3.bf16.msra.mxu1 %v11355_v56  ;;  %v13086_v56 = vcombine.low %v12795_v7, %v12812_v17 }
  0x55   : > { %1690 = vmatprep.mubr.bf16.mxu0 %v12820_v20  ;;  %v12997_v20 = vsel %vm601_vm0, %v700_v1, %v704_v15  ;;  %v13018_v15 = vcombine.high %v12752_v38, %v12755_v40  ;;  %v13035_v1 = vrot.slane %v758_v48, 1  ;;  %v11356_v38 = vld [vmem:[%s17377_s1 + $0x168] sm:$0xff]   ;;  %v724_v48 = vor.u32 %v722_v55, %v12943_v52  ;;  %10704 = vmatprep.subr.bf16.mxu1 %v11357_v41 }
  0x56   : > { %v13005_v31 = vrot.slane %v742_v10, 1  ;;  %v708_v10 = vor.u32 %v706_v29, %v12913_v23  ;;  %v13051_v23 = vcombine.low %v12772_v51, %v12782_v63  ;;  %1803 = vmatmul.mubr.bf16.gmra.mrb[12].mxu1 %v665_v49  ;;  %v17419_v29 = vshrl.u32 %v12892_v9, 16  ;;  %v11358_v63 = vld [vmem:[%s17377_s1 + $0x128] sm:$0xff]   ;;  %10622 = vmatprep.subr.bf16.mxu0 %v11356_v38 }
  0x57   : > { %1810 = vmatprep.mubr.bf16.mxu1 %v689_v43  ;;  %v740_v51 = vor.u32 %v738_v57, %v12970_v22  ;;  %v845_v55 = vshll.u32 %v12749_v37, 16  ;;  %v13070_v49 = vcombine.high %v12785_v0, %v12792_v6  ;;  %v844_v57 = vrot.slane %v842_v50, 2  ;;  %10623 = vmatpush3.bf16.msra.mxu0 %v11358_v63  ;;  %v11362_v6 = vld [vmem:[%s17377_s1 + $0x170] sm:$0xff]  }
  0x58   : > { %v732_v58 = vor.u32 %v17419_v29, %v12931_v33  ;;  %v13082_v43 = vcombine.high %v12795_v7, %v12812_v17  ;;  %v13090_v0 = vcombine.high %v12815_v18, %v12858_v47  ;;  %v13097_v38 = vcombine.low %v12815_v18, %v12858_v47  ;;  %v11363_v17 = vld [vmem:[%s17377_s1 + $0x1f0] sm:$0xff]   ;;  %10624 = vmatprep.subr.bf16.mxu0 %v11362_v6 }
  0x59   : > { %v13101_v29 = vcombine.high %v12867_v54, %v12877_v60  ;;  %v13105_v7 = vcombine.low %v12867_v54, %v12877_v60  ;;  %v850_v41 = vshrl.u32 %v13018_v15, 16  ;;  %v13113_v50 = vcombine.high %v12882_v2, %v12917_v62  ;;  %v11365_v6 = vld [vmem:[%s17377_s1 + $0x1b0] sm:$0xff]  }
  0x5a   : > { %v13117_v18 = vcombine.low %v12882_v2, %v12917_v62  ;;  %v13121_v47 = vcombine.high %v12920_v25, %v12964_v14  ;;  %v17420_v54 = vshrl.u32 %v12940_v42, 16  ;;  %v756_v63 = vor.u32 %v754_v12, %v13005_v31 }
  0x5b   : > { %v13133_v2 = vcombine.low %v12920_v25, %v12964_v14  ;;  %v721_v62 = vsel %vm601_vm0, %v13003_v8, %v12931_v33  ;;  %v13144_v12 = vsel %vm601_vm0, %v732_v58, %v12956_v11  ;;  %v852_v40 = vrot.slane %v850_v41, 2 }
  0x5c   : > { %1691 = vmatmul.mubr.bf16.gmra.mrb[16].mxu0 %v12824_v21  ;;  %v11359_v21 = vld [vmem:[%s17377_s1 + $0x1a8] sm:$0xff]   ;;  %v764_v60 = vor.u32 %v17420_v54, %v12972_v24  ;;  %v13140_v54 = vsel %vm601_vm0, %v708_v10, %v12943_v52  ;;  %v13151_v25 = vsel %vm601_vm0, %v724_v48, %v12970_v22  ;;  %v9601_v33 = vcombine.high %v12964_v14, %v12964_v14  ;;  %v11366_v52 = vld [vmem:[%s17377_s1 + $0x178] sm:$0xff]  }
  0x5d   : > { %1698 = vmatprep.mubr.bf16.mxu0 %v12832_v26  ;;  %v847_v26 = vrot.slane %v845_v55, 3  ;;  %10705 = vmatpush3.bf16.msra.mxu1 %v11359_v21  ;;  %v11364_v55 = vld [vmem:[%s17377_s1 + $0x130] sm:$0xff]   ;;  %v853_v21 = vshll.u32 %v13018_v15, 16  ;;  %v13161_v10 = vsel %vm601_vm0, %v748_v5, %v12972_v24  ;;  %v13165_v22 = vsel %vm601_vm0, %v740_v51, %v13005_v31  ;;  %v11367_v48 = vld [vmem:[%s17377_s1 + $0x1f8] sm:$0xff]  }
  0x5e   : > { %10706 = vmatprep.subr.bf16.mxu1 %v11363_v17  ;;  %10625 = vmatpush3.bf16.msra.mxu0 %v11364_v55  ;;  %v9600_v58 = vcombine.low %v12964_v14, %v12964_v14  ;;  %v13177_v24 = vsel %vm601_vm0, %v764_v60, %v13033_v4  ;;  %v13181_v31 = vsel %vm601_vm0, %v756_v63, %v13035_v1  ;;  %v1047_v51 = vrot.slane %v13018_v15, 3 }
  0x5f   : > { %v848_v11 = vor.u32 %v847_v26, %v844_v57  ;;  %v855_v8 = vrot.slane %v853_v21, 3  ;;  %1811 = vmatmul.mubr.bf16.gmra.mrb[16].mxu1 %v12994_v3  ;;  %v1046_v57 = vrot.slane %v12749_v37, 3  ;;  %v11368_v3 = vld [vmem:[%s17377_s1 + $0x138] sm:$0xff]   ;;  %v833_v26 = vshrl.u32 %v13022_v16, 16  ;;  %10626 = vmatprep.subr.bf16.mxu0 %v11366_v52 }
  0x60   : > { %1818 = vmatprep.mubr.bf16.mxu1 %v12997_v20  ;;  %v11369_v37 = vld [vmem:[%s17377_s1 + $0x1b8] sm:$0xff]   ;;  %v828_v20 = vshll.u32 %v12747_v36, 16  ;;  %v1043_v17 = vrot.slane %v12747_v36, 3  ;;  %v1044_v55 = vrot.slane %v13022_v16, 3  ;;  %v871_v52 = vshll.u32 %v13026_v44, 16 }
  0x61   : > { %v856_v5 = vor.u32 %v855_v8, %v852_v40  ;;  %10707 = vmatpush3.bf16.msra.mxu1 %v11365_v6  ;;  %v13198_v15 = vsel %vm1042_vm1, %v1046_v57, %v1047_v51  ;;  %v835_v63 = vrot.slane %v833_v26, 2  ;;  %v868_v6 = vshrl.u32 %v13026_v44, 16 }
  0x62   : > { %10708 = vmatprep.subr.bf16.mxu1 %v11367_v48  ;;  %10627 = vmatpush3.bf16.msra.mxu0 %v11368_v3  ;;  %v830_v60 = vrot.slane %v828_v20, 3  ;;  %v13207_v48 = vsel %vm1042_vm1, %v1043_v17, %v1044_v55  ;;  %v862_v57 = vshll.u32 %v13043_v34, 16  ;;  %v873_v20 = vrot.slane %v871_v52, 3 }
  0x63   : > { %v13195_v40 = vsel %vm823_vm2, %v848_v11, %v856_v5  ;;  %v1051_v11 = vrot.slane %v13026_v44, 3  ;;  %v1049_v44 = vrot.slane %v13043_v34, 3  ;;  %v880_v52 = vshll.u32 %v13051_v23, 16 }
  0x64   : > { %1699 = vmatmul.mubr.bf16.gmra.mrb[20].mxu0 %v12849_v39  ;;  %v825_v39 = vshrl.u32 %v12747_v36, 16  ;;  %v859_v36 = vshrl.u32 %v13043_v34, 16 }
  0x65   : > { %1706 = vmatprep.mubr.bf16.mxu0 %v12855_v46  ;;  %v836_v46 = vshll.u32 %v13022_v16, 16  ;;  %10709 = vmatpush3.bf16.msra.mxu1 %v11369_v37  ;;  %v13212_v16 = vsel %vm1042_vm1, %v1047_v51, %v1051_v11  ;;  %v886_v37 = vshrl.u32 %v13047_v30, 16  ;;  %v1055_v51 = vrot.slane %v13047_v30, 3 }
  0x66   : > { %v827_v41 = vrot.slane %v825_v39, 2  ;;  %v870_v39 = vrot.slane %v868_v6, 2  ;;  %v861_v26 = vrot.slane %v859_v36, 2 }
  0x67   : > { %v838_v21 = vrot.slane %v836_v46, 3  ;;  %1819 = vmatmul.mubr.bf16.gmra.mrb[20].mxu1 %v13030_v28  ;;  %v864_v46 = vrot.slane %v862_v57, 3  ;;  %v888_v34 = vrot.slane %v886_v37, 2  ;;  %v13232_v6 = vsel %vm1042_vm1, %v1051_v11, %v1055_v51 }
  0x68   : > { %v831_v8 = vor.u32 %v830_v60, %v827_v41  ;;  %1826 = vmatprep.mubr.bf16.mxu1 %v721_v62  ;;  %v874_v41 = vor.u32 %v873_v20, %v870_v39  ;;  %v889_v60 = vshll.u32 %v13047_v30, 16  ;;  %v882_v57 = vrot.slane %v880_v52, 3 }
  0x69   : > { %v839_v3 = vor.u32 %v838_v21, %v835_v63  ;;  %v865_v28 = vor.u32 %v864_v46, %v861_v26  ;;  %v13225_v63 = vsel %vm1042_vm1, %v1044_v55, %v1049_v44  ;;  %v877_v21 = vshrl.u32 %v13051_v23, 16 }
  0x6a   : > { %v13229_v62 = vsel %vm823_vm2, %v856_v5, %v874_v41  ;;  %v904_v55 = vshrl.u32 %v13070_v49, 16  ;;  %v907_v39 = vshll.u32 %v13070_v49, 16  ;;  %v1059_v5 = vrot.slane %v13070_v49, 3 }
  0x6b   : > { %v13219_v17 = vsel %vm823_vm2, %v831_v8, %v839_v3  ;;  %v13236_v30 = vsel %vm823_vm2, %v839_v3, %v865_v28  ;;  %v1053_v8 = vrot.slane %v13051_v23, 3  ;;  %v895_v26 = vshrl.u32 %v13074_v59, 16 }
  0x6c   : > { %1707 = vmatmul.mubr.bf16.gmra.mrb[24].mxu0 %v12864_v53  ;;  %v891_v53 = vrot.slane %v889_v60, 3  ;;  %v906_v11 = vrot.slane %v904_v55, 2  ;;  %v898_v3 = vshll.u32 %v13074_v59, 16  ;;  %v909_v37 = vrot.slane %v907_v39, 3 }
  0x6d   : > { %1714 = vmatprep.mubr.bf16.mxu0 %v12892_v9  ;;  %v879_v9 = vrot.slane %v877_v21, 2  ;;  %v13243_v20 = vsel %vm1042_vm1, %v1049_v44, %v1053_v8  ;;  %v13251_v60 = vsel %vm1042_vm1, %v1055_v51, %v1059_v5  ;;  %v1057_v44 = vrot.slane %v13074_v59, 3 }
  0x6e   : > { %v892_v36 = vor.u32 %v891_v53, %v888_v34  ;;  %v897_v34 = vrot.slane %v895_v26, 2  ;;  %v900_v49 = vrot.slane %v898_v3, 3  ;;  %v922_v21 = vshrl.u32 %v13082_v43, 16 }
  0x6f   : > { %v883_v23 = vor.u32 %v882_v57, %v879_v9  ;;  %1827 = vmatmul.mubr.bf16.gmra.mrb[24].mxu1 %v13140_v54  ;;  %v910_v53 = vor.u32 %v909_v37, %v906_v11  ;;  %v925_v52 = vshll.u32 %v13082_v43, 16  ;;  %v913_v51 = vshrl.u32 %v13086_v56, 16 }
  0x70   : > { %v13248_v46 = vsel %vm823_vm2, %v874_v41, %v892_v36  ;;  %1834 = vmatprep.mubr.bf16.mxu1 %v13144_v12  ;;  %v901_v54 = vor.u32 %v900_v49, %v897_v34  ;;  %v13265_v9 = vsel %vm1042_vm1, %v1053_v8, %v1057_v44  ;;  %v924_v59 = vrot.slane %v922_v21, 2 }
  0x71   : > { %v13259_v41 = vsel %vm823_vm2, %v865_v28, %v883_v23  ;;  %v916_v55 = vshll.u32 %v13086_v56, 16  ;;  %v13269_v12 = vsel %vm823_vm2, %v892_v36, %v910_v53  ;;  %v915_v28 = vrot.slane %v913_v51, 2 }
  0x72   : > { %v1063_v57 = vrot.slane %v13082_v43, 3  ;;  %v13273_v39 = vsel %vm823_vm2, %v883_v23, %v901_v54  ;;  %v940_v26 = vshrl.u32 %v13090_v0, 16  ;;  %v943_v37 = vshll.u32 %v13090_v0, 16 }
  0x73   : > { %v918_v11 = vrot.slane %v916_v55, 3  ;;  %v931_v36 = vshrl.u32 %v13097_v38, 16  ;;  %v934_v23 = vshll.u32 %v13097_v38, 16  ;;  %v1067_v51 = vrot.slane %v13090_v0, 3 }
  0x74   : > { %1715 = vmatmul.mubr.bf16.gmra.mrb[28].mxu0 %v12898_v13  ;;  %v927_v13 = vrot.slane %v925_v52, 3  ;;  %v13278_v3 = vsel %vm1042_vm1, %v1059_v5, %v1063_v57  ;;  %v942_v43 = vrot.slane %v940_v26, 2  ;;  %v1065_v55 = vrot.slane %v13097_v38, 3 }
  0x75   : > { %1722 = vmatprep.mubr.bf16.mxu0 %v12908_v45  ;;  %v1061_v45 = vrot.slane %v13086_v56, 3  ;;  %v919_v34 = vor.u32 %v918_v11, %v915_v28  ;;  %v945_v56 = vrot.slane %v943_v37, 3  ;;  %v933_v52 = vrot.slane %v931_v36, 2 }
  0x76   : > { %v928_v8 = vor.u32 %v927_v13, %v924_v59  ;;  %v936_v59 = vrot.slane %v934_v23, 3  ;;  %v13299_v13 = vsel %vm1042_vm1, %v1063_v57, %v1067_v51  ;;  %v961_v0 = vshll.u32 %v13101_v29, 16 }
  0x77   : > { %v13283_v49 = vsel %vm1042_vm1, %v1057_v44, %v1061_v45  ;;  %1835 = vmatmul.mubr.bf16.gmra.mrb[28].mxu1 %v13151_v25  ;;  %v13292_v5 = vsel %vm823_vm2, %v901_v54, %v919_v34  ;;  %v958_v44 = vshrl.u32 %v13101_v29, 16  ;;  %v949_v25 = vshrl.u32 %v13105_v7, 16 }
  0x78   : > { %v13287_v21 = vsel %vm823_vm2, %v910_v53, %v928_v8  ;;  %1842 = vmatprep.mubr.bf16.mxu1 %v13161_v10  ;;  %v946_v53 = vor.u32 %v945_v56, %v942_v43  ;;  %v937_v54 = vor.u32 %v936_v59, %v933_v52  ;;  %v13305_v28 = vsel %vm1042_vm1, %v1061_v45, %v1065_v55 }
  0x79   : > { %v960_v38 = vrot.slane %v958_v44, 2  ;;  %v952_v11 = vshll.u32 %v13105_v7, 16  ;;  %v951_v26 = vrot.slane %v949_v25, 2  ;;  %v1071_v57 = vrot.slane %v13101_v29, 3 }
  0x7a   : > { %v13309_v10 = vsel %vm823_vm2, %v928_v8, %v946_v53  ;;  %v13313_v37 = vsel %vm823_vm2, %v919_v34, %v937_v54  ;;  %v976_v45 = vshrl.u32 %v13113_v50, 16  ;;  %v979_v8 = vshll.u32 %v13113_v50, 16 }
  0x7b   : > { %v954_v36 = vrot.slane %v952_v11, 3  ;;  %v13318_v23 = vsel %vm1042_vm1, %v1067_v51, %v1071_v57  ;;  %v967_v56 = vshrl.u32 %v13117_v18, 16  ;;  %v970_v59 = vshll.u32 %v13117_v18, 16  ;;  %v488_v51 = vld [vmem:[%s12736_s24 + $0xb0] sm:$0xff] }
  0x7c   : > { %1723 = vmatmul.mubr.bf16.gmra.mrb[32].mxu0 %v12936_v35  ;;  %v963_v35 = vrot.slane %v961_v0, 3  ;;  %v978_v34 = vrot.slane %v976_v45, 2  ;;  %v1075_v25 = vrot.slane %v13113_v50, 3  ;;  %v997_v50 = vshll.u32 %v13121_v47, 16 }
  0x7d   : > { %1730 = vmatprep.mubr.bf16.mxu0 %v12940_v42  ;;  %v1069_v42 = vrot.slane %v13105_v7, 3  ;;  %v955_v52 = vor.u32 %v954_v36, %v951_v26  ;;  %v981_v7 = vrot.slane %v979_v8, 3  ;;  %v969_v0 = vrot.slane %v967_v56, 2 }
  0x7e   : > { %v964_v43 = vor.u32 %v963_v35, %v960_v38  ;;  %v972_v11 = vrot.slane %v970_v59, 3  ;;  %v994_v35 = vshrl.u32 %v13121_v47, 16  ;;  %v13340_v26 = vsel %vm1042_vm1, %v1071_v57, %v1075_v25 }
  0x7f   : > { %v13323_v29 = vsel %vm1042_vm1, %v1065_v55, %v1069_v42  ;;  %1843 = vmatmul.mubr.bf16.gmra.mrb[32].mxu1 %v13165_v22  ;;  %v13333_v38 = vsel %vm823_vm2, %v937_v54, %v955_v52  ;;  %v1073_v55 = vrot.slane %v13117_v18, 3  ;;  %v985_v22 = vshrl.u32 %v13133_v2, 16 }
  0x80   : > { %v13327_v44 = vsel %vm823_vm2, %v946_v53, %v964_v43  ;;  %1850 = vmatprep.mubr.bf16.mxu1 %v13177_v24  ;;  %v982_v53 = vor.u32 %v981_v7, %v978_v34  ;;  %v973_v54 = vor.u32 %v972_v11, %v969_v0  ;;  %v996_v36 = vrot.slane %v994_v35, 2 }
  0x81   : > { %v13348_v18 = vsel %vm1042_vm1, %v1069_v42, %v1073_v55  ;;  %v988_v24 = vshll.u32 %v13133_v2, 16  ;;  %v999_v57 = vrot.slane %v997_v50, 3  ;;  %v987_v45 = vrot.slane %v985_v22, 2 }
  0x82   : > { %v1079_v8 = vrot.slane %v13121_v47, 3  ;;  %v974_v56 = vsel %vm823_vm2, %v955_v52, %v973_v54  ;;  %v1077_v59 = vrot.slane %v13133_v2, 3  ;;  %v17421_v42 = vshrl.u32 %v12977_v27, 16 }
  0x83   : > { %v990_v34 = vrot.slane %v988_v24, 3  ;;  %v1000_v0 = vor.u32 %v999_v57, %v996_v36  ;;  %v13365_v11 = vcombine.low %v12967_v19, %v488_v51 }
  0x84   : > { %1731 = vmatmul.mubr.bf16.gmra.mrb[36].mxu0 %v12961_v61  ;;  %v13352_v61 = vsel %vm823_vm2, %v964_v43, %v982_v53  ;;  %v775_v7 = vor.u32 %v17421_v42, %v13033_v4  ;;  %v1080_v43 = vsel %vm1042_vm1, %v1075_v25, %v1079_v8  ;;  %v13368_v47 = vsel %vm1042_vm1, %v1073_v55, %v1077_v59 }
  0x85   : > { %1738 = vmatprep.mubr.bf16.mxu0 %v9601_v33  ;;  %v13358_v33 = vcombine.high %v12967_v19, %v488_v51  ;;  %v991_v35 = vor.u32 %v990_v34, %v987_v45  ;;  %v1001_v50 = vsel %vm823_vm2, %v982_v53, %v1000_v0  ;;  %v1003_v22 = vshrl.u32 %v13365_v11, 16 }
  0x86   : > { %v1006_v27 = vshll.u32 %v13365_v11, 16  ;;  %v1081_v55 = vrot.slane %v13365_v11, 3  ;;  %v17422_v45 = vshrl.u32 %v12988_v32, 16  ;;  %v11390_v32 = vld [vmem:[%s17379_s3 + $0x40] sm:$0xff]  }
  0x87   : > { %v1012_v52 = vshrl.u32 %v13358_v33, 16  ;;  %v1015_v2 = vshll.u32 %v13358_v33, 16  ;;  %v1083_v4 = vrot.slane %v13358_v33, 3  ;;  %1851 = vmatmul.mubr.bf16.gmra.mrb[36].mxu1 %v13181_v31  ;;  %v992_v19 = vsel %vm823_vm2, %v973_v54, %v991_v35  ;;  %10776 = vmatprep.subr.bf16.mxu0 %v11390_v32 }
  0x88   : > { %1858 = vmatprep.mubr.bf16.mxu1 %v775_v7  ;;  %v1005_v53 = vrot.slane %v1003_v22, 2  ;;  %v1008_v36 = vrot.slane %v1006_v27, 3  ;;  %v1082_v54 = vsel %vm1042_vm1, %v1077_v59, %v1081_v55  ;;  %v772_v34 = vor.u32 %v17422_v45, %v13035_v1  ;;  %v11391_v1 = vld [vmem:[%s17379_s3] sm:$0xff]  }
  0x89   : > { %v1014_v25 = vrot.slane %v1012_v52, 2  ;;  %v1017_v51 = vrot.slane %v1015_v2, 3  ;;  %v1084_v24 = vsel %vm1042_vm1, %v1079_v8, %v1083_v4 }
  0x8a   : > { %v1009_v57 = vor.u32 %v1008_v36, %v1005_v53 }
  0x8b   : > { %v1018_v31 = vor.u32 %v1017_v51, %v1014_v25 }
  0x8c   : > { %1739 = vmatmul.mubr.bf16.gmra.mrb[40].mxu0 %v9600_v58  ;;  %v1010_v58 = vsel %vm823_vm2, %v991_v35, %v1009_v57 }
  0x8d   : > { %1898 = vmatprep.mubr.bf16.mxu0 %v13195_v40  ;;  %v1019_v14 = vsel %vm823_vm2, %v1000_v0, %v1018_v31  ;;  %v11392_v40 = vld [vmem:[%s17379_s3 + $0xc0] sm:$0xff]  }
  0x8e   : > { %10852 = vmatprep.subr.bf16.mxu1 %v11392_v40 }
  0x8f   : > { %1859 = vmatmul.mubr.bf16.gmra.mrb[40].mxu1 %v772_v34 }
  0x90   : > { %2018 = vmatprep.mubr.bf16.mxu1 %v13198_v15  ;;  %v11393_v15 = vld [vmem:[%s17379_s3 + $0x80] sm:$0xff]  }
  0x94   : > { %1899 = vmatmul.mubr.bf16.vlgmr.msra.gmra.mrb[44].mxu0 %v13219_v17  ;;  %v11396_v17 = vld [vmem:[%s17379_s3 + $0xc8] sm:$0xff]  }
  0x95   : > { %1906 = vmatprep.mubr.bf16.mxu0 %v13229_v62  ;;  %10777 = vmatpush3.bf16.msra.mxu0 %v11391_v1  ;;  %v11398_v62 = vld [vmem:[%s17379_s3 + $0x50] sm:$0xff]  }
  0x97   : > { %2019 = vmatmul.mubr.bf16.vlgmr.msra.gmra.mrb[44].mxu1 %v13207_v48  ;;  %v11394_v48 = vld [vmem:[%s17379_s3 + $0x48] sm:$0xff]  }
  0x98   : > { %2026 = vmatprep.mubr.bf16.mxu1 %v13212_v16  ;;  %10853 = vmatpush3.bf16.msra.mxu1 %v11393_v15  ;;  %v11395_v16 = vld [vmem:[%s17379_s3 + $0x8] sm:$0xff]  }
  0x99   : > { %10778 = vmatprep.subr.bf16.mxu0 %v11394_v48  ;;  %10854 = vmatprep.subr.bf16.mxu1 %v11396_v17 }
  0x9a   : > { %10779 = vmatpush3.bf16.msra.mxu0 %v11395_v16 }
  0x9b   : > { %10780 = vmatprep.subr.bf16.mxu0 %v11398_v62 }
  0x9c   : > { %1907 = vmatmul.mubr.bf16.gmra.mrb[48].mxu0 %v13236_v30  ;;  %v11400_v30 = vld [vmem:[%s17379_s3 + $0xd0] sm:$0xff]  }
  0x9d   : > { %1914 = vmatprep.mubr.bf16.mxu0 %v13248_v46  ;;  %v11402_v46 = vld [vmem:[%s17379_s3 + $0x58] sm:$0xff]  }
  0x9f   : > { %2027 = vmatmul.mubr.bf16.gmra.mrb[48].mxu1 %v13225_v63  ;;  %v11397_v63 = vld [vmem:[%s17379_s3 + $0x88] sm:$0xff]  }
  0xa0   : > { %2034 = vmatprep.mubr.bf16.mxu1 %v13232_v6  ;;  %10855 = vmatpush3.bf16.msra.mxu1 %v11397_v63  ;;  %v11399_v6 = vld [vmem:[%s17379_s3 + $0x10] sm:$0xff]  }
  0xa1   : > { %10856 = vmatprep.subr.bf16.mxu1 %v11400_v30  ;;  %10781 = vmatpush3.bf16.msra.mxu0 %v11399_v6 }
  0xa2   : > { %10782 = vmatprep.subr.bf16.mxu0 %v11402_v46 }
  0xa4   : > { %1915 = vmatmul.mubr.bf16.gmra.mrb[52].mxu0 %v13259_v41  ;;  %v11404_v41 = vld [vmem:[%s17379_s3 + $0xd8] sm:$0xff]  }
  0xa5   : > { %1922 = vmatprep.mubr.bf16.mxu0 %v13269_v12  ;;  %v11406_v12 = vld [vmem:[%s17379_s3 + $0x60] sm:$0xff]  }
  0xa7   : > { %2035 = vmatmul.mubr.bf16.gmra.mrb[52].mxu1 %v13243_v20  ;;  %v11401_v20 = vld [vmem:[%s17379_s3 + $0x90] sm:$0xff]  }
  0xa8   : > { %2042 = vmatprep.mubr.bf16.mxu1 %v13251_v60  ;;  %10857 = vmatpush3.bf16.msra.mxu1 %v11401_v20  ;;  %v11403_v60 = vld [vmem:[%s17379_s3 + $0x18] sm:$0xff]  }
  0xa9   : > { %10783 = vmatpush3.bf16.msra.mxu0 %v11403_v60  ;;  %10858 = vmatprep.subr.bf16.mxu1 %v11404_v41 }
  0xaa   : > { %10784 = vmatprep.subr.bf16.mxu0 %v11406_v12 }
  0xac   : > { %1923 = vmatmul.mubr.bf16.gmra.mrb[56].mxu0 %v13273_v39  ;;  %v11407_v39 = vld [vmem:[%s17379_s3 + $0x20] sm:$0xff]  }
  0xad   : > { %1930 = vmatprep.mubr.bf16.mxu0 %v13287_v21  ;;  %10785 = vmatpush3.bf16.msra.mxu0 %v11407_v39  ;;  %v11410_v21 = vld [vmem:[%s17379_s3 + $0x68] sm:$0xff]  }
  0xae   : > { %10786 = vmatprep.subr.bf16.mxu0 %v11410_v21 }
  0xaf   : > { %2043 = vmatmul.mubr.bf16.gmra.mrb[56].mxu1 %v13265_v9  ;;  %v11405_v9 = vld [vmem:[%s17379_s3 + $0x98] sm:$0xff]  }
  0xb0   : > { %2050 = vmatprep.mubr.bf16.mxu1 %v13278_v3  ;;  %10859 = vmatpush3.bf16.msra.mxu1 %v11405_v9  ;;  %v11408_v3 = vld [vmem:[%s17379_s3 + $0xe0] sm:$0xff]  }
  0xb1   : > { %10860 = vmatprep.subr.bf16.mxu1 %v11408_v3 }
  0xb4   : > { %1931 = vmatmul.mubr.bf16.gmra.mrb[60].mxu0 %v13292_v5  ;;  %v11411_v5 = vld [vmem:[%s17379_s3 + $0x28] sm:$0xff]  }
  0xb5   : > { %1938 = vmatprep.mubr.bf16.mxu0 %v13309_v10  ;;  %10787 = vmatpush3.bf16.msra.mxu0 %v11411_v5  ;;  %v11414_v10 = vld [vmem:[%s17379_s3 + $0x70] sm:$0xff]  }
  0xb6   : > { %10788 = vmatprep.subr.bf16.mxu0 %v11414_v10 }
  0xb7   : > { %2051 = vmatmul.mubr.bf16.gmra.mrb[60].mxu1 %v13283_v49  ;;  %v11409_v49 = vld [vmem:[%s17379_s3 + $0xa0] sm:$0xff]  }
  0xb8   : > { %2058 = vmatprep.mubr.bf16.mxu1 %v13299_v13  ;;  %10861 = vmatpush3.bf16.msra.mxu1 %v11409_v49  ;;  %v11412_v13 = vld [vmem:[%s17379_s3 + $0xe8] sm:$0xff]  }
  0xb9   : > { %10862 = vmatprep.subr.bf16.mxu1 %v11412_v13 }
  0xbc   : > { %1939 = vmatmul.mubr.bf16.gmra.mrb[64].mxu0 %v13313_v37  ;;  %v11415_v37 = vld [vmem:[%s17379_s3 + $0x30] sm:$0xff]  }
  0xbd   : > { %1946 = vmatprep.mubr.bf16.mxu0 %v13327_v44  ;;  %10789 = vmatpush3.bf16.msra.mxu0 %v11415_v37  ;;  %v11418_v44 = vld [vmem:[%s17379_s3 + $0x78] sm:$0xff]  }
  0xbe   : > { %10790 = vmatprep.subr.bf16.mxu0 %v11418_v44 }
  0xbf   : > { %2059 = vmatmul.mubr.bf16.gmra.mrb[64].mxu1 %v13305_v28  ;;  %v11413_v28 = vld [vmem:[%s17379_s3 + $0xa8] sm:$0xff]  }
  0xc0   : > { %2066 = vmatprep.mubr.bf16.mxu1 %v13318_v23  ;;  %10863 = vmatpush3.bf16.msra.mxu1 %v11413_v28  ;;  %v11416_v23 = vld [vmem:[%s17379_s3 + $0xf0] sm:$0xff]  }
  0xc1   : > { %10864 = vmatprep.subr.bf16.mxu1 %v11416_v23 }
  0xc4   : > { %1947 = vmatmul.mubr.bf16.gmra.mrb[68].mxu0 %v13333_v38  ;;  %v11419_v38 = vld [vmem:[%s17379_s3 + $0x38] sm:$0xff]  }
  0xc5   : > { %1954 = vmatprep.mubr.bf16.mxu0 %v13352_v61  ;;  %10791 = vmatpush3.bf16.msra.mxu0 %v11419_v38 }
  0xc7   : > { %2067 = vmatmul.mubr.bf16.gmra.mrb[68].mxu1 %v13323_v29  ;;  %v11417_v29 = vld [vmem:[%s17379_s3 + $0xb0] sm:$0xff]  }
  0xc8   : > { %2074 = vmatprep.mubr.bf16.mxu1 %v13340_v26  ;;  %10865 = vmatpush3.bf16.msra.mxu1 %v11417_v29  ;;  %v11420_v26 = vld [vmem:[%s17379_s3 + $0xf8] sm:$0xff]  }
  0xc9   : > { %10866 = vmatprep.subr.bf16.mxu1 %v11420_v26 }
  0xcc   : > { %1955 = vmatmul.mubr.bf16.gmra.mrb[72].mxu0 %v974_v56  ;;  %v13528_v56 = vld [vmem:[%s17378_s2] ss:$0 sm:$0xff] }
  0xcd   : > { %1962 = vmatprep.mubr.bf16.mxu0 %v1001_v50 }
  0xcf   : > { %2075 = vmatmul.mubr.bf16.gmra.mrb[72].mxu1 %v13348_v18  ;;  %v11421_v18 = vld [vmem:[%s17379_s3 + $0xb8] sm:$0xff]  }
  0xd0   : > { %2082 = vmatprep.mubr.bf16.mxu1 %v1080_v43  ;;  %10867 = vmatpush3.bf16.msra.mxu1 %v11421_v18 }
  0xd4   : > { %1963 = vmatmul.mubr.bf16.gmra.mrb[76].mxu0 %v992_v19 }
  0xd5   : > { %1970 = vmatprep.mubr.bf16.mxu0 %v1019_v14 }
  0xd7   : > { %2083 = vmatmul.mubr.bf16.gmra.mrb[76].mxu1 %v13368_v47 }
  0xd8   : > { %2090 = vmatprep.mubr.bf16.mxu1 %v1084_v24 }
  0xdc   : > { %1971 = vmatmul.mubr.bf16.gmra.mrb[80].mxu0 %v1010_v58 }
  0xdd   : > { %1978 = vmatprep.mubr.bf16.mxu0 %v1018_v31 }
  0xdf   : > { %2091 = vmatmul.mubr.bf16.gmra.mrb[80].mxu1 %v1082_v54 }
  0xe0   : > { %2098 = vmatprep.mubr.bf16.mxu1 %v1083_v4 }
  0xe4   : > { %1979 = vmatmul.mubr.bf16.gmra.mrb[84].mxu0 %v1009_v57 }
  0xe7   : > { %2099 = vmatmul.mubr.bf16.gmra.mrb[84].mxu1 %v1081_v55 }
 0x10f   : > { %v10464_v61 = vpop.f32.mrb[0].mxu0 }
 0x110   : > { %v10465_v8 = vpop.f32.mrb[1].mxu0 }
 0x111   : > { %v10466_v59 = vadd.f32 %v10465_v8, %v10464_v61  ;;  %v10467_v33 = vpop.f32.mrb[2].mxu0  ;;  %v10546_v0 = vpop.f32.mrb[0].mxu1 }
 0x112   : > { %v10468_v42 = vpop.f32.mrb[3].mxu0  ;;  %v10547_v11 = vpop.f32.mrb[1].mxu1 }
 0x113   : > { %v10469_v7 = vadd.f32 %v10468_v42, %v10467_v33  ;;  %v1661_v43 = vadd.f32 %v10466_v59, %v13528_v56  ;;  %v10548_v47 = vadd.f32 %v10547_v11, %v10546_v0  ;;  %v10549_v52 = vpop.f32.mrb[2].mxu1 }
 0x114   : > { %v10550_v22 = vpop.f32.mrb[3].mxu1 }
 0x115   : > { %v1664_v2 = vadd.f32 %v10469_v7, %v13528_v56  ;;  %v13532_v19 = vadd.f32 %v10548_v47, %v1661_v43  ;;  %v10551_v25 = vadd.f32 %v10550_v22, %v10549_v52 }
 0x117   : > { %v10470_v35 = vpop.f32.mrb[4].mxu0  ;;  %v13534_v53 = vadd.f32 %v10551_v25, %v1664_v2 }
 0x118   : > { %v10471_v50 = vpop.f32.mrb[5].mxu0 }
 0x119   : > { %v10472_v27 = vadd.f32 %v10471_v50, %v10470_v35  ;;  %v10473_v4 = vpop.f32.mrb[6].mxu0  ;;  %v10552_v36 = vpop.f32.mrb[4].mxu1 }
 0x11a   : > { %v10474_v51 = vpop.f32.mrb[7].mxu0  ;;  %v10553_v31 = vpop.f32.mrb[5].mxu1 }
 0x11b   : > { %v10475_v55 = vadd.f32 %v10474_v51, %v10473_v4  ;;  %v1669_v24 = vadd.f32 %v10472_v27, %v13528_v56  ;;  %v10554_v57 = vadd.f32 %v10553_v31, %v10552_v36  ;;  %v10555_v45 = vpop.f32.mrb[6].mxu1 }
 0x11c   : > { %v10556_v58 = vpop.f32.mrb[7].mxu1 }
 0x11d   : > { %v1672_v34 = vadd.f32 %v10475_v55, %v13528_v56  ;;  %v13538_v40 = vadd.f32 %v10554_v57, %v1669_v24  ;;  %v10557_v15 = vadd.f32 %v10556_v58, %v10555_v45 }
 0x11f   : > { %v10476_v54 = vpop.f32.mrb[8].mxu0  ;;  %v13540_v17 = vadd.f32 %v10557_v15, %v1672_v34 }
 0x120   : > { %v10477_v14 = vpop.f32.mrb[9].mxu0 }
 0x121   : > { %v10478_v32 = vadd.f32 %v10477_v14, %v10476_v54  ;;  %v10479_v1 = vpop.f32.mrb[10].mxu0  ;;  %v10558_v63 = vpop.f32.mrb[8].mxu1 }
 0x122   : > { %v10480_v48 = vpop.f32.mrb[11].mxu0  ;;  %v10559_v6 = vpop.f32.mrb[9].mxu1 }
 0x123   : > { %v10481_v16 = vadd.f32 %v10480_v48, %v10479_v1  ;;  %v1677_v62 = vadd.f32 %v10478_v32, %v13528_v56  ;;  %v10560_v20 = vadd.f32 %v10559_v6, %v10558_v63  ;;  %v10561_v46 = vpop.f32.mrb[10].mxu1 }
 0x124   : > { %v10562_v9 = vpop.f32.mrb[11].mxu1 }
 0x125   : > { %v1680_v60 = vadd.f32 %v10481_v16, %v13528_v56  ;;  %v13544_v3 = vadd.f32 %v10560_v20, %v1677_v62  ;;  %v10563_v49 = vadd.f32 %v10562_v9, %v10561_v46 }
 0x127   : > { %v10482_v30 = vpop.f32.mrb[12].mxu0  ;;  %v13546_v13 = vadd.f32 %v10563_v49, %v1680_v60 }
 0x128   : > { %v10483_v41 = vpop.f32.mrb[13].mxu0 }
 0x129   : > { %v10484_v12 = vadd.f32 %v10483_v41, %v10482_v30  ;;  %v10485_v39 = vpop.f32.mrb[14].mxu0  ;;  %v10564_v28 = vpop.f32.mrb[12].mxu1 }
 0x12a   : > { %v10486_v21 = vpop.f32.mrb[15].mxu0  ;;  %v10565_v37 = vpop.f32.mrb[13].mxu1 }
 0x12b   : > { %v10487_v5 = vadd.f32 %v10486_v21, %v10485_v39  ;;  %v1685_v10 = vadd.f32 %v10484_v12, %v13528_v56  ;;  %v10566_v29 = vadd.f32 %v10565_v37, %v10564_v28  ;;  %v10567_v44 = vpop.f32.mrb[14].mxu1 }
 0x12c   : > { %v10568_v18 = vpop.f32.mrb[15].mxu1 }
 0x12d   : > { %v1688_v38 = vadd.f32 %v10487_v5, %v13528_v56  ;;  %v13550_v59 = vadd.f32 %v10566_v29, %v1685_v10  ;;  %v10569_v33 = vadd.f32 %v10568_v18, %v10567_v44 }
 0x12f   : > { %v10488_v23 = vpop.f32.mrb[16].mxu0  ;;  %v13552_v0 = vadd.f32 %v10569_v33, %v1688_v38 }
 0x130   : > { %v10489_v26 = vpop.f32.mrb[17].mxu0 }
 0x131   : > { %v10490_v61 = vadd.f32 %v10489_v26, %v10488_v23  ;;  %v10491_v8 = vpop.f32.mrb[18].mxu0 }
 0x132   : > { %v10492_v42 = vpop.f32.mrb[19].mxu0  ;;  %v10570_v43 = vpop.f32.mrb[16].mxu1 }
 0x133   : > { %v10493_v7 = vadd.f32 %v10492_v42, %v10491_v8  ;;  %v1693_v11 = vadd.f32 %v10490_v61, %v13528_v56  ;;  %v10571_v35 = vpop.f32.mrb[17].mxu1 }
 0x134   : > { %v10572_v52 = vadd.f32 %v10571_v35, %v10570_v43  ;;  %v10573_v2 = vpop.f32.mrb[18].mxu1 }
 0x135   : > { %v1696_v50 = vadd.f32 %v10493_v7, %v13528_v56  ;;  %v10574_v27 = vpop.f32.mrb[19].mxu1 }
 0x136   : > { %v13556_v51 = vadd.f32 %v10572_v52, %v1693_v11  ;;  %v10575_v55 = vadd.f32 %v10574_v27, %v10573_v2 }
 0x137   : > { %v10494_v47 = vpop.f32.mrb[20].mxu0 }
 0x138   : > { %v10495_v22 = vpop.f32.mrb[21].mxu0  ;;  %v13558_v31 = vadd.f32 %v10575_v55, %v1696_v50 }
 0x139   : > { %v10496_v4 = vadd.f32 %v10495_v22, %v10494_v47  ;;  %v10497_v25 = vpop.f32.mrb[22].mxu0 }
 0x13a   : > { %v10498_v36 = vpop.f32.mrb[23].mxu0  ;;  %v10576_v54 = vpop.f32.mrb[20].mxu1 }
 0x13b   : > { %v10499_v24 = vadd.f32 %v10498_v36, %v10497_v25  ;;  %v1701_v57 = vadd.f32 %v10496_v4, %v13528_v56  ;;  %v10577_v45 = vpop.f32.mrb[21].mxu1 }
 0x13c   : > { %v10578_v14 = vadd.f32 %v10577_v45, %v10576_v54  ;;  %v10579_v58 = vpop.f32.mrb[22].mxu1 }
 0x13d   : > { %v1704_v32 = vadd.f32 %v10499_v24, %v13528_v56  ;;  %v10580_v15 = vpop.f32.mrb[23].mxu1 }
 0x13e   : > { %v13562_v63 = vadd.f32 %v10578_v14, %v1701_v57  ;;  %v10581_v62 = vadd.f32 %v10580_v15, %v10579_v58 }
 0x13f   : > { %v10500_v34 = vpop.f32.mrb[24].mxu0 }
 0x140   : > { %v10501_v1 = vpop.f32.mrb[25].mxu0  ;;  %v13564_v20 = vadd.f32 %v10581_v62, %v1704_v32 }
 0x141   : > { %v10502_v48 = vadd.f32 %v10501_v1, %v10500_v34  ;;  %v10503_v16 = vpop.f32.mrb[26].mxu0 }
 0x142   : > { %v10504_v6 = vpop.f32.mrb[27].mxu0  ;;  %v10582_v46 = vpop.f32.mrb[24].mxu1 }
 0x143   : > { %v10505_v30 = vadd.f32 %v10504_v6, %v10503_v16  ;;  %v1709_v60 = vadd.f32 %v10502_v48, %v13528_v56  ;;  %v10583_v41 = vpop.f32.mrb[25].mxu1 }
 0x144   : > { %v10584_v12 = vadd.f32 %v10583_v41, %v10582_v46  ;;  %v10585_v39 = vpop.f32.mrb[26].mxu1 }
 0x145   : > { %v1712_v49 = vadd.f32 %v10505_v30, %v13528_v56  ;;  %v10586_v5 = vpop.f32.mrb[27].mxu1 }
 0x146   : > { %v13568_v37 = vadd.f32 %v10584_v12, %v1709_v60  ;;  %v10587_v23 = vadd.f32 %v10586_v5, %v10585_v39 }
 0x147   : > { %v10506_v9 = vpop.f32.mrb[28].mxu0 }
 0x148   : > { %v10507_v21 = vpop.f32.mrb[29].mxu0  ;;  %v13570_v38 = vadd.f32 %v10587_v23, %v1712_v49 }
 0x149   : > { %v10508_v28 = vadd.f32 %v10507_v21, %v10506_v9  ;;  %v10509_v10 = vpop.f32.mrb[30].mxu0 }
 0x14a   : > { %v10510_v29 = vpop.f32.mrb[31].mxu0  ;;  %v10588_v26 = vpop.f32.mrb[28].mxu1 }
 0x14b   : > { %v10511_v44 = vadd.f32 %v10510_v29, %v10509_v10  ;;  %v1717_v18 = vadd.f32 %v10508_v28, %v13528_v56  ;;  %v10589_v61 = vpop.f32.mrb[29].mxu1 }
 0x14c   : > { %v10590_v33 = vadd.f32 %v10589_v61, %v10588_v26  ;;  %v10591_v42 = vpop.f32.mrb[30].mxu1 }
 0x14d   : > { %v1720_v7 = vadd.f32 %v10511_v44, %v13528_v56  ;;  %v10592_v11 = vpop.f32.mrb[31].mxu1 }
 0x14e   : > { %v13574_v52 = vadd.f32 %v10590_v33, %v1717_v18  ;;  %v10593_v2 = vadd.f32 %v10592_v11, %v10591_v42 }
 0x14f   : > { %v10512_v8 = vpop.f32.mrb[32].mxu0 }
 0x150   : > { %v10513_v43 = vpop.f32.mrb[33].mxu0  ;;  %v13576_v27 = vadd.f32 %v10593_v2, %v1720_v7 }
 0x151   : > { %v10514_v35 = vadd.f32 %v10513_v43, %v10512_v8  ;;  %v10515_v47 = vpop.f32.mrb[34].mxu0 }
 0x152   : > { %v10516_v50 = vpop.f32.mrb[35].mxu0  ;;  %v10594_v4 = vpop.f32.mrb[32].mxu1 }
 0x153   : > { %v10517_v22 = vadd.f32 %v10516_v50, %v10515_v47  ;;  %v1725_v25 = vadd.f32 %v10514_v35, %v13528_v56  ;;  %v10595_v55 = vpop.f32.mrb[33].mxu1 }
 0x154   : > { %v10596_v24 = vadd.f32 %v10595_v55, %v10594_v4  ;;  %v10597_v54 = vpop.f32.mrb[34].mxu1 }
 0x155   : > { %v1728_v57 = vadd.f32 %v10517_v22, %v13528_v56  ;;  %v10598_v34 = vpop.f32.mrb[35].mxu1 }
 0x156   : > { %v13580_v32 = vadd.f32 %v10596_v24, %v1725_v25  ;;  %v10599_v1 = vadd.f32 %v10598_v34, %v10597_v54 }
 0x157   : > { %v10518_v36 = vpop.f32.mrb[36].mxu0 }
 0x158   : > { %v10519_v45 = vpop.f32.mrb[37].mxu0  ;;  %v13582_v16 = vadd.f32 %v10599_v1, %v1728_v57 }
 0x159   : > { %v10520_v14 = vadd.f32 %v10519_v45, %v10518_v36  ;;  %v10521_v58 = vpop.f32.mrb[38].mxu0 }
 0x15a   : > { %v10522_v15 = vpop.f32.mrb[39].mxu0  ;;  %v10600_v62 = vpop.f32.mrb[36].mxu1 }
 0x15b   : > { %v10523_v48 = vadd.f32 %v10522_v15, %v10521_v58  ;;  %v1733_v6 = vadd.f32 %v10520_v14, %v13528_v56  ;;  %v10601_v30 = vpop.f32.mrb[37].mxu1 }
 0x15c   : > { %v10602_v60 = vadd.f32 %v10601_v30, %v10600_v62  ;;  %v10603_v41 = vpop.f32.mrb[38].mxu1 }
 0x15d   : > { %v1736_v9 = vadd.f32 %v10523_v48, %v13528_v56  ;;  %v10604_v39 = vpop.f32.mrb[39].mxu1 }
 0x15e   : > { %v13586_v5 = vadd.f32 %v10602_v60, %v1733_v6  ;;  %v10605_v28 = vadd.f32 %v10604_v39, %v10603_v41 }
 0x15f   : > { %v10524_v46 = vpop.f32.mrb[40].mxu0 }
 0x160   : > { %v10525_v12 = vpop.f32.mrb[41].mxu0  ;;  %v13588_v23 = vadd.f32 %v10605_v28, %v1736_v9 }
 0x161   : > { %v10526_v49 = vadd.f32 %v10525_v12, %v10524_v46  ;;  %v10527_v21 = vpop.f32.mrb[42].mxu0 }
 0x162   : > { %v10528_v10 = vpop.f32.mrb[43].mxu0  ;;  %v10606_v29 = vpop.f32.mrb[40].mxu1 }
 0x163   : > { %v1741_v44 = vadd.f32 %v10526_v49, %v13528_v56  ;;  %v10607_v26 = vpop.f32.mrb[41].mxu1 }
 0x164   : > { %v10608_v61 = vadd.f32 %v10607_v26, %v10606_v29  ;;  %v10609_v8 = vpop.f32.mrb[42].mxu1 }
 0x165   : > { %v10610_v42 = vpop.f32.mrb[43].mxu1 }
 0x166   : > { %v13591_v11 = vadd.f32 %v10608_v61, %v1741_v44 }
 0x167   : > { %v10628_v18 = vpop.f32.mrb[44].mxu0 }
 0x168   : > { %v10629_v33 = vpop.f32.mrb[45].mxu0 }
 0x169   : > { %v10630_v7 = vadd.f32 %v10629_v33, %v10628_v18  ;;  %v10631_v43 = vpop.f32.mrb[46].mxu0 }
 0x16a   : > { %v10632_v35 = vpop.f32.mrb[47].mxu0  ;;  %v10710_v22 = vpop.f32.mrb[44].mxu1 }
 0x16b   : > { %v1901_v47 = vadd.f32 %v10630_v7, %v13532_v19  ;;  %v10633_v2 = vadd.f32 %v10632_v35, %v10631_v43  ;;  %v10711_v4 = vpop.f32.mrb[45].mxu1 }
 0x16c   : > { %v10712_v56 = vadd.f32 %v10711_v4, %v10710_v22  ;;  %v10713_v55 = vpop.f32.mrb[46].mxu1 }
 0x16d   : > { %v1904_v50 = vadd.f32 %v10633_v2, %v13534_v53  ;;  %v10714_v24 = vpop.f32.mrb[47].mxu1 }
 0x16e   : > { %v2021_v45 = vadd.f32 %v10712_v56, %v1901_v47  ;;  %v10715_v34 = vadd.f32 %v10714_v24, %v10713_v55 }
 0x16f   : > { %v10634_v25 = vpop.f32.mrb[48].mxu0 }
 0x170   : > { %v10635_v36 = vpop.f32.mrb[49].mxu0  ;;  %v2024_v15 = vadd.f32 %v10715_v34, %v1904_v50  ;;  %v2106_v48 = vmax.f32 %v2021_v45, 0.0 }
 0x171   : > { %v10636_v54 = vadd.f32 %v10635_v36, %v10634_v25  ;;  %v10637_v57 = vpop.f32.mrb[50].mxu0 }
 0x172   : > { %v10638_v14 = vpop.f32.mrb[51].mxu0  ;;  %v2107_v53 = vmax.f32 %v2024_v15, 0.0  ;;  %v10716_v62 = vpop.f32.mrb[48].mxu1 }
 0x173   : > { %v1909_v58 = vadd.f32 %v10636_v54, %v13538_v40  ;;  %v10639_v1 = vadd.f32 %v10638_v14, %v10637_v57  ;;  %v10717_v6 = vpop.f32.mrb[49].mxu1 }
 0x174   : > { %v13597_v46 = vpack.c.bf16 %v2107_v53, %v2106_v48  ;;  %v10718_v60 = vadd.f32 %v10717_v6, %v10716_v62  ;;  %v10719_v41 = vpop.f32.mrb[50].mxu1 }
 0x175   : > { %v1912_v19 = vadd.f32 %v10639_v1, %v13540_v17  ;;  %v10720_v12 = vpop.f32.mrb[51].mxu1 }
 0x176   : > { %v2029_v21 = vadd.f32 %v10718_v60, %v1909_v58  ;;  %v10721_v28 = vadd.f32 %v10720_v12, %v10719_v41  ;;  %v2139_v44 = vshrl.u32 %v13597_v46, 16  ;;  %v2141_v18 = vshll.u32 %v13597_v46, 16 }
 0x177   : > { %v10640_v30 = vpop.f32.mrb[52].mxu0  ;;  %v2298_v43 = vrot.slane %v13597_v46, 7 }
 0x178   : > { %v10641_v9 = vpop.f32.mrb[53].mxu0  ;;  %v2032_v17 = vadd.f32 %v10721_v28, %v1912_v19  ;;  %v2108_v61 = vmax.f32 %v2029_v21, 0.0  ;;  %v2228_v50 = vrot.slane %v2139_v44, 6  ;;  %v2143_v25 = vrot.slane %v2141_v18, 1 }
 0x179   : > { %v10642_v39 = vadd.f32 %v10641_v9, %v10640_v30  ;;  %v10643_v49 = vpop.f32.mrb[54].mxu0  ;;  %v2229_v14 = vrot.slane %v2141_v18, 7 }
 0x17a   : > { %v10644_v40 = vpop.f32.mrb[55].mxu0  ;;  %v2109_v8 = vmax.f32 %v2032_v17, 0.0  ;;  %v10722_v33 = vpop.f32.mrb[52].mxu1  ;;  %v2144_v53 = vor.u32 %v2143_v25, %v2139_v44 }
 0x17b   : > { %v1917_v10 = vadd.f32 %v10642_v39, %v13544_v3  ;;  %v10645_v29 = vadd.f32 %v10644_v40, %v10643_v49  ;;  %v10723_v42 = vpop.f32.mrb[53].mxu1  ;;  %v2230_v9 = vor.u32 %v2229_v14, %v2228_v50 }
 0x17c   : > { %v13604_v35 = vpack.c.bf16 %v2109_v8, %v2108_v61  ;;  %v10724_v3 = vadd.f32 %v10723_v42, %v10722_v33  ;;  %v10725_v47 = vpop.f32.mrb[54].mxu1 }
 0x17d   : > { %v1920_v26 = vadd.f32 %v10645_v29, %v13546_v13  ;;  %v10726_v22 = vpop.f32.mrb[55].mxu1 }
 0x17e   : > { %v2150_v56 = vshrl.u32 %v13604_v35, 16  ;;  %v2037_v55 = vadd.f32 %v10724_v3, %v1917_v10  ;;  %v10727_v36 = vadd.f32 %v10726_v22, %v10725_v47  ;;  %v2299_v24 = vrot.slane %v13604_v35, 7 }
 0x17f   : > { %v10646_v7 = vpop.f32.mrb[56].mxu0  ;;  %v2146_v34 = vshll.u32 %v13604_v35, 16 }
 0x180   : > { %v10647_v2 = vpop.f32.mrb[57].mxu0  ;;  %v2110_v58 = vmax.f32 %v2037_v55, 0.0  ;;  %v2040_v1 = vadd.f32 %v10727_v36, %v1920_v26  ;;  %v2300_v15 = vsel %vm2297_vm3, %v2298_v43, %v2299_v24  ;;  %v2231_v19 = vrot.slane %v2150_v56, 6 }
 0x181   : > { %v10648_v4 = vadd.f32 %v10647_v2, %v10646_v7  ;;  %v10649_v13 = vpop.f32.mrb[58].mxu0  ;;  %2736 = vmatprep.mubr.bf16.mxu1 %v2300_v15  ;;  %v2148_v62 = vrot.slane %v2146_v34, 1  ;;  %v2232_v6 = vrot.slane %v2146_v34, 7 }
 0x182   : > { %v10650_v54 = vpop.f32.mrb[59].mxu0  ;;  %v2111_v30 = vmax.f32 %v2040_v1, 0.0  ;;  %v10728_v60 = vpop.f32.mrb[56].mxu1 }
 0x183   : > { %v1925_v57 = vadd.f32 %v10648_v4, %v13550_v59  ;;  %v10651_v45 = vadd.f32 %v10650_v54, %v10649_v13  ;;  %v10729_v41 = vpop.f32.mrb[57].mxu1  ;;  %v2149_v59 = vsel %vm601_vm0, %v2144_v53, %v2148_v62  ;;  %v2233_v12 = vor.u32 %v2232_v6, %v2231_v19 }
 0x184   : > { %v13613_v49 = vpack.c.bf16 %v2111_v30, %v2110_v58  ;;  %v10730_v21 = vadd.f32 %v10729_v41, %v10728_v60  ;;  %v10731_v28 = vpop.f32.mrb[58].mxu1  ;;  %2624 = vmatprep.mubr.bf16.mxu0 %v2149_v59  ;;  %v2152_v7 = vor.u32 %v2150_v56, %v2148_v62 }
 0x185   : > { %v1928_v48 = vadd.f32 %v10651_v45, %v13552_v0  ;;  %v10732_v10 = vpop.f32.mrb[59].mxu1  ;;  %2625 = vmatmul.mubr.bf16.vlgmr.msra.gmra.mrb[88].mxu0 %v13597_v46  ;;  %v2234_v0 = vsel %vm2227_vm4, %v2230_v9, %v2233_v12 }
 0x186   : > { %v2045_v44 = vadd.f32 %v10730_v21, %v1925_v57  ;;  %v10733_v26 = vadd.f32 %v10732_v10, %v10731_v28  ;;  %2737 = vmatmul.mubr.bf16.vlgmr.msra.gmra.mrb[88].mxu1 %v2234_v0  ;;  %v2301_v18 = vrot.slane %v13613_v49, 7  ;;  %v2154_v8 = vshll.u32 %v13613_v49, 16 }
 0x187   : > { %v10652_v39 = vpop.f32.mrb[60].mxu0  ;;  %v2158_v43 = vshrl.u32 %v13613_v49, 16 }
 0x188   : > { %v10653_v40 = vpop.f32.mrb[61].mxu0  ;;  %v2112_v3 = vmax.f32 %v2045_v44, 0.0  ;;  %v2048_v46 = vadd.f32 %v10733_v26, %v1928_v48  ;;  %v2302_v47 = vsel %vm2297_vm3, %v2299_v24, %v2301_v18  ;;  %v2156_v2 = vrot.slane %v2154_v8, 1 }
 0x189   : > { %v10654_v29 = vadd.f32 %v10653_v40, %v10652_v39  ;;  %v10655_v17 = vpop.f32.mrb[62].mxu0  ;;  %2744 = vmatprep.mubr.bf16.mxu1 %v2302_v47  ;;  %v2235_v22 = vrot.slane %v2158_v43, 6  ;;  %v2236_v4 = vrot.slane %v2154_v8, 7 }
 0x18a   : > { %v10656_v61 = vpop.f32.mrb[63].mxu0  ;;  %v2113_v13 = vmax.f32 %v2048_v46, 0.0  ;;  %v10734_v25 = vpop.f32.mrb[60].mxu1  ;;  %v2157_v55 = vsel %vm601_vm0, %v2152_v7, %v2156_v2  ;;  %v2160_v30 = vor.u32 %v2158_v43, %v2156_v2 }
 0x18b   : > { %v1933_v33 = vadd.f32 %v10654_v29, %v13556_v51  ;;  %v10657_v42 = vadd.f32 %v10656_v61, %v10655_v17  ;;  %v10735_v36 = vpop.f32.mrb[61].mxu1  ;;  %2632 = vmatprep.mubr.bf16.mxu0 %v2157_v55  ;;  %v2237_v51 = vor.u32 %v2236_v4, %v2235_v22 }
 0x18c   : > { %v13624_v54 = vpack.c.bf16 %v2113_v13, %v2112_v3  ;;  %v10736_v57 = vadd.f32 %v10735_v36, %v10734_v25  ;;  %v10737_v45 = vpop.f32.mrb[62].mxu1 }
 0x18d   : > { %v1936_v50 = vadd.f32 %v10657_v42, %v13558_v31  ;;  %2633 = vmatmul.mubr.bf16.gmra.mrb[92].mxu0 %v13604_v35  ;;  %v10738_v24 = vpop.f32.mrb[63].mxu1  ;;  %v2238_v31 = vsel %vm2227_vm4, %v2233_v12, %v2237_v51 }
 0x18e   : > { %v2053_v1 = vadd.f32 %v10736_v57, %v1933_v33  ;;  %v10739_v15 = vadd.f32 %v10738_v24, %v10737_v45  ;;  %2745 = vmatmul.mubr.bf16.gmra.mrb[92].mxu1 %v2238_v31  ;;  %v2303_v19 = vrot.slane %v13624_v54, 7  ;;  %v2162_v53 = vshll.u32 %v13624_v54, 16 }
 0x18f   : > { %v10658_v56 = vpop.f32.mrb[64].mxu0  ;;  %v2166_v60 = vshrl.u32 %v13624_v54, 16 }
 0x190   : > { %v10659_v34 = vpop.f32.mrb[65].mxu0  ;;  %v2114_v35 = vmax.f32 %v2053_v1, 0.0  ;;  %v2056_v41 = vadd.f32 %v10739_v15, %v1936_v50  ;;  %v2304_v59 = vsel %vm2297_vm3, %v2301_v18, %v2303_v19  ;;  %v2164_v9 = vrot.slane %v2162_v53, 1 }
 0x191   : > { %v10660_v14 = vadd.f32 %v10659_v34, %v10658_v56  ;;  %v10661_v58 = vpop.f32.mrb[66].mxu0  ;;  %2752 = vmatprep.mubr.bf16.mxu1 %v2304_v59  ;;  %v2239_v39 = vrot.slane %v2166_v60, 6  ;;  %v2240_v21 = vrot.slane %v2162_v53, 7 }
 0x192   : > { %v10662_v48 = vpop.f32.mrb[67].mxu0  ;;  %v2115_v28 = vmax.f32 %v2056_v41, 0.0  ;;  %v10740_v40 = vpop.f32.mrb[64].mxu1  ;;  %v2165_v10 = vsel %vm601_vm0, %v2160_v30, %v2164_v9  ;;  %v2168_v50 = vor.u32 %v2166_v60, %v2164_v9 }
 0x193   : > { %v1941_v62 = vadd.f32 %v10660_v14, %v13562_v63  ;;  %v10663_v6 = vadd.f32 %v10662_v48, %v10661_v58  ;;  %v10741_v0 = vpop.f32.mrb[65].mxu1  ;;  %2640 = vmatprep.mubr.bf16.mxu0 %v2165_v10  ;;  %v2241_v63 = vor.u32 %v2240_v21, %v2239_v39 }
 0x194   : > { %v13635_v17 = vpack.c.bf16 %v2115_v28, %v2114_v35  ;;  %v10742_v44 = vadd.f32 %v10741_v0, %v10740_v40  ;;  %v10743_v26 = vpop.f32.mrb[66].mxu1 }
 0x195   : > { %v1944_v12 = vadd.f32 %v10663_v6, %v13564_v20  ;;  %2641 = vmatmul.mubr.bf16.gmra.mrb[96].mxu0 %v13613_v49  ;;  %v10744_v18 = vpop.f32.mrb[67].mxu1  ;;  %v2242_v20 = vsel %vm2227_vm4, %v2237_v51, %v2241_v63 }
 0x196   : > { %v2061_v42 = vadd.f32 %v10742_v44, %v1941_v62  ;;  %v10745_v7 = vadd.f32 %v10744_v18, %v10743_v26  ;;  %2753 = vmatmul.mubr.bf16.gmra.mrb[96].mxu1 %v2242_v20  ;;  %v2305_v43 = vrot.slane %v13635_v17, 7  ;;  %v2170_v46 = vshll.u32 %v13635_v17, 16 }
 0x197   : > { %v10664_v29 = vpop.f32.mrb[68].mxu0  ;;  %v2174_v22 = vshrl.u32 %v13635_v17, 16 }
 0x198   : > { %v10665_v61 = vpop.f32.mrb[69].mxu0  ;;  %v2116_v49 = vmax.f32 %v2061_v42, 0.0  ;;  %v2064_v4 = vadd.f32 %v10745_v7, %v1944_v12  ;;  %v2306_v13 = vsel %vm2297_vm3, %v2303_v19, %v2305_v43  ;;  %v2172_v25 = vrot.slane %v2170_v46, 1 }
 0x199   : > { %v10666_v8 = vadd.f32 %v10665_v61, %v10664_v29  ;;  %v10667_v33 = vpop.f32.mrb[70].mxu0  ;;  %2760 = vmatprep.mubr.bf16.mxu1 %v2306_v13  ;;  %v2243_v36 = vrot.slane %v2174_v22, 6  ;;  %v2244_v51 = vrot.slane %v2170_v46, 7 }
 0x19a   : > { %v10668_v3 = vpop.f32.mrb[71].mxu0  ;;  %v2117_v56 = vmax.f32 %v2064_v4, 0.0  ;;  %v10746_v57 = vpop.f32.mrb[68].mxu1  ;;  %v2173_v45 = vsel %vm601_vm0, %v2168_v50, %v2172_v25  ;;  %v2176_v12 = vor.u32 %v2174_v22, %v2172_v25 }
 0x19b   : > { %v1949_v47 = vadd.f32 %v10666_v8, %v13568_v37  ;;  %v10669_v2 = vadd.f32 %v10668_v3, %v10667_v33  ;;  %v10747_v34 = vpop.f32.mrb[69].mxu1  ;;  %2648 = vmatprep.mubr.bf16.mxu0 %v2173_v45  ;;  %v2245_v37 = vor.u32 %v2244_v51, %v2243_v36 }
 0x19c   : > { %v13646_v31 = vpack.c.bf16 %v2117_v56, %v2116_v49  ;;  %v10748_v14 = vadd.f32 %v10747_v34, %v10746_v57  ;;  %v10749_v58 = vpop.f32.mrb[70].mxu1 }
 0x19d   : > { %v1952_v55 = vadd.f32 %v10669_v2, %v13570_v38  ;;  %2649 = vmatmul.mubr.bf16.gmra.mrb[100].mxu0 %v13624_v54  ;;  %v10750_v15 = vpop.f32.mrb[71].mxu1  ;;  %v2246_v38 = vsel %vm2227_vm4, %v2241_v63, %v2245_v37 }
 0x19e   : > { %v2069_v53 = vadd.f32 %v10748_v14, %v1949_v47  ;;  %v10751_v62 = vadd.f32 %v10750_v15, %v10749_v58  ;;  %2761 = vmatmul.mubr.bf16.gmra.mrb[100].mxu1 %v2246_v38  ;;  %v2307_v6 = vrot.slane %v13646_v31, 7  ;;  %v2178_v60 = vshll.u32 %v13646_v31, 16 }
 0x19f   : > { %v10670_v24 = vpop.f32.mrb[72].mxu0  ;;  %v2182_v59 = vshrl.u32 %v13646_v31, 16 }
 0x1a0   : > { %v10671_v1 = vpop.f32.mrb[73].mxu0  ;;  %v2072_v9 = vadd.f32 %v10751_v62, %v1952_v55  ;;  %v2308_v54 = vsel %vm2297_vm3, %v2305_v43, %v2307_v6  ;;  %v2180_v39 = vrot.slane %v2178_v60, 1  ;;  %v2248_v40 = vrot.slane %v2178_v60, 7 }
 0x1a1   : > { %v10672_v19 = vadd.f32 %v10671_v1, %v10670_v24  ;;  %v10673_v48 = vpop.f32.mrb[74].mxu0  ;;  %2768 = vmatprep.mubr.bf16.mxu1 %v2308_v54  ;;  %v2247_v28 = vrot.slane %v2182_v59, 6  ;;  %v2118_v10 = vmax.f32 %v2069_v53, 0.0 }
 0x1a2   : > { %v10674_v30 = vpop.f32.mrb[75].mxu0  ;;  %v2119_v0 = vmax.f32 %v2072_v9, 0.0  ;;  %v10752_v63 = vpop.f32.mrb[72].mxu1  ;;  %v2181_v29 = vsel %vm601_vm0, %v2176_v12, %v2180_v39  ;;  %v2184_v13 = vor.u32 %v2182_v59, %v2180_v39 }
 0x1a3   : > { %v1957_v35 = vadd.f32 %v10672_v19, %v13574_v52  ;;  %v10675_v41 = vadd.f32 %v10674_v30, %v10673_v48  ;;  %v10753_v44 = vpop.f32.mrb[73].mxu1  ;;  %2656 = vmatprep.mubr.bf16.mxu0 %v2181_v29  ;;  %v2249_v52 = vor.u32 %v2248_v40, %v2247_v28 }
 0x1a4   : > { %v13657_v61 = vpack.c.bf16 %v2119_v0, %v2118_v10  ;;  %v10754_v18 = vadd.f32 %v10753_v44, %v10752_v63  ;;  %v10755_v20 = vpop.f32.mrb[74].mxu1 }
 0x1a5   : > { %v1960_v21 = vadd.f32 %v10675_v41, %v13576_v27  ;;  %2657 = vmatmul.mubr.bf16.gmra.mrb[104].mxu0 %v13635_v17  ;;  %v10756_v33 = vpop.f32.mrb[75].mxu1  ;;  %v2250_v27 = vsel %vm2227_vm4, %v2245_v37, %v2249_v52 }
 0x1a6   : > { %v2077_v43 = vadd.f32 %v10754_v18, %v1957_v35  ;;  %v10757_v3 = vadd.f32 %v10756_v33, %v10755_v20  ;;  %2769 = vmatmul.mubr.bf16.gmra.mrb[104].mxu1 %v2250_v27  ;;  %v2309_v46 = vrot.slane %v13657_v61, 7  ;;  %v2186_v2 = vshll.u32 %v13657_v61, 16 }
 0x1a7   : > { %v10676_v26 = vpop.f32.mrb[76].mxu0  ;;  %v2190_v49 = vshrl.u32 %v13657_v61, 16 }
 0x1a8   : > { %v10677_v8 = vpop.f32.mrb[77].mxu0  ;;  %v2080_v4 = vadd.f32 %v10757_v3, %v1960_v21  ;;  %v2310_v17 = vsel %vm2297_vm3, %v2307_v6, %v2309_v46  ;;  %v2188_v25 = vrot.slane %v2186_v2, 1  ;;  %v2252_v51 = vrot.slane %v2186_v2, 7 }
 0x1a9   : > { %v10678_v42 = vadd.f32 %v10677_v8, %v10676_v26  ;;  %v10679_v7 = vpop.f32.mrb[78].mxu0  ;;  %2776 = vmatprep.mubr.bf16.mxu1 %v2310_v17  ;;  %v2251_v36 = vrot.slane %v2190_v49, 6  ;;  %v2120_v56 = vmax.f32 %v2077_v43, 0.0 }
 0x1aa   : > { %v10680_v47 = vpop.f32.mrb[79].mxu0  ;;  %v2121_v57 = vmax.f32 %v2080_v4, 0.0  ;;  %v10758_v45 = vpop.f32.mrb[76].mxu1  ;;  %v2189_v34 = vsel %vm601_vm0, %v2184_v13, %v2188_v25  ;;  %v2192_v54 = vor.u32 %v2190_v49, %v2188_v25 }
 0x1ab   : > { %v1965_v50 = vadd.f32 %v10678_v42, %v13580_v32  ;;  %v10681_v22 = vadd.f32 %v10680_v47, %v10679_v7  ;;  %v10759_v37 = vpop.f32.mrb[77].mxu1  ;;  %2664 = vmatprep.mubr.bf16.mxu0 %v2189_v34  ;;  %v2253_v32 = vor.u32 %v2252_v51, %v2251_v36 }
 0x1ac   : > { %v13668_v14 = vpack.c.bf16 %v2121_v57, %v2120_v56  ;;  %v10760_v58 = vadd.f32 %v10759_v37, %v10758_v45  ;;  %v10761_v1 = vpop.f32.mrb[78].mxu1 }
 0x1ad   : > { %v1968_v55 = vadd.f32 %v10681_v22, %v13582_v16  ;;  %2665 = vmatmul.mubr.bf16.gmra.mrb[108].mxu0 %v13646_v31  ;;  %v10762_v38 = vpop.f32.mrb[79].mxu1  ;;  %v2254_v16 = vsel %vm2227_vm4, %v2249_v52, %v2253_v32 }
 0x1ae   : > { %v2085_v53 = vadd.f32 %v10760_v58, %v1965_v50  ;;  %v10763_v62 = vadd.f32 %v10762_v38, %v10761_v1  ;;  %2777 = vmatmul.mubr.bf16.gmra.mrb[108].mxu1 %v2254_v16  ;;  %v2311_v6 = vrot.slane %v13668_v14, 7  ;;  %v2194_v60 = vshll.u32 %v13668_v14, 16 }
 0x1af   : > { %v10682_v24 = vpop.f32.mrb[80].mxu0  ;;  %v2198_v59 = vshrl.u32 %v13668_v14, 16 }
 0x1b0   : > { %v10683_v15 = vpop.f32.mrb[81].mxu0  ;;  %v2088_v9 = vadd.f32 %v10763_v62, %v1968_v55  ;;  %v2312_v31 = vsel %vm2297_vm3, %v2309_v46, %v2311_v6  ;;  %v2196_v12 = vrot.slane %v2194_v60, 1  ;;  %v2256_v28 = vrot.slane %v2194_v60, 7 }
 0x1b1   : > { %v10684_v19 = vadd.f32 %v10683_v15, %v10682_v24  ;;  %v10685_v48 = vpop.f32.mrb[82].mxu0  ;;  %2784 = vmatprep.mubr.bf16.mxu1 %v2312_v31  ;;  %v2255_v21 = vrot.slane %v2198_v59, 6  ;;  %v2122_v40 = vmax.f32 %v2085_v53, 0.0 }
 0x1b2   : > { %v10686_v30 = vpop.f32.mrb[83].mxu0  ;;  %v2123_v10 = vmax.f32 %v2088_v9, 0.0  ;;  %v10764_v0 = vpop.f32.mrb[80].mxu1  ;;  %v2197_v63 = vsel %vm601_vm0, %v2192_v54, %v2196_v12  ;;  %v2200_v49 = vor.u32 %v2198_v59, %v2196_v12 }
 0x1b3   : > { %v1973_v35 = vadd.f32 %v10684_v19, %v13586_v5  ;;  %v10687_v41 = vadd.f32 %v10686_v30, %v10685_v48  ;;  %v10765_v29 = vpop.f32.mrb[81].mxu1  ;;  %2672 = vmatprep.mubr.bf16.mxu0 %v2197_v63  ;;  %v2257_v5 = vor.u32 %v2256_v28, %v2255_v21  ;;  %v11422_v21 = vld [vmem:[%s17381_s5 + $0x40] sm:$0xff]  }
 0x1b4   : > { %v2135_v52 = vpack.c.bf16 %v2123_v10, %v2122_v40  ;;  %v10766_v26 = vadd.f32 %v10765_v29, %v10764_v0  ;;  %v10767_v18 = vpop.f32.mrb[82].mxu1  ;;  %10928 = vmatprep.subr.bf16.mxu0 %v11422_v21  ;;  %v11423_v28 = vld [vmem:[%s17381_s5] sm:$0xff]   ;;  %v11424_v40 = vld [vmem:[%s17381_s5 + $0x48] sm:$0xff]   ;;  %v11426_v0 = vld [vmem:[%s17381_s5 + $0x50] sm:$0xff]  }
 0x1b5   : > { %v1976_v39 = vadd.f32 %v10687_v41, %v13588_v23  ;;  %2673 = vmatmul.mubr.bf16.gmra.mrb[112].mxu0 %v13657_v61  ;;  %v10768_v8 = vpop.f32.mrb[83].mxu1  ;;  %v2258_v23 = vsel %vm2227_vm4, %v2253_v32, %v2257_v5  ;;  %v11425_v10 = vld [vmem:[%s17381_s5 + $0x8] sm:$0xff]   ;;  %v11432_v63 = vld [vmem:[%s17381_s5 + $0xc0] sm:$0xff]   ;;  %v11427_v29 = vld [vmem:[%s17381_s5 + $0x10] sm:$0xff]  }
 0x1b6   : > { %v2093_v42 = vadd.f32 %v10766_v26, %v1973_v35  ;;  %v10769_v7 = vadd.f32 %v10768_v8, %v10767_v18  ;;  %2785 = vmatmul.mubr.bf16.gmra.mrb[112].mxu1 %v2258_v23  ;;  %v2313_v43 = vrot.slane %v2135_v52, 7  ;;  %v2202_v3 = vshll.u32 %v2135_v52, 16  ;;  %10929 = vmatpush3.bf16.msra.mxu0 %v11423_v28  ;;  %v11430_v26 = vld [vmem:[%s17381_s5 + $0x60] sm:$0xff]   ;;  %v11435_v8 = vld [vmem:[%s17381_s5 + $0x28] sm:$0xff]   ;;  %v11436_v23 = vld [vmem:[%s17381_s5 + $0x70] sm:$0xff]  }
 0x1b7   : > { %v10688_v44 = vpop.f32.mrb[84].mxu0  ;;  %v2206_v2 = vshrl.u32 %v2135_v52, 16  ;;  %10930 = vmatprep.subr.bf16.mxu0 %v11424_v40  ;;  %10992 = vmatprep.subr.bf16.mxu1 %v11432_v63  ;;  %v11431_v18 = vld [vmem:[%s17381_s5 + $0x20] sm:$0xff]   ;;  %v11441_v28 = vld [vmem:[%s17381_s5 + $0x88] sm:$0xff]  }
 0x1b8   : > { %v10689_v20 = vpop.f32.mrb[85].mxu0  ;;  %v2096_v50 = vadd.f32 %v10769_v7, %v1976_v39  ;;  %v2314_v22 = vsel %vm2297_vm3, %v2311_v6, %v2313_v43  ;;  %v2204_v4 = vrot.slane %v2202_v3, 1  ;;  %v2260_v17 = vrot.slane %v2202_v3, 7 }
 0x1b9   : > { %v10690_v33 = vadd.f32 %v10689_v20, %v10688_v44  ;;  %v10691_v27 = vpop.f32.mrb[86].mxu0  ;;  %2792 = vmatprep.mubr.bf16.mxu1 %v2314_v22  ;;  %v2259_v61 = vrot.slane %v2206_v2, 6  ;;  %v2124_v13 = vmax.f32 %v2093_v42, 0.0  ;;  %v11428_v44 = vld [vmem:[%s17381_s5 + $0x58] sm:$0xff]   ;;  %v11434_v20 = vld [vmem:[%s17381_s5 + $0x68] sm:$0xff]  }
 0x1ba   : > { %v10692_v46 = vpop.f32.mrb[87].mxu0  ;;  %v2125_v25 = vmax.f32 %v2096_v50, 0.0  ;;  %v10770_v55 = vpop.f32.mrb[84].mxu1  ;;  %v2205_v36 = vsel %vm601_vm0, %v2200_v49, %v2204_v4  ;;  %v2208_v15 = vor.u32 %v2206_v2, %v2204_v4  ;;  %10931 = vmatpush3.bf16.msra.mxu0 %v11425_v10  ;;  %v13742_v42 = vld [vmem:[%s17380_s4] ss:$0 sm:$0xff] }
 0x1bb   : > { %v1981_v47 = vadd.f32 %v10690_v33, %v13591_v11  ;;  %v10771_v51 = vpop.f32.mrb[85].mxu1  ;;  %2680 = vmatprep.mubr.bf16.mxu0 %v2205_v36  ;;  %v2261_v56 = vor.u32 %v2260_v17, %v2259_v61  ;;  %10932 = vmatprep.subr.bf16.mxu0 %v11426_v0  ;;  %v11437_v33 = vld [vmem:[%s17381_s5 + $0x30] sm:$0xff]  }
 0x1bc   : > { %v2136_v57 = vpack.c.bf16 %v2125_v25, %v2124_v13  ;;  %v10772_v45 = vadd.f32 %v10771_v51, %v10770_v55  ;;  %v10773_v11 = vpop.f32.mrb[86].mxu1 }
 0x1bd   : > { %2681 = vmatmul.mubr.bf16.gmra.mrb[116].mxu0 %v13668_v14  ;;  %v2262_v34 = vsel %vm2227_vm4, %v2257_v5, %v2261_v56  ;;  %v10774_v37 = vpop.f32.mrb[87].mxu1  ;;  %v11433_v5 = vld [vmem:[%s17381_s5 + $0x80] sm:$0xff]  }
 0x1be   : > { %v2101_v32 = vadd.f32 %v10772_v45, %v1981_v47  ;;  %2793 = vmatmul.mubr.bf16.gmra.mrb[116].mxu1 %v2262_v34  ;;  %v2315_v24 = vrot.slane %v2136_v57, 7  ;;  %v2210_v58 = vshll.u32 %v2136_v57, 16  ;;  %v2214_v1 = vshrl.u32 %v2136_v57, 16  ;;  %10933 = vmatpush3.bf16.msra.mxu0 %v11427_v29 }
 0x1bf   : > { %10993 = vmatpush3.bf16.msra.mxu1 %v11433_v5  ;;  %10934 = vmatprep.subr.bf16.mxu0 %v11428_v44 }
 0x1c0   : > { %v2126_v38 = vmax.f32 %v2101_v32, 0.0  ;;  %v2316_v16 = vsel %vm2297_vm3, %v2313_v43, %v2315_v24  ;;  %v2212_v19 = vrot.slane %v2210_v58, 1  ;;  %v2263_v48 = vrot.slane %v2214_v1, 6 }
 0x1c1   : > { %2800 = vmatprep.mubr.bf16.mxu1 %v2316_v16  ;;  %v2264_v53 = vrot.slane %v2210_v58, 7 }
 0x1c2   : > { %v2137_v62 = vpack.c.bf16 %v2126_v38, %v2126_v38  ;;  %v2213_v6 = vsel %vm601_vm0, %v2208_v15, %v2212_v19  ;;  %v2216_v14 = vor.u32 %v2214_v1, %v2212_v19 }
 0x1c3   : > { %2688 = vmatprep.mubr.bf16.mxu0 %v2213_v6  ;;  %v2265_v30 = vor.u32 %v2264_v53, %v2263_v48 }
 0x1c4   : > { %v2268_v60 = vshrl.u32 %v2137_v62, 16  ;;  %v2271_v35 = vshll.u32 %v2137_v62, 16  ;;  %v2317_v41 = vrot.slane %v2137_v62, 7  ;;  %v11438_v62 = vld [vmem:[%s17381_s5 + $0x78] sm:$0xff]  }
 0x1c5   : > { %2689 = vmatmul.mubr.bf16.gmra.mrb[120].mxu0 %v2135_v52  ;;  %v2266_v59 = vsel %vm2227_vm4, %v2261_v56, %v2265_v30  ;;  %v11429_v52 = vld [vmem:[%s17381_s5 + $0x18] sm:$0xff]  }
 0x1c6   : > { %2696 = vmatprep.mubr.bf16.mxu0 %v2216_v14  ;;  %2801 = vmatmul.mubr.bf16.gmra.mrb[120].mxu1 %v2266_v59  ;;  %v2318_v9 = vsel %vm2297_vm3, %v2315_v24, %v2317_v41  ;;  %v2270_v31 = vrot.slane %v2268_v60, 6  ;;  %v2273_v54 = vrot.slane %v2271_v35, 7  ;;  %v11439_v59 = vld [vmem:[%s17381_s5 + $0xc8] sm:$0xff]  }
 0x1c7   : > { %2808 = vmatprep.mubr.bf16.mxu1 %v2318_v9  ;;  %10935 = vmatpush3.bf16.msra.mxu0 %v11429_v52  ;;  %v11440_v9 = vld [vmem:[%s17381_s5 + $0x38] sm:$0xff]  }
 0x1c8   : > { %v2274_v12 = vor.u32 %v2273_v54, %v2270_v31  ;;  %10936 = vmatprep.subr.bf16.mxu0 %v11430_v26  ;;  %10994 = vmatprep.subr.bf16.mxu1 %v11439_v59 }
 0x1c9   : > { %10995 = vmatpush3.bf16.msra.mxu1 %v11441_v28 }
 0x1ca   : > { %v2275_v39 = vsel %vm2227_vm4, %v2265_v30, %v2274_v12 }
 0x1cb   : > { %10937 = vmatpush3.bf16.msra.mxu0 %v11431_v18 }
 0x1cc   : > { %10938 = vmatprep.subr.bf16.mxu0 %v11434_v20 }
 0x1cd   : > { %2697 = vmatmul.mubr.bf16.gmra.mrb[124].mxu0 %v2136_v57 }
 0x1ce   : > { %2809 = vmatmul.mubr.bf16.gmra.mrb[124].mxu1 %v2275_v39 }
 0x1cf   : > { %10939 = vmatpush3.bf16.msra.mxu0 %v11435_v8 }
 0x1d0   : > { %10940 = vmatprep.subr.bf16.mxu0 %v11436_v23 }
 0x1d3   : > { %10941 = vmatpush3.bf16.msra.mxu0 %v11437_v33 }
 0x1d4   : > { %10942 = vmatprep.subr.bf16.mxu0 %v11438_v62 }
 0x1d7   : > { %10943 = vmatpush3.bf16.msra.mxu0 %v11440_v9 }
 0x258   : > { %v10792_v27 = vpop.f32.mrb[88].mxu0 }
 0x259   : > { %v10793_v7 = vpop.f32.mrb[89].mxu0  ;;  %v10868_v43 = vpop.f32.mrb[88].mxu1 }
 0x25a   : > { %v10794_v3 = vadd.f32 %v10793_v7, %v10792_v27  ;;  %v10795_v46 = vpop.f32.mrb[90].mxu0  ;;  %v10869_v47 = vpop.f32.mrb[89].mxu1 }
 0x25b   : > { %v10870_v2 = vadd.f32 %v10869_v47, %v10868_v43  ;;  %v10796_v50 = vpop.f32.mrb[91].mxu0  ;;  %v10871_v22 = vpop.f32.mrb[90].mxu1 }
 0x25c   : > { %v2627_v49 = vadd.f32 %v10794_v3, %v13742_v42  ;;  %v10797_v4 = vadd.f32 %v10796_v50, %v10795_v46  ;;  %v10872_v61 = vpop.f32.mrb[91].mxu1 }
 0x25d   : > { %v10873_v17 = vadd.f32 %v10872_v61, %v10871_v22 }
 0x25e   : > { %v2739_v13 = vadd.f32 %v10870_v2, %v2627_v49  ;;  %v2630_v25 = vadd.f32 %v10797_v4, %v13742_v42 }
 0x260   : > { %v2742_v55 = vadd.f32 %v10873_v17, %v2630_v25  ;;  %v10798_v36 = vpop.f32.mrb[92].mxu0  ;;  %v2816_v57 = vmax.f32 %v2739_v13, 0.0  ;;  %v11442_v25 = vld [vmem:[%s17381_s5 + $0xd0] sm:$0xff]  }
 0x261   : > { %v10799_v51 = vpop.f32.mrb[93].mxu0  ;;  %v10874_v56 = vpop.f32.mrb[92].mxu1  ;;  %10996 = vmatprep.subr.bf16.mxu1 %v11442_v25 }
 0x262   : > { %v2817_v45 = vmax.f32 %v2742_v55, 0.0  ;;  %v10800_v11 = vadd.f32 %v10799_v51, %v10798_v36  ;;  %v10801_v34 = vpop.f32.mrb[94].mxu0  ;;  %v10875_v37 = vpop.f32.mrb[93].mxu1 }
 0x263   : > { %v10876_v32 = vadd.f32 %v10875_v37, %v10874_v56  ;;  %v10802_v24 = vpop.f32.mrb[95].mxu0  ;;  %v10877_v58 = vpop.f32.mrb[94].mxu1 }
 0x264   : > { %v13746_v1 = vpack.c.bf16 %v2817_v45, %v2816_v57  ;;  %v2635_v15 = vadd.f32 %v10800_v11, %v13742_v42  ;;  %v10803_v38 = vadd.f32 %v10802_v24, %v10801_v34  ;;  %v10878_v16 = vpop.f32.mrb[95].mxu1  ;;  %v11443_v57 = vld [vmem:[%s17381_s5 + $0x90] sm:$0xff]  }
 0x265   : > { %v10879_v19 = vadd.f32 %v10878_v16, %v10877_v58  ;;  %10997 = vmatpush3.bf16.msra.mxu1 %v11443_v57  ;;  %v11448_v57 = vld [vmem:[%s17381_s5 + $0xe8] sm:$0xff]  }
 0x266   : > { %v2747_v48 = vadd.f32 %v10876_v32, %v2635_v15  ;;  %v2638_v53 = vadd.f32 %v10803_v38, %v13742_v42  ;;  %v13754_v35 = vshrl.u32 %v13746_v1, 16  ;;  %v2848_v41 = vshll.u32 %v13746_v1, 16 }
 0x268   : > { %v2750_v6 = vadd.f32 %v10879_v19, %v2638_v53  ;;  %v10804_v14 = vpop.f32.mrb[96].mxu0  ;;  %v2818_v31 = vmax.f32 %v2747_v48, 0.0  ;;  %v2948_v26 = vrot.slane %v13754_v35, 6  ;;  %v2949_v18 = vrot.slane %v2848_v41, 7 }
 0x269   : > { %v10805_v30 = vpop.f32.mrb[97].mxu0  ;;  %v10880_v60 = vpop.f32.mrb[96].mxu1  ;;  %v2850_v50 = vrot.slane %v2848_v41, 1 }
 0x26a   : > { %v2819_v54 = vmax.f32 %v2750_v6, 0.0  ;;  %v10806_v12 = vadd.f32 %v10805_v30, %v10804_v14  ;;  %v10807_v39 = vpop.f32.mrb[98].mxu0  ;;  %v10881_v21 = vpop.f32.mrb[97].mxu1  ;;  %v2950_v2 = vor.u32 %v2949_v18, %v2948_v26 }
 0x26b   : > { %v10882_v40 = vadd.f32 %v10881_v21, %v10880_v60  ;;  %v10808_v10 = vpop.f32.mrb[99].mxu0  ;;  %v10883_v0 = vpop.f32.mrb[98].mxu1  ;;  %v2851_v58 = vor.u32 %v2850_v50, %v13754_v35  ;;  %v11445_v21 = vld [vmem:[%s17381_s5 + $0x98] sm:$0xff]  }
 0x26c   : > { %v13766_v63 = vpack.c.bf16 %v2819_v54, %v2818_v31  ;;  %v2643_v29 = vadd.f32 %v10806_v12, %v13742_v42  ;;  %v10809_v5 = vadd.f32 %v10808_v10, %v10807_v39  ;;  %v10884_v44 = vpop.f32.mrb[99].mxu1  ;;  %v11444_v39 = vld [vmem:[%s17381_s5 + $0xd8] sm:$0xff]  }
 0x26d   : > { %v10885_v52 = vadd.f32 %v10884_v44, %v10883_v0  ;;  %10998 = vmatprep.subr.bf16.mxu1 %v11444_v39 }
 0x26e   : > { %v2755_v20 = vadd.f32 %v10882_v40, %v2643_v29  ;;  %v2646_v8 = vadd.f32 %v10809_v5, %v13742_v42  ;;  %v13772_v23 = vshll.u32 %v13766_v63, 16  ;;  %v13775_v33 = vshrl.u32 %v13766_v63, 16  ;;  %10999 = vmatpush3.bf16.msra.mxu1 %v11445_v21 }
 0x270   : > { %v2758_v27 = vadd.f32 %v10885_v52, %v2646_v8  ;;  %v10810_v7 = vpop.f32.mrb[100].mxu0  ;;  %v2951_v43 = vrot.slane %v13775_v33, 6  ;;  %v2952_v3 = vrot.slane %v13772_v23, 7  ;;  %v2820_v22 = vmax.f32 %v2755_v20, 0.0  ;;  %v11446_v8 = vld [vmem:[%s17381_s5 + $0xe0] sm:$0xff]  }
 0x271   : > { %v10811_v46 = vpop.f32.mrb[101].mxu0  ;;  %v10886_v47 = vpop.f32.mrb[100].mxu1  ;;  %v2855_v56 = vrot.slane %v13772_v23, 1  ;;  %11000 = vmatprep.subr.bf16.mxu1 %v11446_v8  ;;  %v11453_v8 = vld [vmem:[%s17381_s5 + $0xb8] sm:$0xff]  }
 0x272   : > { %v2821_v49 = vmax.f32 %v2758_v27, 0.0  ;;  %v10812_v4 = vadd.f32 %v10811_v46, %v10810_v7  ;;  %v10813_v61 = vpop.f32.mrb[102].mxu0  ;;  %v10887_v17 = vpop.f32.mrb[101].mxu1  ;;  %v2953_v13 = vor.u32 %v2952_v3, %v2951_v43  ;;  %v11447_v27 = vld [vmem:[%s17381_s5 + $0xa0] sm:$0xff]  }
 0x273   : > { %v10888_v55 = vadd.f32 %v10887_v17, %v10886_v47  ;;  %v10814_v36 = vpop.f32.mrb[103].mxu0  ;;  %v10889_v51 = vpop.f32.mrb[102].mxu1  ;;  %v2856_v62 = vsel %vm601_vm0, %v2851_v58, %v2855_v56  ;;  %v2859_v20 = vor.u32 %v13775_v33, %v2855_v56  ;;  %11001 = vmatpush3.bf16.msra.mxu1 %v11447_v27 }
 0x274   : > { %v13786_v45 = vpack.c.bf16 %v2821_v49, %v2820_v22  ;;  %v2651_v11 = vadd.f32 %v10812_v4, %v13742_v42  ;;  %v10815_v34 = vadd.f32 %v10814_v36, %v10813_v61  ;;  %v10890_v37 = vpop.f32.mrb[103].mxu1  ;;  %v2954_v32 = vsel %vm2227_vm4, %v2950_v2, %v2953_v13  ;;  %11002 = vmatprep.subr.bf16.mxu1 %v11448_v57 }
 0x275   : > { %v10891_v24 = vadd.f32 %v10890_v37, %v10889_v51  ;;  %2988 = vrot.lane.b32.xlu0 %v2954_v32, %s17395_s27 }
 0x276   : > { %v2763_v15 = vadd.f32 %v10888_v55, %v2651_v11  ;;  %v2654_v38 = vadd.f32 %v10815_v34, %v13742_v42  ;;  %v13794_v16 = vshll.u32 %v13786_v45, 16  ;;  %v13797_v19 = vshrl.u32 %v13786_v45, 16  ;;  %v11449_v11 = vld [vmem:[%s17381_s5 + $0xa8] sm:$0xff]  }
 0x277   : > { %11003 = vmatpush3.bf16.msra.mxu1 %v11449_v11 }
 0x278   : > { %v2766_v48 = vadd.f32 %v10891_v24, %v2654_v38  ;;  %v10816_v53 = vpop.f32.mrb[104].mxu0  ;;  %v2955_v6 = vrot.slane %v13797_v19, 6  ;;  %v2956_v14 = vrot.slane %v13794_v16, 7  ;;  %v2822_v41 = vmax.f32 %v2763_v15, 0.0 }
 0x279   : > { %v10817_v30 = vpop.f32.mrb[105].mxu0  ;;  %v10892_v60 = vpop.f32.mrb[104].mxu1  ;;  %2908 = vrot.lane.b32.xlu0 %v2856_v62, %s17395_s27  ;;  %v2863_v0 = vrot.slane %v13794_v16, 1  ;;  %v3087_v57 = vrot.slane %v13797_v19, 5  ;;  %v3088_v11 = vrot.slane %v13794_v16, 6 }
 0x27a   : > { %v2823_v59 = vmax.f32 %v2766_v48, 0.0  ;;  %v10818_v9 = vadd.f32 %v10817_v30, %v10816_v53  ;;  %v10819_v31 = vpop.f32.mrb[106].mxu0  ;;  %v10893_v54 = vpop.f32.mrb[105].mxu1  ;;  %v2957_v12 = vor.u32 %v2956_v14, %v2955_v6  ;;  %v11450_v14 = vld [vmem:[%s17381_s5 + $0xf0] sm:$0xff]  }
 0x27b   : > { %v10894_v28 = vadd.f32 %v10893_v54, %v10892_v60  ;;  %v10820_v40 = vpop.f32.mrb[107].mxu0  ;;  %v10895_v10 = vpop.f32.mrb[106].mxu1  ;;  %v2864_v50 = vsel %vm601_vm0, %v2859_v20, %v2863_v0  ;;  %v2867_v56 = vor.u32 %v13797_v19, %v2863_v0  ;;  %11004 = vmatprep.subr.bf16.mxu1 %v11450_v14  ;;  %v11452_v20 = vld [vmem:[%s17381_s5 + $0xf8] sm:$0xff]   ;;  %v3085_v14 = vrot.slane %v13772_v23, 6 }
 0x27c   : > { %v13810_v29 = vpack.c.bf16 %v2823_v59, %v2822_v41  ;;  %v2659_v5 = vadd.f32 %v10818_v9, %v13742_v42  ;;  %v10821_v44 = vadd.f32 %v10820_v40, %v10819_v31  ;;  %v10896_v52 = vpop.f32.mrb[107].mxu1  ;;  %v2958_v26 = vsel %vm2227_vm4, %v2953_v13, %v2957_v12  ;;  %v11451_v9 = vld [vmem:[%s17381_s5 + $0xb0] sm:$0xff]  }
 0x27d   : > { %v10897_v18 = vadd.f32 %v10896_v52, %v10895_v10  ;;  %2990 = vrot.lane.b32.xlu1 %v2958_v26, %s17395_s27  ;;  %11005 = vmatpush3.bf16.msra.mxu1 %v11451_v9 }
 0x27e   : > { %v2771_v7 = vadd.f32 %v10894_v28, %v2659_v5  ;;  %v2662_v43 = vadd.f32 %v10821_v44, %v13742_v42  ;;  %v13824_v3 = vshll.u32 %v13810_v29, 16  ;;  %v13827_v46 = vshrl.u32 %v13810_v29, 16  ;;  %11006 = vmatprep.subr.bf16.mxu1 %v11452_v20 }
 0x27f   : > { %v3027_v20 = vrot.slane %v13797_v19, 7 }
 0x280   : > { %v2774_v47 = vadd.f32 %v10897_v18, %v2662_v43  ;;  %v10822_v2 = vpop.f32.mrb[108].mxu0  ;;  %v2871_v22 = vrot.slane %v13824_v3, 1  ;;  %v2959_v49 = vrot.slane %v13827_v46, 6  ;;  %v2960_v17 = vrot.slane %v13824_v3, 7 }
 0x281   : > { %v10823_v4 = vpop.f32.mrb[109].mxu0  ;;  %v10898_v61 = vpop.f32.mrb[108].mxu1  ;;  %2910 = vrot.lane.b32.xlu1 %v2864_v50, %s17395_s27  ;;  %v2824_v13 = vmax.f32 %v2771_v7, 0.0  ;;  %11007 = vmatpush3.bf16.msra.mxu1 %v11453_v8 }
 0x282   : > { %v2825_v25 = vmax.f32 %v2774_v47, 0.0  ;;  %v10824_v55 = vadd.f32 %v10823_v4, %v10822_v2  ;;  %v10825_v36 = vpop.f32.mrb[110].mxu0  ;;  %v10899_v51 = vpop.f32.mrb[109].mxu1  ;;  %v2961_v24 = vor.u32 %v2960_v17, %v2959_v49  ;;  %v2872_v53 = vsel %vm601_vm0, %v2867_v56, %v2871_v22 }
 0x283   : > { %v10900_v34 = vadd.f32 %v10899_v51, %v10898_v61  ;;  %v10826_v37 = vpop.f32.mrb[111].mxu0  ;;  %v10901_v32 = vpop.f32.mrb[110].mxu1  ;;  %v3024_v2 = vrot.slane %v13775_v33, 7  ;;  %v13880_v61 = vld [vmem:[%s17381_s5 + $0x100] sm:$0xff]  }
 0x284   : > { %v13841_v58 = vpack.c.bf16 %v2825_v25, %v2824_v13  ;;  %v2667_v15 = vadd.f32 %v10824_v55, %v13742_v42  ;;  %v10827_v38 = vadd.f32 %v10826_v37, %v10825_v36  ;;  %v10902_v48 = vpop.f32.mrb[111].mxu1  ;;  %v2962_v6 = vsel %vm2227_vm4, %v2957_v12, %v2961_v24  ;;  %11122 = vmatprep.subr.bf16.mxu0 %v13880_v61 }
 0x285   : > { %v10903_v62 = vadd.f32 %v10902_v48, %v10901_v32  ;;  %2912 = vrot.lane.b32.xlu1 %v2872_v53, %s17395_s27  ;;  %2992 = vrot.lane.b32.xlu0 %v2962_v6, %s17395_s27  ;;  %v2875_v12 = vor.u32 %v13827_v46, %v2871_v22  ;;  %v3025_v56 = vor.u32 %v3024_v2, %v13772_v23  ;;  %v3084_v6 = vrot.slane %v13775_v33, 5 }
 0x286   : > { %v2779_v30 = vadd.f32 %v10900_v34, %v2667_v15  ;;  %v2670_v60 = vadd.f32 %v10827_v38, %v13742_v42  ;;  %v13853_v41 = vshll.u32 %v13841_v58, 16  ;;  %v13856_v59 = vshrl.u32 %v13841_v58, 16 }
 0x288   : > { %v2782_v31 = vadd.f32 %v10903_v62, %v2670_v60  ;;  %v10828_v54 = vpop.f32.mrb[112].mxu0  ;;  %v2879_v39 = vrot.slane %v13853_v41, 1  ;;  %v2963_v21 = vrot.slane %v13856_v59, 6  ;;  %v2964_v10 = vrot.slane %v13853_v41, 7 }
 0x289   : > { %v10829_v28 = vpop.f32.mrb[113].mxu0  ;;  %v10904_v40 = vpop.f32.mrb[112].mxu1  ;;  %v2826_v0 = vmax.f32 %v2779_v30, 0.0  ;;  %v3023_v62 = vrot.slane %v13754_v35, 7 }
 0x28a   : > { %v2827_v5 = vmax.f32 %v2782_v31, 0.0  ;;  %v10830_v44 = vadd.f32 %v10829_v28, %v10828_v54  ;;  %v10831_v52 = vpop.f32.mrb[114].mxu0  ;;  %v10905_v26 = vpop.f32.mrb[113].mxu1  ;;  %v2880_v18 = vsel %vm601_vm0, %v2875_v12, %v2879_v39  ;;  %v2965_v47 = vor.u32 %v2964_v10, %v2963_v21 }
 0x28b   : > { %v10906_v27 = vadd.f32 %v10905_v26, %v10904_v40  ;;  %v10832_v7 = vpop.f32.mrb[115].mxu0  ;;  %v10907_v43 = vpop.f32.mrb[114].mxu1  ;;  %2914 = vrot.lane.b32.xlu1 %v2880_v18, %s17395_s27  ;;  %v2883_v32 = vor.u32 %v13856_v59, %v2879_v39  ;;  %v13906_v10 = vor.u32 %v3088_v11, %v3087_v57  ;;  %v3086_v18 = vor.u32 %v3085_v14, %v3084_v6 }
 0x28c   : > { %v13874_v50 = vpack.c.bf16 %v2827_v5, %v2826_v0  ;;  %v2675_v22 = vadd.f32 %v10830_v44, %v13742_v42  ;;  %v10833_v49 = vadd.f32 %v10832_v7, %v10831_v52  ;;  %v10908_v4 = vpop.f32.mrb[115].mxu1  ;;  %v2966_v13 = vsel %vm2227_vm4, %v2961_v24, %v2965_v47 }
 0x28d   : > { %v10909_v17 = vadd.f32 %v10908_v4, %v10907_v43  ;;  %2994 = vrot.lane.b32.xlu0 %v2966_v13, %s17395_s27  ;;  %v3026_v44 = vsel %vm3022_vm5, %v3023_v62, %v3025_v56  ;;  %v3028_v57 = vor.u32 %v3027_v20, %v13794_v16  ;;  %v3091_v11 = vrot.slane %v13827_v46, 5 }
 0x28e   : > { %v2787_v25 = vadd.f32 %v10906_v27, %v2675_v22  ;;  %v2678_v55 = vadd.f32 %v10833_v49, %v13742_v42  ;;  %v13886_v36 = vshll.u32 %v13874_v50, 16  ;;  %v13889_v51 = vshrl.u32 %v13874_v50, 16 }
 0x28f   : > { %v3090_v22 = vsel %vm3083_vm6, %v3086_v18, %v13906_v10  ;;  %v3030_v16 = vrot.slane %v13827_v46, 7 }
 0x290   : > { %v2790_v34 = vadd.f32 %v10909_v17, %v2678_v55  ;;  %v10834_v37 = vpop.f32.mrb[116].mxu0  ;;  %v2887_v24 = vrot.slane %v13886_v36, 1  ;;  %v2967_v15 = vrot.slane %v13889_v51, 6  ;;  %v2968_v53 = vrot.slane %v13886_v36, 7 }
 0x291   : > { %v10835_v38 = vpop.f32.mrb[117].mxu0  ;;  %v10910_v48 = vpop.f32.mrb[116].mxu1  ;;  %v2828_v30 = vmax.f32 %v2787_v25, 0.0  ;;  %v3031_v33 = vor.u32 %v3030_v16, %v13824_v3 }
 0x292   : > { %v2829_v60 = vmax.f32 %v2790_v34, 0.0  ;;  %v10836_v9 = vadd.f32 %v10835_v38, %v10834_v37  ;;  %v10837_v31 = vpop.f32.mrb[118].mxu0  ;;  %v10911_v54 = vpop.f32.mrb[117].mxu1  ;;  %v2888_v12 = vsel %vm601_vm0, %v2883_v32, %v2887_v24  ;;  %v2969_v40 = vor.u32 %v2968_v53, %v2967_v15 }
 0x293   : > { %v10912_v39 = vadd.f32 %v10911_v54, %v10910_v48  ;;  %v10838_v21 = vpop.f32.mrb[119].mxu0  ;;  %v10913_v28 = vpop.f32.mrb[118].mxu1  ;;  %2916 = vrot.lane.b32.xlu1 %v2888_v12, %s17395_s27  ;;  %v2891_v4 = vor.u32 %v13889_v51, %v2887_v24  ;;  %v3092_v34 = vrot.slane %v13824_v3, 6 }
 0x294   : > { %v13908_v35 = vpack.c.bf16 %v2829_v60, %v2828_v30  ;;  %v2683_v23 = vadd.f32 %v10836_v9, %v13742_v42  ;;  %v10839_v0 = vadd.f32 %v10838_v21, %v10837_v31  ;;  %v10914_v5 = vpop.f32.mrb[119].mxu1  ;;  %v2970_v26 = vsel %vm2227_vm4, %v2965_v47, %v2969_v40 }
 0x295   : > { %v10915_v52 = vadd.f32 %v10914_v5, %v10913_v28  ;;  %2996 = vrot.lane.b32.xlu0 %v2970_v26, %s17395_s27  ;;  %v3093_v21 = vor.u32 %v3092_v34, %v3091_v11 }
 0x296   : > { %v2795_v8 = vadd.f32 %v10912_v39, %v2683_v23  ;;  %v2686_v27 = vadd.f32 %v10839_v0, %v13742_v42  ;;  %v13917_v7 = vshll.u32 %v13908_v35, 16  ;;  %v13920_v43 = vshrl.u32 %v13908_v35, 16 }
 0x297   : > { %3048 = vrot.lane.b32.xlu1 %v3026_v44, %s17395_s27  ;;  %v3029_v39 = vsel %vm3022_vm5, %v3024_v2, %v3028_v57 }
 0x298   : > { %v2798_v47 = vadd.f32 %v10915_v52, %v2686_v27  ;;  %v10840_v49 = vpop.f32.mrb[120].mxu0  ;;  %v2895_v17 = vrot.slane %v13917_v7, 1  ;;  %v2971_v13 = vrot.slane %v13920_v43, 6  ;;  %v2972_v56 = vrot.slane %v13917_v7, 7 }
 0x299   : > { %v10841_v25 = vpop.f32.mrb[121].mxu0  ;;  %v10916_v55 = vpop.f32.mrb[120].mxu1  ;;  %v2830_v37 = vmax.f32 %v2795_v8, 0.0  ;;  %3124 = vrot.lane.b32.xlu0 %v3090_v22, %s17395_s27  ;;  %v3094_v27 = vsel %vm3083_vm6, %v13906_v10, %v3093_v21 }
 0x29a   : > { %v2831_v32 = vmax.f32 %v2798_v47, 0.0  ;;  %v10842_v15 = vadd.f32 %v10841_v25, %v10840_v49  ;;  %v10843_v24 = vpop.f32.mrb[122].mxu0  ;;  %v10917_v38 = vpop.f32.mrb[121].mxu1  ;;  %v2896_v48 = vsel %vm601_vm0, %v2891_v4, %v2895_v17  ;;  %v2973_v14 = vor.u32 %v2972_v56, %v2971_v13 }
 0x29b   : > { %v10918_v53 = vadd.f32 %v10917_v38, %v10916_v55  ;;  %v10844_v62 = vpop.f32.mrb[123].mxu0  ;;  %v10919_v6 = vpop.f32.mrb[122].mxu1  ;;  %2918 = vrot.lane.b32.xlu1 %v2896_v48, %s17395_s27  ;;  %v2899_v44 = vor.u32 %v13920_v43, %v2895_v17  ;;  %v3095_v47 = vrot.slane %v13856_v59, 5  ;;  %v3096_v49 = vrot.slane %v13853_v41, 6 }
 0x29c   : > { %v13938_v30 = vpack.c.bf16 %v2831_v32, %v2830_v37  ;;  %v2691_v60 = vadd.f32 %v10842_v15, %v13742_v42  ;;  %v10845_v9 = vadd.f32 %v10844_v62, %v10843_v24  ;;  %v10920_v31 = vpop.f32.mrb[123].mxu1  ;;  %v2974_v12 = vsel %vm2227_vm4, %v2969_v40, %v2973_v14 }
 0x29d   : > { %v10921_v54 = vadd.f32 %v10920_v31, %v10919_v6  ;;  %2998 = vrot.lane.b32.xlu0 %v2974_v12, %s17395_s27  ;;  %v3097_v24 = vor.u32 %v3096_v49, %v3095_v47  ;;  %v3033_v38 = vrot.slane %v13856_v59, 7 }
 0x29e   : > { %v2803_v28 = vadd.f32 %v10918_v53, %v2691_v60  ;;  %v2694_v23 = vadd.f32 %v10845_v9, %v13742_v42  ;;  %v13948_v0 = vshll.u32 %v13938_v30, 16  ;;  %v13951_v5 = vshrl.u32 %v13938_v30, 16 }
 0x29f   : > { %3050 = vrot.lane.b32.xlu1 %v3029_v39, %s17395_s27  ;;  %v3032_v53 = vsel %vm3022_vm5, %v3027_v20, %v3031_v33  ;;  %v3098_v31 = vsel %vm3083_vm6, %v3093_v21, %v3097_v24  ;;  %v3034_v19 = vor.u32 %v3033_v38, %v13853_v41  ;;  %v3036_v39 = vrot.slane %v13889_v51, 7 }
 0x2a0   : > { %v2806_v40 = vadd.f32 %v10921_v54, %v2694_v23  ;;  %v10846_v2 = vpop.f32.mrb[124].mxu0  ;;  %v2903_v52 = vrot.slane %v13948_v0, 1  ;;  %v2975_v26 = vrot.slane %v13951_v5, 6  ;;  %v2976_v22 = vrot.slane %v13948_v0, 7 }
 0x2a1   : > { %v10847_v18 = vpop.f32.mrb[125].mxu0  ;;  %v10922_v8 = vpop.f32.mrb[124].mxu1  ;;  %v2832_v3 = vmax.f32 %v2803_v28, 0.0  ;;  %3126 = vrot.lane.b32.xlu0 %v3094_v27, %s17395_s27  ;;  %v3103_v23 = vrot.slane %v13920_v43, 5  ;;  %v3104_v33 = vrot.slane %v13917_v7, 6  ;;  %v3035_v41 = vsel %vm3022_vm5, %v3030_v16, %v3034_v19  ;;  %v11456_v19 = vld [vmem:[%s17381_s5 + $0x110] sm:$0xff]  }
 0x2a2   : > { %v2833_v4 = vmax.f32 %v2806_v40, 0.0  ;;  %v10848_v13 = vadd.f32 %v10847_v18, %v10846_v2  ;;  %v10849_v17 = vpop.f32.mrb[126].mxu0  ;;  %v10923_v25 = vpop.f32.mrb[125].mxu1  ;;  %v2904_v55 = vsel %vm601_vm0, %v2899_v44, %v2903_v52  ;;  %v2977_v10 = vor.u32 %v2976_v22, %v2975_v26 }
 0x2a3   : > { %v10924_v56 = vadd.f32 %v10923_v25, %v10922_v8  ;;  %v10850_v57 = vpop.f32.mrb[127].mxu0  ;;  %v10925_v11 = vpop.f32.mrb[126].mxu1  ;;  %2920 = vrot.lane.b32.xlu1 %v2904_v55, %s17395_s27  ;;  %v2907_v54 = vor.u32 %v13951_v5, %v2903_v52  ;;  %v3039_v26 = vrot.slane %v13920_v43, 7  ;;  %v3105_v49 = vor.u32 %v3104_v33, %v3103_v23 }
 0x2a4   : > { %v13968_v34 = vpack.c.bf16 %v2833_v4, %v2832_v3  ;;  %v2699_v37 = vadd.f32 %v10848_v13, %v13742_v42  ;;  %v10926_v32 = vpop.f32.mrb[127].mxu1  ;;  %v2978_v15 = vsel %vm2227_vm4, %v2973_v14, %v2977_v10  ;;  %v3099_v42 = vrot.slane %v13889_v51, 5 }
 0x2a5   : > { %3000 = vrot.lane.b32.xlu0 %v2978_v15, %s17395_s27  ;;  %v3100_v14 = vrot.slane %v13886_v36, 6  ;;  %v3037_v51 = vor.u32 %v3036_v39, %v13886_v36  ;;  %v3107_v13 = vrot.slane %v13951_v5, 5  ;;  %v3108_v36 = vrot.slane %v13948_v0, 6 }
 0x2a6   : > { %v2811_v48 = vadd.f32 %v10924_v56, %v2699_v37  ;;  %v2980_v62 = vshrl.u32 %v13968_v34, 16  ;;  %v2983_v6 = vshll.u32 %v13968_v34, 16  ;;  %v3079_v27 = vrot.slane %v13968_v34, 5 }
 0x2a7   : > { %3052 = vrot.lane.b32.xlu1 %v3032_v53, %s17395_s27  ;;  %v3101_v28 = vor.u32 %v3100_v14, %v3099_v42  ;;  %v3154_v22 = vrot.slane %v13968_v34, 6  ;;  %v3038_v25 = vsel %vm3022_vm5, %v3033_v38, %v3037_v51  ;;  %v3040_v55 = vor.u32 %v3039_v26, %v13917_v7 }
 0x2a8   : > { %v2834_v60 = vmax.f32 %v2811_v48, 0.0  ;;  %v2982_v9 = vrot.slane %v2980_v62, 6  ;;  %v2985_v59 = vrot.slane %v2983_v6, 7  ;;  %v3111_v40 = vrot.slane %v2980_v62, 5 }
 0x2a9   : > { %3128 = vrot.lane.b32.xlu0 %v3098_v31, %s17395_s27  ;;  %v3112_v2 = vrot.slane %v2983_v6, 6  ;;  %v3102_v16 = vsel %vm3083_vm6, %v3097_v24, %v3101_v28  ;;  %v3042_v56 = vrot.slane %v13951_v5, 7  ;;  %v3106_v11 = vsel %vm3083_vm6, %v3101_v28, %v3105_v49 }
 0x2aa   : > { %v2844_v20 = vpack.c.bf16 %v2834_v60, %v2834_v60  ;;  %v2986_v12 = vor.u32 %v2985_v59, %v2982_v9  ;;  %v3041_v37 = vsel %vm3022_vm5, %v3036_v39, %v3040_v55  ;;  %v3045_v15 = vrot.slane %v2980_v62, 7  ;;  %v11455_v9 = vld [vmem:[%s17381_s5 + $0x108] sm:$0xff]   ;;  %v11457_v39 = vld [vmem:[%s17381_s5 + $0x118] sm:$0xff]  }
 0x2ab   : > { %2922 = vrot.lane.b32.xlu1 %v2907_v54, %s17395_s27  ;;  %v3113_v3 = vor.u32 %v3112_v2, %v3111_v40  ;;  %v3043_v32 = vor.u32 %v3042_v56, %v13948_v0  ;;  %v2934_v0 = vrot.slane %v13766_v63, 1  ;;  %v2933_v53 = vrot.slane %v13746_v1, 1 }
 0x2ac   : > { %v2987_v21 = vsel %vm2227_vm4, %v2977_v10, %v2986_v12  ;;  %v3116_v44 = vshrl.u32 %v2844_v20, 16  ;;  %v3119_v52 = vshll.u32 %v2844_v20, 16  ;;  %v3081_v47 = vrot.slane %v2844_v20, 5 }
 0x2ad   : > { %3002 = vrot.lane.b32.xlu0 %v2987_v21, %s17395_s27  ;;  %v3156_v46 = vrot.slane %v2844_v20, 6  ;;  %v3109_v10 = vor.u32 %v3108_v36, %v3107_v13  ;;  %v3044_v5 = vsel %vm3022_vm5, %v3039_v26, %v3043_v32  ;;  %v3046_v24 = vor.u32 %v3045_v15, %v2983_v6 }
 0x2ae   : > { %v3118_v18 = vrot.slane %v3116_v44, 5  ;;  %v3121_v8 = vrot.slane %v3119_v52, 6  ;;  %v14006_v43 = vsel %vm3065_vm7, %v3079_v27, %v3081_v47  ;;  %v2935_v6 = vsel %vm2932_vm9, %v2933_v53, %v2934_v0 }
 0x2af   : > { %3054 = vrot.lane.b32.xlu1 %v3035_v41, %s17395_s27  ;;  %v14011_v17 = vsel %vm3140_vm8, %v3154_v22, %v3156_v46  ;;  %v3110_v7 = vsel %vm3083_vm6, %v3105_v49, %v3109_v10  ;;  %v3114_v38 = vsel %vm3083_vm6, %v3109_v10, %v3113_v3  ;;  %v3047_v48 = vsel %vm3022_vm5, %v3042_v56, %v3046_v24 }
 0x2b0   : > { %v3122_v4 = vor.u32 %v3121_v8, %v3118_v18  ;;  %v2936_v60 = vrot.slane %v13786_v45, 1  ;;  %v2938_v28 = vrot.slane %v13810_v29, 1  ;;  %v2940_v44 = vrot.slane %v13841_v58, 1 }
 0x2b1   : > { %3130 = vrot.lane.b32.xlu0 %v3102_v16, %s17395_s27  ;;  %v2942_v8 = vrot.slane %v13874_v50, 1  ;;  %v3067_v49 = vrot.slane %v13786_v45, 5  ;;  %v3066_v36 = vrot.slane %v13766_v63, 5 }
 0x2b2   : > { %v3123_v57 = vsel %vm3083_vm6, %v3113_v3, %v3122_v4  ;;  %v2937_v54 = vsel %vm2932_vm9, %v2934_v0, %v2936_v60  ;;  %v2939_v33 = vsel %vm2932_vm9, %v2936_v60, %v2938_v28  ;;  %v2941_v41 = vsel %vm2932_vm9, %v2938_v28, %v2940_v44 }
 0x2b3   : > { %3056 = vrot.lane.b32.xlu1 %v3038_v25, %s17395_s27  ;;  %v2943_v16 = vsel %vm2932_vm9, %v2940_v44, %v2942_v8  ;;  %v3006_v3 = vrot.slane %v13766_v63, 7  ;;  %v3005_v25 = vrot.slane %v13746_v1, 7  ;;  %v3073_v44 = vrot.slane %v13874_v50, 5 }
 0x2b5   : > { %3132 = vrot.lane.b32.xlu0 %v3106_v11, %s17395_s27  ;;  %v2944_v11 = vrot.slane %v13908_v35, 1  ;;  %v3007_v10 = vsel %vm2297_vm3, %v3005_v25, %v3006_v3 }
 0x2b7   : > { %3058 = vrot.lane.b32.xlu1 %v3041_v37, %s17395_s27 }
 0x2b9   : > { %3134 = vrot.lane.b32.xlu0 %v3110_v7, %s17395_s27 }
 0x2bb   : > { %3060 = vrot.lane.b32.xlu1 %v3044_v5, %s17395_s27  ;;  %v3069_v5 = vrot.slane %v13810_v29, 5 }
 0x2bd   : > { %3136 = vrot.lane.b32.xlu0 %v3114_v38, %s17395_s27 }
 0x2bf   : > { %3062 = vrot.lane.b32.xlu1 %v3047_v48, %s17395_s27  ;;  %v3008_v48 = vrot.slane %v13786_v45, 7 }
 0x2c1   : > { %3138 = vrot.lane.b32.xlu0 %v3123_v57, %s17395_s27  ;;  %v3068_v57 = vsel %vm3065_vm7, %v3066_v36, %v3067_v49  ;;  %v3009_v60 = vsel %vm2297_vm3, %v3006_v3, %v3008_v48  ;;  %v3144_v36 = vrot.slane %v13810_v29, 6  ;;  %s10445_s27 = sshll.u32 %s12614_s17, 4  ;;  %s12517_s17 = smov [#allocation2]  }
 0x2c2   : > { %s17334_s25 = scalar_lea.hbm %s17390_s14, %s10445_s27  ;;  %s12456_s18 = sshll.u32 %s12517_s17, 4  ;;  %s12457_s18 = int_to_ptr.vmem [resolvable:$false] %s12456_s18 }
 0x2c3   : > { %s12458_s20 = scalar_lea.vmem %s12457_s18, 32 }
 0x2e7   : > { %v2989_v62 = vpop.permute.xlu0 %2988 }
 0x2e8   : > { %v3185_v42 = vsel %vm17397_vm10, %v2935_v6, %v2989_v62  ;;  %v3070_v62 = vsel %vm3065_vm7, %v3067_v49, %v3069_v5  ;;  %v2946_v6 = vrot.slane %v13938_v30, 1 }
 0x2e9   : > { %3630 = vmatprep.mubr.bf16.mxu0 %v3185_v42 }
 0x2eb   : > { %v2909_v14 = vpop.permute.xlu0 %2908 }
 0x2ec   : > { %v3160_v59 = vsel %vm17397_vm10, %v13746_v1, %v2909_v14  ;;  %v2945_v1 = vsel %vm2932_vm9, %v2942_v8, %v2944_v11 }
 0x2ed   : > { %3631 = vmatmul.mubr.bf16.vlgmr.msra.gmra.mrb[128].mxu0 %v3160_v59 }
 0x2ee   : > { %11123 = vmatpush3.bf16.msra.mxu0 %v13880_v61 }
 0x2ef   : > { %v2991_v31 = vpop.permute.xlu1 %2990  ;;  %11124 = vmatprep.subr.bf16.mxu0 %v11455_v9 }
 0x2f0   : > { %v3189_v20 = vsel %vm17397_vm10, %v2937_v54, %v2991_v31  ;;  %v2947_v31 = vsel %vm2932_vm9, %v2944_v11, %v2946_v6  ;;  %v3071_v54 = vrot.slane %v13841_v58, 5 }
 0x2f1   : > { %3638 = vmatprep.mubr.bf16.mxu0 %v3189_v20 }
 0x2f2   : > { %11125 = vmatpush3.bf16.msra.mxu0 %v11455_v9  ;;  %v3072_v28 = vsel %vm3065_vm7, %v3069_v5, %v3071_v54  ;;  %v3016_v5 = vrot.slane %v13908_v35, 7 }
 0x2f3   : > { %v2911_v12 = vpop.permute.xlu1 %2910  ;;  %11126 = vmatprep.subr.bf16.mxu0 %v11456_v19 }
 0x2f4   : > { %v3163_v61 = vsel %vm17397_vm10, %v13766_v63, %v2911_v12  ;;  %v3010_v12 = vrot.slane %v13810_v29, 7 }
 0x2f5   : > { %3639 = vmatmul.mubr.bf16.gmra.mrb[132].mxu0 %v3163_v61 }
 0x2f6   : > { %11127 = vmatpush3.bf16.msra.mxu0 %v11456_v19 }
 0x2f7   : > { %11128 = vmatprep.subr.bf16.mxu0 %v11457_v39  ;;  %v2993_v23 = vpop.permute.xlu0 %2992  ;;  %v2913_v40 = vpop.permute.xlu1 %2912 }
 0x2f8   : > { %v3193_v21 = vsel %vm17397_vm10, %v2939_v33, %v2993_v23  ;;  %v3166_v2 = vsel %vm17397_vm10, %v13786_v45, %v2913_v40  ;;  %v3011_v40 = vsel %vm2297_vm3, %v3008_v48, %v3010_v12 }
 0x2f9   : > { %3646 = vmatprep.mubr.bf16.mxu0 %v3193_v21 }
 0x2fa   : > { %11129 = vmatpush3.bf16.msra.mxu0 %v11457_v39 }
 0x2fd   : > { %3647 = vmatmul.mubr.bf16.gmra.mrb[136].mxu0 %v3166_v2  ;;  %v2915_v51 = vpop.permute.xlu1 %2914 }
 0x2fe   : > { %v3169_v18 = vsel %vm17397_vm10, %v13810_v29, %v2915_v51  ;;  %v3142_v51 = vrot.slane %v13786_v45, 6 }
 0x2ff   : > { %v2995_v52 = vpop.permute.xlu0 %2994 }
 0x300   : > { %v3197_v26 = vsel %vm17397_vm10, %v2941_v41, %v2995_v52  ;;  %v3012_v41 = vrot.slane %v13841_v58, 7 }
 0x301   : > { %3654 = vmatprep.mubr.bf16.mxu0 %v3197_v26 }
 0x302   : > { %v3013_v3 = vsel %vm2297_vm3, %v3010_v12, %v3012_v41 }
 0x305   : > { %v2917_v47 = vpop.permute.xlu1 %2916  ;;  %3655 = vmatmul.mubr.bf16.gmra.mrb[140].mxu0 %v3169_v18  ;;  %v3141_v18 = vrot.slane %v13766_v63, 6 }
 0x306   : > { %v3172_v56 = vsel %vm17397_vm10, %v13841_v58, %v2917_v47 }
 0x307   : > { %v2997_v46 = vpop.permute.xlu0 %2996 }
 0x308   : > { %v3201_v13 = vsel %vm17397_vm10, %v2943_v16, %v2997_v46  ;;  %v3074_v46 = vsel %vm3065_vm7, %v3071_v54, %v3073_v44  ;;  %v3075_v16 = vrot.slane %v13908_v35, 5 }
 0x309   : > { %v3049_v4 = vpop.permute.xlu1 %3048  ;;  %3662 = vmatprep.mubr.bf16.mxu0 %v3201_v13 }
 0x30a   : > { %v3217_v15 = vsel %vm17397_vm10, %v3007_v10, %v3049_v4  ;;  %v3143_v4 = vsel %vm3140_vm8, %v3141_v18, %v3142_v51  ;;  %v3076_v13 = vsel %vm3065_vm7, %v3073_v44, %v3075_v16 }
 0x30b   : > { %v3125_v55 = vpop.permute.xlu0 %3124 }
 0x30c   : > { %v3249_v32 = vsel %vm17397_vm10, %v3068_v57, %v3125_v55  ;;  %v3014_v55 = vrot.slane %v13874_v50, 7  ;;  %v3077_v57 = vrot.slane %v13938_v30, 5 }
 0x30d   : > { %v2919_v37 = vpop.permute.xlu1 %2918  ;;  %3663 = vmatmul.mubr.bf16.gmra.mrb[144].mxu0 %v3172_v56  ;;  %3726 = vmatprep.mubr.bf16.mxu1 %v3249_v32  ;;  %v3146_v56 = vrot.slane %v13841_v58, 6 }
 0x30e   : > { %3727 = vmatmul.mubr.bf16.vlgmr.msra.gmra.mrb[128].mxu1 %v3217_v15  ;;  %v3175_v53 = vsel %vm17397_vm10, %v13874_v50, %v2919_v37  ;;  %v3145_v37 = vsel %vm3140_vm8, %v3142_v51, %v3144_v36  ;;  %v3015_v32 = vsel %vm2297_vm3, %v3012_v41, %v3014_v55 }
 0x30f   : > { %v2999_v7 = vpop.permute.xlu0 %2998  ;;  %v3147_v15 = vsel %vm3140_vm8, %v3144_v36, %v3146_v56 }
 0x310   : > { %v3205_v38 = vsel %vm17397_vm10, %v2945_v1, %v2999_v7  ;;  %v3078_v7 = vsel %vm3065_vm7, %v3075_v16, %v3077_v57  ;;  %v3148_v1 = vrot.slane %v13874_v50, 6  ;;  %v3080_v50 = vsel %vm3065_vm7, %v3077_v57, %v3079_v27 }
 0x311   : > { %v3051_v24 = vpop.permute.xlu1 %3050  ;;  %3670 = vmatprep.mubr.bf16.mxu0 %v3205_v38 }
 0x312   : > { %v3221_v9 = vsel %vm17397_vm10, %v3009_v60, %v3051_v24  ;;  %v3150_v24 = vrot.slane %v13908_v35, 6 }
 0x313   : > { %v3127_v0 = vpop.permute.xlu0 %3126 }
 0x314   : > { %v3253_v14 = vsel %vm17397_vm10, %v3070_v62, %v3127_v0  ;;  %v3149_v0 = vsel %vm3140_vm8, %v3146_v56, %v3148_v1  ;;  %v3151_v62 = vsel %vm3140_vm8, %v3148_v1, %v3150_v24 }
 0x315   : > { %v2921_v42 = vpop.permute.xlu1 %2920  ;;  %3671 = vmatmul.mubr.bf16.gmra.mrb[148].mxu0 %v3175_v53  ;;  %3734 = vmatprep.mubr.bf16.mxu1 %v3253_v14  ;;  %v3017_v53 = vsel %vm2297_vm3, %v3014_v55, %v3016_v5  ;;  %v3018_v14 = vrot.slane %v13938_v30, 7 }
 0x316   : > { %3735 = vmatmul.mubr.bf16.gmra.mrb[132].mxu1 %v3221_v9  ;;  %v3178_v61 = vsel %vm17397_vm10, %v13908_v35, %v2921_v42  ;;  %v3152_v42 = vrot.slane %v13938_v30, 6 }
 0x317   : > { %v3001_v59 = vpop.permute.xlu0 %3000 }
 0x318   : > { %v3209_v20 = vsel %vm17397_vm10, %v2947_v31, %v3001_v59  ;;  %v3153_v59 = vsel %vm3140_vm8, %v3150_v24, %v3152_v42  ;;  %v3019_v31 = vsel %vm2297_vm3, %v3016_v5, %v3018_v14  ;;  %v3155_v27 = vsel %vm3140_vm8, %v3152_v42, %v3154_v22  ;;  %v11458_v22 = vld [vmem:[%s17383_s7] sm:$0xff]  }
 0x319   : > { %v3053_v19 = vpop.permute.xlu1 %3052  ;;  %3678 = vmatprep.mubr.bf16.mxu0 %v3209_v20 }
 0x31a   : > { %v3225_v21 = vsel %vm17397_vm10, %v3011_v40, %v3053_v19  ;;  %v3020_v19 = vrot.slane %v13968_v34, 7 }
 0x31b   : > { %v3129_v39 = vpop.permute.xlu0 %3128 }
 0x31c   : > { %v3257_v33 = vsel %vm17397_vm10, %v3072_v28, %v3129_v39  ;;  %v3021_v12 = vsel %vm2297_vm3, %v3018_v14, %v3020_v19 }
 0x31d   : > { %v2923_v23 = vpop.permute.xlu1 %2922  ;;  %3679 = vmatmul.mubr.bf16.gmra.mrb[152].mxu0 %v3178_v61  ;;  %3742 = vmatprep.mubr.bf16.mxu1 %v3257_v33 }
 0x31e   : > { %3743 = vmatmul.mubr.bf16.gmra.mrb[136].mxu1 %v3225_v21  ;;  %v3181_v47 = vsel %vm17397_vm10, %v13938_v30, %v2923_v23 }
 0x31f   : > { %v3003_v2 = vpop.permute.xlu0 %3002 }
 0x320   : > { %v3213_v52 = vsel %vm17397_vm10, %v2946_v6, %v3003_v2 }
 0x321   : > { %3686 = vmatprep.mubr.bf16.mxu0 %v3213_v52  ;;  %v3055_v26 = vpop.permute.xlu1 %3054 }
 0x322   : > { %v3229_v45 = vsel %vm17397_vm10, %v3013_v3, %v3055_v26 }
 0x323   : > { %v3131_v8 = vpop.permute.xlu0 %3130 }
 0x324   : > { %v3261_v49 = vsel %vm17397_vm10, %v3074_v46, %v3131_v8 }
 0x325   : > { %3687 = vmatmul.mubr.bf16.gmra.mrb[156].mxu0 %v3181_v47  ;;  %3750 = vmatprep.mubr.bf16.mxu1 %v3261_v49  ;;  %v3057_v11 = vpop.permute.xlu1 %3056 }
 0x326   : > { %11130 = vmatprep.mubr.msk.bf16.mxu0 %vm17397_vm10, %v3143_v4  ;;  %3751 = vmatmul.mubr.bf16.gmra.mrb[140].mxu1 %v3229_v45  ;;  %v3233_v29 = vsel %vm17397_vm10, %v3015_v32, %v3057_v11 }
 0x327   : > { %v3133_v63 = vpop.permute.xlu0 %3132 }
 0x328   : > { %v3265_v25 = vsel %vm17397_vm10, %v3076_v13, %v3133_v63  ;;  %v14164_v13 = vld [vmem:[%s17382_s6] ss:$0 sm:$0xff] }
 0x329   : > { %3758 = vmatprep.mubr.bf16.mxu1 %v3265_v25  ;;  %v3059_v38 = vpop.permute.xlu1 %3058 }
 0x32a   : > { %v3237_v6 = vsel %vm17397_vm10, %v3017_v53, %v3059_v38 }
 0x32b   : > { %v3135_v10 = vpop.permute.xlu0 %3134 }
 0x32c   : > { %v3269_v58 = vsel %vm17397_vm10, %v3078_v7, %v3135_v10 }
 0x32d   : > { %11131 = vmatmul.mubr.msk.bf16.vlgmr.msra.gmra.mrb[160].mxu0 %vm17397_vm10, %v3145_v37  ;;  %v3061_v60 = vpop.permute.xlu1 %3060 }
 0x32e   : > { %11134 = vmatprep.mubr.msk.bf16.mxu0 %vm17397_vm10, %v3147_v15  ;;  %3759 = vmatmul.mubr.bf16.gmra.mrb[144].mxu1 %v3233_v29  ;;  %v3241_v54 = vsel %vm17397_vm10, %v3019_v31, %v3061_v60 }
 0x32f   : > { %3766 = vmatprep.mubr.bf16.mxu1 %v3269_v58  ;;  %v3137_v48 = vpop.permute.xlu0 %3136 }
 0x330   : > { %v3273_v35 = vsel %vm17397_vm10, %v3080_v50, %v3137_v48 }
 0x331   : > { %v3063_v20 = vpop.permute.xlu1 %3062 }
 0x332   : > { %v3245_v39 = vsel %vm17397_vm10, %v3021_v12, %v3063_v20 }
 0x333   : > { %v3139_v9 = vpop.permute.xlu0 %3138 }
 0x334   : > { %v3277_v30 = vsel %vm17397_vm10, %v14006_v43, %v3139_v9 }
 0x335   : > { %11135 = vmatmul.mubr.msk.bf16.gmra.mrb[164].mxu0 %vm17397_vm10, %v3149_v0 }
 0x336   : > { %11138 = vmatprep.mubr.msk.bf16.mxu0 %vm17397_vm10, %v3151_v62  ;;  %3767 = vmatmul.mubr.bf16.gmra.mrb[148].mxu1 %v3237_v6 }
 0x337   : > { %3774 = vmatprep.mubr.bf16.mxu1 %v3273_v35 }
 0x33d   : > { %11139 = vmatmul.mubr.msk.bf16.gmra.mrb[168].mxu0 %vm17397_vm10, %v3153_v59 }
 0x33e   : > { %11142 = vmatprep.mubr.msk.bf16.mxu0 %vm17397_vm10, %v3155_v27  ;;  %3775 = vmatmul.mubr.bf16.gmra.mrb[152].mxu1 %v3241_v54 }
 0x33f   : > { %3782 = vmatprep.mubr.bf16.mxu1 %v3277_v30 }
 0x345   : > { %11143 = vmatmul.mubr.msk.bf16.gmra.mrb[172].mxu0 %vm17397_vm10, %v14011_v17 }
 0x346   : > { %3783 = vmatmul.mubr.bf16.gmra.mrb[156].mxu1 %v3245_v39 }
 0x347   : > { %11162 = vmatprep.mubr.msk.bf16.mxu1 %vm3923_vm11, %v11458_v22 }
 0x3c0   : > { %v10944_v43 = vpop.f32.mrb[128].mxu0 }
 0x3c1   : > { %v10945_v61 = vpop.f32.mrb[129].mxu0 }
 0x3c2   : > { %v10946_v28 = vadd.f32 %v10945_v61, %v10944_v43  ;;  %v10947_v34 = vpop.f32.mrb[130].mxu0 }
 0x3c3   : > { %v10948_v23 = vpop.f32.mrb[131].mxu0 }
 0x3c4   : > { %v10949_v33 = vadd.f32 %v10948_v23, %v10947_v34  ;;  %v3633_v10 = vadd.f32 %v10946_v28, %v14164_v13 }
 0x3c6   : > { %v3636_v7 = vadd.f32 %v10949_v33, %v14164_v13 }
 0x3c8   : > { %v10950_v40 = vpop.f32.mrb[132].mxu0 }
 0x3c9   : > { %v10951_v17 = vpop.f32.mrb[133].mxu0 }
 0x3ca   : > { %v10952_v21 = vadd.f32 %v10951_v17, %v10950_v40  ;;  %v10953_v2 = vpop.f32.mrb[134].mxu0 }
 0x3cb   : > { %v10954_v44 = vpop.f32.mrb[135].mxu0 }
 0x3cc   : > { %v10955_v52 = vadd.f32 %v10954_v44, %v10953_v2  ;;  %v3641_v50 = vadd.f32 %v10952_v21, %v14164_v13 }
 0x3ce   : > { %v3644_v9 = vadd.f32 %v10955_v52, %v14164_v13 }
 0x3d0   : > { %v10956_v41 = vpop.f32.mrb[136].mxu0 }
 0x3d1   : > { %v10957_v51 = vpop.f32.mrb[137].mxu0 }
 0x3d2   : > { %v10958_v26 = vadd.f32 %v10957_v51, %v10956_v41  ;;  %v10959_v18 = vpop.f32.mrb[138].mxu0 }
 0x3d3   : > { %v10960_v8 = vpop.f32.mrb[139].mxu0 }
 0x3d4   : > { %v10961_v47 = vadd.f32 %v10960_v8, %v10959_v18  ;;  %v3649_v43 = vadd.f32 %v10958_v26, %v14164_v13 }
 0x3d6   : > { %v3652_v33 = vadd.f32 %v10961_v47, %v14164_v13 }
 0x3d8   : > { %v10962_v46 = vpop.f32.mrb[140].mxu0 }
 0x3d9   : > { %v10963_v16 = vpop.f32.mrb[141].mxu0 }
 0x3da   : > { %v10964_v49 = vadd.f32 %v10963_v16, %v10962_v46  ;;  %v10965_v3 = vpop.f32.mrb[142].mxu0 }
 0x3db   : > { %v10966_v4 = vpop.f32.mrb[143].mxu0 }
 0x3dc   : > { %v10967_v45 = vadd.f32 %v10966_v4, %v10965_v3  ;;  %v3657_v26 = vadd.f32 %v10964_v49, %v14164_v13 }
 0x3de   : > { %v3660_v4 = vadd.f32 %v10967_v45, %v14164_v13 }
 0x3e0   : > { %v10968_v63 = vpop.f32.mrb[144].mxu0 }
 0x3e1   : > { %v10969_v36 = vpop.f32.mrb[145].mxu0  ;;  %v11008_v55 = vpop.f32.mrb[128].mxu1 }
 0x3e2   : > { %v14166_v25 = vadd.f32 %v10969_v36, %v10968_v63  ;;  %v10971_v56 = vpop.f32.mrb[146].mxu0  ;;  %v11009_v57 = vpop.f32.mrb[129].mxu1 }
 0x3e3   : > { %v10972_v11 = vpop.f32.mrb[147].mxu0  ;;  %v11010_v37 = vadd.f32 %v11009_v57, %v11008_v55  ;;  %v11011_v15 = vpop.f32.mrb[130].mxu1 }
 0x3e4   : > { %v14169_v32 = vadd.f32 %v10972_v11, %v10971_v56  ;;  %v11012_v29 = vpop.f32.mrb[131].mxu1  ;;  %v3665_v49 = vadd.f32 %v14166_v25, %v14164_v13 }
 0x3e5   : > { %v11013_v58 = vadd.f32 %v11012_v29, %v11011_v15  ;;  %v3729_v1 = vadd.f32 %v11010_v37, %v3633_v10 }
 0x3e6   : > { %v3668_v45 = vadd.f32 %v14169_v32, %v14164_v13 }
 0x3e7   : > { %v3732_v24 = vadd.f32 %v11013_v58, %v3636_v7 }
 0x3e8   : > { %v10974_v5 = vpop.f32.mrb[148].mxu0 }
 0x3e9   : > { %v10975_v38 = vpop.f32.mrb[149].mxu0  ;;  %v11014_v0 = vpop.f32.mrb[132].mxu1 }
 0x3ea   : > { %v14172_v48 = vadd.f32 %v10975_v38, %v10974_v5  ;;  %v10977_v53 = vpop.f32.mrb[150].mxu0  ;;  %v11015_v62 = vpop.f32.mrb[133].mxu1 }
 0x3eb   : > { %v10978_v6 = vpop.f32.mrb[151].mxu0  ;;  %v11016_v35 = vadd.f32 %v11015_v62, %v11014_v0  ;;  %v11017_v14 = vpop.f32.mrb[134].mxu1 }
 0x3ec   : > { %v14175_v42 = vadd.f32 %v10978_v6, %v10977_v53  ;;  %v11018_v60 = vpop.f32.mrb[135].mxu1 }
 0x3ed   : > { %v11019_v59 = vadd.f32 %v11018_v60, %v11017_v14  ;;  %v3737_v31 = vadd.f32 %v11016_v35, %v3641_v50 }
 0x3ef   : > { %v3740_v54 = vadd.f32 %v11019_v59, %v3644_v9 }
 0x3f0   : > { %v10980_v27 = vpop.f32.mrb[152].mxu0 }
 0x3f1   : > { %v10981_v30 = vpop.f32.mrb[153].mxu0  ;;  %v11020_v20 = vpop.f32.mrb[136].mxu1 }
 0x3f2   : > { %v14178_v19 = vadd.f32 %v10981_v30, %v10980_v27  ;;  %v10983_v12 = vpop.f32.mrb[154].mxu0  ;;  %v11021_v39 = vpop.f32.mrb[137].mxu1 }
 0x3f3   : > { %v10984_v22 = vpop.f32.mrb[155].mxu0  ;;  %v11022_v61 = vadd.f32 %v11021_v39, %v11020_v20  ;;  %v11023_v34 = vpop.f32.mrb[138].mxu1 }
 0x3f4   : > { %v14181_v28 = vadd.f32 %v10984_v22, %v10983_v12  ;;  %v11024_v23 = vpop.f32.mrb[139].mxu1  ;;  %v3673_v12 = vadd.f32 %v14172_v48, %v14164_v13 }
 0x3f5   : > { %v11025_v40 = vadd.f32 %v11024_v23, %v11023_v34  ;;  %v3745_v17 = vadd.f32 %v11022_v61, %v3649_v43  ;;  %v3676_v61 = vadd.f32 %v14175_v42, %v14164_v13 }
 0x3f7   : > { %v3748_v2 = vadd.f32 %v11025_v40, %v3652_v33 }
 0x3f8   : > { %v10986_v21 = vpop.f32.mrb[156].mxu0 }
 0x3f9   : > { %v10987_v44 = vpop.f32.mrb[157].mxu0  ;;  %v11026_v41 = vpop.f32.mrb[140].mxu1 }
 0x3fa   : > { %v14184_v52 = vadd.f32 %v10987_v44, %v10986_v21  ;;  %v10989_v51 = vpop.f32.mrb[158].mxu0  ;;  %v11027_v18 = vpop.f32.mrb[141].mxu1 }
 0x3fb   : > { %v10990_v8 = vpop.f32.mrb[159].mxu0  ;;  %v11028_v46 = vadd.f32 %v11027_v18, %v11026_v41  ;;  %v11029_v16 = vpop.f32.mrb[142].mxu1 }
 0x3fc   : > { %v11030_v3 = vpop.f32.mrb[143].mxu1 }
 0x3fd   : > { %v11031_v63 = vadd.f32 %v11030_v3, %v11029_v16  ;;  %v3753_v47 = vadd.f32 %v11028_v46, %v3657_v26 }
 0x3ff   : > { %v3756_v55 = vadd.f32 %v11031_v63, %v3660_v4  ;;  %v3681_v63 = vadd.f32 %v14178_v19, %v14164_v13 }
 0x400   : > { %v11132_v36 = vpop.f32.mrb[160].mxu0 }
 0x401   : > { %v3833_v56 = vadd.f32 %v11132_v36, %v3737_v31  ;;  %v3824_v57 = vpop.f32.mrb[161].mxu0  ;;  %v11032_v11 = vpop.f32.mrb[144].mxu1 }
 0x402   : > { %v3825_v10 = vadd.f32 %v3824_v57, %v3729_v1  ;;  %v11133_v37 = vpop.f32.mrb[162].mxu0  ;;  %v11033_v15 = vpop.f32.mrb[145].mxu1 }
 0x403   : > { %v3836_v29 = vadd.f32 %v11133_v37, %v3740_v54  ;;  %v3827_v7 = vpop.f32.mrb[163].mxu0  ;;  %v11034_v58 = vadd.f32 %v11033_v15, %v11032_v11  ;;  %v11035_v5 = vpop.f32.mrb[146].mxu1  ;;  %v3888_v0 = vmax.f32 %v3833_v56, 0.0  ;;  %v3684_v56 = vadd.f32 %v14181_v28, %v14164_v13 }
 0x404   : > { %v3828_v38 = vadd.f32 %v3827_v7, %v3732_v24  ;;  %v11036_v62 = vpop.f32.mrb[147].mxu1  ;;  %v3886_v6 = vmax.f32 %v3825_v10, 0.0  ;;  %v3689_v28 = vadd.f32 %v14184_v52, %v14164_v13  ;;  %v11459_v13 = vld [vmem:[%s17383_s7 + $0x8] sm:$0xff]   ;;  %v11460_v52 = vld [vmem:[%s17384_s8] ss:$16 sps:$4 sm:$0xff]  }
 0x405   : > { %v3889_v53 = vmax.f32 %v3836_v29, 0.0  ;;  %v11037_v35 = vadd.f32 %v11036_v62, %v11035_v5  ;;  %v3761_v1 = vadd.f32 %v11034_v58, %v3665_v49 }
 0x406   : > { %v3887_v50 = vmax.f32 %v3828_v38, 0.0 }
 0x407   : > { %v3902_v14 = vpack.c.bf16 %v3889_v53, %v3888_v0  ;;  %v3764_v59 = vadd.f32 %v11037_v35, %v3668_v45 }
 0x408   : > { %v3901_v60 = vpack.c.bf16 %v3887_v50, %v3886_v6  ;;  %v11136_v9 = vpop.f32.mrb[164].mxu0 }
 0x409   : > { %v3849_v31 = vadd.f32 %v11136_v9, %v3753_v47  ;;  %v3840_v27 = vpop.f32.mrb[165].mxu0  ;;  %v11038_v25 = vpop.f32.mrb[148].mxu1 }
 0x40a   : > { %v3841_v54 = vadd.f32 %v3840_v27, %v3745_v17  ;;  %v11137_v30 = vpop.f32.mrb[166].mxu0  ;;  %11146 = vmatprep.subr.bf16.mxu1 %v3901_v60  ;;  %v11039_v24 = vpop.f32.mrb[149].mxu1 }
 0x40b   : > { %v3852_v20 = vadd.f32 %v11137_v30, %v3756_v55  ;;  %v3843_v32 = vpop.f32.mrb[167].mxu0  ;;  %11147 = vmatpush3.bf16.msra.mxu1 %v3901_v60  ;;  %v11040_v39 = vadd.f32 %v11039_v24, %v11038_v25  ;;  %v11041_v22 = vpop.f32.mrb[150].mxu1  ;;  %v3892_v34 = vmax.f32 %v3849_v31, 0.0  ;;  %v11462_v24 = vld [vmem:[%s17384_s8 + $0x4] ss:$16 sps:$4 sm:$0xff]  }
 0x40c   : > { %v3844_v43 = vadd.f32 %v3843_v32, %v3748_v2  ;;  %11148 = vmatprep.subr.bf16.mxu1 %v3902_v14  ;;  %v11042_v33 = vpop.f32.mrb[151].mxu1  ;;  %v3890_v40 = vmax.f32 %v3841_v54, 0.0  ;;  %v11465_v32 = vld [vmem:[%s17384_s8 + $0xc] ss:$16 sps:$4 sm:$0xff]   ;;  %7543 = vmatprep.subr.bf16.mxu0 %v11462_v24  ;;  %v11547_v24 = vld [vmem:[%s17384_s8 + $0x1c8] ss:$16 sps:$4 sm:$0xff]  }
 0x40d   : > { %v3893_v23 = vmax.f32 %v3852_v20, 0.0  ;;  %v11043_v21 = vadd.f32 %v11042_v33, %v11041_v22  ;;  %v3769_v44 = vadd.f32 %v11040_v39, %v3673_v12  ;;  %v11463_v20 = vld [vmem:[%s17384_s8 + $0x8] ss:$16 sps:$4 sm:$0xff]   ;;  %v11468_v12 = vld [vmem:[%s17384_s8 + $0x24] ss:$16 sps:$4 sm:$0xff]   ;;  %7544 = vmatpush1.bf16.msra.mxu0 %v11460_v52 }
 0x40e   : > { %v3891_v17 = vmax.f32 %v3844_v43, 0.0  ;;  %v11471_v39 = vld [vmem:[%s17384_s8 + $0x2c] ss:$16 sps:$4 sm:$0xff]   ;;  %v11466_v22 = vld [vmem:[%s17384_s8 + $0x20] ss:$16 sps:$4 sm:$0xff]   ;;  %7545 = vmatprep.subr.bf16.mxu0 %v11468_v12  ;;  %v4003_v12 = vlaneseq }
 0x40f   : > { %v3904_v41 = vpack.c.bf16 %v3893_v23, %v3892_v34  ;;  %11149 = vmatpush3.bf16.msra.mxu1 %v3902_v14  ;;  %v3772_v8 = vadd.f32 %v11043_v21, %v3676_v61  ;;  %v11469_v43 = vld [vmem:[%s17384_s8 + $0x28] ss:$16 sps:$4 sm:$0xff]   ;;  %v11474_v61 = vld [vmem:[%s17384_s8 + $0x44] ss:$16 sps:$4 sm:$0xff]   ;;  %v11477_v34 = vld [vmem:[%s17384_s8 + $0x4c] ss:$16 sps:$4 sm:$0xff]  }
 0x410   : > { %v3903_v51 = vpack.c.bf16 %v3891_v17, %v3890_v40  ;;  %v11140_v18 = vpop.f32.mrb[168].mxu0  ;;  %v11472_v23 = vld [vmem:[%s17384_s8 + $0x40] ss:$16 sps:$4 sm:$0xff]   ;;  %v11475_v33 = vld [vmem:[%s17384_s8 + $0x48] ss:$16 sps:$4 sm:$0xff]  }
 0x411   : > { %v3865_v48 = vadd.f32 %v11140_v18, %v3769_v44  ;;  %v3856_v26 = vpop.f32.mrb[169].mxu0  ;;  %v11044_v46 = vpop.f32.mrb[152].mxu1  ;;  %7546 = vmatpush1.bf16.msra.mxu0 %v11466_v22  ;;  %v11480_v40 = vld [vmem:[%s17384_s8 + $0x64] ss:$16 sps:$4 sm:$0xff]   ;;  %v11483_v17 = vld [vmem:[%s17384_s8 + $0x6c] ss:$16 sps:$4 sm:$0xff]  }
 0x412   : > { %v3857_v2 = vadd.f32 %v3856_v26, %v3761_v1  ;;  %v11141_v16 = vpop.f32.mrb[170].mxu0  ;;  %11150 = vmatprep.subr.bf16.mxu1 %v3903_v51  ;;  %v11045_v3 = vpop.f32.mrb[153].mxu1  ;;  %7547 = vmatprep.subr.bf16.mxu0 %v11474_v61  ;;  %v11478_v21 = vld [vmem:[%s17384_s8 + $0x60] ss:$16 sps:$4 sm:$0xff]   ;;  %v11481_v44 = vld [vmem:[%s17384_s8 + $0x68] ss:$16 sps:$4 sm:$0xff]  }
 0x413   : > { %v3868_v42 = vadd.f32 %v11141_v16, %v3772_v8  ;;  %v3859_v4 = vpop.f32.mrb[171].mxu0  ;;  %11151 = vmatpush3.bf16.msra.mxu1 %v3903_v51  ;;  %v11046_v47 = vadd.f32 %v11045_v3, %v11044_v46  ;;  %v11047_v36 = vpop.f32.mrb[154].mxu1  ;;  %v3896_v57 = vmax.f32 %v3865_v48, 0.0  ;;  %v11489_v51 = vld [vmem:[%s17384_s8 + $0x8c] ss:$16 sps:$4 sm:$0xff]  }
 0x414   : > { %v3860_v55 = vadd.f32 %v3859_v4, %v3764_v59  ;;  %11152 = vmatprep.subr.bf16.mxu1 %v3904_v41  ;;  %v11048_v10 = vpop.f32.mrb[155].mxu1  ;;  %v3894_v37 = vmax.f32 %v3857_v2, 0.0  ;;  %v11484_v18 = vld [vmem:[%s17384_s8 + $0x80] ss:$16 sps:$4 sm:$0xff]   ;;  %v11487_v8 = vld [vmem:[%s17384_s8 + $0x88] ss:$16 sps:$4 sm:$0xff]  }
 0x415   : > { %v3897_v11 = vmax.f32 %v3868_v42, 0.0  ;;  %v11049_v29 = vadd.f32 %v11048_v10, %v11047_v36  ;;  %v3777_v7 = vadd.f32 %v11046_v47, %v3681_v63  ;;  %7548 = vmatpush1.bf16.msra.mxu0 %v11472_v23  ;;  %v11492_v48 = vld [vmem:[%s17384_s8 + $0xa4] ss:$16 sps:$4 sm:$0xff]   ;;  %v11495_v26 = vld [vmem:[%s17384_s8 + $0xac] ss:$16 sps:$4 sm:$0xff]  }
 0x416   : > { %v3895_v15 = vmax.f32 %v3860_v55, 0.0  ;;  %7549 = vmatprep.subr.bf16.mxu0 %v11480_v40  ;;  %v11490_v46 = vld [vmem:[%s17384_s8 + $0xa0] ss:$16 sps:$4 sm:$0xff]   ;;  %v11493_v2 = vld [vmem:[%s17384_s8 + $0xa8] ss:$16 sps:$4 sm:$0xff]  }
 0x417   : > { %v3906_v49 = vpack.c.bf16 %v3897_v11, %v3896_v57  ;;  %11153 = vmatpush3.bf16.msra.mxu1 %v3904_v41  ;;  %v3780_v38 = vadd.f32 %v11049_v29, %v3684_v56  ;;  %v11486_v41 = vld [vmem:[%s17384_s8 + $0x84] ss:$16 sps:$4 sm:$0xff]   ;;  %v11501_v3 = vld [vmem:[%s17384_s8 + $0xcc] ss:$16 sps:$4 sm:$0xff]   ;;  %v11496_v42 = vld [vmem:[%s17384_s8 + $0xc0] ss:$16 sps:$4 sm:$0xff]  }
 0x418   : > { %v3905_v58 = vpack.c.bf16 %v3895_v15, %v3894_v37  ;;  %v11144_v5 = vpop.f32.mrb[172].mxu0  ;;  %v11498_v16 = vld [vmem:[%s17384_s8 + $0xc4] ss:$16 sps:$4 sm:$0xff]   ;;  %v11499_v4 = vld [vmem:[%s17384_s8 + $0xc8] ss:$16 sps:$4 sm:$0xff]  }
 0x419   : > { %v3872_v19 = vpop.f32.mrb[173].mxu0  ;;  %v11050_v45 = vpop.f32.mrb[156].mxu1  ;;  %7550 = vmatpush1.bf16.msra.mxu0 %v11478_v21  ;;  %v11504_v63 = vld [vmem:[%s17384_s8 + $0xe4] ss:$16 sps:$4 sm:$0xff]   ;;  %v11507_v47 = vld [vmem:[%s17384_s8 + $0xec] ss:$16 sps:$4 sm:$0xff]  }
 0x41a   : > { %v3873_v0 = vadd.f32 %v3872_v19, %v3777_v7  ;;  %v11145_v53 = vpop.f32.mrb[174].mxu0  ;;  %11154 = vmatprep.subr.bf16.mxu1 %v3905_v58  ;;  %v11051_v62 = vpop.f32.mrb[157].mxu1  ;;  %7551 = vmatprep.subr.bf16.mxu0 %v11486_v41  ;;  %v11502_v36 = vld [vmem:[%s17384_s8 + $0xe0] ss:$16 sps:$4 sm:$0xff]   ;;  %v11505_v55 = vld [vmem:[%s17384_s8 + $0xe8] ss:$16 sps:$4 sm:$0xff]  }
 0x41b   : > { %v3875_v6 = vpop.f32.mrb[175].mxu0  ;;  %11155 = vmatpush3.bf16.msra.mxu1 %v3905_v58  ;;  %v11052_v50 = vadd.f32 %v11051_v62, %v11050_v45  ;;  %v11053_v35 = vpop.f32.mrb[158].mxu1  ;;  %v11510_v56 = vld [vmem:[%s17384_s8 + $0x104] ss:$16 sps:$4 sm:$0xff]   ;;  %v11513_v57 = vld [vmem:[%s17384_s8 + $0x10c] ss:$16 sps:$4 sm:$0xff]  }
 0x41c   : > { %v3876_v1 = vadd.f32 %v3875_v6, %v3780_v38  ;;  %11156 = vmatprep.subr.bf16.mxu1 %v3906_v49  ;;  %v11054_v14 = vpop.f32.mrb[159].mxu1  ;;  %v3898_v60 = vmax.f32 %v3873_v0, 0.0  ;;  %v11508_v11 = vld [vmem:[%s17384_s8 + $0x100] ss:$16 sps:$4 sm:$0xff]   ;;  %v11511_v10 = vld [vmem:[%s17384_s8 + $0x108] ss:$16 sps:$4 sm:$0xff]  }
 0x41d   : > { %v3785_v9 = vadd.f32 %v11052_v50, %v3689_v28  ;;  %7552 = vmatpush1.bf16.msra.mxu0 %v11484_v18  ;;  %v11516_v37 = vld [vmem:[%s17384_s8 + $0x124] ss:$16 sps:$4 sm:$0xff]   ;;  %v11519_v15 = vld [vmem:[%s17384_s8 + $0x12c] ss:$16 sps:$4 sm:$0xff]   ;;  %v11514_v29 = vld [vmem:[%s17384_s8 + $0x120] ss:$16 sps:$4 sm:$0xff]  }
 0x41e   : > { %v3899_v59 = vmax.f32 %v3876_v1, 0.0  ;;  %7553 = vmatprep.subr.bf16.mxu0 %v11492_v48  ;;  %v11517_v7 = vld [vmem:[%s17384_s8 + $0x128] ss:$16 sps:$4 sm:$0xff]   ;;  %v11522_v58 = vld [vmem:[%s17384_s8 + $0x144] ss:$16 sps:$4 sm:$0xff]  }
 0x41f   : > { %11157 = vmatpush3.bf16.msra.mxu1 %v3906_v49  ;;  %v3881_v31 = vadd.f32 %v11144_v5, %v3785_v9  ;;  %v11520_v49 = vld [vmem:[%s17384_s8 + $0x140] ss:$16 sps:$4 sm:$0xff]   ;;  %v11523_v5 = vld [vmem:[%s17384_s8 + $0x148] ss:$16 sps:$4 sm:$0xff]   ;;  %v11525_v38 = vld [vmem:[%s17384_s8 + $0x14c] ss:$16 sps:$4 sm:$0xff]  }
 0x420   : > { %v3907_v27 = vpack.c.bf16 %v3899_v59, %v3898_v60  ;;  %v11528_v19 = vld [vmem:[%s17384_s8 + $0x164] ss:$16 sps:$4 sm:$0xff]   ;;  %v11531_v45 = vld [vmem:[%s17384_s8 + $0x16c] ss:$16 sps:$4 sm:$0xff]   ;;  %v11526_v0 = vld [vmem:[%s17384_s8 + $0x160] ss:$16 sps:$4 sm:$0xff]  }
 0x421   : > { %v3900_v25 = vmax.f32 %v3881_v31, 0.0  ;;  %7554 = vmatpush1.bf16.msra.mxu0 %v11490_v46  ;;  %v11529_v53 = vld [vmem:[%s17384_s8 + $0x168] ss:$16 sps:$4 sm:$0xff]   ;;  %v11534_v62 = vld [vmem:[%s17384_s8 + $0x184] ss:$16 sps:$4 sm:$0xff]  }
 0x422   : > { %11158 = vmatprep.subr.bf16.mxu1 %v3907_v27  ;;  %7555 = vmatprep.subr.bf16.mxu0 %v11498_v16  ;;  %v11537_v6 = vld [vmem:[%s17384_s8 + $0x18c] ss:$16 sps:$4 sm:$0xff]   ;;  %v11532_v35 = vld [vmem:[%s17384_s8 + $0x180] ss:$16 sps:$4 sm:$0xff]   ;;  %v11535_v14 = vld [vmem:[%s17384_s8 + $0x188] ss:$16 sps:$4 sm:$0xff]  }
 0x423   : > { %11159 = vmatpush3.bf16.msra.mxu1 %v3907_v27  ;;  %v3908_v54 = vpack.c.bf16 %v3900_v25, %v3900_v25  ;;  %v11540_v59 = vld [vmem:[%s17384_s8 + $0x1a4] ss:$16 sps:$4 sm:$0xff]   ;;  %v11543_v31 = vld [vmem:[%s17384_s8 + $0x1ac] ss:$16 sps:$4 sm:$0xff]   ;;  %v11538_v25 = vld [vmem:[%s17384_s8 + $0x1a0] ss:$16 sps:$4 sm:$0xff]  }
 0x424   : > { %v11544_v52 = vld [vmem:[%s17384_s8 + $0x1c0] ss:$16 sps:$4 sm:$0xff]   ;;  %v11553_v22 = vld [vmem:[%s17384_s8 + $0x1e8] ss:$16 sps:$4 sm:$0xff]   ;;  %v11558_v61 = vld [vmem:[%s17384_s8 + $0x204] ss:$16 sps:$4 sm:$0xff]  }
 0x425   : > { %11238 = vmatprep.subr.msk.bf16.mxu1 %vm3930_vm12, %v3908_v54  ;;  %v3932_v30 = vsel %vm3930_vm12, %v3908_v54, 0  ;;  %7556 = vmatpush1.bf16.msra.mxu0 %v11496_v42  ;;  %v11541_v54 = vld [vmem:[%s17384_s8 + $0x1a8] ss:$16 sps:$4 sm:$0xff]  }
 0x426   : > { %7557 = vmatprep.subr.bf16.mxu0 %v11504_v63  ;;  %v17425_v63 = vmov 0 }
 0x427   : > { %11161 = vmatpush3.bf16.msra.mxu1 %v3932_v30  ;;  %v11546_v30 = vld [vmem:[%s17384_s8 + $0x1c4] ss:$16 sps:$4 sm:$0xff]  }
 0x428   : > { %7871 = vmatprep.subr.bf16.mxu1 %v11465_v32  ;;  %v11555_v32 = vld [vmem:[%s17384_s8 + $0x1ec] ss:$16 sps:$4 sm:$0xff]  }
 0x429   : > { %7558 = vmatpush1.bf16.msra.mxu0 %v11502_v36  ;;  %v17429_v36 = vmov 0 }
 0x42a   : > { %11163 = vmatmul.mubr.msk.bf16.vlgmr.msra.gmra.mrb[160].mxu1 %vm3923_vm11, %v11459_v13  ;;  %7559 = vmatprep.subr.bf16.mxu0 %v11510_v56  ;;  %v11549_v13 = vld [vmem:[%s17384_s8 + $0x1cc] ss:$16 sps:$4 sm:$0xff]   ;;  %v17433_v56 = vmov 0 }
 0x42b   : > { %7872 = vmatpush1.bf16.msra.mxu1 %v11463_v20  ;;  %v11552_v20 = vld [vmem:[%s17384_s8 + $0x1e4] ss:$16 sps:$4 sm:$0xff]  }
 0x42c   : > { %7873 = vmatprep.subr.bf16.mxu1 %v11471_v39  ;;  %v11550_v39 = vld [vmem:[%s17384_s8 + $0x1e0] ss:$16 sps:$4 sm:$0xff]  }
 0x42d   : > { %7560 = vmatpush1.bf16.msra.mxu0 %v11508_v11  ;;  %v17438_v11 = vmov 0 }
 0x42e   : > { %7561 = vmatprep.subr.bf16.mxu0 %v11516_v37  ;;  %v17445_v37 = vmov 0 }
 0x42f   : > { %7874 = vmatpush1.bf16.msra.mxu1 %v11469_v43  ;;  %v14406_v43 = vshrl.u32 %v4003_v12, 7 }
 0x430   : > { %7875 = vmatprep.subr.bf16.mxu1 %v11477_v34  ;;  %v11561_v34 = vld [vmem:[%s17384_s8 + $0x20c] ss:$16 sps:$4 sm:$0xff]  }
 0x431   : > { %7562 = vmatpush1.bf16.msra.mxu0 %v11514_v29  ;;  %17424 = vst [vmem:[#allocation9_spill] sm:$0xff] %v14406_v43  ;;  %v4006_v23 = vadd.s32 16, %v14406_v43  ;;  %v4005_v40 = vadd.s32 8, %v14406_v43  ;;  %v17453_v29 = vmov 0 }
 0x432   : > { %7563 = vmatprep.subr.bf16.mxu0 %v11522_v58 }
 0x433   : > { %7876 = vmatpush1.bf16.msra.mxu1 %v11475_v33  ;;  %v4007_v33 = vadd.s32 24, %v14406_v43  ;;  %v14424_v41 = vmul.u32 64, %v4005_v40  ;;  %v17565_v40 = vmov 0 }
 0x434   : > { %7877 = vmatprep.subr.bf16.mxu1 %v11483_v17  ;;  %v14417_v17 = vmul.u32 64, %v4006_v23  ;;  %v17557_v23 = vmov 0 }
 0x435   : > { %7564 = vmatpush1.bf16.msra.mxu0 %v11520_v49  ;;  %v14419_v21 = vmul.u32 64, %v4007_v33  ;;  %v17561_v33 = vmov 0 }
 0x436   : > { %7565 = vmatprep.subr.bf16.mxu0 %v11528_v19  ;;  %v14429_v18 = vadd.s32 64, %v14417_v17 }
 0x437   : > { %7878 = vmatpush1.bf16.msra.mxu1 %v11481_v44  ;;  %v14422_v44 = vmul.u32 64, %v14406_v43  ;;  %v17627_v43 = vmov 0 }
 0x438   : > { %7879 = vmatprep.subr.bf16.mxu1 %v11489_v51  ;;  %v14426_v51 = vand.u32 127, %v4003_v12  ;;  %v17537_v12 = vmov 0 }
 0x439   : > { %7566 = vmatpush1.bf16.msra.mxu0 %v11526_v0  ;;  %v14435_v48 = vadd.s32 64, %v14422_v44 }
 0x43a   : > { %7567 = vmatprep.subr.bf16.mxu0 %v11534_v62  ;;  %v4011_v46 = vadd.s32 256, %v14426_v51  ;;  %v14443_v16 = vadd.s32 512, %v14426_v51  ;;  %v14449_v42 = vadd.s32 768, %v14426_v51  ;;  %v14621_v49 = vadd.s32 1024, %v14426_v51 }
 0x43b   : > { %7880 = vmatpush1.bf16.msra.mxu1 %v11487_v8  ;;  %v14432_v8 = vadd.s32 64, %v14419_v21  ;;  %v14624_v58 = vadd.s32 1408, %v14426_v51  ;;  %v14640_v19 = vadd.s32 1664, %v14426_v51  ;;  %v14646_v0 = vadd.s32 1920, %v14426_v51 }
 0x43c   : > { %7881 = vmatprep.subr.bf16.mxu1 %v11495_v26  ;;  %v14438_v26 = vadd.s32 64, %v14424_v41  ;;  %vm4063_vm13 = vcmp.ge.s32.totalorder %v4011_v46, %v14417_v17  ;;  %vm4079_vm14 = vcmp.ge.s32.totalorder %v4011_v46, %v14419_v21  ;;  %vm4131_vm15 = vcmp.lt.s32.totalorder %v4011_v46, %v14429_v18 }
 0x43d   : > { %7568 = vmatpush1.bf16.msra.mxu0 %v11532_v35  ;;  %vm4147_vm0 = vcmp.lt.s32.totalorder %v4011_v46, %v14432_v8  ;;  %vm4031_vm1 = vcmp.ge.s32.totalorder %v4011_v46, %v14422_v44  ;;  %vm4047_vm2 = vcmp.ge.s32.totalorder %v4011_v46, %v14424_v41  ;;  %vm4099_vm3 = vcmp.lt.s32.totalorder %v4011_v46, %v14435_v48  ;;  %vm14462_vm5 = vmand %vm4063_vm13, %vm4131_vm15 }
 0x43e   : > { %7569 = vmatprep.subr.bf16.mxu0 %v11540_v59  ;;  %vm4115_vm4 = vcmp.lt.s32.totalorder %v4011_v46, %v14438_v26  ;;  %v17426_v63 = vsel %vm14462_vm5, 4294967295, %v17425_v63  ;;  %vm14466_vm6 = vmand %vm4031_vm1, %vm4099_vm3  ;;  %v17469_v62 = vmov 0  ;;  %v17485_v35 = vmov 0 }
 0x43f   : > { %7882 = vmatpush1.bf16.msra.mxu1 %v11493_v2  ;;  %v4014_v2 = vadd.s32 640, %v14426_v51  ;;  %vm14474_vm12 = vmand %vm4047_vm2, %vm4115_vm4  ;;  %v17501_v59 = vmov 0  ;;  %v17569_v46 = vmov 0  ;;  %vm4129_vm5 = vcmp.lt.s32.totalorder %v14426_v51, %v14429_v18 }
 0x440   : > { %7883 = vmatprep.subr.bf16.mxu1 %v11501_v3  ;;  %v14446_v3 = vadd.s32 896, %v14426_v51  ;;  %v17430_v36 = vsel %vm14474_vm12, 4294967295, %v17429_v36  ;;  %vm14486_vm10 = vmand %vm4079_vm14, %vm4147_vm0  ;;  %vm4101_vm14 = vcmp.lt.s32.totalorder %v14443_v16, %v14435_v48 }
 0x441   : > { %7570 = vmatpush1.bf16.msra.mxu0 %v11538_v25  ;;  %vm4034_vm7 = vcmp.ge.s32.totalorder %v4014_v2, %v14422_v44  ;;  %vm4050_vm8 = vcmp.ge.s32.totalorder %v4014_v2, %v14424_v41  ;;  %vm4102_vm13 = vcmp.lt.s32.totalorder %v4014_v2, %v14435_v48  ;;  %vm4118_vm15 = vcmp.lt.s32.totalorder %v4014_v2, %v14438_v26 }
 0x442   : > { %7571 = vmatprep.subr.bf16.mxu0 %v11546_v30  ;;  %vm4134_vm1 = vcmp.lt.s32.totalorder %v4014_v2, %v14429_v18  ;;  %vm14498_vm9 = vmand %vm4034_vm7, %vm4102_vm13  ;;  %vm17437_vm4 = vcmp.ge.s32.totalorder %v4014_v2, %v14417_v17  ;;  %vm17440_vm7 = vcmp.lt.s32.totalorder %v4014_v2, %v14432_v8  ;;  %vm17441_vm0 = vcmp.ge.s32.totalorder %v4014_v2, %v14419_v21 }
 0x443   : > { %7884 = vmatpush1.bf16.msra.mxu1 %v11499_v4  ;;  %v14452_v4 = vadd.s32 1152, %v14426_v51  ;;  %v17434_v56 = vsel %vm14498_vm9, 4294967295, %v17433_v56  ;;  %vm14512_vm11 = vmand %vm4050_vm8, %vm4118_vm15  ;;  %vm17447_vm15 = vcmp.lt.s32.totalorder %v14443_v16, %v14438_v26  ;;  %vm17459_vm3 = vcmp.lt.s32.totalorder %v14446_v3, %v14435_v48 }
 0x444   : > { %7885 = vmatprep.subr.bf16.mxu1 %v11507_v47  ;;  %v17427_v47 = vmov 0  ;;  %vm14528_vm8 = vmand %vm17437_vm4, %vm4134_vm1  ;;  %vm17460_vm2 = vcmp.ge.s32.totalorder %v14446_v3, %v14422_v44  ;;  %v17509_v25 = vmov 0  ;;  %v4023_v30 = vadd.s32 1792, %v14426_v51 }
 0x445   : > { %7572 = vmatpush1.bf16.msra.mxu0 %v11544_v52  ;;  %v17428_v47 = vsel %vm14466_vm6, 4294967295, %v17427_v47  ;;  %v17439_v11 = vsel %vm14528_vm8, 4294967295, %v17438_v11  ;;  %vm14544_vm1 = vmand %vm17441_vm0, %vm17440_vm7  ;;  %vm17444_vm0 = vcmp.ge.s32.totalorder %v14443_v16, %v14422_v44  ;;  %vm17515_vm4 = vcmp.lt.s32.totalorder %v14621_v49, %v14429_v18 }
 0x446   : > { %7573 = vmatprep.subr.bf16.mxu0 %v11552_v20  ;;  %vm14562_vm7 = vmand %vm17444_vm0, %vm4101_vm14  ;;  %vm17448_vm14 = vcmp.ge.s32.totalorder %v14443_v16, %v14424_v41  ;;  %v17521_v52 = vmov 0  ;;  %v17529_v20 = vmov 0  ;;  %v17573_v2 = vmov 0 }
 0x447   : > { %7886 = vmatpush1.bf16.msra.mxu1 %v11505_v55  ;;  %v17431_v55 = vmov 0  ;;  %v17446_v37 = vsel %vm14562_vm7, 4294967295, %v17445_v37  ;;  %vm14580_vm0 = vmand %vm17448_vm14, %vm17447_vm15  ;;  %vm17451_vm7 = vcmp.lt.s32.totalorder %v14443_v16, %v14429_v18  ;;  %vm17452_vm15 = vcmp.ge.s32.totalorder %v14443_v16, %v14417_v17 }
 0x448   : > { %7887 = vmatprep.subr.bf16.mxu1 %v11513_v57  ;;  %v17432_v55 = vsel %vm14486_vm10, 4294967295, %v17431_v55  ;;  %v17435_v57 = vmov 0  ;;  %vm14598_vm14 = vmand %vm17452_vm15, %vm17451_vm7  ;;  %vm17456_vm7 = vcmp.ge.s32.totalorder %v14443_v16, %v14419_v21  ;;  %vm4097_vm9 = vcmp.lt.s32.totalorder %v14426_v51, %v14435_v48 }
 0x449   : > { %7574 = vmatpush1.bf16.msra.mxu0 %v11550_v39  ;;  %v17436_v57 = vsel %vm14512_vm11, 4294967295, %v17435_v57  ;;  %v17454_v29 = vsel %vm14598_vm14, 4294967295, %v17453_v29  ;;  %vm14632_vm13 = vmand %vm17460_vm2, %vm17459_vm3  ;;  %vm17464_vm3 = vcmp.ge.s32.totalorder %v14446_v3, %v14424_v41  ;;  %vm17467_vm14 = vcmp.lt.s32.totalorder %v14446_v3, %v14429_v18 }
 0x44a   : > { %7584 = vmatprep.subr.bf16.mxu0 %v11558_v61  ;;  %v17541_v39 = vmov 0  ;;  %v17549_v61 = vmov 0  ;;  %vm4029_vm11 = vcmp.ge.s32.totalorder %v14426_v51, %v14422_v44 }
 0x44b   : > { %7888 = vmatpush1.bf16.msra.mxu1 %v11511_v10  ;;  %v17442_v10 = vmov 0  ;;  %vm15177_vm12 = vmand %vm4029_vm11, %vm4097_vm9 }
 0x44c   : > { %7889 = vmatprep.subr.bf16.mxu1 %v11519_v15  ;;  %v17443_v10 = vsel %vm14544_vm1, 4294967295, %v17442_v10  ;;  %v17449_v15 = vmov 0  ;;  %vm17535_vm1 = vcmp.lt.s32.totalorder %v14624_v58, %v14432_v8 }
 0x44d   : > { %v17450_v15 = vsel %vm14580_vm0, 4294967295, %v17449_v15  ;;  %vm17455_vm0 = vcmp.lt.s32.totalorder %v14443_v16, %v14432_v8  ;;  %v17577_v16 = vmov 0 }
 0x44e   : > { %vm14616_vm15 = vmand %vm17456_vm7, %vm17455_vm0  ;;  %vm17463_vm0 = vcmp.lt.s32.totalorder %v14446_v3, %v14438_v26 }
 0x44f   : > { %7890 = vmatpush1.bf16.msra.mxu1 %v11517_v7  ;;  %v17457_v7 = vmov 0  ;;  %vm14654_vm2 = vmand %vm17464_vm3, %vm17463_vm0  ;;  %vm17468_vm0 = vcmp.ge.s32.totalorder %v14446_v3, %v14417_v17 }
 0x450   : > { %7891 = vmatprep.subr.bf16.mxu1 %v11525_v38  ;;  %v17458_v7 = vsel %vm14616_vm15, 4294967295, %v17457_v7  ;;  %v14637_v38 = vadd.s32 1280, %v14426_v51  ;;  %vm14672_vm3 = vmand %vm17468_vm0, %vm17467_vm14  ;;  %vm17472_vm14 = vcmp.ge.s32.totalorder %v14446_v3, %v14419_v21  ;;  %vm17519_vm15 = vcmp.lt.s32.totalorder %v14621_v49, %v14432_v8 }
 0x451   : > { %v17470_v62 = vsel %vm14672_vm3, 4294967295, %v17469_v62  ;;  %vm17475_vm3 = vcmp.lt.s32.totalorder %v14449_v42, %v14435_v48 }
 0x453   : > { %7892 = vmatpush1.bf16.msra.mxu1 %v11523_v5  ;;  %v17461_v5 = vmov 0 }
 0x454   : > { %7893 = vmatprep.subr.bf16.mxu1 %v11531_v45  ;;  %v17462_v5 = vsel %vm14632_vm13, 4294967295, %v17461_v5  ;;  %v14643_v45 = vadd.s32 1536, %v14426_v51  ;;  %vm17516_vm13 = vcmp.ge.s32.totalorder %v14621_v49, %v14417_v17 }
 0x455   : > { %vm14881_vm7 = vmand %vm17516_vm13, %vm17515_vm4  ;;  %vm17523_vm4 = vcmp.lt.s32.totalorder %v14624_v58, %v14435_v48  ;;  %vm17527_vm13 = vcmp.lt.s32.totalorder %v14624_v58, %v14438_v26 }
 0x457   : > { %7894 = vmatpush1.bf16.msra.mxu1 %v11529_v53  ;;  %v17465_v53 = vmov 0 }
 0x458   : > { %7895 = vmatprep.subr.bf16.mxu1 %v11537_v6  ;;  %v17466_v53 = vsel %vm14654_vm2, 4294967295, %v17465_v53  ;;  %vm17471_vm2 = vcmp.lt.s32.totalorder %v14446_v3, %v14432_v8  ;;  %v17473_v6 = vmov 0  ;;  %v17582_v3 = vmov 0 }
 0x459   : > { %vm14690_vm0 = vmand %vm17472_vm14, %vm17471_vm2  ;;  %vm17476_vm2 = vcmp.ge.s32.totalorder %v14449_v42, %v14422_v44 }
 0x45a   : > { %v17474_v6 = vsel %vm14690_vm0, 4294967295, %v17473_v6  ;;  %vm14708_vm14 = vmand %vm17476_vm2, %vm17475_vm3  ;;  %vm17479_vm0 = vcmp.lt.s32.totalorder %v14449_v42, %v14438_v26  ;;  %vm17480_vm3 = vcmp.ge.s32.totalorder %v14449_v42, %v14424_v41 }
 0x45b   : > { %7896 = vmatpush1.bf16.msra.mxu1 %v11535_v14  ;;  %vm14726_vm2 = vmand %vm17480_vm3, %vm17479_vm0  ;;  %vm17484_vm0 = vcmp.ge.s32.totalorder %v14449_v42, %v14417_v17  ;;  %v17493_v14 = vmov 0 }
 0x45c   : > { %7897 = vmatprep.subr.bf16.mxu1 %v11543_v31  ;;  %v17505_v31 = vmov 0 }
 0x45f   : > { %7898 = vmatpush1.bf16.msra.mxu1 %v11541_v54  ;;  %v17513_v54 = vmov 0 }
 0x460   : > { %7899 = vmatprep.subr.bf16.mxu1 %v11549_v13  ;;  %v17517_v13 = vmov 0 }
 0x461   : > { %v17518_v13 = vsel %vm14881_vm7, 4294967295, %v17517_v13  ;;  %vm17524_vm7 = vcmp.ge.s32.totalorder %v14624_v58, %v14422_v44 }
 0x462   : > { %vm14905_vm8 = vmand %vm17524_vm7, %vm17523_vm4  ;;  %vm17531_vm7 = vcmp.lt.s32.totalorder %v14624_v58, %v14429_v18  ;;  %vm17532_vm4 = vcmp.ge.s32.totalorder %v14624_v58, %v14417_v17 }
 0x463   : > { %7900 = vmatpush1.bf16.msra.mxu1 %v11547_v24  ;;  %v17525_v24 = vmov 0 }
 0x464   : > { %7901 = vmatprep.subr.bf16.mxu1 %v11555_v32  ;;  %v17526_v24 = vsel %vm14905_vm8, 4294967295, %v17525_v24  ;;  %v17533_v32 = vmov 0 }
 0x467   : > { %7902 = vmatpush1.bf16.msra.mxu1 %v11553_v22  ;;  %v17545_v22 = vmov 0 }
 0x468   : > { %7912 = vmatprep.subr.bf16.mxu1 %v11561_v34  ;;  %v17553_v34 = vmov 0 }
 0x4fd   : > { %v11164_v28 = vpop.f32.mrb[160].mxu1 }
 0x4fe   : > { %v3968_v50 = vpop.f32.mrb[161].mxu1 }
 0x4ff   : > { %v11165_v1 = vpop.f32.mrb[162].mxu1 }
 0x500   : > { %v14362_v60 = vpack.c.bf16 %v11165_v1, %v11164_v28  ;;  %v3971_v9 = vpop.f32.mrb[163].mxu1  ;;  %v17477_v28 = vmov 0  ;;  %v17489_v1 = vmov 0 }
 0x501   : > { %v14370_v27 = vpack.c.bf16 %v3971_v9, %v3968_v50  ;;  %v17478_v28 = vsel %vm14708_vm14, 4294967295, %v17477_v28  ;;  %v17481_v50 = vmov 0  ;;  %vm17483_vm14 = vcmp.lt.s32.totalorder %v14449_v42, %v14429_v18 }
 0x502   : > { %3989 = vrot.lane.b32.xlu1 %v14362_v60, %s17423_s21  ;;  %v17482_v50 = vsel %vm14726_vm2, 4294967295, %v17481_v50  ;;  %vm14744_vm3 = vmand %vm17484_vm0, %vm17483_vm14  ;;  %vm17487_vm2 = vcmp.lt.s32.totalorder %v14449_v42, %v14432_v8  ;;  %vm17488_vm14 = vcmp.ge.s32.totalorder %v14449_v42, %v14419_v21  ;;  %v17497_v9 = vmov 0 }
 0x503   : > { %3987 = vrot.lane.b32.xlu0 %v14370_v27, %s17423_s21  ;;  %v17486_v35 = vsel %vm14744_vm3, 4294967295, %v17485_v35  ;;  %vm14762_vm0 = vmand %vm17488_vm14, %vm17487_vm2  ;;  %vm17491_vm3 = vcmp.lt.s32.totalorder %v14452_v4, %v14435_v48  ;;  %vm17492_vm2 = vcmp.ge.s32.totalorder %v14452_v4, %v14422_v44  ;;  %v17587_v42 = vmov 0  ;;  %s459_s21 = scalar_lea.vmem [#allocation2], %s458_s0 }
 0x504   : > { %v17490_v1 = vsel %vm14762_vm0, 4294967295, %v17489_v1  ;;  %vm14780_vm14 = vmand %vm17492_vm2, %vm17491_vm3  ;;  %vm17495_vm0 = vcmp.lt.s32.totalorder %v14452_v4, %v14438_v26  ;;  %vm17496_vm3 = vcmp.ge.s32.totalorder %v14452_v4, %v14424_v41  ;;  %s9520_s15 = sshll.u32 %s459_s21, 4  ;;  %s17336_s15 = int_to_ptr.vmem [resolvable:$true] %s9520_s15 }
 0x505   : > { %v17494_v14 = vsel %vm14780_vm14, 4294967295, %v17493_v14  ;;  %vm14798_vm2 = vmand %vm17496_vm3, %vm17495_vm0  ;;  %vm17499_vm14 = vcmp.lt.s32.totalorder %v14452_v4, %v14429_v18  ;;  %vm17500_vm0 = vcmp.ge.s32.totalorder %v14452_v4, %v14417_v17  ;;  %s12452_s24 = scalar_lea.vmem %s17336_s15, 16  ;;  %p12459_p0 = scmp.lt.s32.totalorder %s17336_s15, %s12457_s18 }
 0x506   : > { %v17498_v9 = vsel %vm14798_vm2, 4294967295, %v17497_v9  ;;  %vm14816_vm3 = vmand %vm17500_vm0, %vm17499_vm14  ;;  %vm17503_vm2 = vcmp.lt.s32.totalorder %v14452_v4, %v14432_v8  ;;  %vm17504_vm14 = vcmp.ge.s32.totalorder %v14452_v4, %v14419_v21  ;;  %v17592_v4 = vmov 0  ;;  %p12453_p11 = scmp.ne.s32.totalorder %s17336_s15, %s12452_s24  ;;  %p12460_p1 = scmp.lt.s32.totalorder %s12458_s20, %s12452_s24 }
 0x507   : > { %v17502_v59 = vsel %vm14816_vm3, 4294967295, %v17501_v59  ;;  %vm14834_vm0 = vmand %vm17504_vm14, %vm17503_vm2  ;;  %vm17507_vm3 = vcmp.lt.s32.totalorder %v14621_v49, %v14435_v48  ;;  %vm17508_vm2 = vcmp.ge.s32.totalorder %v14621_v49, %v14422_v44 }
 0x508   : > { %v17506_v31 = vsel %vm14834_vm0, 4294967295, %v17505_v31  ;;  %vm14852_vm14 = vmand %vm17508_vm2, %vm17507_vm3  ;;  %vm17511_vm0 = vcmp.lt.s32.totalorder %v14621_v49, %v14438_v26  ;;  %vm17512_vm3 = vcmp.ge.s32.totalorder %v14621_v49, %v14424_v41  ;;  %p12454_p12 = pnand %p12453_p11, %p12631_p5  ;;  %p12461_p2 = por %p12460_p1, %p12459_p0 }
 0x509   : > { %v17510_v25 = vsel %vm14852_vm14, 4294967295, %v17509_v25  ;;  %vm14870_vm2 = vmand %vm17512_vm3, %vm17511_vm0  ;;  %vm17520_vm0 = vcmp.ge.s32.totalorder %v14621_v49, %v14419_v21  ;;  %vm17536_vm14 = vcmp.ge.s32.totalorder %v14624_v58, %v14419_v21  ;;  %v17597_v49 = vmov 0 }
 0x50a   : > { %v17514_v54 = vsel %vm14870_vm2, 4294967295, %v17513_v54  ;;  %vm14891_vm3 = vmand %vm17520_vm0, %vm17519_vm15  ;;  %vm17528_vm2 = vcmp.ge.s32.totalorder %v14624_v58, %v14424_v41  ;;  %vm17540_vm15 = vcmp.ge.s32.totalorder %v14637_v38, %v14422_v44  ;;  %v17602_v58 = vmov 0  ;;  %p12455_p13 = pneg %p12454_p12 }
 0x50b   : > { %v17522_v52 = vsel %vm14891_vm3, 4294967295, %v17521_v52  ;;  %vm14919_vm3 = vmand %vm17528_vm2, %vm17527_vm13  ;;  %vm17539_vm13 = vcmp.lt.s32.totalorder %v14637_v38, %v14435_v48 }
 0x50c   : > { %v17530_v20 = vsel %vm14919_vm3, 4294967295, %v17529_v20  ;;  %vm14929_vm0 = vmand %vm17532_vm4, %vm17531_vm7  ;;  %vm17543_vm4 = vcmp.lt.s32.totalorder %v14637_v38, %v14438_v26  ;;  %p12462_p3 = pnand %p12461_p2, %p12455_p13 }
 0x50d   : > { %v17534_v32 = vsel %vm14929_vm0, 4294967295, %v17533_v32  ;;  %vm14939_vm2 = vmand %vm17536_vm14, %vm17535_vm1  ;;  %vm17544_vm0 = vcmp.ge.s32.totalorder %v14637_v38, %v14424_v41  ;;  %vm17547_vm14 = vcmp.lt.s32.totalorder %v14637_v38, %v14429_v18 }
 0x50e   : > { %v17538_v12 = vsel %vm14939_vm2, 4294967295, %v17537_v12  ;;  %vm14949_vm7 = vmand %vm17540_vm15, %vm17539_vm13  ;;  %vm17548_vm2 = vcmp.ge.s32.totalorder %v14637_v38, %v14417_v17  ;;  %vm17551_vm13 = vcmp.lt.s32.totalorder %v14637_v38, %v14432_v8 }
 0x50f   : > { %v17542_v39 = vsel %vm14949_vm7, 4294967295, %v17541_v39  ;;  %vm14959_vm1 = vmand %vm17544_vm0, %vm17543_vm4  ;;  %vm17552_vm7 = vcmp.ge.s32.totalorder %v14637_v38, %v14419_v21  ;;  %vm17555_vm4 = vcmp.lt.s32.totalorder %v14640_v19, %v14435_v48  ;;  %v17607_v38 = vmov 0 }
 0x510   : > { %v17546_v22 = vsel %vm14959_vm1, 4294967295, %v17545_v22  ;;  %vm14969_vm15 = vmand %vm17548_vm2, %vm17547_vm14  ;;  %vm17556_vm1 = vcmp.ge.s32.totalorder %v14640_v19, %v14422_v44  ;;  %vm17559_vm14 = vcmp.lt.s32.totalorder %v14640_v19, %v14438_v26 }
 0x511   : > { %v17550_v61 = vsel %vm14969_vm15, 4294967295, %v17549_v61  ;;  %vm14979_vm0 = vmand %vm17552_vm7, %vm17551_vm13  ;;  %vm17560_vm15 = vcmp.ge.s32.totalorder %v14640_v19, %v14424_v41  ;;  %vm17563_vm13 = vcmp.lt.s32.totalorder %v14640_v19, %v14429_v18 }
 0x512   : > { %v17554_v34 = vsel %vm14979_vm0, 4294967295, %v17553_v34  ;;  %vm14989_vm2 = vmand %vm17556_vm1, %vm17555_vm4  ;;  %vm17564_vm0 = vcmp.ge.s32.totalorder %v14640_v19, %v14417_v17  ;;  %vm17567_vm4 = vcmp.lt.s32.totalorder %v14640_v19, %v14432_v8 }
 0x513   : > { %v17558_v23 = vsel %vm14989_vm2, 4294967295, %v17557_v23  ;;  %vm14999_vm7 = vmand %vm17560_vm15, %vm17559_vm14  ;;  %vm17568_vm2 = vcmp.ge.s32.totalorder %v14640_v19, %v14419_v21  ;;  %vm17571_vm14 = vcmp.lt.s32.totalorder %v14643_v45, %v14435_v48  ;;  %v17612_v19 = vmov 0 }
 0x514   : > { %v17562_v33 = vsel %vm14999_vm7, 4294967295, %v17561_v33  ;;  %vm15009_vm1 = vmand %vm17564_vm0, %vm17563_vm13  ;;  %vm17572_vm7 = vcmp.ge.s32.totalorder %v14643_v45, %v14422_v44  ;;  %vm17575_vm13 = vcmp.lt.s32.totalorder %v14643_v45, %v14438_v26 }
 0x515   : > { %v17566_v40 = vsel %vm15009_vm1, 4294967295, %v17565_v40  ;;  %vm15019_vm15 = vmand %vm17568_vm2, %vm17567_vm4  ;;  %vm17576_vm1 = vcmp.ge.s32.totalorder %v14643_v45, %v14424_v41  ;;  %vm17580_vm4 = vcmp.lt.s32.totalorder %v14643_v45, %v14429_v18 }
 0x516   : > { %v17570_v46 = vsel %vm15019_vm15, 4294967295, %v17569_v46  ;;  %vm15029_vm0 = vmand %vm17572_vm7, %vm17571_vm14  ;;  %vm17581_vm15 = vcmp.ge.s32.totalorder %v14643_v45, %v14417_v17  ;;  %vm17585_vm14 = vcmp.lt.s32.totalorder %v14643_v45, %v14432_v8 }
 0x517   : > { %v17574_v2 = vsel %vm15029_vm0, 4294967295, %v17573_v2  ;;  %vm15039_vm2 = vmand %vm17576_vm1, %vm17575_vm13  ;;  %vm17586_vm0 = vcmp.ge.s32.totalorder %v14643_v45, %v14419_v21  ;;  %vm17590_vm13 = vcmp.lt.s32.totalorder %v14646_v0, %v14435_v48  ;;  %v17617_v45 = vmov 0 }
 0x518   : > { %v17578_v16 = vsel %vm15039_vm2, 4294967295, %v17577_v16  ;;  %vm15049_vm7 = vmand %vm17581_vm15, %vm17580_vm4  ;;  %vm17591_vm2 = vcmp.ge.s32.totalorder %v14646_v0, %v14422_v44  ;;  %vm17595_vm4 = vcmp.lt.s32.totalorder %v14646_v0, %v14438_v26 }
 0x519   : > { %17579 = vst [vmem:[#allocation10_spill] sm:$0xff] %v17578_v16  ;;  %v17583_v3 = vsel %vm15049_vm7, 4294967295, %v17582_v3  ;;  %vm15059_vm1 = vmand %vm17586_vm0, %vm17585_vm14  ;;  %vm17596_vm7 = vcmp.ge.s32.totalorder %v14646_v0, %v14424_v41  ;;  %vm17600_vm14 = vcmp.lt.s32.totalorder %v14646_v0, %v14429_v18 }
 0x51a   : > { %17584 = vst [vmem:[#allocation11_spill] sm:$0xff] %v17583_v3  ;;  %v17588_v42 = vsel %vm15059_vm1, 4294967295, %v17587_v42  ;;  %vm15069_vm15 = vmand %vm17591_vm2, %vm17590_vm13  ;;  %vm17601_vm1 = vcmp.ge.s32.totalorder %v14646_v0, %v14417_v17  ;;  %vm17605_vm13 = vcmp.lt.s32.totalorder %v14646_v0, %v14432_v8 }
 0x51b   : > { %17589 = vst [vmem:[#allocation12_spill] sm:$0xff] %v17588_v42  ;;  %v17593_v4 = vsel %vm15069_vm15, 4294967295, %v17592_v4  ;;  %vm15079_vm0 = vmand %vm17596_vm7, %vm17595_vm4  ;;  %vm17606_vm15 = vcmp.ge.s32.totalorder %v14646_v0, %v14419_v21  ;;  %vm17610_vm4 = vcmp.lt.s32.totalorder %v4023_v30, %v14435_v48  ;;  %v17622_v0 = vmov 0 }
 0x51c   : > { %17594 = vst [vmem:[#allocation13_spill] sm:$0xff] %v17593_v4  ;;  %v17598_v49 = vsel %vm15079_vm0, 4294967295, %v17597_v49  ;;  %vm15089_vm2 = vmand %vm17601_vm1, %vm17600_vm14  ;;  %vm17611_vm0 = vcmp.ge.s32.totalorder %v4023_v30, %v14422_v44  ;;  %vm17615_vm1 = vcmp.lt.s32.totalorder %v4023_v30, %v14438_v26  ;;  %vm17616_vm14 = vcmp.ge.s32.totalorder %v4023_v30, %v14424_v41 }
 0x51d   : > { %17599 = vst [vmem:[#allocation14_spill] sm:$0xff] %v17598_v49  ;;  %v17603_v58 = vsel %vm15089_vm2, 4294967295, %v17602_v58  ;;  %vm15099_vm7 = vmand %vm17606_vm15, %vm17605_vm13  ;;  %vm17620_vm15 = vcmp.lt.s32.totalorder %v4023_v30, %v14429_v18  ;;  %vm17621_vm13 = vcmp.ge.s32.totalorder %v4023_v30, %v14417_v17 }
 0x51e   : > { %17604 = vst [vmem:[#allocation15_spill] sm:$0xff] %v17603_v58  ;;  %v17608_v38 = vsel %vm15099_vm7, 4294967295, %v17607_v38  ;;  %vm15107_vm3 = vmand %vm17611_vm0, %vm17610_vm4  ;;  %vm17625_vm0 = vcmp.lt.s32.totalorder %v4023_v30, %v14432_v8  ;;  %vm17626_vm4 = vcmp.ge.s32.totalorder %v4023_v30, %v14419_v21  ;;  %v17630_v30 = vmov 0 }
 0x51f   : > { %17609 = vst [vmem:[#allocation16_spill] sm:$0xff] %v17608_v38  ;;  %v17613_v19 = vsel %vm15107_vm3, 4294967295, %v17612_v19  ;;  %vm15115_vm2 = vmand %vm17616_vm14, %vm17615_vm1  ;;  %v17640_v58 = vmov 0 }
 0x520   : > { %17614 = vst [vmem:[#allocation17_spill] sm:$0xff] %v17613_v19  ;;  %v17618_v45 = vsel %vm15115_vm2, 4294967295, %v17617_v45  ;;  %vm15123_vm7 = vmand %vm17621_vm13, %vm17620_vm15  ;;  %v4010_v19 = vadd.s32 128, %v14426_v51 }
 0x521   : > { %17619 = vst [vmem:[#allocation18_spill] sm:$0xff] %v17618_v45  ;;  %v17623_v0 = vsel %vm15123_vm7, 4294967295, %v17622_v0  ;;  %vm15131_vm3 = vmand %vm17626_vm4, %vm17625_vm0 }
 0x522   : > { %17624 = vst [vmem:[#allocation19_spill] sm:$0xff] %v17623_v0  ;;  %v17628_v43 = vsel %vm15131_vm3, 4294967295, %v17627_v43  ;;  %vm4030_vm1 = vcmp.ge.s32.totalorder %v4010_v19, %v14422_v44  ;;  %vm4046_vm14 = vcmp.ge.s32.totalorder %v4010_v19, %v14424_v41  ;;  %vm4098_vm2 = vcmp.lt.s32.totalorder %v4010_v19, %v14435_v48 }
 0x523   : > { %17629 = vst [vmem:[#allocation20_spill] sm:$0xff] %v17628_v43  ;;  %vm4114_vm15 = vcmp.lt.s32.totalorder %v4010_v19, %v14438_v26  ;;  %vm4062_vm13 = vcmp.ge.s32.totalorder %v4010_v19, %v14417_v17  ;;  %vm4130_vm7 = vcmp.lt.s32.totalorder %v4010_v19, %v14429_v18  ;;  %vm4078_vm8 = vcmp.ge.s32.totalorder %v4010_v19, %v14419_v21  ;;  %vm15144_vm4 = vmand %vm4030_vm1, %vm4098_vm2 }
 0x524   : > { %vm4146_vm0 = vcmp.lt.s32.totalorder %v4010_v19, %v14432_v8  ;;  %v17631_v30 = vsel %vm15144_vm4, 4294967295, %v17630_v30  ;;  %vm15148_vm3 = vmand %vm4046_vm14, %vm4114_vm15  ;;  %v17632_v43 = vmov 0  ;;  %v4012_v0 = vadd.s32 384, %v14426_v51 }
 0x525   : > { %v17633_v43 = vsel %vm15148_vm3, 4294967295, %v17632_v43  ;;  %vm15157_vm10 = vmand %vm4062_vm13, %vm4130_vm7  ;;  %vm4045_vm2 = vcmp.ge.s32.totalorder %v14426_v51, %v14424_v41  ;;  %vm4113_vm1 = vcmp.lt.s32.totalorder %v14426_v51, %v14438_v26  ;;  %v17636_v19 = vmov 0 }
 0x526   : > { %vm15165_vm14 = vmand %vm4078_vm8, %vm4146_vm0  ;;  %vm4061_vm15 = vcmp.ge.s32.totalorder %v14426_v51, %v14417_v17  ;;  %vm4077_vm7 = vcmp.ge.s32.totalorder %v14426_v51, %v14419_v21  ;;  %vm4145_vm13 = vcmp.lt.s32.totalorder %v14426_v51, %v14432_v8  ;;  %vm4032_vm0 = vcmp.ge.s32.totalorder %v4012_v0, %v14422_v44 }
 0x527   : > { %v17637_v19 = vsel %vm15165_vm14, 4294967295, %v17636_v19  ;;  %vm15181_vm8 = vmand %vm4045_vm2, %vm4113_vm1  ;;  %vm4100_vm6 = vcmp.lt.s32.totalorder %v4012_v0, %v14435_v48  ;;  %vm4048_vm4 = vcmp.ge.s32.totalorder %v4012_v0, %v14424_v41  ;;  %vm4116_vm14 = vcmp.lt.s32.totalorder %v4012_v0, %v14438_v26 }
 0x528   : > { %v17641_v58 = vsel %vm15181_vm8, 4294967295, %v17640_v58  ;;  %vm15187_vm3 = vmand %vm4061_vm15, %vm4129_vm5  ;;  %vm4064_vm11 = vcmp.ge.s32.totalorder %v4012_v0, %v14417_v17  ;;  %vm4132_vm2 = vcmp.lt.s32.totalorder %v4012_v0, %v14429_v18  ;;  %vm17646_vm1 = vcmask 523264  }
 0x529   : > { %vm15193_vm9 = vmand %vm4077_vm7, %vm4145_vm13  ;;  %vm4080_vm5 = vcmp.ge.s32.totalorder %v4012_v0, %v14419_v21  ;;  %vm4148_vm15 = vcmp.lt.s32.totalorder %v4012_v0, %v14432_v8 }
 0x52a   : > { %vm15203_vm8 = vmand %vm4032_vm0, %vm4100_vm6  ;;  %vm17654_vm6 = vnez %v17637_v19  ;;  %vm17662_vm0 = vnez %v17426_v63 }
 0x52b   : > { %vm17649_vm7 = vmmov %vm17646_vm1 }
 0x52c   : > { %vm15213_vm13 = vmand %vm4048_vm4, %vm4116_vm14  ;;  %vm17657_vm14 = vnez %v17631_v30 }
 0x52d   : > { %vm15237_vm4 = vmand %vm4080_vm5, %vm4148_vm15  ;;  %vm17666_vm5 = vnez %v17439_v11  ;;  %vm17667_vm15 = vnez %v17443_v10 }
 0x574   : > { %v3990_v51 = vpop.permute.xlu1 %3989 }
 0x575   : > { %v3997_v44 = vsel %vm17646_vm1, %v14362_v60, %v3990_v51  ;;  %v3988_v48 = vpop.permute.xlu0 %3987  ;;  %vm15221_vm1 = vmand %vm4064_vm11, %vm4132_vm2  ;;  %vm17664_vm11 = vnez %v17434_v56  ;;  %vm17665_vm2 = vnez %v17436_v57 }
 0x576   : > { %v15207_v26 = vunpack.c.l.bf16 %v3997_v44  ;;  %v15209_v42 = vunpack.c.h.bf16 %v3997_v44  ;;  %v3993_v17 = vsel %vm17649_vm7, %v14370_v27, %v3988_v48  ;;  %vm17668_vm7 = vnez %v17446_v37 }
 0x577   : > { %v15217_v60 = vunpack.c.l.bf16 %v3993_v17  ;;  %v15219_v21 = vunpack.c.h.bf16 %v3993_v17 }
 0x578   : > { %v4258_v0 = vsel %vm15157_vm10, %v15207_v26, 0.0  ;;  %v4274_v27 = vsel %vm17654_vm6, %v15209_v42, 0.0  ;;  %v4257_v51 = vsel %vm15187_vm3, %v15207_v26, 0.0  ;;  %v4273_v44 = vsel %vm15193_vm9, %v15209_v42, 0.0 }
 0x579   : > { %v4226_v45 = vsel %vm17657_vm14, %v15217_v60, 0.0  ;;  %vm17658_vm10 = vnez %v17633_v43  ;;  %v4225_v49 = vsel %vm15177_vm12, %v15217_v60, 0.0  ;;  %vm17659_vm3 = vnez %v17641_v58 }
 0x57a   : > { %v4242_v19 = vsel %vm17658_vm10, %v15219_v21, 0.0  ;;  %v4241_v4 = vsel %vm17659_vm3, %v15219_v21, 0.0  ;;  %v4228_v16 = vsel %vm15203_vm8, %v15217_v60, 0.0  ;;  %v4244_v30 = vsel %vm15213_vm13, %v15219_v21, 0.0 }
 0x57b   : > { %v4298_v17 = vadd.f32 %v4242_v19, %v4226_v45  ;;  %v4289_v3 = vadd.f32 %v4241_v4, %v4225_v49  ;;  %v4260_v43 = vsel %vm15221_vm1, %v15207_v26, 0.0  ;;  %v4276_v38 = vsel %vm15237_vm4, %v15209_v42, 0.0 }
 0x57c   : > { %v4316_v58 = vadd.f32 %v4244_v30, %v4228_v16  ;;  %vm17660_vm12 = vnez %v17428_v47  ;;  %vm17661_vm8 = vnez %v17430_v36  ;;  %v4259_v8 = vsel %vm17662_vm0, %v15207_v26, 0.0 }
 0x57d   : > { %v4227_v45 = vsel %vm17660_vm12, %v15217_v60, 0.0  ;;  %v4299_v19 = vadd.f32 %v4298_v17, %v4258_v0  ;;  %v4290_v41 = vadd.f32 %v4289_v3, %v4257_v51  ;;  %v4243_v18 = vsel %vm17661_vm8, %v15219_v21, 0.0 }
 0x57e   : > { %v4317_v49 = vadd.f32 %v4316_v58, %v4260_v43  ;;  %vm17663_vm9 = vnez %v17432_v55  ;;  %v4307_v16 = vadd.f32 %v4243_v18, %v4227_v45  ;;  %v4230_v47 = vsel %vm17664_vm11, %v15217_v60, 0.0 }
 0x57f   : > { %v4275_v48 = vsel %vm17663_vm9, %v15209_v42, 0.0  ;;  %v4300_v0 = vadd.f32 %v4299_v19, %v4274_v27  ;;  %v4291_v3 = vadd.f32 %v4290_v41, %v4273_v44  ;;  %v4246_v36 = vsel %vm17665_vm2, %v15219_v21, 0.0 }
 0x580   : > { %v4262_v63 = vsel %vm17666_vm5, %v15207_v26, 0.0  ;;  %v4318_v51 = vadd.f32 %v4317_v49, %v4276_v38  ;;  %v4308_v4 = vadd.f32 %v4307_v16, %v4259_v8  ;;  %v4278_v55 = vsel %vm17667_vm15, %v15209_v42, 0.0 }
 0x581   : > { %v4334_v17 = vadd.f32 %v4246_v36, %v4230_v47  ;;  %v4301_v30 = vrot.slane %v4300_v0, 4  ;;  %v4292_v56 = vrot.slane %v4291_v3, 4  ;;  %v4229_v27 = vsel %vm17668_vm7, %v15217_v60, 0.0 }
 0x582   : > { %vm17669_vm13 = vnez %v17450_v15  ;;  %v4319_v44 = vrot.slane %v4318_v51, 4  ;;  %v15295_v11 = vadd.f32 %v4308_v4, %v4275_v48  ;;  %vm17670_vm1 = vnez %v17454_v29 }
 0x583   : > { %v4245_v57 = vsel %vm17669_vm13, %v15219_v21, 0.0  ;;  %v4335_v43 = vadd.f32 %v4334_v17, %v4262_v63  ;;  %v4261_v10 = vsel %vm17670_vm1, %v15207_v26, 0.0  ;;  %v4302_v38 = vadd.f32 %v4301_v30, %v4300_v0 }
 0x584   : > { %v4293_v58 = vadd.f32 %v4292_v56, %v4291_v3  ;;  %vm17671_vm6 = vnez %v17458_v7  ;;  %v4325_v37 = vadd.f32 %v4245_v57, %v4229_v27  ;;  %v4320_v19 = vadd.f32 %v4319_v44, %v4318_v51  ;;  %v11556_v57 = vld [vmem:[%s17384_s8 + $0x200] ss:$16 sps:$4 sm:$0xff]  }
 0x585   : > { %v4277_v45 = vsel %vm17671_vm6, %v15209_v42, 0.0  ;;  %v15303_v41 = vadd.f32 %v4335_v43, %v4278_v55  ;;  %vm17672_vm4 = vnez %v17462_v5  ;;  %v4303_v18 = vrot.slane %v4302_v38, 2 }
 0x586   : > { %v4232_v15 = vsel %vm17672_vm4, %v15217_v60, 0.0  ;;  %v4294_v8 = vrot.slane %v4293_v58, 2  ;;  %v4326_v49 = vadd.f32 %v4325_v37, %v4261_v10  ;;  %vm17673_vm14 = vnez %v17466_v53  ;;  %v11567_v10 = vld [vmem:[%s17384_s8 + $0x22c] ss:$16 sps:$4 sm:$0xff]  }
 0x587   : > { %v4248_v29 = vsel %vm17673_vm14, %v15219_v21, 0.0  ;;  %v4321_v48 = vrot.slane %v4320_v19, 2  ;;  %v4304_v47 = vadd.f32 %v4303_v18, %v4302_v38  ;;  %vm17674_vm10 = vnez %v17470_v62 }
 0x588   : > { %v4352_v16 = vadd.f32 %v4248_v29, %v4232_v15  ;;  %v4295_v7 = vadd.f32 %v4294_v8, %v4293_v58  ;;  %v15311_v0 = vadd.f32 %v4326_v49, %v4277_v45  ;;  %v4264_v3 = vsel %vm17674_vm10, %v15207_v26, 0.0 }
 0x589   : > { %v4322_v36 = vadd.f32 %v4321_v48, %v4320_v19  ;;  %vm17675_vm3 = vnez %v17474_v6  ;;  %v4305_v63 = vrot.slane %v4304_v47, 1  ;;  %vm17676_vm12 = vnez %v17478_v28  ;;  %v11559_v6 = vld [vmem:[%s17384_s8 + $0x208] ss:$16 sps:$4 sm:$0xff]   ;;  %v11564_v28 = vld [vmem:[%s17384_s8 + $0x224] ss:$16 sps:$4 sm:$0xff]  }
 0x58a   : > { %v4280_v5 = vsel %vm17675_vm3, %v15209_v42, 0.0  ;;  %v4296_v51 = vrot.slane %v4295_v7, 1  ;;  %v4353_v4 = vadd.f32 %v4352_v16, %v4264_v3  ;;  %v4231_v27 = vsel %vm17676_vm12, %v15217_v60, 0.0  ;;  %v11562_v19 = vld [vmem:[%s17384_s8 + $0x220] ss:$16 sps:$4 sm:$0xff]  }
 0x58b   : > { %v4323_v53 = vrot.slane %v4322_v36, 1  ;;  %v4306_v55 = vadd.f32 %v4305_v63, %v4304_v47  ;;  %vm17677_vm8 = vnez %v17482_v50  ;;  %vm17678_vm0 = vnez %v17486_v35  ;;  %v11565_v35 = vld [vmem:[%s17384_s8 + $0x228] ss:$16 sps:$4 sm:$0xff]  }
 0x58c   : > { %v4297_v17 = vadd.f32 %v4296_v51, %v4295_v7  ;;  %v15319_v30 = vadd.f32 %v4353_v4, %v4280_v5  ;;  %v4247_v43 = vsel %vm17677_vm8, %v15219_v21, 0.0  ;;  %v4263_v38 = vsel %vm17678_vm0, %v15207_v26, 0.0  ;;  %v11571_v47 = vld [vmem:[%s17384_s8 + $0x248] ss:$16 sps:$4 sm:$0xff]   ;;  %v11579_v7 = vld [vmem:[%s17384_s8 + $0x26c] ss:$16 sps:$4 sm:$0xff]  }
 0x58d   : > { %v4324_v56 = vadd.f32 %v4323_v53, %v4322_v36  ;;  %v4434_v62 = vpack.c.bf16 %v4306_v55, %v4306_v55  ;;  %vm17679_vm9 = vnez %v17490_v1  ;;  %v4343_v45 = vadd.f32 %v4247_v43, %v4231_v27  ;;  %v11570_v1 = vld [vmem:[%s17384_s8 + $0x244] ss:$16 sps:$4 sm:$0xff]   ;;  %v11577_v53 = vld [vmem:[%s17384_s8 + $0x268] ss:$16 sps:$4 sm:$0xff]  }
 0x58e   : > { %v4433_v44 = vpack.c.bf16 %v4297_v17, %v4297_v17  ;;  %v4279_v58 = vsel %vm17679_vm9, %v15209_v42, 0.0  ;;  %vm17680_vm11 = vnez %v17494_v14  ;;  %v11573_v14 = vld [vmem:[%s17384_s8 + $0x24c] ss:$16 sps:$4 sm:$0xff]   ;;  %vm17681_vm2 = vnez %v17498_v9 }
 0x58f   : > { %7575 = vmatprep.mubr.bf16.mxu0 %v4434_v62  ;;  %7903 = vmatprep.mubr.bf16.mxu1 %v4434_v62  ;;  %v4436_v50 = vpack.c.bf16 %v4324_v56, %v4324_v56  ;;  %v4234_v37 = vsel %vm17680_vm11, %v15217_v60, 0.0  ;;  %v4344_v15 = vadd.f32 %v4343_v45, %v4263_v38  ;;  %v4250_v18 = vsel %vm17681_vm2, %v15219_v21, 0.0 }
 0x590   : > { %7576 = vmatmul.mubr.bf16.vlgmr.msra.gmra.mrb[176].mxu0 %v4433_v44  ;;  %7904 = vmatmul.mubr.bf16.vlgmr.msra.gmra.mrb[164].mxu1 %v4433_v44  ;;  %vm17682_vm5 = vnez %v17502_v59  ;;  %v4370_v49 = vadd.f32 %v4250_v18, %v4234_v37  ;;  %vm17683_vm15 = vnez %v17506_v31  ;;  %vm17684_vm7 = vnez %v17510_v25  ;;  %v11568_v59 = vld [vmem:[%s17384_s8 + $0x240] ss:$16 sps:$4 sm:$0xff]   ;;  %v11591_v44 = vld [vmem:[%s17384_s8 + $0x2ac] ss:$16 sps:$4 sm:$0xff]  }
 0x591   : > { %7585 = vmatpush1.bf16.msra.mxu0 %v11556_v57  ;;  %7913 = vmatpush1.bf16.msra.mxu1 %v11559_v6  ;;  %v4266_v8 = vsel %vm17682_vm5, %v15207_v26, 0.0  ;;  %v15366_v29 = vadd.f32 %v4344_v15, %v4279_v58  ;;  %v4282_v48 = vsel %vm17683_vm15, %v15209_v42, 0.0  ;;  %v4233_v16 = vsel %vm17684_vm7, %v15217_v60, 0.0  ;;  %v11586_v58 = vld [vmem:[%s17384_s8 + $0x2a0] ss:$16 sps:$4 sm:$0xff]  }
 0x592   : > { %7616 = vmatprep.mubr.bf16.mxu0 %v4436_v50  ;;  %7944 = vmatprep.mubr.bf16.mxu1 %v4436_v50  ;;  %vm17685_vm13 = vnez %v17514_v54  ;;  %v4371_v31 = vadd.f32 %v4370_v49, %v4266_v8  ;;  %vm17686_vm1 = vnez %v17518_v13  ;;  %v11576_v54 = vld [vmem:[%s17384_s8 + $0x264] ss:$16 sps:$4 sm:$0xff]   ;;  %vm17687_vm6 = vnez %v17522_v52  ;;  %v11574_v52 = vld [vmem:[%s17384_s8 + $0x260] ss:$16 sps:$4 sm:$0xff]   ;;  %v11589_v50 = vld [vmem:[%s17384_s8 + $0x2a8] ss:$16 sps:$4 sm:$0xff]  }
 0x593   : > { %7586 = vmatprep.subr.bf16.mxu0 %v11564_v28  ;;  %7914 = vmatprep.subr.bf16.mxu1 %v11567_v10  ;;  %v4249_v9 = vsel %vm17685_vm13, %v15219_v21, 0.0  ;;  %v4265_v25 = vsel %vm17686_vm1, %v15207_v26, 0.0  ;;  %v4281_v5 = vsel %vm17687_vm6, %v15209_v42, 0.0  ;;  %vm17688_vm4 = vnez %v17526_v24  ;;  %v11595_v15 = vld [vmem:[%s17384_s8 + $0x2c8] ss:$16 sps:$4 sm:$0xff]  }
 0x594   : > { %v4361_v3 = vadd.f32 %v4249_v9, %v4233_v16  ;;  %v15392_v36 = vadd.f32 %v4371_v31, %v4282_v48  ;;  %v4236_v13 = vsel %vm17688_vm4, %v15217_v60, 0.0  ;;  %vm17689_vm14 = vnez %v17530_v20  ;;  %v11582_v20 = vld [vmem:[%s17384_s8 + $0x284] ss:$16 sps:$4 sm:$0xff]   ;;  %v11603_v48 = vld [vmem:[%s17384_s8 + $0x2ec] ss:$16 sps:$4 sm:$0xff]  }
 0x595   : > { %7587 = vmatpush1.bf16.msra.mxu0 %v11562_v19  ;;  %7915 = vmatpush1.bf16.msra.mxu1 %v11565_v35  ;;  %v4252_v51 = vsel %vm17689_vm14, %v15219_v21, 0.0  ;;  %vm17690_vm10 = vnez %v17534_v32  ;;  %vm17691_vm3 = vnez %v17538_v12  ;;  %v11585_v32 = vld [vmem:[%s17384_s8 + $0x28c] ss:$16 sps:$4 sm:$0xff]   ;;  %vm17692_vm12 = vnez %v17542_v39  ;;  %v11580_v39 = vld [vmem:[%s17384_s8 + $0x280] ss:$16 sps:$4 sm:$0xff]  }
 0x596   : > { %7588 = vmatprep.subr.bf16.mxu0 %v11570_v1  ;;  %7916 = vmatprep.subr.bf16.mxu1 %v11573_v14  ;;  %v4362_v63 = vadd.f32 %v4361_v3, %v4265_v25  ;;  %v4268_v4 = vsel %vm17690_vm10, %v15207_v26, 0.0  ;;  %v4284_v24 = vsel %vm17691_vm3, %v15209_v42, 0.0  ;;  %v4388_v17 = vadd.f32 %v4252_v51, %v4236_v13  ;;  %v17701_v35 = vld [vmem:[#allocation10_spill] sm:$0xff]  ;;  %v17703_v8 = vld [vmem:[#allocation11_spill] sm:$0xff]  ;;  %v17705_v9 = vld [vmem:[#allocation12_spill] sm:$0xff] }
 0x597   : > { %v4235_v56 = vsel %vm17692_vm12, %v15217_v60, 0.0  ;;  %vm17693_vm8 = vnez %v17546_v22  ;;  %vm17694_vm0 = vnez %v17550_v61  ;;  %vm17695_vm9 = vnez %v17554_v34  ;;  %v11583_v22 = vld [vmem:[%s17384_s8 + $0x288] ss:$16 sps:$4 sm:$0xff]   ;;  %v11588_v34 = vld [vmem:[%s17384_s8 + $0x2a4] ss:$16 sps:$4 sm:$0xff]  }
 0x598   : > { %v15421_v55 = vadd.f32 %v4362_v63, %v4281_v5  ;;  %v4251_v12 = vsel %vm17693_vm8, %v15219_v21, 0.0  ;;  %v4389_v27 = vadd.f32 %v4388_v17, %v4268_v4  ;;  %v4267_v62 = vsel %vm17694_vm0, %v15207_v26, 0.0  ;;  %v11592_v14 = vld [vmem:[%s17384_s8 + $0x2c0] ss:$16 sps:$4 sm:$0xff]   ;;  %v11600_v49 = vld [vmem:[%s17384_s8 + $0x2e4] ss:$16 sps:$4 sm:$0xff]  }
 0x599   : > { %7589 = vmatpush1.bf16.msra.mxu0 %v11568_v59  ;;  %7917 = vmatpush1.bf16.msra.mxu1 %v11571_v47  ;;  %v4283_v57 = vsel %vm17695_vm9, %v15209_v42, 0.0  ;;  %v4379_v6 = vadd.f32 %v4251_v12, %v4235_v56  ;;  %vm17696_vm11 = vnez %v17558_v23  ;;  %vm17697_vm2 = vnez %v17562_v33  ;;  %v17707_v47 = vld [vmem:[#allocation13_spill] sm:$0xff]  ;;  %v17711_v63 = vld [vmem:[#allocation15_spill] sm:$0xff]  ;;  %v17713_v51 = vld [vmem:[#allocation16_spill] sm:$0xff] }
 0x59a   : > { %7590 = vmatprep.subr.bf16.mxu0 %v11576_v54  ;;  %7918 = vmatprep.subr.bf16.mxu1 %v11579_v7  ;;  %v4238_v61 = vsel %vm17696_vm11, %v15217_v60, 0.0  ;;  %v15450_v43 = vadd.f32 %v4389_v27, %v4284_v24  ;;  %v4254_v10 = vsel %vm17697_vm2, %v15219_v21, 0.0  ;;  %vm17698_vm5 = vnez %v17566_v40  ;;  %v11594_v40 = vld [vmem:[%s17384_s8 + $0x2c4] ss:$16 sps:$4 sm:$0xff]   ;;  %v17709_v54 = vld [vmem:[#allocation14_spill] sm:$0xff] }
 0x59b   : > { %v4380_v28 = vadd.f32 %v4379_v6, %v4267_v62  ;;  %v4270_v23 = vsel %vm17698_vm5, %v15207_v26, 0.0  ;;  %vm17699_vm15 = vnez %v17570_v46  ;;  %v4406_v45 = vadd.f32 %v4254_v10, %v4238_v61  ;;  %v11597_v46 = vld [vmem:[%s17384_s8 + $0x2cc] ss:$16 sps:$4 sm:$0xff]   ;;  %v11598_v3 = vld [vmem:[%s17384_s8 + $0x2e0] ss:$16 sps:$4 sm:$0xff]  }
 0x59c   : > { %v4286_v38 = vsel %vm17699_vm15, %v15209_v42, 0.0  ;;  %vm17700_vm7 = vnez %v17574_v2  ;;  %vm17702_vm13 = vnez %v17701_v35  ;;  %vm17704_vm1 = vnez %v17703_v8  ;;  %v11601_v5 = vld [vmem:[%s17384_s8 + $0x2e8] ss:$16 sps:$4 sm:$0xff]   ;;  %v11615_v61 = vld [vmem:[%s17384_s8 + $0x32c] ss:$16 sps:$4 sm:$0xff]  }
 0x59d   : > { %7591 = vmatpush1.bf16.msra.mxu0 %v11574_v52  ;;  %7919 = vmatpush1.bf16.msra.mxu1 %v11577_v53  ;;  %v15467_v33 = vadd.f32 %v4380_v28, %v4283_v57  ;;  %v4407_v37 = vadd.f32 %v4406_v45, %v4270_v23  ;;  %v4237_v19 = vsel %vm17700_vm7, %v15217_v60, 0.0  ;;  %v4253_v1 = vsel %vm17702_vm13, %v15219_v21, 0.0  ;;  %v11606_v52 = vld [vmem:[%s17384_s8 + $0x304] ss:$16 sps:$4 sm:$0xff]   ;;  %v11609_v53 = vld [vmem:[%s17384_s8 + $0x30c] ss:$16 sps:$4 sm:$0xff]  }
 0x59e   : > { %7592 = vmatprep.subr.bf16.mxu0 %v11582_v20  ;;  %7920 = vmatprep.subr.bf16.mxu1 %v11585_v32  ;;  %v4269_v2 = vsel %vm17704_vm1, %v15207_v26, 0.0  ;;  %v4397_v16 = vadd.f32 %v4253_v1, %v4237_v19  ;;  %vm17706_vm6 = vnez %v17705_v9  ;;  %vm17708_vm4 = vnez %v17707_v47  ;;  %v17715_v32 = vld [vmem:[#allocation17_spill] sm:$0xff]  ;;  %v17717_v56 = vld [vmem:[#allocation18_spill] sm:$0xff]  ;;  %v17719_v62 = vld [vmem:[#allocation19_spill] sm:$0xff] }
 0x59f   : > { %v15487_v18 = vadd.f32 %v4407_v37, %v4286_v38  ;;  %v4285_v59 = vsel %vm17706_vm6, %v15209_v42, 0.0  ;;  %v4240_v31 = vsel %vm17708_vm4, %v15217_v60, 0.0  ;;  %vm17710_vm14 = vnez %v17709_v54  ;;  %v11613_v28 = vld [vmem:[%s17384_s8 + $0x328] ss:$16 sps:$4 sm:$0xff]   ;;  %v11618_v23 = vld [vmem:[%s17384_s8 + $0x344] ss:$16 sps:$4 sm:$0xff]  }
 0x5a0   : > { %v4398_v25 = vadd.f32 %v4397_v16, %v4269_v2  ;;  %v4256_v7 = vsel %vm17710_vm14, %v15219_v21, 0.0  ;;  %vm17712_vm10 = vnez %v17711_v63  ;;  %vm17714_vm3 = vnez %v17713_v51  ;;  %v11621_v38 = vld [vmem:[%s17384_s8 + $0x34c] ss:$16 sps:$4 sm:$0xff]   ;;  %v11624_v45 = vld [vmem:[%s17384_s8 + $0x364] ss:$16 sps:$4 sm:$0xff]  }
 0x5a1   : > { %7593 = vmatpush1.bf16.msra.mxu0 %v11580_v39  ;;  %7921 = vmatpush1.bf16.msra.mxu1 %v11583_v22  ;;  %v4272_v13 = vsel %vm17712_vm10, %v15207_v26, 0.0  ;;  %v4288_v4 = vsel %vm17714_vm3, %v15209_v42, 0.0  ;;  %v4424_v20 = vadd.f32 %v4256_v7, %v4240_v31  ;;  %vm17716_vm12 = vnez %v17715_v32  ;;  %v11604_v39 = vld [vmem:[%s17384_s8 + $0x300] ss:$16 sps:$4 sm:$0xff]   ;;  %v11607_v22 = vld [vmem:[%s17384_s8 + $0x308] ss:$16 sps:$4 sm:$0xff]  }
 0x5a2   : > { %7594 = vmatprep.subr.bf16.mxu0 %v11588_v34  ;;  %7922 = vmatprep.subr.bf16.mxu1 %v11591_v44  ;;  %v15525_v24 = vadd.f32 %v4398_v25, %v4285_v59  ;;  %v4239_v17 = vsel %vm17716_vm12, %v15217_v60, 0.0  ;;  %vm17718_vm8 = vnez %v17717_v56  ;;  %vm17720_vm0 = vnez %v17719_v62  ;;  %v17721_v60 = vld [vmem:[#allocation20_spill] sm:$0xff]  ;;  %v11630_v1 = vld [vmem:[%s17384_s8 + $0x384] ss:$16 sps:$4 sm:$0xff]  }
 0x5a3   : > { %v4255_v12 = vsel %vm17718_vm8, %v15219_v21, 0.0  ;;  %v4425_v27 = vadd.f32 %v4424_v20, %v4272_v13  ;;  %v4271_v57 = vsel %vm17720_vm0, %v15207_v26, 0.0  ;;  %vm17722_vm9 = vnez %v17721_v60  ;;  %v11612_v26 = vld [vmem:[%s17384_s8 + $0x324] ss:$16 sps:$4 sm:$0xff]   ;;  %v11622_v19 = vld [vmem:[%s17384_s8 + $0x360] ss:$16 sps:$4 sm:$0xff]  }
 0x5a4   : > { %v4287_v6 = vsel %vm17722_vm9, %v15209_v42, 0.0  ;;  %v4415_v21 = vadd.f32 %v4255_v12, %v4239_v17  ;;  %v11610_v42 = vld [vmem:[%s17384_s8 + $0x320] ss:$16 sps:$4 sm:$0xff]   ;;  %v4337_v37 = vrot.slane %v15303_v41, 4  ;;  %v11625_v35 = vld [vmem:[%s17384_s8 + $0x368] ss:$16 sps:$4 sm:$0xff]  }
 0x5a5   : > { %7595 = vmatpush1.bf16.msra.mxu0 %v11586_v58  ;;  %7923 = vmatpush1.bf16.msra.mxu1 %v11589_v50  ;;  %v15551_v34 = vadd.f32 %v4425_v27, %v4288_v4  ;;  %v11616_v58 = vld [vmem:[%s17384_s8 + $0x340] ss:$16 sps:$4 sm:$0xff]   ;;  %v11619_v50 = vld [vmem:[%s17384_s8 + $0x348] ss:$16 sps:$4 sm:$0xff]   ;;  %v11642_v47 = vld [vmem:[%s17384_s8 + $0x3c4] ss:$16 sps:$4 sm:$0xff]  }
 0x5a6   : > { %7596 = vmatprep.subr.bf16.mxu0 %v11594_v40  ;;  %7924 = vmatprep.subr.bf16.mxu1 %v11597_v46  ;;  %v4416_v44 = vadd.f32 %v4415_v21, %v4271_v57  ;;  %v11627_v40 = vld [vmem:[%s17384_s8 + $0x36c] ss:$16 sps:$4 sm:$0xff]   ;;  %v4310_v46 = vrot.slane %v15295_v11, 4  ;;  %v4338_v8 = vadd.f32 %v4337_v37, %v15303_v41  ;;  %v11628_v2 = vld [vmem:[%s17384_s8 + $0x380] ss:$16 sps:$4 sm:$0xff]  }
 0x5a7   : > { %v11634_v9 = vld [vmem:[%s17384_s8 + $0x3a0] ss:$16 sps:$4 sm:$0xff]   ;;  %v11637_v59 = vld [vmem:[%s17384_s8 + $0x3a8] ss:$16 sps:$4 sm:$0xff]   ;;  %v11645_v31 = vld [vmem:[%s17384_s8 + $0x3cc] ss:$16 sps:$4 sm:$0xff]  }
 0x5a8   : > { %v15559_v10 = vadd.f32 %v4416_v44, %v4287_v6  ;;  %v4339_v16 = vrot.slane %v4338_v8, 2  ;;  %v11640_v7 = vld [vmem:[%s17384_s8 + $0x3c0] ss:$16 sps:$4 sm:$0xff]   ;;  %v11651_v63 = vld [vmem:[%s17384_s8 + $0x3ec] ss:$16 sps:$4 sm:$0xff]  }
 0x5a9   : > { %7597 = vmatpush1.bf16.msra.mxu0 %v11592_v14  ;;  %7925 = vmatpush1.bf16.msra.mxu1 %v11595_v15  ;;  %v11633_v14 = vld [vmem:[%s17384_s8 + $0x38c] ss:$16 sps:$4 sm:$0xff]   ;;  %v4311_v15 = vadd.f32 %v4310_v46, %v15295_v11  ;;  %v11646_v4 = vld [vmem:[%s17384_s8 + $0x3e0] ss:$16 sps:$4 sm:$0xff]   ;;  %v11654_v20 = vld [vmem:[%s17384_s8 + $0x404] ss:$16 sps:$4 sm:$0xff]  }
 0x5aa   : > { %7598 = vmatprep.subr.bf16.mxu0 %v11600_v49  ;;  %7926 = vmatprep.subr.bf16.mxu1 %v11603_v48  ;;  %v11631_v49 = vld [vmem:[%s17384_s8 + $0x388] ss:$16 sps:$4 sm:$0xff]   ;;  %v11636_v48 = vld [vmem:[%s17384_s8 + $0x3a4] ss:$16 sps:$4 sm:$0xff]   ;;  %v11639_v11 = vld [vmem:[%s17384_s8 + $0x3ac] ss:$16 sps:$4 sm:$0xff]   ;;  %v4340_v54 = vadd.f32 %v4339_v16, %v4338_v8 }
 0x5ab   : > { %v4312_v41 = vrot.slane %v4311_v15, 2  ;;  %v11657_v32 = vld [vmem:[%s17384_s8 + $0x40c] ss:$16 sps:$4 sm:$0xff]   ;;  %v11652_v56 = vld [vmem:[%s17384_s8 + $0x400] ss:$16 sps:$4 sm:$0xff]  }
 0x5ac   : > { %v4341_v51 = vrot.slane %v4340_v54, 1  ;;  %v11655_v27 = vld [vmem:[%s17384_s8 + $0x408] ss:$16 sps:$4 sm:$0xff]   ;;  %v11660_v57 = vld [vmem:[%s17384_s8 + $0x424] ss:$16 sps:$4 sm:$0xff]  }
 0x5ad   : > { %7599 = vmatpush1.bf16.msra.mxu0 %v11598_v3  ;;  %7927 = vmatpush1.bf16.msra.mxu1 %v11601_v5  ;;  %v4313_v25 = vadd.f32 %v4312_v41, %v4311_v15  ;;  %v11643_v3 = vld [vmem:[%s17384_s8 + $0x3c8] ss:$16 sps:$4 sm:$0xff]   ;;  %v11648_v5 = vld [vmem:[%s17384_s8 + $0x3e4] ss:$16 sps:$4 sm:$0xff]   ;;  %v11669_v21 = vld [vmem:[%s17384_s8 + $0x44c] ss:$16 sps:$4 sm:$0xff]  }
 0x5ae   : > { %7600 = vmatprep.subr.bf16.mxu0 %v11606_v52  ;;  %7928 = vmatprep.subr.bf16.mxu1 %v11609_v53  ;;  %v11649_v52 = vld [vmem:[%s17384_s8 + $0x3e8] ss:$16 sps:$4 sm:$0xff]   ;;  %v4342_v17 = vadd.f32 %v4341_v51, %v4340_v54  ;;  %v11666_v6 = vld [vmem:[%s17384_s8 + $0x444] ss:$16 sps:$4 sm:$0xff]   ;;  %v11687_v46 = vld [vmem:[%s17384_s8 + $0x4ac] ss:$16 sps:$4 sm:$0xff]  }
 0x5af   : > { %v4314_v13 = vrot.slane %v4313_v25, 1  ;;  %v11661_v60 = vld [vmem:[%s17384_s8 + $0x428] ss:$16 sps:$4 sm:$0xff]   ;;  %v11672_v44 = vld [vmem:[%s17384_s8 + $0x464] ss:$16 sps:$4 sm:$0xff]  }
 0x5b0   : > { %v4438_v62 = vpack.c.bf16 %v4342_v17, %v4342_v17  ;;  %v11682_v37 = vld [vmem:[%s17384_s8 + $0x4a0] ss:$16 sps:$4 sm:$0xff]   ;;  %v11691_v15 = vld [vmem:[%s17384_s8 + $0x4c8] ss:$16 sps:$4 sm:$0xff]   ;;  %v11696_v8 = vld [vmem:[%s17384_s8 + $0x4e4] ss:$16 sps:$4 sm:$0xff]  }
 0x5b1   : > { %7601 = vmatpush1.bf16.msra.mxu0 %v11604_v39  ;;  %7929 = vmatpush1.bf16.msra.mxu1 %v11607_v22  ;;  %v4315_v53 = vadd.f32 %v4314_v13, %v4313_v25  ;;  %v11663_v39 = vld [vmem:[%s17384_s8 + $0x42c] ss:$16 sps:$4 sm:$0xff]   ;;  %v11658_v22 = vld [vmem:[%s17384_s8 + $0x420] ss:$16 sps:$4 sm:$0xff]   ;;  %v11709_v25 = vld [vmem:[%s17384_s8 + $0x528] ss:$16 sps:$4 sm:$0xff]  }
 0x5b2   : > { %7602 = vmatprep.subr.bf16.mxu0 %v11612_v26  ;;  %7930 = vmatprep.subr.bf16.mxu1 %v11615_v61  ;;  %v11664_v26 = vld [vmem:[%s17384_s8 + $0x440] ss:$16 sps:$4 sm:$0xff]   ;;  %v11667_v61 = vld [vmem:[%s17384_s8 + $0x448] ss:$16 sps:$4 sm:$0xff]   ;;  %v11705_v41 = vld [vmem:[%s17384_s8 + $0x50c] ss:$16 sps:$4 sm:$0xff]  }
 0x5b3   : > { %v4435_v12 = vpack.c.bf16 %v4315_v53, %v4315_v53  ;;  %v11700_v16 = vld [vmem:[%s17384_s8 + $0x500] ss:$16 sps:$4 sm:$0xff]   ;;  %v11714_v54 = vld [vmem:[%s17384_s8 + $0x544] ss:$16 sps:$4 sm:$0xff]   ;;  %v4328_v13 = vrot.slane %v15311_v0, 4 }
 0x5b4   : > { %v11723_v51 = vld [vmem:[%s17384_s8 + $0x56c] ss:$16 sps:$4 sm:$0xff]   ;;  %v11721_v53 = vld [vmem:[%s17384_s8 + $0x568] ss:$16 sps:$4 sm:$0xff]  }
 0x5b5   : > { %7603 = vmatpush1.bf16.msra.mxu0 %v11610_v42  ;;  %7931 = vmatpush1.bf16.msra.mxu1 %v11613_v28  ;;  %v11675_v42 = vld [vmem:[%s17384_s8 + $0x46c] ss:$16 sps:$4 sm:$0xff]   ;;  %v11670_v28 = vld [vmem:[%s17384_s8 + $0x460] ss:$16 sps:$4 sm:$0xff]  }
 0x5b6   : > { %7604 = vmatprep.subr.bf16.mxu0 %v11618_v23  ;;  %7932 = vmatprep.subr.bf16.mxu1 %v11621_v38  ;;  %v11673_v23 = vld [vmem:[%s17384_s8 + $0x468] ss:$16 sps:$4 sm:$0xff]   ;;  %v11678_v38 = vld [vmem:[%s17384_s8 + $0x484] ss:$16 sps:$4 sm:$0xff]   ;;  %v11729_v17 = vld [vmem:[%s17384_s8 + $0x58c] ss:$16 sps:$4 sm:$0xff]  }
 0x5b9   : > { %7605 = vmatpush1.bf16.msra.mxu0 %v11616_v58  ;;  %7933 = vmatpush1.bf16.msra.mxu1 %v11619_v50  ;;  %v11681_v58 = vld [vmem:[%s17384_s8 + $0x48c] ss:$16 sps:$4 sm:$0xff]   ;;  %v11676_v50 = vld [vmem:[%s17384_s8 + $0x480] ss:$16 sps:$4 sm:$0xff]  }
 0x5ba   : > { %7606 = vmatprep.subr.bf16.mxu0 %v11624_v45  ;;  %7934 = vmatprep.subr.bf16.mxu1 %v11627_v40  ;;  %v11679_v45 = vld [vmem:[%s17384_s8 + $0x488] ss:$16 sps:$4 sm:$0xff]   ;;  %v11684_v40 = vld [vmem:[%s17384_s8 + $0x4a4] ss:$16 sps:$4 sm:$0xff]  }
 0x5bd   : > { %7607 = vmatpush1.bf16.msra.mxu0 %v11622_v19  ;;  %7935 = vmatpush1.bf16.msra.mxu1 %v11625_v35  ;;  %v11685_v19 = vld [vmem:[%s17384_s8 + $0x4a8] ss:$16 sps:$4 sm:$0xff]   ;;  %v11690_v35 = vld [vmem:[%s17384_s8 + $0x4c4] ss:$16 sps:$4 sm:$0xff]  }
 0x5be   : > { %7608 = vmatprep.subr.bf16.mxu0 %v11630_v1  ;;  %7936 = vmatprep.subr.bf16.mxu1 %v11633_v14  ;;  %v11693_v1 = vld [vmem:[%s17384_s8 + $0x4cc] ss:$16 sps:$4 sm:$0xff]   ;;  %v11688_v14 = vld [vmem:[%s17384_s8 + $0x4c0] ss:$16 sps:$4 sm:$0xff]  }
 0x5c1   : > { %7609 = vmatpush1.bf16.msra.mxu0 %v11628_v2  ;;  %7937 = vmatpush1.bf16.msra.mxu1 %v11631_v49  ;;  %v11699_v2 = vld [vmem:[%s17384_s8 + $0x4ec] ss:$16 sps:$4 sm:$0xff]   ;;  %v11694_v49 = vld [vmem:[%s17384_s8 + $0x4e0] ss:$16 sps:$4 sm:$0xff]  }
 0x5c2   : > { %7610 = vmatprep.subr.bf16.mxu0 %v11636_v48  ;;  %7938 = vmatprep.subr.bf16.mxu1 %v11639_v11  ;;  %v11697_v48 = vld [vmem:[%s17384_s8 + $0x4e8] ss:$16 sps:$4 sm:$0xff]   ;;  %v11702_v11 = vld [vmem:[%s17384_s8 + $0x504] ss:$16 sps:$4 sm:$0xff]  }
 0x5c5   : > { %7611 = vmatpush1.bf16.msra.mxu0 %v11634_v9  ;;  %7939 = vmatpush1.bf16.msra.mxu1 %v11637_v59  ;;  %v11703_v9 = vld [vmem:[%s17384_s8 + $0x508] ss:$16 sps:$4 sm:$0xff]   ;;  %v11708_v59 = vld [vmem:[%s17384_s8 + $0x524] ss:$16 sps:$4 sm:$0xff]  }
 0x5c6   : > { %7612 = vmatprep.subr.bf16.mxu0 %v11642_v47  ;;  %7940 = vmatprep.subr.bf16.mxu1 %v11645_v31  ;;  %v11711_v47 = vld [vmem:[%s17384_s8 + $0x52c] ss:$16 sps:$4 sm:$0xff]   ;;  %v11706_v31 = vld [vmem:[%s17384_s8 + $0x520] ss:$16 sps:$4 sm:$0xff]  }
 0x5c9   : > { %7613 = vmatpush1.bf16.msra.mxu0 %v11640_v7  ;;  %7941 = vmatpush1.bf16.msra.mxu1 %v11643_v3  ;;  %v11717_v7 = vld [vmem:[%s17384_s8 + $0x54c] ss:$16 sps:$4 sm:$0xff]   ;;  %v11712_v3 = vld [vmem:[%s17384_s8 + $0x540] ss:$16 sps:$4 sm:$0xff]  }
 0x5ca   : > { %7614 = vmatprep.subr.bf16.mxu0 %v11648_v5  ;;  %7942 = vmatprep.subr.bf16.mxu1 %v11651_v63  ;;  %v11715_v5 = vld [vmem:[%s17384_s8 + $0x548] ss:$16 sps:$4 sm:$0xff]   ;;  %v11720_v63 = vld [vmem:[%s17384_s8 + $0x564] ss:$16 sps:$4 sm:$0xff]  }
 0x5cd   : > { %7615 = vmatpush1.bf16.msra.mxu0 %v11646_v4  ;;  %7943 = vmatpush1.bf16.msra.mxu1 %v11649_v52  ;;  %v4355_v4 = vrot.slane %v15319_v30, 4  ;;  %v11718_v52 = vld [vmem:[%s17384_s8 + $0x560] ss:$16 sps:$4 sm:$0xff]  }
 0x5ce   : > { %7625 = vmatprep.subr.bf16.mxu0 %v11654_v20  ;;  %7953 = vmatprep.subr.bf16.mxu1 %v11657_v32  ;;  %v11726_v20 = vld [vmem:[%s17384_s8 + $0x584] ss:$16 sps:$4 sm:$0xff]   ;;  %v4329_v32 = vadd.f32 %v4328_v13, %v15311_v0  ;;  %v11778_v13 = vld [vmem:[%s17384_s8 + $0x6a0] ss:$16 sps:$4 sm:$0xff]  }
 0x5cf   : > { %v11732_v0 = vld [vmem:[%s17384_s8 + $0x5a4] ss:$16 sps:$4 sm:$0xff]  }
 0x5d0   : > { %7617 = vmatmul.mubr.bf16.vlgmr.msra.gmra.mrb[176].mxu0 %v4435_v12  ;;  %7945 = vmatmul.mubr.bf16.vlgmr.msra.gmra.mrb[164].mxu1 %v4435_v12  ;;  %v11724_v12 = vld [vmem:[%s17384_s8 + $0x580] ss:$16 sps:$4 sm:$0xff]  }
 0x5d1   : > { %7626 = vmatpush1.bf16.msra.mxu0 %v11652_v56  ;;  %7657 = vmatprep.mubr.bf16.mxu0 %v4438_v62  ;;  %v4356_v56 = vadd.f32 %v4355_v4, %v15319_v30  ;;  %v11735_v30 = vld [vmem:[%s17384_s8 + $0x5ac] ss:$16 sps:$4 sm:$0xff]   ;;  %v11786_v4 = vld [vmem:[%s17384_s8 + $0x6c4] ss:$16 sps:$4 sm:$0xff]  }
 0x5d2   : > { %7954 = vmatpush1.bf16.msra.mxu1 %v11655_v27  ;;  %7985 = vmatprep.mubr.bf16.mxu1 %v4438_v62  ;;  %v11727_v27 = vld [vmem:[%s17384_s8 + $0x588] ss:$16 sps:$4 sm:$0xff]   ;;  %v4330_v62 = vrot.slane %v4329_v32, 2 }
 0x5d3   : > { %7627 = vmatprep.subr.bf16.mxu0 %v11660_v57  ;;  %7955 = vmatprep.subr.bf16.mxu1 %v11663_v39  ;;  %v4357_v57 = vrot.slane %v4356_v56, 2  ;;  %v11730_v39 = vld [vmem:[%s17384_s8 + $0x5a0] ss:$16 sps:$4 sm:$0xff]  }
 0x5d5   : > { %7628 = vmatpush1.bf16.msra.mxu0 %v11658_v22  ;;  %v11733_v22 = vld [vmem:[%s17384_s8 + $0x5a8] ss:$16 sps:$4 sm:$0xff]  }
 0x5d6   : > { %7956 = vmatpush1.bf16.msra.mxu1 %v11661_v60  ;;  %7629 = vmatprep.subr.bf16.mxu0 %v11666_v6  ;;  %v11738_v60 = vld [vmem:[%s17384_s8 + $0x5c4] ss:$16 sps:$4 sm:$0xff]   ;;  %v4331_v6 = vadd.f32 %v4330_v62, %v4329_v32  ;;  %v11796_v62 = vld [vmem:[%s17384_s8 + $0x700] ss:$16 sps:$4 sm:$0xff]  }
 0x5d7   : > { %7957 = vmatprep.subr.bf16.mxu1 %v11669_v21  ;;  %v11741_v21 = vld [vmem:[%s17384_s8 + $0x5cc] ss:$16 sps:$4 sm:$0xff]   ;;  %v11792_v32 = vld [vmem:[%s17384_s8 + $0x6e4] ss:$16 sps:$4 sm:$0xff]  }
 0x5d9   : > { %7630 = vmatpush1.bf16.msra.mxu0 %v11664_v26  ;;  %v4358_v26 = vadd.f32 %v4357_v57, %v4356_v56  ;;  %v11790_v56 = vld [vmem:[%s17384_s8 + $0x6e0] ss:$16 sps:$4 sm:$0xff]   ;;  %v11804_v57 = vld [vmem:[%s17384_s8 + $0x724] ss:$16 sps:$4 sm:$0xff]  }
 0x5da   : > { %7958 = vmatpush1.bf16.msra.mxu1 %v11667_v61  ;;  %7631 = vmatprep.subr.bf16.mxu0 %v11672_v44  ;;  %v11736_v61 = vld [vmem:[%s17384_s8 + $0x5c0] ss:$16 sps:$4 sm:$0xff]   ;;  %v11739_v44 = vld [vmem:[%s17384_s8 + $0x5c8] ss:$16 sps:$4 sm:$0xff]  }
 0x5db   : > { %7959 = vmatprep.subr.bf16.mxu1 %v11675_v42  ;;  %v11744_v42 = vld [vmem:[%s17384_s8 + $0x5e4] ss:$16 sps:$4 sm:$0xff]  }
 0x5dd   : > { %7632 = vmatpush1.bf16.msra.mxu0 %v11670_v28  ;;  %v4332_v28 = vrot.slane %v4331_v6, 1 }
 0x5de   : > { %7960 = vmatpush1.bf16.msra.mxu1 %v11673_v23  ;;  %7633 = vmatprep.subr.bf16.mxu0 %v11678_v38  ;;  %v11747_v23 = vld [vmem:[%s17384_s8 + $0x5ec] ss:$16 sps:$4 sm:$0xff]   ;;  %v4359_v38 = vrot.slane %v4358_v26, 1 }
 0x5df   : > { %7961 = vmatprep.subr.bf16.mxu1 %v11681_v58  ;;  %v11742_v58 = vld [vmem:[%s17384_s8 + $0x5e0] ss:$16 sps:$4 sm:$0xff]  }
 0x5e1   : > { %7634 = vmatpush1.bf16.msra.mxu0 %v11676_v50  ;;  %v11745_v50 = vld [vmem:[%s17384_s8 + $0x5e8] ss:$16 sps:$4 sm:$0xff]  }
 0x5e2   : > { %7962 = vmatpush1.bf16.msra.mxu1 %v11679_v45  ;;  %7635 = vmatprep.subr.bf16.mxu0 %v11684_v40  ;;  %v4333_v45 = vadd.f32 %v4332_v28, %v4331_v6  ;;  %v11750_v40 = vld [vmem:[%s17384_s8 + $0x604] ss:$16 sps:$4 sm:$0xff]   ;;  %v11819_v28 = vld [vmem:[%s17384_s8 + $0x76c] ss:$16 sps:$4 sm:$0xff]  }
 0x5e3   : > { %7963 = vmatprep.subr.bf16.mxu1 %v11687_v46  ;;  %v11753_v46 = vld [vmem:[%s17384_s8 + $0x60c] ss:$16 sps:$4 sm:$0xff]   ;;  %v11810_v6 = vld [vmem:[%s17384_s8 + $0x744] ss:$16 sps:$4 sm:$0xff]  }
 0x5e5   : > { %7636 = vmatpush1.bf16.msra.mxu0 %v11682_v37  ;;  %v4360_v37 = vadd.f32 %v4359_v38, %v4358_v26  ;;  %v11808_v26 = vld [vmem:[%s17384_s8 + $0x740] ss:$16 sps:$4 sm:$0xff]  }
 0x5e6   : > { %7964 = vmatpush1.bf16.msra.mxu1 %v11685_v19  ;;  %7637 = vmatprep.subr.bf16.mxu0 %v11690_v35  ;;  %v11748_v19 = vld [vmem:[%s17384_s8 + $0x600] ss:$16 sps:$4 sm:$0xff]   ;;  %v4437_v35 = vpack.c.bf16 %v4333_v45, %v4333_v45 }
 0x5e7   : > { %7965 = vmatprep.subr.bf16.mxu1 %v11693_v1  ;;  %v11751_v1 = vld [vmem:[%s17384_s8 + $0x608] ss:$16 sps:$4 sm:$0xff]   ;;  %v11814_v38 = vld [vmem:[%s17384_s8 + $0x760] ss:$16 sps:$4 sm:$0xff]  }
 0x5e9   : > { %7638 = vmatpush1.bf16.msra.mxu0 %v11688_v14  ;;  %v11756_v14 = vld [vmem:[%s17384_s8 + $0x624] ss:$16 sps:$4 sm:$0xff]  }
 0x5ea   : > { %7966 = vmatpush1.bf16.msra.mxu1 %v11691_v15  ;;  %7639 = vmatprep.subr.bf16.mxu0 %v11696_v8  ;;  %v4440_v15 = vpack.c.bf16 %v4360_v37, %v4360_v37  ;;  %v11759_v8 = vld [vmem:[%s17384_s8 + $0x62c] ss:$16 sps:$4 sm:$0xff]   ;;  %v11820_v37 = vld [vmem:[%s17384_s8 + $0x780] ss:$16 sps:$4 sm:$0xff]  }
 0x5eb   : > { %7967 = vmatprep.subr.bf16.mxu1 %v11699_v2  ;;  %v11754_v2 = vld [vmem:[%s17384_s8 + $0x620] ss:$16 sps:$4 sm:$0xff]  }
 0x5ed   : > { %7640 = vmatpush1.bf16.msra.mxu0 %v11694_v49  ;;  %v11757_v49 = vld [vmem:[%s17384_s8 + $0x628] ss:$16 sps:$4 sm:$0xff]  }
 0x5ee   : > { %7968 = vmatpush1.bf16.msra.mxu1 %v11697_v48  ;;  %7641 = vmatprep.subr.bf16.mxu0 %v11702_v11  ;;  %v11762_v48 = vld [vmem:[%s17384_s8 + $0x644] ss:$16 sps:$4 sm:$0xff]   ;;  %v11765_v11 = vld [vmem:[%s17384_s8 + $0x64c] ss:$16 sps:$4 sm:$0xff]  }
 0x5ef   : > { %7969 = vmatprep.subr.bf16.mxu1 %v11705_v41  ;;  %v11760_v41 = vld [vmem:[%s17384_s8 + $0x640] ss:$16 sps:$4 sm:$0xff]  }
 0x5f1   : > { %7642 = vmatpush1.bf16.msra.mxu0 %v11700_v16  ;;  %v11763_v16 = vld [vmem:[%s17384_s8 + $0x648] ss:$16 sps:$4 sm:$0xff]  }
 0x5f2   : > { %7970 = vmatpush1.bf16.msra.mxu1 %v11703_v9  ;;  %7643 = vmatprep.subr.bf16.mxu0 %v11708_v59  ;;  %v11768_v9 = vld [vmem:[%s17384_s8 + $0x664] ss:$16 sps:$4 sm:$0xff]   ;;  %v11771_v59 = vld [vmem:[%s17384_s8 + $0x66c] ss:$16 sps:$4 sm:$0xff]  }
 0x5f3   : > { %7971 = vmatprep.subr.bf16.mxu1 %v11711_v47  ;;  %v11766_v47 = vld [vmem:[%s17384_s8 + $0x660] ss:$16 sps:$4 sm:$0xff]  }
 0x5f5   : > { %7644 = vmatpush1.bf16.msra.mxu0 %v11706_v31  ;;  %v11769_v31 = vld [vmem:[%s17384_s8 + $0x668] ss:$16 sps:$4 sm:$0xff]  }
 0x5f6   : > { %7972 = vmatpush1.bf16.msra.mxu1 %v11709_v25  ;;  %7645 = vmatprep.subr.bf16.mxu0 %v11714_v54  ;;  %v11774_v25 = vld [vmem:[%s17384_s8 + $0x684] ss:$16 sps:$4 sm:$0xff]   ;;  %v11777_v54 = vld [vmem:[%s17384_s8 + $0x68c] ss:$16 sps:$4 sm:$0xff]  }
 0x5f7   : > { %7973 = vmatprep.subr.bf16.mxu1 %v11717_v7  ;;  %v11772_v7 = vld [vmem:[%s17384_s8 + $0x680] ss:$16 sps:$4 sm:$0xff]  }
 0x5f9   : > { %7646 = vmatpush1.bf16.msra.mxu0 %v11712_v3  ;;  %v11775_v3 = vld [vmem:[%s17384_s8 + $0x688] ss:$16 sps:$4 sm:$0xff]  }
 0x5fa   : > { %7974 = vmatpush1.bf16.msra.mxu1 %v11715_v5  ;;  %7647 = vmatprep.subr.bf16.mxu0 %v11720_v63  ;;  %v11780_v5 = vld [vmem:[%s17384_s8 + $0x6a4] ss:$16 sps:$4 sm:$0xff]   ;;  %v11783_v63 = vld [vmem:[%s17384_s8 + $0x6ac] ss:$16 sps:$4 sm:$0xff]  }
 0x5fb   : > { %7975 = vmatprep.subr.bf16.mxu1 %v11723_v51  ;;  %v11781_v51 = vld [vmem:[%s17384_s8 + $0x6a8] ss:$16 sps:$4 sm:$0xff]  }
 0x5fd   : > { %7648 = vmatpush1.bf16.msra.mxu0 %v11718_v52  ;;  %v11789_v52 = vld [vmem:[%s17384_s8 + $0x6cc] ss:$16 sps:$4 sm:$0xff]  }
 0x5fe   : > { %7976 = vmatpush1.bf16.msra.mxu1 %v11721_v53  ;;  %7649 = vmatprep.subr.bf16.mxu0 %v11726_v20  ;;  %v11784_v53 = vld [vmem:[%s17384_s8 + $0x6c0] ss:$16 sps:$4 sm:$0xff]   ;;  %v11787_v20 = vld [vmem:[%s17384_s8 + $0x6c8] ss:$16 sps:$4 sm:$0xff]  }
 0x5ff   : > { %7977 = vmatprep.subr.bf16.mxu1 %v11729_v17  ;;  %v11795_v17 = vld [vmem:[%s17384_s8 + $0x6ec] ss:$16 sps:$4 sm:$0xff]  }
 0x601   : > { %7650 = vmatpush1.bf16.msra.mxu0 %v11724_v12  ;;  %v11793_v12 = vld [vmem:[%s17384_s8 + $0x6e8] ss:$16 sps:$4 sm:$0xff]  }
 0x602   : > { %7978 = vmatpush1.bf16.msra.mxu1 %v11727_v27  ;;  %7651 = vmatprep.subr.bf16.mxu0 %v11732_v0  ;;  %v11798_v27 = vld [vmem:[%s17384_s8 + $0x704] ss:$16 sps:$4 sm:$0xff]   ;;  %v11801_v0 = vld [vmem:[%s17384_s8 + $0x70c] ss:$16 sps:$4 sm:$0xff]  }
 0x603   : > { %7979 = vmatprep.subr.bf16.mxu1 %v11735_v30  ;;  %v11799_v30 = vld [vmem:[%s17384_s8 + $0x708] ss:$16 sps:$4 sm:$0xff]  }
 0x605   : > { %7652 = vmatpush1.bf16.msra.mxu0 %v11730_v39  ;;  %v11807_v39 = vld [vmem:[%s17384_s8 + $0x72c] ss:$16 sps:$4 sm:$0xff]  }
 0x606   : > { %7980 = vmatpush1.bf16.msra.mxu1 %v11733_v22  ;;  %7653 = vmatprep.subr.bf16.mxu0 %v11738_v60  ;;  %v11802_v22 = vld [vmem:[%s17384_s8 + $0x720] ss:$16 sps:$4 sm:$0xff]   ;;  %v11805_v60 = vld [vmem:[%s17384_s8 + $0x728] ss:$16 sps:$4 sm:$0xff]  }
 0x607   : > { %7981 = vmatprep.subr.bf16.mxu1 %v11741_v21  ;;  %v11813_v21 = vld [vmem:[%s17384_s8 + $0x74c] ss:$16 sps:$4 sm:$0xff]  }
 0x609   : > { %7654 = vmatpush1.bf16.msra.mxu0 %v11736_v61  ;;  %v11811_v61 = vld [vmem:[%s17384_s8 + $0x748] ss:$16 sps:$4 sm:$0xff]  }
 0x60a   : > { %7982 = vmatpush1.bf16.msra.mxu1 %v11739_v44  ;;  %7655 = vmatprep.subr.bf16.mxu0 %v11744_v42  ;;  %v11816_v44 = vld [vmem:[%s17384_s8 + $0x764] ss:$16 sps:$4 sm:$0xff]   ;;  %v4346_v42 = vrot.slane %v15366_v29, 4 }
 0x60b   : > { %7983 = vmatprep.subr.bf16.mxu1 %v11747_v23  ;;  %v4373_v23 = vrot.slane %v15392_v36, 4 }
 0x60c   : > { %v4347_v45 = vadd.f32 %v4346_v42, %v15366_v29  ;;  %v11828_v29 = vld [vmem:[%s17384_s8 + $0x7a4] ss:$16 sps:$4 sm:$0xff]  }
 0x60d   : > { %7656 = vmatpush1.bf16.msra.mxu0 %v11742_v58  ;;  %v11817_v58 = vld [vmem:[%s17384_s8 + $0x768] ss:$16 sps:$4 sm:$0xff]   ;;  %v11882_v42 = vld [vmem:[%s17384_s8 + $0x8c4] ss:$16 sps:$4 sm:$0xff]  }
 0x60e   : > { %7984 = vmatpush1.bf16.msra.mxu1 %v11745_v50  ;;  %7666 = vmatprep.subr.bf16.mxu0 %v11750_v40  ;;  %v11822_v50 = vld [vmem:[%s17384_s8 + $0x784] ss:$16 sps:$4 sm:$0xff]   ;;  %v11825_v40 = vld [vmem:[%s17384_s8 + $0x78c] ss:$16 sps:$4 sm:$0xff]  }
 0x60f   : > { %7994 = vmatprep.subr.bf16.mxu1 %v11753_v46  ;;  %v4374_v46 = vadd.f32 %v4373_v23, %v15392_v36  ;;  %v11831_v36 = vld [vmem:[%s17384_s8 + $0x7ac] ss:$16 sps:$4 sm:$0xff]   ;;  %v11880_v23 = vld [vmem:[%s17384_s8 + $0x8c0] ss:$16 sps:$4 sm:$0xff]  }
 0x610   : > { %7658 = vmatmul.mubr.bf16.vlgmr.msra.gmra.mrb[176].mxu0 %v4437_v35 }
 0x611   : > { %7986 = vmatmul.mubr.bf16.vlgmr.msra.gmra.mrb[164].mxu1 %v4437_v35  ;;  %7667 = vmatpush1.bf16.msra.mxu0 %v11748_v19  ;;  %v11823_v19 = vld [vmem:[%s17384_s8 + $0x788] ss:$16 sps:$4 sm:$0xff]   ;;  %v4348_v35 = vrot.slane %v4347_v45, 2 }
 0x612   : > { %7698 = vmatprep.mubr.bf16.mxu0 %v4440_v15  ;;  %7995 = vmatpush1.bf16.msra.mxu1 %v11751_v1  ;;  %v4375_v1 = vrot.slane %v4374_v46, 2 }
 0x613   : > { %8026 = vmatprep.mubr.bf16.mxu1 %v4440_v15  ;;  %7668 = vmatprep.subr.bf16.mxu0 %v11756_v14  ;;  %v11826_v14 = vld [vmem:[%s17384_s8 + $0x7a0] ss:$16 sps:$4 sm:$0xff]   ;;  %v11829_v15 = vld [vmem:[%s17384_s8 + $0x7a8] ss:$16 sps:$4 sm:$0xff]  }
 0x614   : > { %7996 = vmatprep.subr.bf16.mxu1 %v11759_v8  ;;  %v11834_v8 = vld [vmem:[%s17384_s8 + $0x7c4] ss:$16 sps:$4 sm:$0xff]  }
 0x615   : > { %7669 = vmatpush1.bf16.msra.mxu0 %v11754_v2  ;;  %v4349_v2 = vadd.f32 %v4348_v35, %v4347_v45  ;;  %v11886_v45 = vld [vmem:[%s17384_s8 + $0x8e0] ss:$16 sps:$4 sm:$0xff]   ;;  %v11900_v35 = vld [vmem:[%s17384_s8 + $0x924] ss:$16 sps:$4 sm:$0xff]  }
 0x616   : > { %7997 = vmatpush1.bf16.msra.mxu1 %v11757_v49  ;;  %7670 = vmatprep.subr.bf16.mxu0 %v11762_v48  ;;  %v11837_v49 = vld [vmem:[%s17384_s8 + $0x7cc] ss:$16 sps:$4 sm:$0xff]   ;;  %v4376_v48 = vadd.f32 %v4375_v1, %v4374_v46  ;;  %v11894_v46 = vld [vmem:[%s17384_s8 + $0x904] ss:$16 sps:$4 sm:$0xff]   ;;  %v11898_v1 = vld [vmem:[%s17384_s8 + $0x920] ss:$16 sps:$4 sm:$0xff]  }
 0x617   : > { %7998 = vmatprep.subr.bf16.mxu1 %v11765_v11  ;;  %v11832_v11 = vld [vmem:[%s17384_s8 + $0x7c0] ss:$16 sps:$4 sm:$0xff]  }
 0x619   : > { %7671 = vmatpush1.bf16.msra.mxu0 %v11760_v41  ;;  %v11835_v41 = vld [vmem:[%s17384_s8 + $0x7c8] ss:$16 sps:$4 sm:$0xff]  }
 0x61a   : > { %7999 = vmatpush1.bf16.msra.mxu1 %v11763_v16  ;;  %7672 = vmatprep.subr.bf16.mxu0 %v11768_v9  ;;  %v11840_v16 = vld [vmem:[%s17384_s8 + $0x7e4] ss:$16 sps:$4 sm:$0xff]   ;;  %v4350_v9 = vrot.slane %v4349_v2, 1 }
 0x61b   : > { %8000 = vmatprep.subr.bf16.mxu1 %v11771_v59  ;;  %v11843_v59 = vld [vmem:[%s17384_s8 + $0x7ec] ss:$16 sps:$4 sm:$0xff]  }
 0x61d   : > { %7673 = vmatpush1.bf16.msra.mxu0 %v11766_v47  ;;  %v4377_v47 = vrot.slane %v4376_v48, 1 }
 0x61e   : > { %8001 = vmatpush1.bf16.msra.mxu1 %v11769_v31  ;;  %7674 = vmatprep.subr.bf16.mxu0 %v11774_v25  ;;  %v11838_v31 = vld [vmem:[%s17384_s8 + $0x7e0] ss:$16 sps:$4 sm:$0xff]   ;;  %v11841_v25 = vld [vmem:[%s17384_s8 + $0x7e8] ss:$16 sps:$4 sm:$0xff]  }
 0x61f   : > { %8002 = vmatprep.subr.bf16.mxu1 %v11777_v54  ;;  %v4351_v54 = vadd.f32 %v4350_v9, %v4349_v2  ;;  %v11904_v2 = vld [vmem:[%s17384_s8 + $0x940] ss:$16 sps:$4 sm:$0xff]  }
 0x620   : > { %v11910_v9 = vld [vmem:[%s17384_s8 + $0x960] ss:$16 sps:$4 sm:$0xff]  }
 0x621   : > { %7675 = vmatpush1.bf16.msra.mxu0 %v11772_v7  ;;  %v11846_v7 = vld [vmem:[%s17384_s8 + $0x804] ss:$16 sps:$4 sm:$0xff]  }
 0x622   : > { %8003 = vmatpush1.bf16.msra.mxu1 %v11775_v3  ;;  %7676 = vmatprep.subr.bf16.mxu0 %v11780_v5  ;;  %v11849_v3 = vld [vmem:[%s17384_s8 + $0x80c] ss:$16 sps:$4 sm:$0xff]   ;;  %v4378_v5 = vadd.f32 %v4377_v47, %v4376_v48  ;;  %v11912_v48 = vld [vmem:[%s17384_s8 + $0x964] ss:$16 sps:$4 sm:$0xff]  }
 0x623   : > { %8004 = vmatprep.subr.bf16.mxu1 %v11783_v63  ;;  %v11844_v63 = vld [vmem:[%s17384_s8 + $0x800] ss:$16 sps:$4 sm:$0xff]   ;;  %v11918_v47 = vld [vmem:[%s17384_s8 + $0x984] ss:$16 sps:$4 sm:$0xff]  }
 0x625   : > { %7677 = vmatpush1.bf16.msra.mxu0 %v11778_v13  ;;  %v4439_v13 = vpack.c.bf16 %v4351_v54, %v4351_v54 }
 0x626   : > { %8005 = vmatpush1.bf16.msra.mxu1 %v11781_v51  ;;  %7678 = vmatprep.subr.bf16.mxu0 %v11786_v4  ;;  %v11847_v51 = vld [vmem:[%s17384_s8 + $0x808] ss:$16 sps:$4 sm:$0xff]   ;;  %v11852_v4 = vld [vmem:[%s17384_s8 + $0x824] ss:$16 sps:$4 sm:$0xff]  }
 0x627   : > { %8006 = vmatprep.subr.bf16.mxu1 %v11789_v52  ;;  %v4442_v52 = vpack.c.bf16 %v4378_v5, %v4378_v5 }
 0x629   : > { %7679 = vmatpush1.bf16.msra.mxu0 %v11784_v53  ;;  %v11855_v53 = vld [vmem:[%s17384_s8 + $0x82c] ss:$16 sps:$4 sm:$0xff]  }
 0x62a   : > { %8007 = vmatpush1.bf16.msra.mxu1 %v11787_v20  ;;  %7680 = vmatprep.subr.bf16.mxu0 %v11792_v32  ;;  %v11850_v20 = vld [vmem:[%s17384_s8 + $0x820] ss:$16 sps:$4 sm:$0xff]   ;;  %v11853_v32 = vld [vmem:[%s17384_s8 + $0x828] ss:$16 sps:$4 sm:$0xff]  }
 0x62b   : > { %8008 = vmatprep.subr.bf16.mxu1 %v11795_v17  ;;  %v11858_v17 = vld [vmem:[%s17384_s8 + $0x844] ss:$16 sps:$4 sm:$0xff]  }
 0x62d   : > { %7681 = vmatpush1.bf16.msra.mxu0 %v11790_v56  ;;  %v11861_v56 = vld [vmem:[%s17384_s8 + $0x84c] ss:$16 sps:$4 sm:$0xff]  }
 0x62e   : > { %8009 = vmatpush1.bf16.msra.mxu1 %v11793_v12  ;;  %7682 = vmatprep.subr.bf16.mxu0 %v11798_v27  ;;  %v11856_v12 = vld [vmem:[%s17384_s8 + $0x840] ss:$16 sps:$4 sm:$0xff]   ;;  %v11859_v27 = vld [vmem:[%s17384_s8 + $0x848] ss:$16 sps:$4 sm:$0xff]  }
 0x62f   : > { %8010 = vmatprep.subr.bf16.mxu1 %v11801_v0  ;;  %v11864_v0 = vld [vmem:[%s17384_s8 + $0x864] ss:$16 sps:$4 sm:$0xff]  }
 0x631   : > { %7683 = vmatpush1.bf16.msra.mxu0 %v11796_v62  ;;  %v11867_v62 = vld [vmem:[%s17384_s8 + $0x86c] ss:$16 sps:$4 sm:$0xff]  }
 0x632   : > { %8011 = vmatpush1.bf16.msra.mxu1 %v11799_v30  ;;  %7684 = vmatprep.subr.bf16.mxu0 %v11804_v57  ;;  %v11862_v30 = vld [vmem:[%s17384_s8 + $0x860] ss:$16 sps:$4 sm:$0xff]   ;;  %v11865_v57 = vld [vmem:[%s17384_s8 + $0x868] ss:$16 sps:$4 sm:$0xff]  }
 0x633   : > { %8012 = vmatprep.subr.bf16.mxu1 %v11807_v39  ;;  %v11870_v39 = vld [vmem:[%s17384_s8 + $0x884] ss:$16 sps:$4 sm:$0xff]  }
 0x635   : > { %7685 = vmatpush1.bf16.msra.mxu0 %v11802_v22  ;;  %v11873_v22 = vld [vmem:[%s17384_s8 + $0x88c] ss:$16 sps:$4 sm:$0xff]  }
 0x636   : > { %8013 = vmatpush1.bf16.msra.mxu1 %v11805_v60  ;;  %7686 = vmatprep.subr.bf16.mxu0 %v11810_v6  ;;  %v11868_v60 = vld [vmem:[%s17384_s8 + $0x880] ss:$16 sps:$4 sm:$0xff]   ;;  %v11871_v6 = vld [vmem:[%s17384_s8 + $0x888] ss:$16 sps:$4 sm:$0xff]  }
 0x637   : > { %8014 = vmatprep.subr.bf16.mxu1 %v11813_v21  ;;  %v11876_v21 = vld [vmem:[%s17384_s8 + $0x8a4] ss:$16 sps:$4 sm:$0xff]  }
 0x639   : > { %7687 = vmatpush1.bf16.msra.mxu0 %v11808_v26  ;;  %v11879_v26 = vld [vmem:[%s17384_s8 + $0x8ac] ss:$16 sps:$4 sm:$0xff]  }
 0x63a   : > { %8015 = vmatpush1.bf16.msra.mxu1 %v11811_v61  ;;  %7688 = vmatprep.subr.bf16.mxu0 %v11816_v44  ;;  %v11874_v61 = vld [vmem:[%s17384_s8 + $0x8a0] ss:$16 sps:$4 sm:$0xff]   ;;  %v11877_v44 = vld [vmem:[%s17384_s8 + $0x8a8] ss:$16 sps:$4 sm:$0xff]  }
 0x63b   : > { %8016 = vmatprep.subr.bf16.mxu1 %v11819_v28  ;;  %v11885_v28 = vld [vmem:[%s17384_s8 + $0x8cc] ss:$16 sps:$4 sm:$0xff]  }
 0x63d   : > { %7689 = vmatpush1.bf16.msra.mxu0 %v11814_v38  ;;  %v11883_v38 = vld [vmem:[%s17384_s8 + $0x8c8] ss:$16 sps:$4 sm:$0xff]  }
 0x63e   : > { %8017 = vmatpush1.bf16.msra.mxu1 %v11817_v58  ;;  %7690 = vmatprep.subr.bf16.mxu0 %v11822_v50  ;;  %v11888_v58 = vld [vmem:[%s17384_s8 + $0x8e4] ss:$16 sps:$4 sm:$0xff]   ;;  %v11891_v50 = vld [vmem:[%s17384_s8 + $0x8ec] ss:$16 sps:$4 sm:$0xff]  }
 0x63f   : > { %8018 = vmatprep.subr.bf16.mxu1 %v11825_v40  ;;  %v11889_v40 = vld [vmem:[%s17384_s8 + $0x8e8] ss:$16 sps:$4 sm:$0xff]  }
 0x641   : > { %7691 = vmatpush1.bf16.msra.mxu0 %v11820_v37  ;;  %v11897_v37 = vld [vmem:[%s17384_s8 + $0x90c] ss:$16 sps:$4 sm:$0xff]  }
 0x642   : > { %8019 = vmatpush1.bf16.msra.mxu1 %v11823_v19  ;;  %7692 = vmatprep.subr.bf16.mxu0 %v11828_v29  ;;  %v11892_v19 = vld [vmem:[%s17384_s8 + $0x900] ss:$16 sps:$4 sm:$0xff]   ;;  %v11895_v29 = vld [vmem:[%s17384_s8 + $0x908] ss:$16 sps:$4 sm:$0xff]  }
 0x643   : > { %8020 = vmatprep.subr.bf16.mxu1 %v11831_v36  ;;  %v11903_v36 = vld [vmem:[%s17384_s8 + $0x92c] ss:$16 sps:$4 sm:$0xff]  }
 0x645   : > { %7693 = vmatpush1.bf16.msra.mxu0 %v11826_v14  ;;  %v11901_v14 = vld [vmem:[%s17384_s8 + $0x928] ss:$16 sps:$4 sm:$0xff]  }
 0x646   : > { %8021 = vmatpush1.bf16.msra.mxu1 %v11829_v15  ;;  %7694 = vmatprep.subr.bf16.mxu0 %v11834_v8  ;;  %v11906_v15 = vld [vmem:[%s17384_s8 + $0x944] ss:$16 sps:$4 sm:$0xff]   ;;  %v11909_v8 = vld [vmem:[%s17384_s8 + $0x94c] ss:$16 sps:$4 sm:$0xff]  }
 0x647   : > { %8022 = vmatprep.subr.bf16.mxu1 %v11837_v49  ;;  %v11907_v49 = vld [vmem:[%s17384_s8 + $0x948] ss:$16 sps:$4 sm:$0xff]  }
 0x649   : > { %7695 = vmatpush1.bf16.msra.mxu0 %v11832_v11  ;;  %v4364_v11 = vrot.slane %v15421_v55, 4 }
 0x64a   : > { %8023 = vmatpush1.bf16.msra.mxu1 %v11835_v41  ;;  %7696 = vmatprep.subr.bf16.mxu0 %v11840_v16  ;;  %v11915_v41 = vld [vmem:[%s17384_s8 + $0x96c] ss:$16 sps:$4 sm:$0xff]   ;;  %v4391_v16 = vrot.slane %v15450_v43, 4 }
 0x64b   : > { %8024 = vmatprep.subr.bf16.mxu1 %v11843_v59  ;;  %v11913_v59 = vld [vmem:[%s17384_s8 + $0x968] ss:$16 sps:$4 sm:$0xff]  }
 0x64c   : > { %v4392_v54 = vadd.f32 %v4391_v16, %v15450_v43  ;;  %v11927_v43 = vld [vmem:[%s17384_s8 + $0x9ac] ss:$16 sps:$4 sm:$0xff]   ;;  %v11984_v16 = vld [vmem:[%s17384_s8 + $0xae4] ss:$16 sps:$4 sm:$0xff]  }
 0x64d   : > { %7697 = vmatpush1.bf16.msra.mxu0 %v11838_v31  ;;  %v4365_v31 = vadd.f32 %v4364_v11, %v15421_v55  ;;  %v11924_v55 = vld [vmem:[%s17384_s8 + $0x9a4] ss:$16 sps:$4 sm:$0xff]   ;;  %v11976_v11 = vld [vmem:[%s17384_s8 + $0xac0] ss:$16 sps:$4 sm:$0xff]  }
 0x64e   : > { %8025 = vmatpush1.bf16.msra.mxu1 %v11841_v25  ;;  %7707 = vmatprep.subr.bf16.mxu0 %v11846_v7  ;;  %v11921_v25 = vld [vmem:[%s17384_s8 + $0x98c] ss:$16 sps:$4 sm:$0xff]   ;;  %v11916_v7 = vld [vmem:[%s17384_s8 + $0x980] ss:$16 sps:$4 sm:$0xff]  }
 0x64f   : > { %8035 = vmatprep.subr.bf16.mxu1 %v11849_v3  ;;  %v11919_v3 = vld [vmem:[%s17384_s8 + $0x988] ss:$16 sps:$4 sm:$0xff]   ;;  %v4366_v5 = vrot.slane %v4365_v31, 2 }
 0x650   : > { %7699 = vmatmul.mubr.bf16.vlgmr.msra.gmra.mrb[176].mxu0 %v4439_v13 }
 0x651   : > { %8027 = vmatmul.mubr.bf16.vlgmr.msra.gmra.mrb[164].mxu1 %v4439_v13  ;;  %7708 = vmatpush1.bf16.msra.mxu0 %v11844_v63  ;;  %v4393_v63 = vrot.slane %v4392_v54, 2  ;;  %v11922_v13 = vld [vmem:[%s17384_s8 + $0x9a0] ss:$16 sps:$4 sm:$0xff]  }
 0x652   : > { %7739 = vmatprep.mubr.bf16.mxu0 %v4442_v52  ;;  %8036 = vmatpush1.bf16.msra.mxu1 %v11847_v51  ;;  %v11925_v51 = vld [vmem:[%s17384_s8 + $0x9a8] ss:$16 sps:$4 sm:$0xff]  }
 0x653   : > { %8067 = vmatprep.mubr.bf16.mxu1 %v4442_v52  ;;  %7709 = vmatprep.subr.bf16.mxu0 %v11852_v4  ;;  %v11930_v4 = vld [vmem:[%s17384_s8 + $0x9c4] ss:$16 sps:$4 sm:$0xff]   ;;  %v4367_v52 = vadd.f32 %v4366_v5, %v4365_v31  ;;  %v11994_v5 = vld [vmem:[%s17384_s8 + $0xb20] ss:$16 sps:$4 sm:$0xff]  }
 0x654   : > { %8037 = vmatprep.subr.bf16.mxu1 %v11855_v53  ;;  %v11933_v53 = vld [vmem:[%s17384_s8 + $0x9cc] ss:$16 sps:$4 sm:$0xff]   ;;  %v11990_v31 = vld [vmem:[%s17384_s8 + $0xb04] ss:$16 sps:$4 sm:$0xff]  }
 0x655   : > { %7710 = vmatpush1.bf16.msra.mxu0 %v11850_v20  ;;  %v4394_v20 = vadd.f32 %v4393_v63, %v4392_v54  ;;  %v11988_v54 = vld [vmem:[%s17384_s8 + $0xb00] ss:$16 sps:$4 sm:$0xff]   ;;  %v12002_v63 = vld [vmem:[%s17384_s8 + $0xb44] ss:$16 sps:$4 sm:$0xff]  }
 0x656   : > { %8038 = vmatpush1.bf16.msra.mxu1 %v11853_v32  ;;  %7711 = vmatprep.subr.bf16.mxu0 %v11858_v17  ;;  %v11928_v32 = vld [vmem:[%s17384_s8 + $0x9c0] ss:$16 sps:$4 sm:$0xff]   ;;  %v11931_v17 = vld [vmem:[%s17384_s8 + $0x9c8] ss:$16 sps:$4 sm:$0xff]  }
 0x657   : > { %8039 = vmatprep.subr.bf16.mxu1 %v11861_v56  ;;  %v11936_v56 = vld [vmem:[%s17384_s8 + $0x9e4] ss:$16 sps:$4 sm:$0xff]  }
 0x659   : > { %7712 = vmatpush1.bf16.msra.mxu0 %v11856_v12  ;;  %v4368_v12 = vrot.slane %v4367_v52, 1 }
 0x65a   : > { %8040 = vmatpush1.bf16.msra.mxu1 %v11859_v27  ;;  %7713 = vmatprep.subr.bf16.mxu0 %v11864_v0  ;;  %v11939_v27 = vld [vmem:[%s17384_s8 + $0x9ec] ss:$16 sps:$4 sm:$0xff]   ;;  %v4395_v0 = vrot.slane %v4394_v20, 1 }
 0x65b   : > { %8041 = vmatprep.subr.bf16.mxu1 %v11867_v62  ;;  %v11934_v62 = vld [vmem:[%s17384_s8 + $0x9e0] ss:$16 sps:$4 sm:$0xff]  }
 0x65d   : > { %7714 = vmatpush1.bf16.msra.mxu0 %v11862_v30  ;;  %v11937_v30 = vld [vmem:[%s17384_s8 + $0x9e8] ss:$16 sps:$4 sm:$0xff]  }
 0x65e   : > { %8042 = vmatpush1.bf16.msra.mxu1 %v11865_v57  ;;  %7715 = vmatprep.subr.bf16.mxu0 %v11870_v39  ;;  %v4369_v57 = vadd.f32 %v4368_v12, %v4367_v52  ;;  %v11942_v39 = vld [vmem:[%s17384_s8 + $0xa04] ss:$16 sps:$4 sm:$0xff]  }
 0x65f   : > { %8043 = vmatprep.subr.bf16.mxu1 %v11873_v22  ;;  %v11945_v22 = vld [vmem:[%s17384_s8 + $0xa0c] ss:$16 sps:$4 sm:$0xff]   ;;  %v12008_v52 = vld [vmem:[%s17384_s8 + $0xb64] ss:$16 sps:$4 sm:$0xff]  }
 0x660   : > { %v12014_v12 = vld [vmem:[%s17384_s8 + $0xb84] ss:$16 sps:$4 sm:$0xff]  }
 0x661   : > { %7716 = vmatpush1.bf16.msra.mxu0 %v11868_v60  ;;  %v4396_v60 = vadd.f32 %v4395_v0, %v4394_v20  ;;  %v12011_v20 = vld [vmem:[%s17384_s8 + $0xb6c] ss:$16 sps:$4 sm:$0xff]  }
 0x662   : > { %8044 = vmatpush1.bf16.msra.mxu1 %v11871_v6  ;;  %7717 = vmatprep.subr.bf16.mxu0 %v11876_v21  ;;  %v11940_v6 = vld [vmem:[%s17384_s8 + $0xa00] ss:$16 sps:$4 sm:$0xff]   ;;  %v4441_v21 = vpack.c.bf16 %v4369_v57, %v4369_v57  ;;  %v12017_v0 = vld [vmem:[%s17384_s8 + $0xb8c] ss:$16 sps:$4 sm:$0xff]   ;;  %v12015_v57 = vld [vmem:[%s17384_s8 + $0xb88] ss:$16 sps:$4 sm:$0xff]  }
 0x663   : > { %8045 = vmatprep.subr.bf16.mxu1 %v11879_v26  ;;  %v11943_v26 = vld [vmem:[%s17384_s8 + $0xa08] ss:$16 sps:$4 sm:$0xff]  }
 0x665   : > { %7718 = vmatpush1.bf16.msra.mxu0 %v11874_v61  ;;  %v11948_v61 = vld [vmem:[%s17384_s8 + $0xa24] ss:$16 sps:$4 sm:$0xff]  }
 0x666   : > { %8046 = vmatpush1.bf16.msra.mxu1 %v11877_v44  ;;  %7719 = vmatprep.subr.bf16.mxu0 %v11882_v42  ;;  %v4444_v44 = vpack.c.bf16 %v4396_v60, %v4396_v60  ;;  %v11951_v42 = vld [vmem:[%s17384_s8 + $0xa2c] ss:$16 sps:$4 sm:$0xff]   ;;  %v12018_v60 = vld [vmem:[%s17384_s8 + $0xba0] ss:$16 sps:$4 sm:$0xff]  }
 0x667   : > { %8047 = vmatprep.subr.bf16.mxu1 %v11885_v28  ;;  %v11946_v28 = vld [vmem:[%s17384_s8 + $0xa20] ss:$16 sps:$4 sm:$0xff]  }
 0x669   : > { %7720 = vmatpush1.bf16.msra.mxu0 %v11880_v23  ;;  %v11949_v23 = vld [vmem:[%s17384_s8 + $0xa28] ss:$16 sps:$4 sm:$0xff]  }
 0x66a   : > { %8048 = vmatpush1.bf16.msra.mxu1 %v11883_v38  ;;  %7721 = vmatprep.subr.bf16.mxu0 %v11888_v58  ;;  %v11954_v38 = vld [vmem:[%s17384_s8 + $0xa44] ss:$16 sps:$4 sm:$0xff]   ;;  %v11957_v58 = vld [vmem:[%s17384_s8 + $0xa4c] ss:$16 sps:$4 sm:$0xff]  }
 0x66b   : > { %8049 = vmatprep.subr.bf16.mxu1 %v11891_v50  ;;  %v11952_v50 = vld [vmem:[%s17384_s8 + $0xa40] ss:$16 sps:$4 sm:$0xff]  }
 0x66d   : > { %7722 = vmatpush1.bf16.msra.mxu0 %v11886_v45  ;;  %v11955_v45 = vld [vmem:[%s17384_s8 + $0xa48] ss:$16 sps:$4 sm:$0xff]  }
 0x66e   : > { %8050 = vmatpush1.bf16.msra.mxu1 %v11889_v40  ;;  %7723 = vmatprep.subr.bf16.mxu0 %v11894_v46  ;;  %v11960_v40 = vld [vmem:[%s17384_s8 + $0xa64] ss:$16 sps:$4 sm:$0xff]   ;;  %v11963_v46 = vld [vmem:[%s17384_s8 + $0xa6c] ss:$16 sps:$4 sm:$0xff]  }
 0x66f   : > { %8051 = vmatprep.subr.bf16.mxu1 %v11897_v37  ;;  %v11958_v37 = vld [vmem:[%s17384_s8 + $0xa60] ss:$16 sps:$4 sm:$0xff]  }
 0x671   : > { %7724 = vmatpush1.bf16.msra.mxu0 %v11892_v19  ;;  %v11961_v19 = vld [vmem:[%s17384_s8 + $0xa68] ss:$16 sps:$4 sm:$0xff]  }
 0x672   : > { %8052 = vmatpush1.bf16.msra.mxu1 %v11895_v29  ;;  %7725 = vmatprep.subr.bf16.mxu0 %v11900_v35  ;;  %v11966_v29 = vld [vmem:[%s17384_s8 + $0xa84] ss:$16 sps:$4 sm:$0xff]   ;;  %v11969_v35 = vld [vmem:[%s17384_s8 + $0xa8c] ss:$16 sps:$4 sm:$0xff]  }
 0x673   : > { %8053 = vmatprep.subr.bf16.mxu1 %v11903_v36  ;;  %v11964_v36 = vld [vmem:[%s17384_s8 + $0xa80] ss:$16 sps:$4 sm:$0xff]  }
 0x675   : > { %7726 = vmatpush1.bf16.msra.mxu0 %v11898_v1  ;;  %v11967_v1 = vld [vmem:[%s17384_s8 + $0xa88] ss:$16 sps:$4 sm:$0xff]  }
 0x676   : > { %8054 = vmatpush1.bf16.msra.mxu1 %v11901_v14  ;;  %7727 = vmatprep.subr.bf16.mxu0 %v11906_v15  ;;  %v11972_v14 = vld [vmem:[%s17384_s8 + $0xaa4] ss:$16 sps:$4 sm:$0xff]   ;;  %v11975_v15 = vld [vmem:[%s17384_s8 + $0xaac] ss:$16 sps:$4 sm:$0xff]  }
 0x677   : > { %8055 = vmatprep.subr.bf16.mxu1 %v11909_v8  ;;  %v11970_v8 = vld [vmem:[%s17384_s8 + $0xaa0] ss:$16 sps:$4 sm:$0xff]  }
 0x679   : > { %7728 = vmatpush1.bf16.msra.mxu0 %v11904_v2  ;;  %v11973_v2 = vld [vmem:[%s17384_s8 + $0xaa8] ss:$16 sps:$4 sm:$0xff]  }
 0x67a   : > { %8056 = vmatpush1.bf16.msra.mxu1 %v11907_v49  ;;  %7729 = vmatprep.subr.bf16.mxu0 %v11912_v48  ;;  %v11978_v49 = vld [vmem:[%s17384_s8 + $0xac4] ss:$16 sps:$4 sm:$0xff]   ;;  %v11981_v48 = vld [vmem:[%s17384_s8 + $0xacc] ss:$16 sps:$4 sm:$0xff]  }
 0x67b   : > { %8057 = vmatprep.subr.bf16.mxu1 %v11915_v41  ;;  %v11979_v41 = vld [vmem:[%s17384_s8 + $0xac8] ss:$16 sps:$4 sm:$0xff]  }
 0x67d   : > { %7730 = vmatpush1.bf16.msra.mxu0 %v11910_v9  ;;  %v11987_v9 = vld [vmem:[%s17384_s8 + $0xaec] ss:$16 sps:$4 sm:$0xff]  }
 0x67e   : > { %8058 = vmatpush1.bf16.msra.mxu1 %v11913_v59  ;;  %7731 = vmatprep.subr.bf16.mxu0 %v11918_v47  ;;  %v11982_v59 = vld [vmem:[%s17384_s8 + $0xae0] ss:$16 sps:$4 sm:$0xff]   ;;  %v11985_v47 = vld [vmem:[%s17384_s8 + $0xae8] ss:$16 sps:$4 sm:$0xff]  }
 0x67f   : > { %8059 = vmatprep.subr.bf16.mxu1 %v11921_v25  ;;  %v11993_v25 = vld [vmem:[%s17384_s8 + $0xb0c] ss:$16 sps:$4 sm:$0xff]  }
 0x681   : > { %7732 = vmatpush1.bf16.msra.mxu0 %v11916_v7  ;;  %v11991_v7 = vld [vmem:[%s17384_s8 + $0xb08] ss:$16 sps:$4 sm:$0xff]  }
 0x682   : > { %8060 = vmatpush1.bf16.msra.mxu1 %v11919_v3  ;;  %7733 = vmatprep.subr.bf16.mxu0 %v11924_v55  ;;  %v11996_v3 = vld [vmem:[%s17384_s8 + $0xb24] ss:$16 sps:$4 sm:$0xff]   ;;  %v11999_v55 = vld [vmem:[%s17384_s8 + $0xb2c] ss:$16 sps:$4 sm:$0xff]  }
 0x683   : > { %8061 = vmatprep.subr.bf16.mxu1 %v11927_v43  ;;  %v11997_v43 = vld [vmem:[%s17384_s8 + $0xb28] ss:$16 sps:$4 sm:$0xff]  }
 0x685   : > { %7734 = vmatpush1.bf16.msra.mxu0 %v11922_v13  ;;  %v12005_v13 = vld [vmem:[%s17384_s8 + $0xb4c] ss:$16 sps:$4 sm:$0xff]  }
 0x686   : > { %8062 = vmatpush1.bf16.msra.mxu1 %v11925_v51  ;;  %7735 = vmatprep.subr.bf16.mxu0 %v11930_v4  ;;  %v12000_v51 = vld [vmem:[%s17384_s8 + $0xb40] ss:$16 sps:$4 sm:$0xff]   ;;  %v12003_v4 = vld [vmem:[%s17384_s8 + $0xb48] ss:$16 sps:$4 sm:$0xff]  }
 0x687   : > { %8063 = vmatprep.subr.bf16.mxu1 %v11933_v53  ;;  %v4382_v53 = vrot.slane %v15467_v33, 4 }
 0x689   : > { %7736 = vmatpush1.bf16.msra.mxu0 %v11928_v32  ;;  %v4409_v32 = vrot.slane %v15487_v18, 4 }
 0x68a   : > { %8064 = vmatpush1.bf16.msra.mxu1 %v11931_v17  ;;  %7737 = vmatprep.subr.bf16.mxu0 %v11936_v56  ;;  %v12006_v17 = vld [vmem:[%s17384_s8 + $0xb60] ss:$16 sps:$4 sm:$0xff]   ;;  %v12009_v56 = vld [vmem:[%s17384_s8 + $0xb68] ss:$16 sps:$4 sm:$0xff]  }
 0x68b   : > { %8065 = vmatprep.subr.bf16.mxu1 %v11939_v27  ;;  %v4383_v27 = vadd.f32 %v4382_v53, %v15467_v33  ;;  %v12020_v33 = vld [vmem:[%s17384_s8 + $0xba4] ss:$16 sps:$4 sm:$0xff]  }
 0x68c   : > { %v12080_v53 = vld [vmem:[%s17384_s8 + $0xce4] ss:$16 sps:$4 sm:$0xff]  }
 0x68d   : > { %7738 = vmatpush1.bf16.msra.mxu0 %v11934_v62  ;;  %v4410_v62 = vadd.f32 %v4409_v32, %v15487_v18  ;;  %v12023_v18 = vld [vmem:[%s17384_s8 + $0xbac] ss:$16 sps:$4 sm:$0xff]   ;;  %v12078_v32 = vld [vmem:[%s17384_s8 + $0xce0] ss:$16 sps:$4 sm:$0xff]  }
 0x68e   : > { %8066 = vmatpush1.bf16.msra.mxu1 %v11937_v30  ;;  %7748 = vmatprep.subr.bf16.mxu0 %v11942_v39  ;;  %v12012_v30 = vld [vmem:[%s17384_s8 + $0xb80] ss:$16 sps:$4 sm:$0xff]   ;;  %v4384_v39 = vrot.slane %v4383_v27, 2 }
 0x68f   : > { %8076 = vmatprep.subr.bf16.mxu1 %v11945_v22  ;;  %v4411_v22 = vrot.slane %v4410_v62, 2 }
 0x690   : > { %7740 = vmatmul.mubr.bf16.vlgmr.msra.gmra.mrb[176].mxu0 %v4441_v21 }
 0x691   : > { %8068 = vmatmul.mubr.bf16.vlgmr.msra.gmra.mrb[164].mxu1 %v4441_v21  ;;  %7749 = vmatpush1.bf16.msra.mxu0 %v11940_v6  ;;  %v12021_v6 = vld [vmem:[%s17384_s8 + $0xba8] ss:$16 sps:$4 sm:$0xff]   ;;  %v12026_v21 = vld [vmem:[%s17384_s8 + $0xbc4] ss:$16 sps:$4 sm:$0xff]  }
 0x692   : > { %7780 = vmatprep.mubr.bf16.mxu0 %v4444_v44  ;;  %8077 = vmatpush1.bf16.msra.mxu1 %v11943_v26  ;;  %v4385_v26 = vadd.f32 %v4384_v39, %v4383_v27  ;;  %v12084_v27 = vld [vmem:[%s17384_s8 + $0xd00] ss:$16 sps:$4 sm:$0xff]   ;;  %v12098_v39 = vld [vmem:[%s17384_s8 + $0xd44] ss:$16 sps:$4 sm:$0xff]  }
 0x693   : > { %8108 = vmatprep.mubr.bf16.mxu1 %v4444_v44  ;;  %7750 = vmatprep.subr.bf16.mxu0 %v11948_v61  ;;  %v12029_v61 = vld [vmem:[%s17384_s8 + $0xbcc] ss:$16 sps:$4 sm:$0xff]   ;;  %v4412_v44 = vadd.f32 %v4411_v22, %v4410_v62  ;;  %v12092_v62 = vld [vmem:[%s17384_s8 + $0xd24] ss:$16 sps:$4 sm:$0xff]   ;;  %v12096_v22 = vld [vmem:[%s17384_s8 + $0xd40] ss:$16 sps:$4 sm:$0xff]  }
 0x694   : > { %8078 = vmatprep.subr.bf16.mxu1 %v11951_v42  ;;  %v12024_v42 = vld [vmem:[%s17384_s8 + $0xbc0] ss:$16 sps:$4 sm:$0xff]  }
 0x695   : > { %7751 = vmatpush1.bf16.msra.mxu0 %v11946_v28  ;;  %v12027_v28 = vld [vmem:[%s17384_s8 + $0xbc8] ss:$16 sps:$4 sm:$0xff]  }
 0x696   : > { %8079 = vmatpush1.bf16.msra.mxu1 %v11949_v23  ;;  %7752 = vmatprep.subr.bf16.mxu0 %v11954_v38  ;;  %v12032_v23 = vld [vmem:[%s17384_s8 + $0xbe4] ss:$16 sps:$4 sm:$0xff]   ;;  %v4386_v38 = vrot.slane %v4385_v26, 1 }
 0x697   : > { %8080 = vmatprep.subr.bf16.mxu1 %v11957_v58  ;;  %v12035_v58 = vld [vmem:[%s17384_s8 + $0xbec] ss:$16 sps:$4 sm:$0xff]  }
 0x699   : > { %7753 = vmatpush1.bf16.msra.mxu0 %v11952_v50  ;;  %v4413_v50 = vrot.slane %v4412_v44, 1 }
 0x69a   : > { %8081 = vmatpush1.bf16.msra.mxu1 %v11955_v45  ;;  %7754 = vmatprep.subr.bf16.mxu0 %v11960_v40  ;;  %v12030_v45 = vld [vmem:[%s17384_s8 + $0xbe0] ss:$16 sps:$4 sm:$0xff]   ;;  %v12033_v40 = vld [vmem:[%s17384_s8 + $0xbe8] ss:$16 sps:$4 sm:$0xff]  }
 0x69b   : > { %8082 = vmatprep.subr.bf16.mxu1 %v11963_v46  ;;  %v4387_v46 = vadd.f32 %v4386_v38, %v4385_v26  ;;  %v12107_v26 = vld [vmem:[%s17384_s8 + $0xd6c] ss:$16 sps:$4 sm:$0xff]  }
 0x69c   : > { %v12113_v38 = vld [vmem:[%s17384_s8 + $0xd8c] ss:$16 sps:$4 sm:$0xff]  }
 0x69d   : > { %7755 = vmatpush1.bf16.msra.mxu0 %v11958_v37  ;;  %v12038_v37 = vld [vmem:[%s17384_s8 + $0xc04] ss:$16 sps:$4 sm:$0xff]  }
 0x69e   : > { %8083 = vmatpush1.bf16.msra.mxu1 %v11961_v19  ;;  %7756 = vmatprep.subr.bf16.mxu0 %v11966_v29  ;;  %v12041_v19 = vld [vmem:[%s17384_s8 + $0xc0c] ss:$16 sps:$4 sm:$0xff]   ;;  %v4414_v29 = vadd.f32 %v4413_v50, %v4412_v44  ;;  %v12102_v44 = vld [vmem:[%s17384_s8 + $0xd60] ss:$16 sps:$4 sm:$0xff]  }
 0x69f   : > { %8084 = vmatprep.subr.bf16.mxu1 %v11969_v35  ;;  %v12036_v35 = vld [vmem:[%s17384_s8 + $0xc00] ss:$16 sps:$4 sm:$0xff]  }
 0x6a0   : > { %v12108_v50 = vld [vmem:[%s17384_s8 + $0xd80] ss:$16 sps:$4 sm:$0xff]  }
 0x6a1   : > { %7757 = vmatpush1.bf16.msra.mxu0 %v11964_v36  ;;  %v4443_v36 = vpack.c.bf16 %v4387_v46, %v4387_v46 }
 0x6a2   : > { %8085 = vmatpush1.bf16.msra.mxu1 %v11967_v1  ;;  %7758 = vmatprep.subr.bf16.mxu0 %v11972_v14  ;;  %v12039_v1 = vld [vmem:[%s17384_s8 + $0xc08] ss:$16 sps:$4 sm:$0xff]   ;;  %v12044_v14 = vld [vmem:[%s17384_s8 + $0xc24] ss:$16 sps:$4 sm:$0xff]  }
 0x6a3   : > { %8086 = vmatprep.subr.bf16.mxu1 %v11975_v15  ;;  %v4446_v15 = vpack.c.bf16 %v4414_v29, %v4414_v29  ;;  %v12122_v29 = vld [vmem:[%s17384_s8 + $0xdc4] ss:$16 sps:$4 sm:$0xff]  }
 0x6a5   : > { %7759 = vmatpush1.bf16.msra.mxu0 %v11970_v8  ;;  %v12047_v8 = vld [vmem:[%s17384_s8 + $0xc2c] ss:$16 sps:$4 sm:$0xff]  }
 0x6a6   : > { %8087 = vmatpush1.bf16.msra.mxu1 %v11973_v2  ;;  %7760 = vmatprep.subr.bf16.mxu0 %v11978_v49  ;;  %v12042_v2 = vld [vmem:[%s17384_s8 + $0xc20] ss:$16 sps:$4 sm:$0xff]   ;;  %v12045_v49 = vld [vmem:[%s17384_s8 + $0xc28] ss:$16 sps:$4 sm:$0xff]  }
 0x6a7   : > { %8088 = vmatprep.subr.bf16.mxu1 %v11981_v48  ;;  %v12050_v48 = vld [vmem:[%s17384_s8 + $0xc44] ss:$16 sps:$4 sm:$0xff]  }
 0x6a9   : > { %7761 = vmatpush1.bf16.msra.mxu0 %v11976_v11  ;;  %v12053_v11 = vld [vmem:[%s17384_s8 + $0xc4c] ss:$16 sps:$4 sm:$0xff]  }
 0x6aa   : > { %8089 = vmatpush1.bf16.msra.mxu1 %v11979_v41  ;;  %7762 = vmatprep.subr.bf16.mxu0 %v11984_v16  ;;  %v12048_v41 = vld [vmem:[%s17384_s8 + $0xc40] ss:$16 sps:$4 sm:$0xff]   ;;  %v12051_v16 = vld [vmem:[%s17384_s8 + $0xc48] ss:$16 sps:$4 sm:$0xff]  }
 0x6ab   : > { %8090 = vmatprep.subr.bf16.mxu1 %v11987_v9  ;;  %v12056_v9 = vld [vmem:[%s17384_s8 + $0xc64] ss:$16 sps:$4 sm:$0xff]  }
 0x6ad   : > { %7763 = vmatpush1.bf16.msra.mxu0 %v11982_v59  ;;  %v12059_v59 = vld [vmem:[%s17384_s8 + $0xc6c] ss:$16 sps:$4 sm:$0xff]  }
 0x6ae   : > { %8091 = vmatpush1.bf16.msra.mxu1 %v11985_v47  ;;  %7764 = vmatprep.subr.bf16.mxu0 %v11990_v31  ;;  %v12054_v47 = vld [vmem:[%s17384_s8 + $0xc60] ss:$16 sps:$4 sm:$0xff]   ;;  %v12057_v31 = vld [vmem:[%s17384_s8 + $0xc68] ss:$16 sps:$4 sm:$0xff]  }
 0x6af   : > { %8092 = vmatprep.subr.bf16.mxu1 %v11993_v25  ;;  %v12062_v25 = vld [vmem:[%s17384_s8 + $0xc84] ss:$16 sps:$4 sm:$0xff]  }
 0x6b1   : > { %7765 = vmatpush1.bf16.msra.mxu0 %v11988_v54  ;;  %v12065_v54 = vld [vmem:[%s17384_s8 + $0xc8c] ss:$16 sps:$4 sm:$0xff]  }
 0x6b2   : > { %8093 = vmatpush1.bf16.msra.mxu1 %v11991_v7  ;;  %7766 = vmatprep.subr.bf16.mxu0 %v11996_v3  ;;  %v12060_v7 = vld [vmem:[%s17384_s8 + $0xc80] ss:$16 sps:$4 sm:$0xff]   ;;  %v12063_v3 = vld [vmem:[%s17384_s8 + $0xc88] ss:$16 sps:$4 sm:$0xff]  }
 0x6b3   : > { %8094 = vmatprep.subr.bf16.mxu1 %v11999_v55  ;;  %v12068_v55 = vld [vmem:[%s17384_s8 + $0xca4] ss:$16 sps:$4 sm:$0xff]  }
 0x6b5   : > { %7767 = vmatpush1.bf16.msra.mxu0 %v11994_v5  ;;  %v12071_v5 = vld [vmem:[%s17384_s8 + $0xcac] ss:$16 sps:$4 sm:$0xff]  }
 0x6b6   : > { %8095 = vmatpush1.bf16.msra.mxu1 %v11997_v43  ;;  %7768 = vmatprep.subr.bf16.mxu0 %v12002_v63  ;;  %v12066_v43 = vld [vmem:[%s17384_s8 + $0xca0] ss:$16 sps:$4 sm:$0xff]   ;;  %v12069_v63 = vld [vmem:[%s17384_s8 + $0xca8] ss:$16 sps:$4 sm:$0xff]  }
 0x6b7   : > { %8096 = vmatprep.subr.bf16.mxu1 %v12005_v13  ;;  %v12074_v13 = vld [vmem:[%s17384_s8 + $0xcc4] ss:$16 sps:$4 sm:$0xff]  }
 0x6b9   : > { %7769 = vmatpush1.bf16.msra.mxu0 %v12000_v51  ;;  %v12077_v51 = vld [vmem:[%s17384_s8 + $0xccc] ss:$16 sps:$4 sm:$0xff]  }
 0x6ba   : > { %8097 = vmatpush1.bf16.msra.mxu1 %v12003_v4  ;;  %7770 = vmatprep.subr.bf16.mxu0 %v12008_v52  ;;  %v12072_v4 = vld [vmem:[%s17384_s8 + $0xcc0] ss:$16 sps:$4 sm:$0xff]   ;;  %v12075_v52 = vld [vmem:[%s17384_s8 + $0xcc8] ss:$16 sps:$4 sm:$0xff]  }
 0x6bb   : > { %8098 = vmatprep.subr.bf16.mxu1 %v12011_v20  ;;  %v12083_v20 = vld [vmem:[%s17384_s8 + $0xcec] ss:$16 sps:$4 sm:$0xff]  }
 0x6bd   : > { %7771 = vmatpush1.bf16.msra.mxu0 %v12006_v17  ;;  %v12081_v17 = vld [vmem:[%s17384_s8 + $0xce8] ss:$16 sps:$4 sm:$0xff]  }
 0x6be   : > { %8099 = vmatpush1.bf16.msra.mxu1 %v12009_v56  ;;  %7772 = vmatprep.subr.bf16.mxu0 %v12014_v12  ;;  %v12086_v56 = vld [vmem:[%s17384_s8 + $0xd04] ss:$16 sps:$4 sm:$0xff]   ;;  %v12089_v12 = vld [vmem:[%s17384_s8 + $0xd0c] ss:$16 sps:$4 sm:$0xff]  }
 0x6bf   : > { %8100 = vmatprep.subr.bf16.mxu1 %v12017_v0  ;;  %v12087_v0 = vld [vmem:[%s17384_s8 + $0xd08] ss:$16 sps:$4 sm:$0xff]  }
 0x6c1   : > { %7773 = vmatpush1.bf16.msra.mxu0 %v12012_v30  ;;  %v12095_v30 = vld [vmem:[%s17384_s8 + $0xd2c] ss:$16 sps:$4 sm:$0xff]  }
 0x6c2   : > { %8101 = vmatpush1.bf16.msra.mxu1 %v12015_v57  ;;  %7774 = vmatprep.subr.bf16.mxu0 %v12020_v33  ;;  %v12090_v57 = vld [vmem:[%s17384_s8 + $0xd20] ss:$16 sps:$4 sm:$0xff]   ;;  %v12093_v33 = vld [vmem:[%s17384_s8 + $0xd28] ss:$16 sps:$4 sm:$0xff]  }
 0x6c3   : > { %8102 = vmatprep.subr.bf16.mxu1 %v12023_v18  ;;  %v12101_v18 = vld [vmem:[%s17384_s8 + $0xd4c] ss:$16 sps:$4 sm:$0xff]  }
 0x6c5   : > { %7775 = vmatpush1.bf16.msra.mxu0 %v12018_v60  ;;  %v12099_v60 = vld [vmem:[%s17384_s8 + $0xd48] ss:$16 sps:$4 sm:$0xff]  }
 0x6c6   : > { %8103 = vmatpush1.bf16.msra.mxu1 %v12021_v6  ;;  %7776 = vmatprep.subr.bf16.mxu0 %v12026_v21  ;;  %v12104_v6 = vld [vmem:[%s17384_s8 + $0xd64] ss:$16 sps:$4 sm:$0xff]   ;;  %v4400_v21 = vrot.slane %v15525_v24, 4 }
 0x6c7   : > { %8104 = vmatprep.subr.bf16.mxu1 %v12029_v61  ;;  %v4427_v61 = vrot.slane %v15551_v34, 4 }
 0x6c9   : > { %7777 = vmatpush1.bf16.msra.mxu0 %v12024_v42  ;;  %v12105_v42 = vld [vmem:[%s17384_s8 + $0xd68] ss:$16 sps:$4 sm:$0xff]  }
 0x6ca   : > { %8105 = vmatpush1.bf16.msra.mxu1 %v12027_v28  ;;  %7778 = vmatprep.subr.bf16.mxu0 %v12032_v23  ;;  %v12110_v28 = vld [vmem:[%s17384_s8 + $0xd84] ss:$16 sps:$4 sm:$0xff]   ;;  %v4401_v23 = vadd.f32 %v4400_v21, %v15525_v24  ;;  %v12174_v21 = vld [vmem:[%s17384_s8 + $0xee0] ss:$16 sps:$4 sm:$0xff]  }
 0x6cb   : > { %8106 = vmatprep.subr.bf16.mxu1 %v12035_v58  ;;  %v4428_v58 = vadd.f32 %v4427_v61, %v15551_v34  ;;  %v12116_v24 = vld [vmem:[%s17384_s8 + $0xda4] ss:$16 sps:$4 sm:$0xff]   ;;  %v12119_v34 = vld [vmem:[%s17384_s8 + $0xdac] ss:$16 sps:$4 sm:$0xff]  }
 0x6cc   : > { %v12182_v61 = vld [vmem:[%s17384_s8 + $0xf04] ss:$16 sps:$4 sm:$0xff]  }
 0x6cd   : > { %7779 = vmatpush1.bf16.msra.mxu0 %v12030_v45  ;;  %v12111_v45 = vld [vmem:[%s17384_s8 + $0xd88] ss:$16 sps:$4 sm:$0xff]   ;;  %v4429_v46 = vrot.slane %v4428_v58, 2 }
 0x6ce   : > { %8107 = vmatpush1.bf16.msra.mxu1 %v12033_v40  ;;  %7789 = vmatprep.subr.bf16.mxu0 %v12038_v37  ;;  %v4402_v40 = vrot.slane %v4401_v23, 2  ;;  %v12114_v37 = vld [vmem:[%s17384_s8 + $0xda0] ss:$16 sps:$4 sm:$0xff]  }
 0x6cf   : > { %8117 = vmatprep.subr.bf16.mxu1 %v12041_v19  ;;  %v12117_v19 = vld [vmem:[%s17384_s8 + $0xda8] ss:$16 sps:$4 sm:$0xff]  }
 0x6d0   : > { %7781 = vmatmul.mubr.bf16.vlgmr.msra.gmra.mrb[176].mxu0 %v4443_v36 }
 0x6d1   : > { %8109 = vmatmul.mubr.bf16.vlgmr.msra.gmra.mrb[164].mxu1 %v4443_v36  ;;  %7790 = vmatpush1.bf16.msra.mxu0 %v12036_v35  ;;  %v4403_v35 = vadd.f32 %v4402_v40, %v4401_v23  ;;  %v12125_v36 = vld [vmem:[%s17384_s8 + $0xdcc] ss:$16 sps:$4 sm:$0xff]   ;;  %v12188_v23 = vld [vmem:[%s17384_s8 + $0xf24] ss:$16 sps:$4 sm:$0xff]   ;;  %v12192_v40 = vld [vmem:[%s17384_s8 + $0xf40] ss:$16 sps:$4 sm:$0xff]  }
 0x6d2   : > { %7821 = vmatprep.mubr.bf16.mxu0 %v4446_v15  ;;  %8118 = vmatpush1.bf16.msra.mxu1 %v12039_v1  ;;  %v4430_v1 = vadd.f32 %v4429_v46, %v4428_v58  ;;  %v12186_v58 = vld [vmem:[%s17384_s8 + $0xf20] ss:$16 sps:$4 sm:$0xff]   ;;  %v12200_v46 = vld [vmem:[%s17384_s8 + $0xf64] ss:$16 sps:$4 sm:$0xff]  }
 0x6d3   : > { %8149 = vmatprep.mubr.bf16.mxu1 %v4446_v15  ;;  %7791 = vmatprep.subr.bf16.mxu0 %v12044_v14  ;;  %v12120_v14 = vld [vmem:[%s17384_s8 + $0xdc0] ss:$16 sps:$4 sm:$0xff]   ;;  %v12123_v15 = vld [vmem:[%s17384_s8 + $0xdc8] ss:$16 sps:$4 sm:$0xff]  }
 0x6d4   : > { %8119 = vmatprep.subr.bf16.mxu1 %v12047_v8  ;;  %v12128_v8 = vld [vmem:[%s17384_s8 + $0xde4] ss:$16 sps:$4 sm:$0xff]  }
 0x6d5   : > { %7792 = vmatpush1.bf16.msra.mxu0 %v12042_v2  ;;  %v4404_v2 = vrot.slane %v4403_v35, 1 }
 0x6d6   : > { %8120 = vmatpush1.bf16.msra.mxu1 %v12045_v49  ;;  %7793 = vmatprep.subr.bf16.mxu0 %v12050_v48  ;;  %v12131_v49 = vld [vmem:[%s17384_s8 + $0xdec] ss:$16 sps:$4 sm:$0xff]   ;;  %v4431_v48 = vrot.slane %v4430_v1, 1 }
 0x6d7   : > { %8121 = vmatprep.subr.bf16.mxu1 %v12053_v11  ;;  %v12126_v11 = vld [vmem:[%s17384_s8 + $0xde0] ss:$16 sps:$4 sm:$0xff]  }
 0x6d9   : > { %7794 = vmatpush1.bf16.msra.mxu0 %v12048_v41  ;;  %v12129_v41 = vld [vmem:[%s17384_s8 + $0xde8] ss:$16 sps:$4 sm:$0xff]  }
 0x6da   : > { %8122 = vmatpush1.bf16.msra.mxu1 %v12051_v16  ;;  %7795 = vmatprep.subr.bf16.mxu0 %v12056_v9  ;;  %v4405_v16 = vadd.f32 %v4404_v2, %v4403_v35  ;;  %v12134_v9 = vld [vmem:[%s17384_s8 + $0xe04] ss:$16 sps:$4 sm:$0xff]   ;;  %v12201_v35 = vld [vmem:[%s17384_s8 + $0xf68] ss:$16 sps:$4 sm:$0xff]  }
 0x6db   : > { %8123 = vmatprep.subr.bf16.mxu1 %v12059_v59  ;;  %v12137_v59 = vld [vmem:[%s17384_s8 + $0xe0c] ss:$16 sps:$4 sm:$0xff]  }
 0x6dd   : > { %7796 = vmatpush1.bf16.msra.mxu0 %v12054_v47  ;;  %v4432_v47 = vadd.f32 %v4431_v48, %v4430_v1  ;;  %v12210_v48 = vld [vmem:[%s17384_s8 + $0xfa0] ss:$16 sps:$4 sm:$0xff]  }
 0x6de   : > { %8124 = vmatpush1.bf16.msra.mxu1 %v12057_v31  ;;  %7797 = vmatprep.subr.bf16.mxu0 %v12062_v25  ;;  %v12132_v31 = vld [vmem:[%s17384_s8 + $0xe00] ss:$16 sps:$4 sm:$0xff]   ;;  %v4445_v25 = vpack.c.bf16 %v4405_v16, %v4405_v16 }
 0x6df   : > { %8125 = vmatprep.subr.bf16.mxu1 %v12065_v54  ;;  %v12135_v54 = vld [vmem:[%s17384_s8 + $0xe08] ss:$16 sps:$4 sm:$0xff]  }
 0x6e1   : > { %7798 = vmatpush1.bf16.msra.mxu0 %v12060_v7  ;;  %v12140_v7 = vld [vmem:[%s17384_s8 + $0xe24] ss:$16 sps:$4 sm:$0xff]  }
 0x6e2   : > { %8126 = vmatpush1.bf16.msra.mxu1 %v12063_v3  ;;  %7799 = vmatprep.subr.bf16.mxu0 %v12068_v55  ;;  %v4448_v3 = vpack.c.bf16 %v4432_v47, %v4432_v47  ;;  %v12143_v55 = vld [vmem:[%s17384_s8 + $0xe2c] ss:$16 sps:$4 sm:$0xff]   ;;  %v12219_v47 = vld [vmem:[%s17384_s8 + $0xfc8] ss:$16 sps:$4 sm:$0xff]  }
 0x6e3   : > { %8127 = vmatprep.subr.bf16.mxu1 %v12071_v5  ;;  %v12138_v5 = vld [vmem:[%s17384_s8 + $0xe20] ss:$16 sps:$4 sm:$0xff]  }
 0x6e5   : > { %7800 = vmatpush1.bf16.msra.mxu0 %v12066_v43  ;;  %v12141_v43 = vld [vmem:[%s17384_s8 + $0xe28] ss:$16 sps:$4 sm:$0xff]  }
 0x6e6   : > { %8128 = vmatpush1.bf16.msra.mxu1 %v12069_v63  ;;  %7801 = vmatprep.subr.bf16.mxu0 %v12074_v13  ;;  %v12146_v63 = vld [vmem:[%s17384_s8 + $0xe44] ss:$16 sps:$4 sm:$0xff]   ;;  %v12149_v13 = vld [vmem:[%s17384_s8 + $0xe4c] ss:$16 sps:$4 sm:$0xff]  }
 0x6e7   : > { %8129 = vmatprep.subr.bf16.mxu1 %v12077_v51  ;;  %v12144_v51 = vld [vmem:[%s17384_s8 + $0xe40] ss:$16 sps:$4 sm:$0xff]  }
 0x6e9   : > { %7802 = vmatpush1.bf16.msra.mxu0 %v12072_v4  ;;  %v12147_v4 = vld [vmem:[%s17384_s8 + $0xe48] ss:$16 sps:$4 sm:$0xff]  }
 0x6ea   : > { %8130 = vmatpush1.bf16.msra.mxu1 %v12075_v52  ;;  %7803 = vmatprep.subr.bf16.mxu0 %v12080_v53  ;;  %v12152_v52 = vld [vmem:[%s17384_s8 + $0xe64] ss:$16 sps:$4 sm:$0xff]   ;;  %v12155_v53 = vld [vmem:[%s17384_s8 + $0xe6c] ss:$16 sps:$4 sm:$0xff]  }
 0x6eb   : > { %8131 = vmatprep.subr.bf16.mxu1 %v12083_v20  ;;  %v12150_v20 = vld [vmem:[%s17384_s8 + $0xe60] ss:$16 sps:$4 sm:$0xff]  }
 0x6ed   : > { %7804 = vmatpush1.bf16.msra.mxu0 %v12078_v32  ;;  %v12153_v32 = vld [vmem:[%s17384_s8 + $0xe68] ss:$16 sps:$4 sm:$0xff]  }
 0x6ee   : > { %8132 = vmatpush1.bf16.msra.mxu1 %v12081_v17  ;;  %7805 = vmatprep.subr.bf16.mxu0 %v12086_v56  ;;  %v12158_v17 = vld [vmem:[%s17384_s8 + $0xe84] ss:$16 sps:$4 sm:$0xff]   ;;  %v12161_v56 = vld [vmem:[%s17384_s8 + $0xe8c] ss:$16 sps:$4 sm:$0xff]  }
 0x6ef   : > { %8133 = vmatprep.subr.bf16.mxu1 %v12089_v12  ;;  %v12156_v12 = vld [vmem:[%s17384_s8 + $0xe80] ss:$16 sps:$4 sm:$0xff]  }
 0x6f1   : > { %7806 = vmatpush1.bf16.msra.mxu0 %v12084_v27  ;;  %v12159_v27 = vld [vmem:[%s17384_s8 + $0xe88] ss:$16 sps:$4 sm:$0xff]  }
 0x6f2   : > { %8134 = vmatpush1.bf16.msra.mxu1 %v12087_v0  ;;  %7807 = vmatprep.subr.bf16.mxu0 %v12092_v62  ;;  %v12164_v0 = vld [vmem:[%s17384_s8 + $0xea4] ss:$16 sps:$4 sm:$0xff]   ;;  %v12167_v62 = vld [vmem:[%s17384_s8 + $0xeac] ss:$16 sps:$4 sm:$0xff]  }
 0x6f3   : > { %8135 = vmatprep.subr.bf16.mxu1 %v12095_v30  ;;  %v12162_v30 = vld [vmem:[%s17384_s8 + $0xea0] ss:$16 sps:$4 sm:$0xff]  }
 0x6f5   : > { %7808 = vmatpush1.bf16.msra.mxu0 %v12090_v57  ;;  %v12165_v57 = vld [vmem:[%s17384_s8 + $0xea8] ss:$16 sps:$4 sm:$0xff]  }
 0x6f6   : > { %8136 = vmatpush1.bf16.msra.mxu1 %v12093_v33  ;;  %7809 = vmatprep.subr.bf16.mxu0 %v12098_v39  ;;  %v12170_v33 = vld [vmem:[%s17384_s8 + $0xec4] ss:$16 sps:$4 sm:$0xff]   ;;  %v12173_v39 = vld [vmem:[%s17384_s8 + $0xecc] ss:$16 sps:$4 sm:$0xff]  }
 0x6f7   : > { %8137 = vmatprep.subr.bf16.mxu1 %v12101_v18  ;;  %v12168_v18 = vld [vmem:[%s17384_s8 + $0xec0] ss:$16 sps:$4 sm:$0xff]  }
 0x6f9   : > { %7810 = vmatpush1.bf16.msra.mxu0 %v12096_v22  ;;  %v12171_v22 = vld [vmem:[%s17384_s8 + $0xec8] ss:$16 sps:$4 sm:$0xff]  }
 0x6fa   : > { %8138 = vmatpush1.bf16.msra.mxu1 %v12099_v60  ;;  %7811 = vmatprep.subr.bf16.mxu0 %v12104_v6  ;;  %v12176_v60 = vld [vmem:[%s17384_s8 + $0xee4] ss:$16 sps:$4 sm:$0xff]   ;;  %v12179_v6 = vld [vmem:[%s17384_s8 + $0xeec] ss:$16 sps:$4 sm:$0xff]  }
 0x6fb   : > { %8139 = vmatprep.subr.bf16.mxu1 %v12107_v26  ;;  %v12177_v26 = vld [vmem:[%s17384_s8 + $0xee8] ss:$16 sps:$4 sm:$0xff]  }
 0x6fd   : > { %7812 = vmatpush1.bf16.msra.mxu0 %v12102_v44  ;;  %v12185_v44 = vld [vmem:[%s17384_s8 + $0xf0c] ss:$16 sps:$4 sm:$0xff]  }
 0x6fe   : > { %8140 = vmatpush1.bf16.msra.mxu1 %v12105_v42  ;;  %7813 = vmatprep.subr.bf16.mxu0 %v12110_v28  ;;  %v12180_v42 = vld [vmem:[%s17384_s8 + $0xf00] ss:$16 sps:$4 sm:$0xff]   ;;  %v12183_v28 = vld [vmem:[%s17384_s8 + $0xf08] ss:$16 sps:$4 sm:$0xff]  }
 0x6ff   : > { %8141 = vmatprep.subr.bf16.mxu1 %v12113_v38  ;;  %v12191_v38 = vld [vmem:[%s17384_s8 + $0xf2c] ss:$16 sps:$4 sm:$0xff]  }
 0x701   : > { %7814 = vmatpush1.bf16.msra.mxu0 %v12108_v50  ;;  %v12189_v50 = vld [vmem:[%s17384_s8 + $0xf28] ss:$16 sps:$4 sm:$0xff]  }
 0x702   : > { %8142 = vmatpush1.bf16.msra.mxu1 %v12111_v45  ;;  %7815 = vmatprep.subr.bf16.mxu0 %v12116_v24  ;;  %v12194_v45 = vld [vmem:[%s17384_s8 + $0xf44] ss:$16 sps:$4 sm:$0xff]   ;;  %v12197_v24 = vld [vmem:[%s17384_s8 + $0xf4c] ss:$16 sps:$4 sm:$0xff]  }
 0x703   : > { %8143 = vmatprep.subr.bf16.mxu1 %v12119_v34  ;;  %v12195_v34 = vld [vmem:[%s17384_s8 + $0xf48] ss:$16 sps:$4 sm:$0xff]  }
 0x705   : > { %7816 = vmatpush1.bf16.msra.mxu0 %v12114_v37  ;;  %v4418_v37 = vrot.slane %v15559_v10, 4 }
 0x706   : > { %8144 = vmatpush1.bf16.msra.mxu1 %v12117_v19  ;;  %7817 = vmatprep.subr.bf16.mxu0 %v12122_v29  ;;  %v12203_v19 = vld [vmem:[%s17384_s8 + $0xf6c] ss:$16 sps:$4 sm:$0xff]   ;;  %v12198_v29 = vld [vmem:[%s17384_s8 + $0xf60] ss:$16 sps:$4 sm:$0xff]  }
 0x707   : > { %8145 = vmatprep.subr.bf16.mxu1 %v12125_v36  ;;  %v12206_v36 = vld [vmem:[%s17384_s8 + $0xf84] ss:$16 sps:$4 sm:$0xff]   ;;  %v4419_v1 = vadd.f32 %v4418_v37, %v15559_v10  ;;  %v12282_v37 = vld [vmem:[%s17386_s10 + $0x120] ss:$16 sps:$4 sm:$0xff]  }
 0x708   : > { %v12212_v10 = vld [vmem:[%s17384_s8 + $0xfa4] ss:$16 sps:$4 sm:$0xff]  }
 0x709   : > { %7818 = vmatpush1.bf16.msra.mxu0 %v12120_v14  ;;  %v12209_v14 = vld [vmem:[%s17384_s8 + $0xf8c] ss:$16 sps:$4 sm:$0xff]   ;;  %v4420_v2 = vrot.slane %v4419_v1, 2 }
 0x70a   : > { %8146 = vmatpush1.bf16.msra.mxu1 %v12123_v15  ;;  %7819 = vmatprep.subr.bf16.mxu0 %v12128_v8  ;;  %v12204_v15 = vld [vmem:[%s17384_s8 + $0xf80] ss:$16 sps:$4 sm:$0xff]   ;;  %v12207_v8 = vld [vmem:[%s17384_s8 + $0xf88] ss:$16 sps:$4 sm:$0xff]  }
 0x70b   : > { %8147 = vmatprep.subr.bf16.mxu1 %v12131_v49  ;;  %v12215_v49 = vld [vmem:[%s17384_s8 + $0xfac] ss:$16 sps:$4 sm:$0xff]   ;;  %v4421_v16 = vadd.f32 %v4420_v2, %v4419_v1  ;;  %v12291_v1 = vld [vmem:[%s17386_s10 + $0x148] ss:$16 sps:$4 sm:$0xff]   ;;  %v12302_v2 = vld [vmem:[%s17386_s10 + $0x184] ss:$16 sps:$4 sm:$0xff]  }
 0x70d   : > { %7820 = vmatpush1.bf16.msra.mxu0 %v12126_v11  ;;  %v12213_v11 = vld [vmem:[%s17384_s8 + $0xfa8] ss:$16 sps:$4 sm:$0xff]  }
 0x70e   : > { %8148 = vmatpush1.bf16.msra.mxu1 %v12129_v41  ;;  %7830 = vmatprep.subr.bf16.mxu0 %v12134_v9  ;;  %v12218_v41 = vld [vmem:[%s17384_s8 + $0xfc4] ss:$16 sps:$4 sm:$0xff]   ;;  %v12221_v9 = vld [vmem:[%s17384_s8 + $0xfcc] ss:$16 sps:$4 sm:$0xff]  }
 0x70f   : > { %8158 = vmatprep.subr.bf16.mxu1 %v12137_v59  ;;  %v12216_v59 = vld [vmem:[%s17384_s8 + $0xfc0] ss:$16 sps:$4 sm:$0xff]  }
 0x710   : > { %7822 = vmatmul.mubr.bf16.vlgmr.msra.gmra.mrb[176].mxu0 %v4445_v25 }
 0x711   : > { %8150 = vmatmul.mubr.bf16.vlgmr.msra.gmra.mrb[164].mxu1 %v4445_v25  ;;  %7831 = vmatpush1.bf16.msra.mxu0 %v12132_v31  ;;  %v12224_v31 = vld [vmem:[%s17384_s8 + $0xfe4] ss:$16 sps:$4 sm:$0xff]   ;;  %v4422_v25 = vrot.slane %v4421_v16, 1 }
 0x712   : > { %7862 = vmatprep.mubr.bf16.mxu0 %v4448_v3  ;;  %8159 = vmatpush1.bf16.msra.mxu1 %v12135_v54  ;;  %v12227_v54 = vld [vmem:[%s17384_s8 + $0xfec] ss:$16 sps:$4 sm:$0xff]  }
 0x713   : > { %8190 = vmatprep.mubr.bf16.mxu1 %v4448_v3  ;;  %7832 = vmatprep.subr.bf16.mxu0 %v12140_v7  ;;  %v12222_v7 = vld [vmem:[%s17384_s8 + $0xfe0] ss:$16 sps:$4 sm:$0xff]   ;;  %v12225_v3 = vld [vmem:[%s17384_s8 + $0xfe8] ss:$16 sps:$4 sm:$0xff]  }
 0x714   : > { %8160 = vmatprep.subr.bf16.mxu1 %v12143_v55  ;;  %v4423_v55 = vadd.f32 %v4422_v25, %v4421_v16  ;;  %v12311_v16 = vld [vmem:[%s17386_s10 + $0x1ac] ss:$16 sps:$4 sm:$0xff]   ;;  %v12315_v25 = vld [vmem:[%s17386_s10 + $0x1c8] ss:$16 sps:$4 sm:$0xff]  }
 0x715   : > { %7833 = vmatpush1.bf16.msra.mxu0 %v12138_v5  ;;  %v12230_v5 = vld [vmem:[%s17386_s10 + $0x4] ss:$16 sps:$4 sm:$0xff]  }
 0x716   : > { %8161 = vmatpush1.bf16.msra.mxu1 %v12141_v43  ;;  %7834 = vmatprep.subr.bf16.mxu0 %v12146_v63  ;;  %v12233_v43 = vld [vmem:[%s17386_s10 + $0xc] ss:$16 sps:$4 sm:$0xff]   ;;  %v12228_v63 = vld [vmem:[%s17386_s10] ss:$16 sps:$4 sm:$0xff]  }
 0x717   : > { %8162 = vmatprep.subr.bf16.mxu1 %v12149_v13  ;;  %v4447_v13 = vpack.c.bf16 %v4423_v55, %v4423_v55  ;;  %v12318_v55 = vld [vmem:[%s17386_s10 + $0x1e0] ss:$16 sps:$4 sm:$0xff]  }
 0x719   : > { %7835 = vmatpush1.bf16.msra.mxu0 %v12144_v51  ;;  %v12231_v51 = vld [vmem:[%s17386_s10 + $0x8] ss:$16 sps:$4 sm:$0xff]  }
 0x71a   : > { %8163 = vmatpush1.bf16.msra.mxu1 %v12147_v4  ;;  %7836 = vmatprep.subr.bf16.mxu0 %v12152_v52  ;;  %v12236_v4 = vld [vmem:[%s17386_s10 + $0x24] ss:$16 sps:$4 sm:$0xff]   ;;  %v12239_v52 = vld [vmem:[%s17386_s10 + $0x2c] ss:$16 sps:$4 sm:$0xff]  }
 0x71b   : > { %8164 = vmatprep.subr.bf16.mxu1 %v12155_v53  ;;  %v12234_v53 = vld [vmem:[%s17386_s10 + $0x20] ss:$16 sps:$4 sm:$0xff]  }
 0x71d   : > { %7837 = vmatpush1.bf16.msra.mxu0 %v12150_v20  ;;  %v12237_v20 = vld [vmem:[%s17386_s10 + $0x28] ss:$16 sps:$4 sm:$0xff]  }
 0x71e   : > { %8165 = vmatpush1.bf16.msra.mxu1 %v12153_v32  ;;  %7838 = vmatprep.subr.bf16.mxu0 %v12158_v17  ;;  %v12242_v32 = vld [vmem:[%s17386_s10 + $0x44] ss:$16 sps:$4 sm:$0xff]   ;;  %v12245_v17 = vld [vmem:[%s17386_s10 + $0x4c] ss:$16 sps:$4 sm:$0xff]  }
 0x71f   : > { %8166 = vmatprep.subr.bf16.mxu1 %v12161_v56  ;;  %v12240_v56 = vld [vmem:[%s17386_s10 + $0x40] ss:$16 sps:$4 sm:$0xff]  }
 0x721   : > { %7839 = vmatpush1.bf16.msra.mxu0 %v12156_v12  ;;  %v12243_v12 = vld [vmem:[%s17386_s10 + $0x48] ss:$16 sps:$4 sm:$0xff]  }
 0x722   : > { %8167 = vmatpush1.bf16.msra.mxu1 %v12159_v27  ;;  %7840 = vmatprep.subr.bf16.mxu0 %v12164_v0  ;;  %v12248_v27 = vld [vmem:[%s17386_s10 + $0x64] ss:$16 sps:$4 sm:$0xff]   ;;  %v12251_v0 = vld [vmem:[%s17386_s10 + $0x6c] ss:$16 sps:$4 sm:$0xff]  }
 0x723   : > { %8168 = vmatprep.subr.bf16.mxu1 %v12167_v62  ;;  %v12246_v62 = vld [vmem:[%s17386_s10 + $0x60] ss:$16 sps:$4 sm:$0xff]  }
 0x725   : > { %7841 = vmatpush1.bf16.msra.mxu0 %v12162_v30  ;;  %v12249_v30 = vld [vmem:[%s17386_s10 + $0x68] ss:$16 sps:$4 sm:$0xff]  }
 0x726   : > { %8169 = vmatpush1.bf16.msra.mxu1 %v12165_v57  ;;  %7842 = vmatprep.subr.bf16.mxu0 %v12170_v33  ;;  %v12254_v57 = vld [vmem:[%s17386_s10 + $0x84] ss:$16 sps:$4 sm:$0xff]   ;;  %v12257_v33 = vld [vmem:[%s17386_s10 + $0x8c] ss:$16 sps:$4 sm:$0xff]  }
 0x727   : > { %8170 = vmatprep.subr.bf16.mxu1 %v12173_v39  ;;  %v12252_v39 = vld [vmem:[%s17386_s10 + $0x80] ss:$16 sps:$4 sm:$0xff]  }
 0x729   : > { %7843 = vmatpush1.bf16.msra.mxu0 %v12168_v18  ;;  %v12255_v18 = vld [vmem:[%s17386_s10 + $0x88] ss:$16 sps:$4 sm:$0xff]  }
 0x72a   : > { %8171 = vmatpush1.bf16.msra.mxu1 %v12171_v22  ;;  %7844 = vmatprep.subr.bf16.mxu0 %v12176_v60  ;;  %v12260_v22 = vld [vmem:[%s17386_s10 + $0xa4] ss:$16 sps:$4 sm:$0xff]   ;;  %v12263_v60 = vld [vmem:[%s17386_s10 + $0xac] ss:$16 sps:$4 sm:$0xff]  }
 0x72b   : > { %8172 = vmatprep.subr.bf16.mxu1 %v12179_v6  ;;  %v12258_v6 = vld [vmem:[%s17386_s10 + $0xa0] ss:$16 sps:$4 sm:$0xff]  }
 0x72d   : > { %7845 = vmatpush1.bf16.msra.mxu0 %v12174_v21  ;;  %v12261_v21 = vld [vmem:[%s17386_s10 + $0xa8] ss:$16 sps:$4 sm:$0xff]  }
 0x72e   : > { %8173 = vmatpush1.bf16.msra.mxu1 %v12177_v26  ;;  %7846 = vmatprep.subr.bf16.mxu0 %v12182_v61  ;;  %v12266_v26 = vld [vmem:[%s17386_s10 + $0xc4] ss:$16 sps:$4 sm:$0xff]   ;;  %v12269_v61 = vld [vmem:[%s17386_s10 + $0xcc] ss:$16 sps:$4 sm:$0xff]  }
 0x72f   : > { %8174 = vmatprep.subr.bf16.mxu1 %v12185_v44  ;;  %v12264_v44 = vld [vmem:[%s17386_s10 + $0xc0] ss:$16 sps:$4 sm:$0xff]  }
 0x731   : > { %7847 = vmatpush1.bf16.msra.mxu0 %v12180_v42  ;;  %v12267_v42 = vld [vmem:[%s17386_s10 + $0xc8] ss:$16 sps:$4 sm:$0xff]  }
 0x732   : > { %8175 = vmatpush1.bf16.msra.mxu1 %v12183_v28  ;;  %7848 = vmatprep.subr.bf16.mxu0 %v12188_v23  ;;  %v12272_v28 = vld [vmem:[%s17386_s10 + $0xe4] ss:$16 sps:$4 sm:$0xff]   ;;  %v12275_v23 = vld [vmem:[%s17386_s10 + $0xec] ss:$16 sps:$4 sm:$0xff]  }
 0x733   : > { %8176 = vmatprep.subr.bf16.mxu1 %v12191_v38  ;;  %v12270_v38 = vld [vmem:[%s17386_s10 + $0xe0] ss:$16 sps:$4 sm:$0xff]  }
 0x735   : > { %7849 = vmatpush1.bf16.msra.mxu0 %v12186_v58  ;;  %v12273_v58 = vld [vmem:[%s17386_s10 + $0xe8] ss:$16 sps:$4 sm:$0xff]  }
 0x736   : > { %8177 = vmatpush1.bf16.msra.mxu1 %v12189_v50  ;;  %7850 = vmatprep.subr.bf16.mxu0 %v12194_v45  ;;  %v12278_v50 = vld [vmem:[%s17386_s10 + $0x104] ss:$16 sps:$4 sm:$0xff]   ;;  %v12281_v45 = vld [vmem:[%s17386_s10 + $0x10c] ss:$16 sps:$4 sm:$0xff]  }
 0x737   : > { %8178 = vmatprep.subr.bf16.mxu1 %v12197_v24  ;;  %v12276_v24 = vld [vmem:[%s17386_s10 + $0x100] ss:$16 sps:$4 sm:$0xff]  }
 0x739   : > { %7851 = vmatpush1.bf16.msra.mxu0 %v12192_v40  ;;  %v12279_v40 = vld [vmem:[%s17386_s10 + $0x108] ss:$16 sps:$4 sm:$0xff]  }
 0x73a   : > { %8179 = vmatpush1.bf16.msra.mxu1 %v12195_v34  ;;  %7852 = vmatprep.subr.bf16.mxu0 %v12200_v46  ;;  %v12284_v34 = vld [vmem:[%s17386_s10 + $0x124] ss:$16 sps:$4 sm:$0xff]   ;;  %v12287_v46 = vld [vmem:[%s17386_s10 + $0x12c] ss:$16 sps:$4 sm:$0xff]  }
 0x73b   : > { %8180 = vmatprep.subr.bf16.mxu1 %v12203_v19  ;;  %v12285_v19 = vld [vmem:[%s17386_s10 + $0x128] ss:$16 sps:$4 sm:$0xff]  }
 0x73d   : > { %7853 = vmatpush1.bf16.msra.mxu0 %v12198_v29  ;;  %v12290_v29 = vld [vmem:[%s17386_s10 + $0x144] ss:$16 sps:$4 sm:$0xff]  }
 0x73e   : > { %8181 = vmatpush1.bf16.msra.mxu1 %v12201_v35  ;;  %7854 = vmatprep.subr.bf16.mxu0 %v12206_v36  ;;  %v12293_v35 = vld [vmem:[%s17386_s10 + $0x14c] ss:$16 sps:$4 sm:$0xff]   ;;  %v12288_v36 = vld [vmem:[%s17386_s10 + $0x140] ss:$16 sps:$4 sm:$0xff]  }
 0x73f   : > { %8182 = vmatprep.subr.bf16.mxu1 %v12209_v14  ;;  %v12296_v14 = vld [vmem:[%s17386_s10 + $0x164] ss:$16 sps:$4 sm:$0xff]  }
 0x741   : > { %7855 = vmatpush1.bf16.msra.mxu0 %v12204_v15  ;;  %v12299_v15 = vld [vmem:[%s17386_s10 + $0x16c] ss:$16 sps:$4 sm:$0xff]  }
 0x742   : > { %8183 = vmatpush1.bf16.msra.mxu1 %v12207_v8  ;;  %7856 = vmatprep.subr.bf16.mxu0 %v12212_v10  ;;  %v12294_v8 = vld [vmem:[%s17386_s10 + $0x160] ss:$16 sps:$4 sm:$0xff]   ;;  %v12297_v10 = vld [vmem:[%s17386_s10 + $0x168] ss:$16 sps:$4 sm:$0xff]  }
 0x743   : > { %8184 = vmatprep.subr.bf16.mxu1 %v12215_v49  ;;  %v12305_v49 = vld [vmem:[%s17386_s10 + $0x18c] ss:$16 sps:$4 sm:$0xff]  }
 0x745   : > { %7857 = vmatpush1.bf16.msra.mxu0 %v12210_v48  ;;  %v12300_v48 = vld [vmem:[%s17386_s10 + $0x180] ss:$16 sps:$4 sm:$0xff]  }
 0x746   : > { %8185 = vmatpush1.bf16.msra.mxu1 %v12213_v11  ;;  %7858 = vmatprep.subr.bf16.mxu0 %v12218_v41  ;;  %v12303_v11 = vld [vmem:[%s17386_s10 + $0x188] ss:$16 sps:$4 sm:$0xff]   ;;  %v12308_v41 = vld [vmem:[%s17386_s10 + $0x1a4] ss:$16 sps:$4 sm:$0xff]  }
 0x747   : > { %8186 = vmatprep.subr.bf16.mxu1 %v12221_v9  ;;  %v12306_v9 = vld [vmem:[%s17386_s10 + $0x1a0] ss:$16 sps:$4 sm:$0xff]  }
 0x749   : > { %7859 = vmatpush1.bf16.msra.mxu0 %v12216_v59  ;;  %v12309_v59 = vld [vmem:[%s17386_s10 + $0x1a8] ss:$16 sps:$4 sm:$0xff]  }
 0x74a   : > { %8187 = vmatpush1.bf16.msra.mxu1 %v12219_v47  ;;  %7860 = vmatprep.subr.bf16.mxu0 %v12224_v31  ;;  %v12312_v47 = vld [vmem:[%s17386_s10 + $0x1c0] ss:$16 sps:$4 sm:$0xff]   ;;  %v12314_v31 = vld [vmem:[%s17386_s10 + $0x1c4] ss:$16 sps:$4 sm:$0xff]  }
 0x74b   : > { %8188 = vmatprep.subr.bf16.mxu1 %v12227_v54  ;;  %v12317_v54 = vld [vmem:[%s17386_s10 + $0x1cc] ss:$16 sps:$4 sm:$0xff]  }
 0x74d   : > { %7861 = vmatpush1.bf16.msra.mxu0 %v12222_v7  ;;  %v12320_v7 = vld [vmem:[%s17386_s10 + $0x1e4] ss:$16 sps:$4 sm:$0xff]  }
 0x74e   : > { %8189 = vmatpush1.bf16.msra.mxu1 %v12225_v3  ;;  %8997 = vmatprep.subr.bf16.mxu0 %v12230_v5  ;;  %v12323_v3 = vld [vmem:[%s17386_s10 + $0x1ec] ss:$16 sps:$4 sm:$0xff]   ;;  %v12321_v5 = vld [vmem:[%s17386_s10 + $0x1e8] ss:$16 sps:$4 sm:$0xff]  }
 0x74f   : > { %9079 = vmatprep.subr.bf16.mxu1 %v12233_v43  ;;  %v12326_v43 = vld [vmem:[%s17386_s10 + $0x204] ss:$16 sps:$4 sm:$0xff]  }
 0x750   : > { %7863 = vmatmul.mubr.bf16.vlgmr.msra.gmra.mrb[176].mxu0 %v4447_v13 }
 0x751   : > { %8191 = vmatmul.mubr.bf16.vlgmr.msra.gmra.mrb[164].mxu1 %v4447_v13  ;;  %8998 = vmatpush1.bf16.msra.mxu0 %v12228_v63  ;;  %v12329_v63 = vld [vmem:[%s17386_s10 + $0x20c] ss:$16 sps:$4 sm:$0xff]   ;;  %v17723_v13 = vld [vmem:[#allocation9_spill] sm:$0xff] }
 0x752   : > { %9080 = vmatpush1.bf16.msra.mxu1 %v12231_v51  ;;  %8999 = vmatprep.subr.bf16.mxu0 %v12236_v4  ;;  %v7525_v51 = vsub.s32 0, %v17723_v13  ;;  %v17013_v4 = vld [vmem:[%s17385_s9] sm:$0xf] }
 0x753   : > { %9081 = vmatprep.subr.bf16.mxu1 %v12239_v52  ;;  %v7529_v52 = vsub.s32 1, %v17723_v13 }
 0x755   : > { %9000 = vmatpush1.bf16.msra.mxu0 %v12234_v53  ;;  %v7537_v53 = vsub.s32 3, %v17723_v13 }
 0x756   : > { %9082 = vmatpush1.bf16.msra.mxu1 %v12237_v20  ;;  %9001 = vmatprep.subr.bf16.mxu0 %v12242_v32  ;;  %v7526_v20 = vrot.slane %v17013_v4, %v7525_v51  ;;  %v7530_v32 = vrot.slane %v17013_v4, %v7529_v52 }
 0x757   : > { %9083 = vmatprep.subr.bf16.mxu1 %v12245_v17  ;;  %v7538_v17 = vrot.slane %v17013_v4, %v7537_v53 }
 0x759   : > { %9002 = vmatpush1.bf16.msra.mxu0 %v12240_v56 }
 0x75a   : > { %9084 = vmatpush1.bf16.msra.mxu1 %v12243_v12  ;;  %9003 = vmatprep.subr.bf16.mxu0 %v12248_v27 }
 0x75b   : > { %9085 = vmatprep.subr.bf16.mxu1 %v12251_v0 }
 0x75d   : > { %9004 = vmatpush1.bf16.msra.mxu0 %v12246_v62 }
 0x75e   : > { %9086 = vmatpush1.bf16.msra.mxu1 %v12249_v30  ;;  %9005 = vmatprep.subr.bf16.mxu0 %v12254_v57 }
 0x75f   : > { %9087 = vmatprep.subr.bf16.mxu1 %v12257_v33 }
 0x761   : > { %9006 = vmatpush1.bf16.msra.mxu0 %v12252_v39 }
 0x762   : > { %9088 = vmatpush1.bf16.msra.mxu1 %v12255_v18  ;;  %9007 = vmatprep.subr.bf16.mxu0 %v12260_v22 }
 0x763   : > { %9089 = vmatprep.subr.bf16.mxu1 %v12263_v60 }
 0x765   : > { %9008 = vmatpush1.bf16.msra.mxu0 %v12258_v6 }
 0x766   : > { %9090 = vmatpush1.bf16.msra.mxu1 %v12261_v21  ;;  %9009 = vmatprep.subr.bf16.mxu0 %v12266_v26 }
 0x767   : > { %9091 = vmatprep.subr.bf16.mxu1 %v12269_v61  ;;  %v12324_v61 = vld [vmem:[%s17386_s10 + $0x200] ss:$16 sps:$4 sm:$0xff]  }
 0x769   : > { %9010 = vmatpush1.bf16.msra.mxu0 %v12264_v44  ;;  %v12327_v44 = vld [vmem:[%s17386_s10 + $0x208] ss:$16 sps:$4 sm:$0xff]  }
 0x76a   : > { %9092 = vmatpush1.bf16.msra.mxu1 %v12267_v42  ;;  %9011 = vmatprep.subr.bf16.mxu0 %v12272_v28  ;;  %v12332_v28 = vld [vmem:[%s17386_s10 + $0x224] ss:$16 sps:$4 sm:$0xff]  }
 0x76b   : > { %9093 = vmatprep.subr.bf16.mxu1 %v12275_v23  ;;  %v12335_v23 = vld [vmem:[%s17386_s10 + $0x22c] ss:$16 sps:$4 sm:$0xff]  }
 0x76d   : > { %9012 = vmatpush1.bf16.msra.mxu0 %v12270_v38 }
 0x76e   : > { %9094 = vmatpush1.bf16.msra.mxu1 %v12273_v58  ;;  %9013 = vmatprep.subr.bf16.mxu0 %v12278_v50  ;;  %v12330_v58 = vld [vmem:[%s17386_s10 + $0x220] ss:$16 sps:$4 sm:$0xff]   ;;  %v12333_v50 = vld [vmem:[%s17386_s10 + $0x228] ss:$16 sps:$4 sm:$0xff]  }
 0x76f   : > { %9095 = vmatprep.subr.bf16.mxu1 %v12281_v45  ;;  %v12338_v45 = vld [vmem:[%s17386_s10 + $0x244] ss:$16 sps:$4 sm:$0xff]  }
 0x771   : > { %9014 = vmatpush1.bf16.msra.mxu0 %v12276_v24  ;;  %v12341_v24 = vld [vmem:[%s17386_s10 + $0x24c] ss:$16 sps:$4 sm:$0xff]  }
 0x772   : > { %9096 = vmatpush1.bf16.msra.mxu1 %v12279_v40  ;;  %9015 = vmatprep.subr.bf16.mxu0 %v12284_v34  ;;  %v12336_v40 = vld [vmem:[%s17386_s10 + $0x240] ss:$16 sps:$4 sm:$0xff]   ;;  %v12339_v34 = vld [vmem:[%s17386_s10 + $0x248] ss:$16 sps:$4 sm:$0xff]  }
 0x773   : > { %9097 = vmatprep.subr.bf16.mxu1 %v12287_v46  ;;  %v12344_v46 = vld [vmem:[%s17386_s10 + $0x264] ss:$16 sps:$4 sm:$0xff]  }
 0x775   : > { %9016 = vmatpush1.bf16.msra.mxu0 %v12282_v37  ;;  %v12347_v37 = vld [vmem:[%s17386_s10 + $0x26c] ss:$16 sps:$4 sm:$0xff]  }
 0x776   : > { %9098 = vmatpush1.bf16.msra.mxu1 %v12285_v19  ;;  %9017 = vmatprep.subr.bf16.mxu0 %v12290_v29  ;;  %v12342_v19 = vld [vmem:[%s17386_s10 + $0x260] ss:$16 sps:$4 sm:$0xff]   ;;  %v12345_v29 = vld [vmem:[%s17386_s10 + $0x268] ss:$16 sps:$4 sm:$0xff]  }
 0x777   : > { %9099 = vmatprep.subr.bf16.mxu1 %v12293_v35  ;;  %v12350_v35 = vld [vmem:[%s17386_s10 + $0x284] ss:$16 sps:$4 sm:$0xff]  }
 0x779   : > { %9018 = vmatpush1.bf16.msra.mxu0 %v12288_v36  ;;  %v12353_v36 = vld [vmem:[%s17386_s10 + $0x28c] ss:$16 sps:$4 sm:$0xff]  }
 0x77a   : > { %9100 = vmatpush1.bf16.msra.mxu1 %v12291_v1  ;;  %9019 = vmatprep.subr.bf16.mxu0 %v12296_v14  ;;  %v12348_v1 = vld [vmem:[%s17386_s10 + $0x280] ss:$16 sps:$4 sm:$0xff]   ;;  %v12351_v14 = vld [vmem:[%s17386_s10 + $0x288] ss:$16 sps:$4 sm:$0xff]  }
 0x77b   : > { %9101 = vmatprep.subr.bf16.mxu1 %v12299_v15  ;;  %v12356_v15 = vld [vmem:[%s17386_s10 + $0x2a4] ss:$16 sps:$4 sm:$0xff]  }
 0x77d   : > { %9020 = vmatpush1.bf16.msra.mxu0 %v12294_v8  ;;  %v12359_v8 = vld [vmem:[%s17386_s10 + $0x2ac] ss:$16 sps:$4 sm:$0xff]  }
 0x77e   : > { %9102 = vmatpush1.bf16.msra.mxu1 %v12297_v10  ;;  %9021 = vmatprep.subr.bf16.mxu0 %v12302_v2  ;;  %v12354_v10 = vld [vmem:[%s17386_s10 + $0x2a0] ss:$16 sps:$4 sm:$0xff]   ;;  %v12357_v2 = vld [vmem:[%s17386_s10 + $0x2a8] ss:$16 sps:$4 sm:$0xff]  }
 0x77f   : > { %9103 = vmatprep.subr.bf16.mxu1 %v12305_v49  ;;  %v12362_v49 = vld [vmem:[%s17386_s10 + $0x2c4] ss:$16 sps:$4 sm:$0xff]  }
 0x781   : > { %9022 = vmatpush1.bf16.msra.mxu0 %v12300_v48  ;;  %v12365_v48 = vld [vmem:[%s17386_s10 + $0x2cc] ss:$16 sps:$4 sm:$0xff]  }
 0x782   : > { %9104 = vmatpush1.bf16.msra.mxu1 %v12303_v11  ;;  %9023 = vmatprep.subr.bf16.mxu0 %v12308_v41  ;;  %v12360_v11 = vld [vmem:[%s17386_s10 + $0x2c0] ss:$16 sps:$4 sm:$0xff]   ;;  %v12363_v41 = vld [vmem:[%s17386_s10 + $0x2c8] ss:$16 sps:$4 sm:$0xff]  }
 0x783   : > { %9105 = vmatprep.subr.bf16.mxu1 %v12311_v16  ;;  %v12368_v16 = vld [vmem:[%s17386_s10 + $0x2e4] ss:$16 sps:$4 sm:$0xff]  }
 0x785   : > { %9024 = vmatpush1.bf16.msra.mxu0 %v12306_v9  ;;  %v12371_v9 = vld [vmem:[%s17386_s10 + $0x2ec] ss:$16 sps:$4 sm:$0xff]  }
 0x786   : > { %9106 = vmatpush1.bf16.msra.mxu1 %v12309_v59  ;;  %9025 = vmatprep.subr.bf16.mxu0 %v12314_v31  ;;  %v12366_v59 = vld [vmem:[%s17386_s10 + $0x2e0] ss:$16 sps:$4 sm:$0xff]   ;;  %v12374_v31 = vld [vmem:[%s17386_s10 + $0x304] ss:$16 sps:$4 sm:$0xff]  }
 0x787   : > { %9107 = vmatprep.subr.bf16.mxu1 %v12317_v54  ;;  %v12372_v54 = vld [vmem:[%s17386_s10 + $0x300] ss:$16 sps:$4 sm:$0xff]  }
 0x789   : > { %9026 = vmatpush1.bf16.msra.mxu0 %v12312_v47  ;;  %v12369_v47 = vld [vmem:[%s17386_s10 + $0x2e8] ss:$16 sps:$4 sm:$0xff]  }
 0x78a   : > { %9108 = vmatpush1.bf16.msra.mxu1 %v12315_v25  ;;  %9027 = vmatprep.subr.bf16.mxu0 %v12320_v7  ;;  %v12377_v25 = vld [vmem:[%s17386_s10 + $0x30c] ss:$16 sps:$4 sm:$0xff]   ;;  %v12375_v7 = vld [vmem:[%s17386_s10 + $0x308] ss:$16 sps:$4 sm:$0xff]  }
 0x78b   : > { %9109 = vmatprep.subr.bf16.mxu1 %v12323_v3  ;;  %v12380_v3 = vld [vmem:[%s17386_s10 + $0x324] ss:$16 sps:$4 sm:$0xff]  }
 0x78d   : > { %9028 = vmatpush1.bf16.msra.mxu0 %v12318_v55  ;;  %v12383_v55 = vld [vmem:[%s17386_s10 + $0x32c] ss:$16 sps:$4 sm:$0xff]  }
 0x78e   : > { %9110 = vmatpush1.bf16.msra.mxu1 %v12321_v5  ;;  %9038 = vmatprep.subr.bf16.mxu0 %v12326_v43  ;;  %v12378_v5 = vld [vmem:[%s17386_s10 + $0x320] ss:$16 sps:$4 sm:$0xff]   ;;  %v12381_v43 = vld [vmem:[%s17386_s10 + $0x328] ss:$16 sps:$4 sm:$0xff]  }
 0x78f   : > { %9120 = vmatprep.subr.bf16.mxu1 %v12329_v63  ;;  %v12386_v63 = vld [vmem:[%s17386_s10 + $0x344] ss:$16 sps:$4 sm:$0xff]  }
 0x823   : > { %v7864_v56 = vpop.f32.mrb[176].mxu0 }
 0x824   : > { %v11166_v12 = vadd.f32 %v7864_v56, %v7526_v20  ;;  %v17026_v27 = vpop.f32.mrb[164].mxu1  ;;  %v7866_v0 = vpop.f32.mrb[177].mxu0  ;;  %v12389_v20 = vld [vmem:[%s17386_s10 + $0x34c] ss:$16 sps:$4 sm:$0xff]   ;;  %v12392_v56 = vld [vmem:[%s17386_s10 + $0x364] ss:$16 sps:$4 sm:$0xff]  }
 0x825   : > { %v11167_v62 = vadd.f32 %v7866_v0, %v7530_v32  ;;  %v8194_v30 = vpop.f32.mrb[165].mxu1  ;;  %v7868_v57 = vpop.f32.mrb[178].mxu0  ;;  %v12384_v32 = vld [vmem:[%s17386_s10 + $0x340] ss:$16 sps:$4 sm:$0xff]  }
 0x826   : > { %v8199_v33 = vmax.f32 %v11166_v12, 0.0  ;;  %v11169_v39 = vadd.f32 %v8194_v30, %v7538_v17  ;;  %v8196_v18 = vpop.f32.mrb[166].mxu1  ;;  %v7869_v22 = vpop.f32.mrb[179].mxu0  ;;  %v12387_v17 = vld [vmem:[%s17386_s10 + $0x348] ss:$16 sps:$4 sm:$0xff]  }
 0x827   : > { %v8200_v60 = vmax.f32 %v11167_v62, 0.0  ;;  %v8197_v6 = vpop.f32.mrb[167].mxu1  ;;  %v12395_v12 = vld [vmem:[%s17386_s10 + $0x36c] ss:$16 sps:$4 sm:$0xff]   ;;  %v12390_v0 = vld [vmem:[%s17386_s10 + $0x360] ss:$16 sps:$4 sm:$0xff]  }
 0x828   : > { %v8202_v21 = vmax.f32 %v11169_v39, 0.0  ;;  %v8203_v42 = vpack.c.bf16 %v8199_v33, %v8199_v33  ;;  %v12393_v62 = vld [vmem:[%s17386_s10 + $0x368] ss:$16 sps:$4 sm:$0xff]   ;;  %v12398_v30 = vld [vmem:[%s17386_s10 + $0x384] ss:$16 sps:$4 sm:$0xff]   ;;  %v7533_v18 = vsub.s32 2, %v17723_v13 }
 0x829   : > { %v8204_v26 = vpack.c.bf16 %v8200_v60, %v8200_v60  ;;  %v12401_v57 = vld [vmem:[%s17386_s10 + $0x38c] ss:$16 sps:$4 sm:$0xff]   ;;  %v12396_v33 = vld [vmem:[%s17386_s10 + $0x380] ss:$16 sps:$4 sm:$0xff]   ;;  %v12399_v39 = vld [vmem:[%s17386_s10 + $0x388] ss:$16 sps:$4 sm:$0xff]  }
 0x82a   : > { %v8206_v38 = vpack.c.bf16 %v8202_v21, %v8202_v21  ;;  %v12404_v22 = vld [vmem:[%s17386_s10 + $0x3a4] ss:$16 sps:$4 sm:$0xff]   ;;  %v12407_v60 = vld [vmem:[%s17386_s10 + $0x3ac] ss:$16 sps:$4 sm:$0xff]   ;;  %v12402_v6 = vld [vmem:[%s17386_s10 + $0x3a0] ss:$16 sps:$4 sm:$0xff]  }
 0x82b   : > { %9029 = vmatprep.mubr.bf16.mxu0 %v8204_v26  ;;  %9111 = vmatprep.mubr.bf16.mxu1 %v8204_v26  ;;  %v12405_v21 = vld [vmem:[%s17386_s10 + $0x3a8] ss:$16 sps:$4 sm:$0xff]   ;;  %v7534_v26 = vrot.slane %v17013_v4, %v7533_v18 }
 0x82c   : > { %9030 = vmatmul.mubr.bf16.vlgmr.msra.gmra.mrb[180].mxu0 %v8203_v42  ;;  %9112 = vmatmul.mubr.bf16.vlgmr.msra.gmra.mrb[168].mxu1 %v8203_v42  ;;  %v12408_v42 = vld [vmem:[%s17386_s10 + $0x3c0] ss:$16 sps:$4 sm:$0xff]   ;;  %v12411_v4 = vld [vmem:[%s17386_s10 + $0x3c8] ss:$16 sps:$4 sm:$0xff]  }
 0x82d   : > { %9039 = vmatpush1.bf16.msra.mxu0 %v12324_v61  ;;  %9121 = vmatpush1.bf16.msra.mxu1 %v12327_v44  ;;  %v12410_v61 = vld [vmem:[%s17386_s10 + $0x3c4] ss:$16 sps:$4 sm:$0xff]   ;;  %v12413_v44 = vld [vmem:[%s17386_s10 + $0x3cc] ss:$16 sps:$4 sm:$0xff]  }
 0x82e   : > { %9070 = vmatprep.mubr.bf16.mxu0 %v8206_v38  ;;  %9152 = vmatprep.mubr.bf16.mxu1 %v8206_v38  ;;  %v12419_v38 = vld [vmem:[%s17386_s10 + $0x3ec] ss:$16 sps:$4 sm:$0xff]  }
 0x82f   : > { %9040 = vmatprep.subr.bf16.mxu0 %v12332_v28  ;;  %9122 = vmatprep.subr.bf16.mxu1 %v12335_v23  ;;  %v11168_v28 = vadd.f32 %v17026_v27, %v7534_v26  ;;  %v12416_v23 = vld [vmem:[%s17386_s10 + $0x3e4] ss:$16 sps:$4 sm:$0xff]   ;;  %v12417_v27 = vld [vmem:[%s17386_s10 + $0x3e8] ss:$16 sps:$4 sm:$0xff]  }
 0x831   : > { %9041 = vmatpush1.bf16.msra.mxu0 %v12330_v58  ;;  %9123 = vmatpush1.bf16.msra.mxu1 %v12333_v50  ;;  %v12414_v58 = vld [vmem:[%s17386_s10 + $0x3e0] ss:$16 sps:$4 sm:$0xff]   ;;  %v8201_v50 = vmax.f32 %v11168_v28, 0.0 }
 0x832   : > { %9042 = vmatprep.subr.bf16.mxu0 %v12338_v45  ;;  %9124 = vmatprep.subr.bf16.mxu1 %v12341_v24  ;;  %v12420_v45 = vld [vmem:[%s17388_s12 + $0x40] sm:$0xff]  }
 0x833   : > { %v12421_v24 = vld [vmem:[%s17388_s12 + $0xc0] sm:$0xff]  }
 0x835   : > { %9043 = vmatpush1.bf16.msra.mxu0 %v12336_v40  ;;  %9125 = vmatpush1.bf16.msra.mxu1 %v12339_v34  ;;  %v12422_v40 = vld [vmem:[%s17388_s12] sm:$0xff]  }
 0x836   : > { %9044 = vmatprep.subr.bf16.mxu0 %v12344_v46  ;;  %9126 = vmatprep.subr.bf16.mxu1 %v12347_v37  ;;  %v12423_v34 = vld [vmem:[%s17388_s12 + $0x80] sm:$0xff]   ;;  %v8205_v46 = vpack.c.bf16 %v8201_v50, %v8201_v50  ;;  %v12424_v37 = vld [vmem:[%s17388_s12 + $0x48] sm:$0xff]  }
 0x839   : > { %9045 = vmatpush1.bf16.msra.mxu0 %v12342_v19  ;;  %9127 = vmatpush1.bf16.msra.mxu1 %v12345_v29  ;;  %v12425_v19 = vld [vmem:[%s17388_s12 + $0xc8] sm:$0xff]  }
 0x83a   : > { %9046 = vmatprep.subr.bf16.mxu0 %v12350_v35  ;;  %9128 = vmatprep.subr.bf16.mxu1 %v12353_v36  ;;  %v12426_v29 = vld [vmem:[%s17388_s12 + $0x8] sm:$0xff]   ;;  %v12428_v36 = vld [vmem:[%s17388_s12 + $0x50] sm:$0xff]  }
 0x83b   : > { %v12427_v35 = vld [vmem:[%s17388_s12 + $0x88] sm:$0xff]  }
 0x83d   : > { %9047 = vmatpush1.bf16.msra.mxu0 %v12348_v1  ;;  %9129 = vmatpush1.bf16.msra.mxu1 %v12351_v14  ;;  %v12429_v1 = vld [vmem:[%s17388_s12 + $0xd0] sm:$0xff]  }
 0x83e   : > { %9048 = vmatprep.subr.bf16.mxu0 %v12356_v15  ;;  %9130 = vmatprep.subr.bf16.mxu1 %v12359_v8  ;;  %v12430_v14 = vld [vmem:[%s17388_s12 + $0x10] sm:$0xff]   ;;  %v12432_v8 = vld [vmem:[%s17388_s12 + $0x58] sm:$0xff]  }
 0x83f   : > { %v12431_v15 = vld [vmem:[%s17388_s12 + $0x90] sm:$0xff]  }
 0x841   : > { %9049 = vmatpush1.bf16.msra.mxu0 %v12354_v10  ;;  %9131 = vmatpush1.bf16.msra.mxu1 %v12357_v2  ;;  %v12433_v10 = vld [vmem:[%s17388_s12 + $0xd8] sm:$0xff]  }
 0x842   : > { %9050 = vmatprep.subr.bf16.mxu0 %v12362_v49  ;;  %9132 = vmatprep.subr.bf16.mxu1 %v12365_v48  ;;  %v12434_v2 = vld [vmem:[%s17388_s12 + $0x18] sm:$0xff]   ;;  %v12436_v48 = vld [vmem:[%s17388_s12 + $0x60] sm:$0xff]  }
 0x843   : > { %v12435_v49 = vld [vmem:[%s17388_s12 + $0x98] sm:$0xff]  }
 0x845   : > { %9051 = vmatpush1.bf16.msra.mxu0 %v12360_v11  ;;  %9133 = vmatpush1.bf16.msra.mxu1 %v12363_v41  ;;  %v12437_v11 = vld [vmem:[%s17388_s12 + $0xe0] sm:$0xff]  }
 0x846   : > { %9052 = vmatprep.subr.bf16.mxu0 %v12368_v16  ;;  %9134 = vmatprep.subr.bf16.mxu1 %v12371_v9  ;;  %v12438_v41 = vld [vmem:[%s17388_s12 + $0x20] sm:$0xff]   ;;  %v12440_v9 = vld [vmem:[%s17388_s12 + $0x68] sm:$0xff]  }
 0x847   : > { %v12439_v16 = vld [vmem:[%s17388_s12 + $0xa0] sm:$0xff]  }
 0x849   : > { %9053 = vmatpush1.bf16.msra.mxu0 %v12366_v59  ;;  %9135 = vmatpush1.bf16.msra.mxu1 %v12369_v47  ;;  %v12441_v59 = vld [vmem:[%s17388_s12 + $0xe8] sm:$0xff]  }
 0x84a   : > { %9054 = vmatprep.subr.bf16.mxu0 %v12374_v31  ;;  %9136 = vmatprep.subr.bf16.mxu1 %v12377_v25  ;;  %v12442_v47 = vld [vmem:[%s17388_s12 + $0x28] sm:$0xff]   ;;  %v12444_v25 = vld [vmem:[%s17388_s12 + $0x70] sm:$0xff]  }
 0x84b   : > { %v12443_v31 = vld [vmem:[%s17388_s12 + $0xa8] sm:$0xff]  }
 0x84d   : > { %9055 = vmatpush1.bf16.msra.mxu0 %v12372_v54  ;;  %9137 = vmatpush1.bf16.msra.mxu1 %v12375_v7  ;;  %v12445_v54 = vld [vmem:[%s17388_s12 + $0xf0] sm:$0xff]  }
 0x84e   : > { %9056 = vmatprep.subr.bf16.mxu0 %v12380_v3  ;;  %9138 = vmatprep.subr.bf16.mxu1 %v12383_v55  ;;  %v12446_v7 = vld [vmem:[%s17388_s12 + $0x30] sm:$0xff]   ;;  %v12448_v55 = vld [vmem:[%s17388_s12 + $0x78] sm:$0xff]  }
 0x84f   : > { %v12447_v3 = vld [vmem:[%s17388_s12 + $0xb0] sm:$0xff]  }
 0x851   : > { %9057 = vmatpush1.bf16.msra.mxu0 %v12378_v5  ;;  %9139 = vmatpush1.bf16.msra.mxu1 %v12381_v43  ;;  %v12449_v5 = vld [vmem:[%s17388_s12 + $0xf8] sm:$0xff]  }
 0x852   : > { %9058 = vmatprep.subr.bf16.mxu0 %v12386_v63  ;;  %9140 = vmatprep.subr.bf16.mxu1 %v12389_v20  ;;  %v12450_v43 = vld [vmem:[%s17388_s12 + $0x38] sm:$0xff]   ;;  %v8335_v20 = vld [vmem:[%s17387_s11] sm:$0xf] }
 0x853   : > { %v12451_v63 = vld [vmem:[%s17388_s12 + $0xb8] sm:$0xff]  }
 0x855   : > { %9059 = vmatpush1.bf16.msra.mxu0 %v12384_v32  ;;  %9141 = vmatpush1.bf16.msra.mxu1 %v12387_v17  ;;  %v8980_v32 = vrot.slane %v8335_v20, %v7525_v51  ;;  %v8988_v17 = vrot.slane %v8335_v20, %v7533_v18 }
 0x856   : > { %9060 = vmatprep.subr.bf16.mxu0 %v12392_v56  ;;  %9142 = vmatprep.subr.bf16.mxu1 %v12395_v12  ;;  %v8984_v56 = vrot.slane %v8335_v20, %v7529_v52  ;;  %v8992_v12 = vrot.slane %v8335_v20, %v7537_v53 }
 0x859   : > { %9061 = vmatpush1.bf16.msra.mxu0 %v12390_v0  ;;  %9143 = vmatpush1.bf16.msra.mxu1 %v12393_v62 }
 0x85a   : > { %9062 = vmatprep.subr.bf16.mxu0 %v12398_v30  ;;  %9144 = vmatprep.subr.bf16.mxu1 %v12401_v57 }
 0x85d   : > { %9063 = vmatpush1.bf16.msra.mxu0 %v12396_v33  ;;  %9145 = vmatpush1.bf16.msra.mxu1 %v12399_v39 }
 0x85e   : > { %9064 = vmatprep.subr.bf16.mxu0 %v12404_v22  ;;  %9146 = vmatprep.subr.bf16.mxu1 %v12407_v60 }
 0x861   : > { %9065 = vmatpush1.bf16.msra.mxu0 %v12402_v6  ;;  %9147 = vmatpush1.bf16.msra.mxu1 %v12405_v21 }
 0x862   : > { %9066 = vmatprep.subr.bf16.mxu0 %v12410_v61  ;;  %9148 = vmatprep.subr.bf16.mxu1 %v12413_v44 }
 0x865   : > { %9067 = vmatpush1.bf16.msra.mxu0 %v12408_v42  ;;  %9149 = vmatpush1.bf16.msra.mxu1 %v12411_v4 }
 0x866   : > { %9068 = vmatprep.subr.bf16.mxu0 %v12416_v23  ;;  %9150 = vmatprep.subr.bf16.mxu1 %v12419_v38  ;;  %v9233_v38 = vld [vmem:[%s17389_s13] sm:$0x1] }
 0x869   : > { %9069 = vmatpush1.bf16.msra.mxu0 %v12414_v58  ;;  %9151 = vmatpush1.bf16.msra.mxu1 %v12417_v27 }
 0x86a   : > { %11078 = vmatprep.subr.bf16.mxu0 %v12420_v45  ;;  %11100 = vmatprep.subr.bf16.mxu1 %v12421_v24 }
 0x86c   : > { %9071 = vmatmul.mubr.bf16.vlgmr.msra.gmra.mrb[180].mxu0 %v8205_v46  ;;  %9153 = vmatmul.mubr.bf16.vlgmr.msra.gmra.mrb[168].mxu1 %v8205_v46 }
 0x86d   : > { %11079 = vmatpush3.bf16.msra.mxu0 %v12422_v40  ;;  %11101 = vmatpush3.bf16.msra.mxu1 %v12423_v34 }
 0x86e   : > { %11080 = vmatprep.subr.bf16.mxu0 %v12424_v37  ;;  %11102 = vmatprep.subr.bf16.mxu1 %v12425_v19 }
 0x871   : > { %11081 = vmatpush3.bf16.msra.mxu0 %v12426_v29  ;;  %11103 = vmatpush3.bf16.msra.mxu1 %v12427_v35 }
 0x872   : > { %11082 = vmatprep.subr.bf16.mxu0 %v12428_v36  ;;  %11104 = vmatprep.subr.bf16.mxu1 %v12429_v1 }
 0x875   : > { %11083 = vmatpush3.bf16.msra.mxu0 %v12430_v14  ;;  %11105 = vmatpush3.bf16.msra.mxu1 %v12431_v15 }
 0x876   : > { %11084 = vmatprep.subr.bf16.mxu0 %v12432_v8  ;;  %11106 = vmatprep.subr.bf16.mxu1 %v12433_v10 }
 0x879   : > { %11085 = vmatpush3.bf16.msra.mxu0 %v12434_v2  ;;  %11107 = vmatpush3.bf16.msra.mxu1 %v12435_v49 }
 0x87a   : > { %11086 = vmatprep.subr.bf16.mxu0 %v12436_v48  ;;  %11108 = vmatprep.subr.bf16.mxu1 %v12437_v11 }
 0x87d   : > { %11087 = vmatpush3.bf16.msra.mxu0 %v12438_v41  ;;  %11109 = vmatpush3.bf16.msra.mxu1 %v12439_v16 }
 0x87e   : > { %11088 = vmatprep.subr.bf16.mxu0 %v12440_v9  ;;  %11110 = vmatprep.subr.bf16.mxu1 %v12441_v59 }
 0x881   : > { %11089 = vmatpush3.bf16.msra.mxu0 %v12442_v47  ;;  %11111 = vmatpush3.bf16.msra.mxu1 %v12443_v31 }
 0x882   : > { %11090 = vmatprep.subr.bf16.mxu0 %v12444_v25  ;;  %11112 = vmatprep.subr.bf16.mxu1 %v12445_v54 }
 0x885   : > { %11091 = vmatpush3.bf16.msra.mxu0 %v12446_v7  ;;  %11113 = vmatpush3.bf16.msra.mxu1 %v12447_v3 }
 0x886   : > { %11092 = vmatprep.subr.bf16.mxu0 %v12448_v55  ;;  %11114 = vmatprep.subr.bf16.mxu1 %v12449_v5 }
 0x889   : > { %11093 = vmatpush3.bf16.msra.mxu0 %v12450_v43  ;;  %11115 = vmatpush3.bf16.msra.mxu1 %v12451_v63 }
 0x93f   : > { %v9072_v0 = vpop.f32.mrb[180].mxu0  ;;  %v9154_v62 = vpop.f32.mrb[168].mxu1 }
 0x940   : > { %v11170_v30 = vadd.f32 %v9072_v0, %v8980_v32  ;;  %v11172_v57 = vadd.f32 %v9154_v62, %v8988_v17  ;;  %v9074_v33 = vpop.f32.mrb[181].mxu0  ;;  %v9156_v39 = vpop.f32.mrb[169].mxu1 }
 0x941   : > { %v11171_v22 = vadd.f32 %v9074_v33, %v8984_v56  ;;  %v11173_v60 = vadd.f32 %v9156_v39, %v8992_v12  ;;  %v9076_v6 = vpop.f32.mrb[182].mxu0  ;;  %v9158_v51 = vpop.f32.mrb[170].mxu1 }
 0x942   : > { %v9161_v21 = vmax.f32 %v11170_v30, 0.0  ;;  %v9163_v26 = vmax.f32 %v11172_v57, 0.0  ;;  %v9077_v18 = vpop.f32.mrb[183].mxu0  ;;  %v9159_v61 = vpop.f32.mrb[171].mxu1 }
 0x943   : > { %v9162_v44 = vmax.f32 %v11171_v22, 0.0  ;;  %v9164_v52 = vmax.f32 %v11173_v60, 0.0 }
 0x944   : > { %v9165_v53 = vpack.c.bf16 %v9161_v21, %v9161_v21  ;;  %v9167_v4 = vpack.c.bf16 %v9163_v26, %v9163_v26 }
 0x945   : > { %v9166_v42 = vpack.c.bf16 %v9162_v44, %v9162_v44  ;;  %v9168_v13 = vpack.c.bf16 %v9164_v52, %v9164_v52 }
 0x947   : > { %9458 = vmatprep.mubr.bf16.mxu0 %v9166_v42  ;;  %9498 = vmatprep.mubr.bf16.mxu1 %v9168_v13 }
 0x948   : > { %9459 = vmatmul.mubr.bf16.vlgmr.msra.gmra.mrb[184].mxu0 %v9165_v53  ;;  %9499 = vmatmul.mubr.bf16.vlgmr.msra.gmra.mrb[172].mxu1 %v9167_v4 }
 0xa1b   : > { %v11094_v28 = vpop.f32.mrb[184].mxu0  ;;  %v11116_v23 = vpop.f32.mrb[172].mxu1 }
 0xa1c   : > { %v11095_v58 = vpop.f32.mrb[185].mxu0  ;;  %v11117_v27 = vpop.f32.mrb[173].mxu1 }
 0xa1d   : > { %v11096_v50 = vadd.f32 %v11095_v58, %v11094_v28  ;;  %v11118_v45 = vadd.f32 %v11117_v27, %v11116_v23  ;;  %v11097_v24 = vpop.f32.mrb[186].mxu0  ;;  %v11119_v40 = vpop.f32.mrb[174].mxu1 }
 0xa1e   : > { %v11098_v34 = vpop.f32.mrb[187].mxu0  ;;  %v11120_v46 = vpop.f32.mrb[175].mxu1 }
 0xa1f   : > { %v9461_v37 = vadd.f32 %v11096_v50, %v9233_v38 }
 0xa21   : > { %v9501_v19 = vadd.f32 %v11118_v45, %v9461_v37 }
 0xa23   : > { %9506 = vst [vmem:[%s459_s21] sm:$0x1] %v9501_v19 }
 0xa24   : > { %12465 = shalt.err (!%p12462_p3)
}
 0xa25   : > { %s12466_s0 = scalar_lea.hbm %s17334_s25, 16  ;;  %s12470_s21 = scalar_lea.hbm %s17390_s14, 32 }
 0xa26   : > { %p12467_p4 = scmp.ne.s32.totalorder %s17334_s25, %s12466_s0  ;;  %p12471_p9 = scmp.lt.u32.totalorder %s17334_s25, %s17390_s14 }
 0xa27   : > { %p12472_p10 = scmp.lt.u32.totalorder %s12470_s21, %s12466_s0  ;;  %p12474_p12 = scmp.lt.u32.totalorder %s12466_s0, %s17334_s25 }
 0xa28   : > { %p12468_p7 = pnand %p12467_p4, %p12631_p5 }
 0xa29   : > { %p12473_p11 = por %p12472_p10, %p12471_p9 }
 0xa2a   : > { %p12469_p8 = pneg %p12468_p7 }
 0xa2b   : > { %p12475_p13 = por %p12474_p12, %p12473_p11 }
 0xa2d   : > { %p12476_p0 = pnand %p12475_p13, %p12469_p8 }
 0xa2f   : > { %12479 = shalt.err (!%p12476_p0)
}
 0xa30   : > { %11240 = dma.vmem_to_hbm [thread:$0]  (%p12631_p5), %s17336_s15, 16, %s17334_s25, %s9508_s26  }
 0xa31 PF: > { %p11246_p1 = scmp.ge.s32.totalorder %s12514_s16, 2  ;;  %s9532_s17 = sand.u32 1, %s12502_s29  }
 0xa32   : > { %s9533_s18 = scalar_lea.sflag [#allocation3], %s9532_s17 }
 0xa33   : > { %p11243_p2 = pnand %p11246_p1, %p12635_p6 }
 0xa35   : > { %12497 = dma.done.wait (!%p11243_p2), %s9533_s18, 16  }
 0xa36   : > { %12499 = vsyncadd (!%p11243_p2), %s9533_s18, 4294967280  ;;  %s17725_s16 = sld [smem:[#allocation6_spill]]  ;;  %s17726_s20 = sld [smem:[#allocation5_spill]] }
 0xa37   : > { %s17727_s15 = sld [smem:[#allocation7_spill]]  ;;  %s17728_s29 = smov %s12506_s30 }
 0xa3c   : > { %p24_p3 = scmp.ge.s32.totalorder %s17725_s16, 4   ;;  %s17729_s30 = smov %s17726_s20 }
 0xa3e   :  { %26 = sbr.rel (!%p24_p3) target bundleno = 5 (0x5), region = 111 }
 0xa45   :  { %9537 = vsyncpa [#allocation3], 1 }
 0xa46   :  { %9539 = vsyncpa [#allocation3 + $0x1], 1 }

</bundles_post_ra>
